<compile_context>
chip_gen: v7x
topology: tpu7x:2x2x1
jax: 0.10.0
libtpu: 0.0.40
codegen_flags: <defaults>
</compile_context>

<pallas_src>
from functools import partial

import numpy as np
import jax
import jax.numpy as jnp
from jax.experimental import pallas as pl
from jax.experimental.pallas import tpu as pltpu

H = 768            # BERT hidden size (fixed by the module: fc1 = Linear(768*4, 768))
HA = 384           # attention MLP hidden size (ori_att / re_att)
NUM_CLASSES = 6    # fc2 output
OUT_PAD = 128      # lane-padded fc2 output width


# ----------------------------- fused Pallas kernel ---------------------------

def _fused_forward_kernel(word_ref, mask_ref, hid_ref,
                          aw1_ref, ab1_ref, aw2_ref,
                          cw_ref, cb_ref,
                          f1w_ref, f1b_ref, f2w_ref, f2b_ref,
                          o_ref, mix_ref):
    """ori/re attention pooling + cnnl/cnnr stub + fc1/ReLU/fc2, all in VMEM.

    word_ref : (B, Lp, H) f32   gathered words (CLS / token-103 removed)
    mask_ref : (B, Lp)    f32   gathered attention mask (0/1)
    hid_ref  : (B, L, H)  f32   BERT hidden layer feeding cnnl/cnnr
    aw1_ref  : (H, 2*HA)  bf16  [ori_att.w1 | re_att.w1]
    ab1_ref  : (1, 2*HA)  f32   [ori_att.b1 | re_att.b1]
    aw2_ref  : (1, 2*HA)  f32   [ori_att.w2^T | re_att.w2^T]  (lane-major)
    cw_ref   : (H, 2*H)   bf16  [cnnl.w | cnnr.w]
    cb_ref   : (1, 2*H)   f32   [cnnl.b | cnnr.b]
    f1w_ref  : (4*H, H)   bf16  fc1 weight
    f1b_ref  : (1, H)     f32   fc1 bias
    f2w_ref  : (H, 128)   bf16  fc2 weight, zero-padded from 6 -> 128 cols
    f2b_ref  : (1, 128)   f32   fc2 bias,   zero-padded
    o_ref    : (B, 128)   f32   padded logits (valid columns: [:6])
    mix_ref  : (B, 4*H)   f32   VMEM scratch holding concat[ori, ocnn, re, rcnn]
    """
    word = word_ref[...]                                   # (B, Lp, H) f32
    mask = mask_ref[...]                                   # (B, Lp)    f32

    # --- fused ori|re attention scoring: one matmul vs [ori_w1 | re_w1] ------
    h = jnp.tanh(
        jnp.einsum('blh,hk->blk', word.astype(jnp.bfloat16), aw1_ref[...],
                   preferred_element_type=jnp.float32)
        + ab1_ref[...])                                    # (B, Lp, 2*HA) f32
    hw = h * aw2_ref[...]                                  # lane-broadcast (1, 2*HA)
    s_ori = jnp.sum(hw[..., :HA], axis=-1)                 # (B, Lp)
    s_re = jnp.sum(hw[..., HA:], axis=-1)                  # (B, Lp)

    def masked_softmax_pool(s):
        # masked_fill(mask == 0, -inf) -> softmax(dim=1) -> bmm(word^T, att)
        s = jnp.where(mask > 0, s, jnp.float32(-1e30))     # finite fill (no NaN path)
        s = s - jnp.max(s, axis=1, keepdims=True)
        e = jnp.exp(s)
        att = e / jnp.sum(e, axis=1, keepdims=True)
        return jnp.sum(att[:, :, None] * word, axis=1)     # (B, H)

    ori = masked_softmax_pool(s_ori)
    re_ = masked_softmax_pool(s_re)

    # --- fused cnnl|cnnr stub: shared mean-pool, one matmul vs [cnnl | cnnr] --
    # TODO(synk): cnnl / cnnr are constructor-injected modules whose definition
    # is not in the source; stubbed as token mean-pool + Linear(768, 768) so
    # the downstream concat/fc1(768*4) semantics stay exact.
    pooled = jnp.mean(hid_ref[...], axis=1)                # (B, H) f32
    cnn = jnp.dot(pooled.astype(jnp.bfloat16), cw_ref[...],
                  preferred_element_type=jnp.float32) + cb_ref[...]   # (B, 2*H)

    # --- head: concat [ori, ocnn, re, rcnn] into VMEM, one K=4H matmul --------
    mix_ref[:, 0 * H:1 * H] = ori
    mix_ref[:, 1 * H:2 * H] = cnn[:, :H]                   # ocnn
    mix_ref[:, 2 * H:3 * H] = re_
    mix_ref[:, 3 * H:4 * H] = cnn[:, H:]                   # rcnn

    z = jnp.dot(mix_ref[...].astype(jnp.bfloat16), f1w_ref[...],
                preferred_element_type=jnp.float32) + f1b_ref[...]
    z = jnp.maximum(z, 0.0)                                # ReLU (Dropout = id in eval)
    o_ref[...] = jnp.dot(z.astype(jnp.bfloat16), f2w_ref[...],
                         preferred_element_type=jnp.float32) + f2b_ref[...]


def fused_forward(word3, sel_mask, hidden_layer, q):
    B = word3.shape[0]
    out_pad = pl.pallas_call(
        _fused_forward_kernel,
        out_shape=jax.ShapeDtypeStruct((B, OUT_PAD), jnp.float32),
        scratch_shapes=[pltpu.VMEM((B, 4 * H), jnp.float32)],
        compiler_params=pltpu.CompilerParams(vmem_limit_bytes=24 * 1024 * 1024),
    )(word3, sel_mask, hidden_layer,
      q['att_w1'], q['att_b1'], q['att_w2'],
      q['cnn_w'], q['cnn_b'],
      q['fc1_w'], q['fc1_b'], q['fc2_w'], q['fc2_b'])
    return out_pad[:, :NUM_CLASSES]


# ------------------------------ device-side get_word -------------------------

def get_word(last_hidden_state, attention_mask, input_ids, length):
    """Device-side Model.get_word: drop CLS (index 0) and the position of token
    103 from each row, keeping token order.  Assumes one 103 per row and a
    uniform `length` (mirrors the original code's sen['length'][0])."""
    sep_loc = jnp.argmax(input_ids == 103, axis=1).astype(jnp.int32)   # (B,)
    k = jnp.arange(length - 2, dtype=jnp.int32)[None, :]               # (1, Lp)
    sel = jnp.where(k + 1 < sep_loc[:, None], k + 1, k + 2)            # (B, Lp)
    word = jnp.take_along_axis(last_hidden_state, sel[:, :, None], axis=1)
    m = jnp.take_along_axis(attention_mask, sel, axis=1).astype(jnp.float32)
    return word, m


# ------------------------------ params ---------------------------------------

def init_params(key):
    ks = jax.random.split(key, 8)

    def lin(k, fan_in, fan_out):
        kw, kb = jax.random.split(k)
        w = jax.random.normal(kw, (fan_in, fan_out), jnp.float32) / np.sqrt(fan_in)
        b = jax.random.normal(kb, (1, fan_out), jnp.float32) * 0.01
        return w, b

    p = {}
    p['ori_w1'], p['ori_b1'] = lin(ks[0], H, HA)
    p['ori_w2'] = jax.random.normal(ks[1], (HA, 1), jnp.float32) / np.sqrt(HA)
    p['re_w1'], p['re_b1'] = lin(ks[2], H, HA)
    p['re_w2'] = jax.random.normal(ks[3], (HA, 1), jnp.float32) / np.sqrt(HA)
    p['cnnl_w'], p['cnnl_b'] = lin(ks[4], H, H)
    p['cnnr_w'], p['cnnr_b'] = lin(ks[5], H, H)
    p['fc1_w'], p['fc1_b'] = lin(ks[6], 4 * H, H)
    p['fc2_w'], p['fc2_b'] = lin(ks[7], H, NUM_CLASSES)
    return p


def pack_params(p):
    """Fuse twin branches by output-dim concatenation, cast matmul weights to
    bf16 (f32 accumulation in-kernel), keep biases / VPU operands in f32, and
    lane-pad fc2 to 128 columns."""
    q = {}
    q['att_w1'] = jnp.concatenate([p['ori_w1'], p['re_w1']], axis=1).astype(jnp.bfloat16)
    q['att_b1'] = jnp.concatenate([p['ori_b1'], p['re_b1']], axis=1)                 # f32
    q['att_w2'] = jnp.concatenate([p['ori_w2'].T, p['re_w2'].T], axis=1)             # f32 (1, 2*HA)
    q['cnn_w'] = jnp.concatenate([p['cnnl_w'], p['cnnr_w']], axis=1).astype(jnp.bfloat16)
    q['cnn_b'] = jnp.concatenate([p['cnnl_b'], p['cnnr_b']], axis=1)                 # f32
    q['fc1_w'] = p['fc1_w'].astype(jnp.bfloat16)
    q['fc1_b'] = p['fc1_b']                                                          # f32
    f2w = jnp.zeros((H, OUT_PAD), jnp.float32).at[:, :NUM_CLASSES].set(p['fc2_w'])
    f2b = jnp.zeros((1, OUT_PAD), jnp.float32).at[:, :NUM_CLASSES].set(p['fc2_b'])
    q['fc2_w'] = f2w.astype(jnp.bfloat16)
    q['fc2_b'] = f2b                                                                 # f32
    return q


# ------------------------------ forward (single jit) -------------------------

@partial(jax.jit, static_argnames=("length",))
def forward_eval(q, last_hidden_state, hidden_layer, input_ids, attention_mask, length):
    word3, sel_mask = get_word(last_hidden_state, attention_mask, input_ids, length)
    # dropout(0.3) is identity at inference
    return fused_forward(word3, sel_mask, hidden_layer, q)


# ------------------------------ pure-JAX reference ---------------------------

def reference_eval(p, last_hidden_state, hidden_layer, input_ids, attention_mask, length):
    word3, sel_mask = get_word(last_hidden_state, attention_mask, input_ids, length)

    def bf(w):  # matmul weights are deployed in bf16; mirror that rounding
        return w.astype(jnp.bfloat16).astype(jnp.float32)

    def att(x, m, w1, b1, w2):
        h = jnp.tanh(x @ bf(w1) + b1)
        s = jnp.sum(h * w2[:, 0][None, None, :], axis=-1)
        s = jnp.where(m > 0, s, -1e30)
        s = s - jnp.max(s, axis=1, keepdims=True)
        e = jnp.exp(s)
        a = e / jnp.sum(e, axis=1, keepdims=True)
        return jnp.sum(a[:, :, None] * x, axis=1)

    def cnn(hd, w, b):
        return jnp.mean(hd, axis=1) @ bf(w) + b

    ori = att(word3, sel_mask, p['ori_w1'], p['ori_b1'], p['ori_w2'])
    re_ = att(word3, sel_mask, p['re_w1'], p['re_b1'], p['re_w2'])
    ocnn = cnn(hidden_layer, p['cnnl_w'], p['cnnl_b'])
    rcnn = cnn(hidden_layer, p['cnnr_w'], p['cnnr_b'])
    mixed = jnp.concatenate([ori, ocnn, re_, rcnn], axis=1)
    z = jnp.maximum(mixed @ bf(p['fc1_w']) + p['fc1_b'], 0.0)
    return z @ bf(p['fc2_w']) + p['fc2_b']


# --------------------------------- main ---------------------------------------

if __name__ == "__main__":
    B, L = 2, 8
    key = jax.random.PRNGKey(0)
    kp, k1, k2 = jax.random.split(key, 3)
    params = init_params(kp)
    packed = pack_params(params)

    # Synthetic "BERT outputs" (AutoModel is an external pretrained encoder):
    # last_hidden_state feeds the attention pooling; hidden_layer feeds cnnl/cnnr.
    last_hidden_state = jax.random.normal(k1, (B, L, H), jnp.float32)
    hidden_layer = jax.random.normal(k2, (B, L, H), jnp.float32)

    input_ids = np.full((B, L), 5, dtype=np.int32)
    input_ids[:, 0] = 101            # CLS at position 0 (dropped by get_word)
    input_ids[0, 5] = 103            # token 103 position (dropped by get_word)
    input_ids[1, 6] = 103
    input_ids = jnp.asarray(input_ids)

    attention_mask = np.ones((B, L), dtype=np.int32)
    attention_mask[0, 7] = 0         # padding to exercise the masked softmax
    attention_mask = jnp.asarray(attention_mask)

    length = L                       # sen['length'][0] (uniform, static)

    out = forward_eval(packed, last_hidden_state, hidden_layer,
                       input_ids, attention_mask, length=length)
    out = jax.block_until_ready(out)

    ref = reference_eval(params, last_hidden_state, hidden_layer,
                         input_ids, attention_mask, length)
    assert out.shape == (B, NUM_CLASSES)
    np.testing.assert_allclose(np.asarray(out), np.asarray(ref), rtol=2e-2, atol=2e-2)
    print("KERNEL_OK")
</pallas_src>

<mosaic_0001>
module attributes {stable_mosaic.version = 11 : i64} {
  func.func @_fused_forward_kernel(%arg0: memref<2x6x768xf32, #tpu.memory_space<vmem>>, %arg1: memref<2x6xf32, #tpu.memory_space<vmem>>, %arg2: memref<2x8x768xf32, #tpu.memory_space<vmem>>, %arg3: memref<768x768xbf16, #tpu.memory_space<vmem>>, %arg4: memref<1x768xf32, #tpu.memory_space<vmem>>, %arg5: memref<1x768xf32, #tpu.memory_space<vmem>>, %arg6: memref<768x1536xbf16, #tpu.memory_space<vmem>>, %arg7: memref<1x1536xf32, #tpu.memory_space<vmem>>, %arg8: memref<3072x768xbf16, #tpu.memory_space<vmem>>, %arg9: memref<1x768xf32, #tpu.memory_space<vmem>>, %arg10: memref<768x128xbf16, #tpu.memory_space<vmem>>, %arg11: memref<1x128xf32, #tpu.memory_space<vmem>>, %arg12: memref<2x128xf32, #tpu.memory_space<vmem>>, %arg13: memref<2x3072xf32, #tpu.memory_space<vmem>>) attributes {dimension_semantics = [], scalar_prefetch = 0 : i64, scratch_operands = 1 : i64, tpu.core_type = #tpu.core_type<tc>} {
    %c0 = arith.constant 0 : index
    %c0_0 = arith.constant 0 : index
    %c0_1 = arith.constant 0 : index
    %0 = vector.load %arg0[%c0, %c0_0, %c0_1] : memref<2x6x768xf32, #tpu.memory_space<vmem>>, vector<2x6x768xf32>
    %c0_2 = arith.constant 0 : index
    %c0_3 = arith.constant 0 : index
    %1 = vector.load %arg1[%c0_2, %c0_3] : memref<2x6xf32, #tpu.memory_space<vmem>>, vector<2x6xf32>
    %2 = arith.truncf %0 : vector<2x6x768xf32> to vector<2x6x768xbf16>
    %c0_4 = arith.constant 0 : index
    %c0_5 = arith.constant 0 : index
    %3 = vector.load %arg3[%c0_4, %c0_5] : memref<768x768xbf16, #tpu.memory_space<vmem>>, vector<768x768xbf16>
    "tpu.trace_start"() <{level = 10 : i32, message = "blh,hk->blk"}> : () -> ()
    %cst = arith.constant dense<0.000000e+00> : vector<2x6x768xf32>
    %4 = tpu.matmul %2, %3, %cst {dimension_numbers = #tpu.dot_dimension_numbers<[2], [0], [0, 1], [1], [0, 0, 0, 1, 1, 1], [], []>} : vector<2x6x768xbf16>, vector<768x768xbf16>, vector<2x6x768xf32> -> vector<2x6x768xf32>
    "tpu.trace_stop"() : () -> ()
    %c0_6 = arith.constant 0 : index
    %c0_7 = arith.constant 0 : index
    %5 = vector.load %arg4[%c0_6, %c0_7] : memref<1x768xf32, #tpu.memory_space<vmem>>, vector<1x768xf32>
    %6 = vector.shape_cast %5 : vector<1x768xf32> to vector<1x1x768xf32>
    %7 = vector.broadcast %6 : vector<1x1x768xf32> to vector<2x6x768xf32>
    %8 = arith.addf %4, %7 : vector<2x6x768xf32>
    %9 = math.tanh %8 : vector<2x6x768xf32>
    %c0_8 = arith.constant 0 : index
    %c0_9 = arith.constant 0 : index
    %10 = vector.load %arg5[%c0_8, %c0_9] : memref<1x768xf32, #tpu.memory_space<vmem>>, vector<1x768xf32>
    %11 = vector.shape_cast %10 : vector<1x768xf32> to vector<1x1x768xf32>
    %12 = vector.broadcast %11 : vector<1x1x768xf32> to vector<2x6x768xf32>
    %13 = arith.mulf %9, %12 : vector<2x6x768xf32>
    %14 = vector.extract_strided_slice %13 {offsets = [0, 0, 0], sizes = [2, 6, 384], strides = [1, 1, 1]} : vector<2x6x768xf32> to vector<2x6x384xf32>
    %cst_10 = arith.constant dense<0.000000e+00> : vector<2x6xf32>
    %15 = vector.multi_reduction <add>, %14, %cst_10 [2] : vector<2x6x384xf32> to vector<2x6xf32>
    %16 = vector.extract_strided_slice %13 {offsets = [0, 0, 384], sizes = [2, 6, 384], strides = [1, 1, 1]} : vector<2x6x768xf32> to vector<2x6x384xf32>
    %cst_11 = arith.constant dense<0.000000e+00> : vector<2x6xf32>
    %17 = vector.multi_reduction <add>, %16, %cst_11 [2] : vector<2x6x384xf32> to vector<2x6xf32>
    %cst_12 = arith.constant 0.000000e+00 : f32
    %18 = vector.broadcast %cst_12 : f32 to vector<2x6xf32>
    %19 = arith.cmpf ogt, %1, %18 : vector<2x6xf32>
    %cst_13 = arith.constant -1.000000e+30 : f32
    %20 = vector.broadcast %cst_13 : f32 to vector<2x6xf32>
    %21 = arith.select %19, %15, %20 : vector<2x6xi1>, vector<2x6xf32>
    %cst_14 = arith.constant dense<0xFF800000> : vector<2xf32>
    %22 = vector.multi_reduction <maximumf>, %21, %cst_14 [1] : vector<2x6xf32> to vector<2xf32>
    %23 = vector.shape_cast %22 : vector<2xf32> to vector<2x1xf32>
    %24 = vector.broadcast %23 : vector<2x1xf32> to vector<2x6xf32>
    %25 = arith.subf %21, %24 : vector<2x6xf32>
    %26 = math.exp %25 : vector<2x6xf32>
    %cst_15 = arith.constant dense<0.000000e+00> : vector<2xf32>
    %27 = vector.multi_reduction <add>, %26, %cst_15 [1] : vector<2x6xf32> to vector<2xf32>
    %28 = vector.shape_cast %27 : vector<2xf32> to vector<2x1xf32>
    %29 = vector.broadcast %28 : vector<2x1xf32> to vector<2x6xf32>
    %30 = arith.divf %26, %29 : vector<2x6xf32>
    %31 = vector.shape_cast %30 : vector<2x6xf32> to vector<2x6x1xf32>
    %32 = vector.broadcast %31 : vector<2x6x1xf32> to vector<2x6x768xf32>
    %33 = arith.mulf %32, %0 : vector<2x6x768xf32>
    %cst_16 = arith.constant dense<0.000000e+00> : vector<2x768xf32>
    %34 = vector.multi_reduction <add>, %33, %cst_16 [1] : vector<2x6x768xf32> to vector<2x768xf32>
    %cst_17 = arith.constant 0.000000e+00 : f32
    %35 = vector.broadcast %cst_17 : f32 to vector<2x6xf32>
    %36 = arith.cmpf ogt, %1, %35 : vector<2x6xf32>
    %cst_18 = arith.constant -1.000000e+30 : f32
    %37 = vector.broadcast %cst_18 : f32 to vector<2x6xf32>
    %38 = arith.select %36, %17, %37 : vector<2x6xi1>, vector<2x6xf32>
    %cst_19 = arith.constant dense<0xFF800000> : vector<2xf32>
    %39 = vector.multi_reduction <maximumf>, %38, %cst_19 [1] : vector<2x6xf32> to vector<2xf32>
    %40 = vector.shape_cast %39 : vector<2xf32> to vector<2x1xf32>
    %41 = vector.broadcast %40 : vector<2x1xf32> to vector<2x6xf32>
    %42 = arith.subf %38, %41 : vector<2x6xf32>
    %43 = math.exp %42 : vector<2x6xf32>
    %cst_20 = arith.constant dense<0.000000e+00> : vector<2xf32>
    %44 = vector.multi_reduction <add>, %43, %cst_20 [1] : vector<2x6xf32> to vector<2xf32>
    %45 = vector.shape_cast %44 : vector<2xf32> to vector<2x1xf32>
    %46 = vector.broadcast %45 : vector<2x1xf32> to vector<2x6xf32>
    %47 = arith.divf %43, %46 : vector<2x6xf32>
    %48 = vector.shape_cast %47 : vector<2x6xf32> to vector<2x6x1xf32>
    %49 = vector.broadcast %48 : vector<2x6x1xf32> to vector<2x6x768xf32>
    %50 = arith.mulf %49, %0 : vector<2x6x768xf32>
    %cst_21 = arith.constant dense<0.000000e+00> : vector<2x768xf32>
    %51 = vector.multi_reduction <add>, %50, %cst_21 [1] : vector<2x6x768xf32> to vector<2x768xf32>
    %c0_22 = arith.constant 0 : index
    %c0_23 = arith.constant 0 : index
    %c0_24 = arith.constant 0 : index
    %52 = vector.load %arg2[%c0_22, %c0_23, %c0_24] : memref<2x8x768xf32, #tpu.memory_space<vmem>>, vector<2x8x768xf32>
    %cst_25 = arith.constant dense<0.000000e+00> : vector<2x768xf32>
    %53 = vector.multi_reduction <add>, %52, %cst_25 [1] : vector<2x8x768xf32> to vector<2x768xf32>
    %cst_26 = arith.constant 8.000000e+00 : f32
    %54 = vector.broadcast %cst_26 : f32 to vector<2x768xf32>
    %55 = arith.divf %53, %54 : vector<2x768xf32>
    %56 = arith.truncf %55 : vector<2x768xf32> to vector<2x768xbf16>
    %c0_27 = arith.constant 0 : index
    %c0_28 = arith.constant 0 : index
    %57 = vector.load %arg6[%c0_27, %c0_28] : memref<768x1536xbf16, #tpu.memory_space<vmem>>, vector<768x1536xbf16>
    %cst_29 = arith.constant dense<0.000000e+00> : vector<2x1536xf32>
    %58 = tpu.matmul %56, %57, %cst_29 {dimension_numbers = #tpu.dot_dimension_numbers<[1], [0], [0], [1], [0, 0, 1, 1], [], []>} : vector<2x768xbf16>, vector<768x1536xbf16>, vector<2x1536xf32> -> vector<2x1536xf32>
    %c0_30 = arith.constant 0 : index
    %c0_31 = arith.constant 0 : index
    %59 = vector.load %arg7[%c0_30, %c0_31] : memref<1x1536xf32, #tpu.memory_space<vmem>>, vector<1x1536xf32>
    %60 = vector.broadcast %59 : vector<1x1536xf32> to vector<2x1536xf32>
    %61 = arith.addf %58, %60 : vector<2x1536xf32>
    %c0_32 = arith.constant 0 : index
    %c0_33 = arith.constant 0 : index
    %62 = vector.load %arg13[%c0_32, %c0_33] : memref<2x3072xf32, #tpu.memory_space<vmem>>, vector<2x768xf32>
    tpu.vector_store %arg13[%c0_32, %c0_33], %34 {strides = array<i32>} : memref<2x3072xf32, #tpu.memory_space<vmem>>, vector<2x768xf32>,
    %63 = vector.extract_strided_slice %61 {offsets = [0, 0], sizes = [2, 768], strides = [1, 1]} : vector<2x1536xf32> to vector<2x768xf32>
    %c0_34 = arith.constant 0 : index
    %c768 = arith.constant 768 : index
    %64 = vector.load %arg13[%c0_34, %c768] : memref<2x3072xf32, #tpu.memory_space<vmem>>, vector<2x768xf32>
    tpu.vector_store %arg13[%c0_34, %c768], %63 {strides = array<i32>} : memref<2x3072xf32, #tpu.memory_space<vmem>>, vector<2x768xf32>,
    %c0_35 = arith.constant 0 : index
    %c1536 = arith.constant 1536 : index
    %65 = vector.load %arg13[%c0_35, %c1536] : memref<2x3072xf32, #tpu.memory_space<vmem>>, vector<2x768xf32>
    tpu.vector_store %arg13[%c0_35, %c1536], %51 {strides = array<i32>} : memref<2x3072xf32, #tpu.memory_space<vmem>>, vector<2x768xf32>,
    %66 = vector.extract_strided_slice %61 {offsets = [0, 768], sizes = [2, 768], strides = [1, 1]} : vector<2x1536xf32> to vector<2x768xf32>
    %c0_36 = arith.constant 0 : index
    %c2304 = arith.constant 2304 : index
    %67 = vector.load %arg13[%c0_36, %c2304] : memref<2x3072xf32, #tpu.memory_space<vmem>>, vector<2x768xf32>
    tpu.vector_store %arg13[%c0_36, %c2304], %66 {strides = array<i32>} : memref<2x3072xf32, #tpu.memory_space<vmem>>, vector<2x768xf32>,
    %c0_37 = arith.constant 0 : index
    %c0_38 = arith.constant 0 : index
    %68 = vector.load %arg13[%c0_37, %c0_38] : memref<2x3072xf32, #tpu.memory_space<vmem>>, vector<2x3072xf32>
    %69 = arith.truncf %68 : vector<2x3072xf32> to vector<2x3072xbf16>
    %c0_39 = arith.constant 0 : index
    %c0_40 = arith.constant 0 : index
    %70 = vector.load %arg8[%c0_39, %c0_40] : memref<3072x768xbf16, #tpu.memory_space<vmem>>, vector<3072x768xbf16>
    %cst_41 = arith.constant dense<0.000000e+00> : vector<2x768xf32>
    %71 = tpu.matmul %69, %70, %cst_41 {dimension_numbers = #tpu.dot_dimension_numbers<[1], [0], [0], [1], [0, 0, 1, 1], [], []>} : vector<2x3072xbf16>, vector<3072x768xbf16>, vector<2x768xf32> -> vector<2x768xf32>
    %c0_42 = arith.constant 0 : index
    %c0_43 = arith.constant 0 : index
    %72 = vector.load %arg9[%c0_42, %c0_43] : memref<1x768xf32, #tpu.memory_space<vmem>>, vector<1x768xf32>
    %73 = vector.broadcast %72 : vector<1x768xf32> to vector<2x768xf32>
    %74 = arith.addf %71, %73 : vector<2x768xf32>
    %cst_44 = arith.constant 0.000000e+00 : f32
    %75 = vector.broadcast %cst_44 : f32 to vector<2x768xf32>
    %76 = arith.maximumf %74, %75 : vector<2x768xf32>
    %77 = arith.truncf %76 : vector<2x768xf32> to vector<2x768xbf16>
    %c0_45 = arith.constant 0 : index
    %c0_46 = arith.constant 0 : index
    %78 = vector.load %arg10[%c0_45, %c0_46] : memref<768x128xbf16, #tpu.memory_space<vmem>>, vector<768x128xbf16>
    %cst_47 = arith.constant dense<0.000000e+00> : vector<2x128xf32>
    %79 = tpu.matmul %77, %78, %cst_47 {dimension_numbers = #tpu.dot_dimension_numbers<[1], [0], [0], [1], [0, 0, 1, 1], [], []>} : vector<2x768xbf16>, vector<768x128xbf16>, vector<2x128xf32> -> vector<2x128xf32>
    %c0_48 = arith.constant 0 : index
    %c0_49 = arith.constant 0 : index
    %80 = vector.load %arg11[%c0_48, %c0_49] : memref<1x128xf32, #tpu.memory_space<vmem>>, vector<1x128xf32>
    %81 = vector.broadcast %80 : vector<1x128xf32> to vector<2x128xf32>
    %82 = arith.addf %79, %81 : vector<2x128xf32>
    %c0_50 = arith.constant 0 : index
    %c0_51 = arith.constant 0 : index
    %83 = vector.load %arg12[%c0_50, %c0_51] : memref<2x128xf32, #tpu.memory_space<vmem>>, vector<2x128xf32>
    tpu.vector_store %arg12[%c0_50, %c0_51], %82 {strides = array<i32>} : memref<2x128xf32, #tpu.memory_space<vmem>>, vector<2x128xf32>,
    return
  }
}

</mosaic_0001>

<bundles_post_ra>
// kernel: forward_eval.1
= control target key start
LH: loop header
LB: loop body
LE: loop exit
PB: predicated region body
PF: predicated region fallthrough
CT: control target
= control target key end

     0   :  { %17 = vsyncpa [#allocation4], 0  ;;  %s24734_s0 = inlined_call_operand.vmem [shape: f32[2,6,768], index: 0, kind: input, shape index: {}]   ;;  %s24735_s1 = inlined_call_operand.vmem [shape: f32[2,6], index: 1, kind: input, shape index: {}]   ;;  %s24736_s2 = inlined_call_operand.hbm [shape: f32[2,8,768], index: 2, kind: input, shape index: {}]   ;;  %s24737_s3 = inlined_call_operand.vmem [shape: bf16[768,768], index: 3, kind: input, shape index: {}]   ;;  %s24738_s4 = inlined_call_operand.hbm [shape: f32[1,768], index: 4, kind: input, shape index: {}]   ;;  %s24739_s5 = inlined_call_operand.hbm [shape: f32[1,768], index: 5, kind: input, shape index: {}]   ;;  %s24740_s6 = inlined_call_operand.hbm [shape: bf16[768,1536], index: 6, kind: input, shape index: {}]   ;;  %s24741_s7 = inlined_call_operand.hbm [shape: f32[1,1536], index: 7, kind: input, shape index: {}]   ;;  %s24742_s8 = inlined_call_operand.hbm [shape: bf16[3072,768], index: 8, kind: input, shape index: {}]   ;;  %s24743_s9 = inlined_call_operand.hbm [shape: f32[1,768], index: 9, kind: input, shape index: {}]   ;;  %s24744_s10 = inlined_call_operand.hbm [shape: bf16[768,128], index: 10, kind: input, shape index: {}]   ;;  %s24745_s11 = inlined_call_operand.hbm [shape: f32[1,128], index: 11, kind: input, shape index: {}]   ;;  %s24746_s12 = inlined_call_operand.hbm [shape: f32[2,128], index: 12, kind: output, shape index: {}]  }
   0x1   :  { %18 = vsyncpa [#allocation7], 0 }
   0x2   :  { %19 = vsyncpa [#allocation10], 0 }
   0x3   :  { %20 = vsyncpa [#allocation13], 0 }
   0x4   :  { %21 = vsyncpa [#allocation16], 0 }
   0x5   :  { %22 = vsyncpa [#allocation5], 0  ;;  %s22895_s21 = smov [#allocation6]   ;;  %s22663_s25 = scalar_lea.hbm %s24738_s4, 96 }
   0x6   :  { %s47_s22 = sshll.u32 %s22895_s21, 4  ;;  %p22664_p0 = scmp.ne.s32.totalorder %s24738_s4, %s22663_s25  ;;  %s48_s22 = int_to_ptr.vmem [resolvable:$true] %s47_s22 }
   0x7   :  { %p22667_p1 = scmp.lt.u32.totalorder %s22663_s25, %s24738_s4 }
   0x9   :  { %p22669_p2 = pnand %p22667_p1, %p22664_p0 }
   0xb   :  { %22672 = shalt.err (!%p22669_p2)
}
   0xc   :  { %s22673_s30 = scalar_lea.vmem %s48_s22, 96  ;;  %p22678_p4 = scmp.lt.s32.totalorder %s48_s22, %s48_s22 }
   0xd   :  { %p22674_p3 = scmp.ne.s32.totalorder %s48_s22, %s22673_s30  ;;  %p22679_p5 = scmp.lt.s32.totalorder %s22673_s30, %s22673_s30 }
   0xf   :  { %p22680_p6 = por %p22679_p5, %p22678_p4 }
  0x11   :  { %p22681_p7 = pnand %p22680_p6, %p22674_p3 }
  0x13   :  { %22684 = shalt.err (!%p22681_p7)
}
  0x14   :  { %50 = dma.hbm_to_vmem [thread:$0]  %s24738_s4, 96, %s48_s22, [#allocation7]  }
  0x15   :  { %s22896_s15 = smov [#allocation9]   ;;  %s22897_s17 = smov [#allocation12]  }
  0x16   :  { %s66_s16 = sshll.u32 %s22896_s15, 4  ;;  %s88_s18 = sshll.u32 %s22897_s17, 4  ;;  %s67_s16 = int_to_ptr.vmem [resolvable:$true] %s66_s16  ;;  %s89_s18 = int_to_ptr.vmem [resolvable:$true] %s88_s18 }
  0x17   :  { %s22685_s21 = scalar_lea.hbm %s24740_s6, 73728 }
  0x18   :  { %p22686_p8 = scmp.ne.s32.totalorder %s24740_s6, %s22685_s21  ;;  %p22689_p9 = scmp.lt.u32.totalorder %s22685_s21, %s24740_s6 }
  0x1a   :  { %p22691_p10 = pnand %p22689_p9, %p22686_p8 }
  0x1c   :  { %22694 = shalt.err (!%p22691_p10)
}
  0x1d   :  { %s22695_s4 = scalar_lea.vmem %s67_s16, 73728  ;;  %p22700_p12 = scmp.lt.s32.totalorder %s67_s16, %s67_s16 }
  0x1e   :  { %p22696_p11 = scmp.ne.s32.totalorder %s67_s16, %s22695_s4  ;;  %p22701_p13 = scmp.lt.s32.totalorder %s22695_s4, %s22695_s4 }
  0x20   :  { %p22702_p0 = por %p22701_p13, %p22700_p12 }
  0x22   :  { %p22703_p1 = pnand %p22702_p0, %p22696_p11 }
  0x24   :  { %22706 = shalt.err (!%p22703_p1)
}
  0x25   :  { %s22898_s22 = smov 768   ;;  %s22899_s27 = smov 48  }
  0x26   :  { %72 = dma.hbm_to_vmem [thread:$0]  %s24740_s6, 73728, %s67_s16, [#allocation10], %s22898_s22, %s22898_s22, %s22899_s27  }
  0x27   :  { %s22707_s14 = scalar_lea.hbm %s24742_s8, 147456 }
  0x28   :  { %p22708_p2 = scmp.ne.s32.totalorder %s24742_s8, %s22707_s14  ;;  %p22711_p3 = scmp.lt.u32.totalorder %s22707_s14, %s24742_s8 }
  0x2a   :  { %p22713_p4 = pnand %p22711_p3, %p22708_p2 }
  0x2c   :  { %22716 = shalt.err (!%p22713_p4)
}
  0x2d   :  { %s22717_s21 = scalar_lea.vmem %s89_s18, 147456  ;;  %p22722_p6 = scmp.lt.s32.totalorder %s89_s18, %s89_s18 }
  0x2e   :  { %p22718_p5 = scmp.ne.s32.totalorder %s89_s18, %s22717_s21  ;;  %p22723_p7 = scmp.lt.s32.totalorder %s22717_s21, %s22717_s21 }
  0x30   :  { %p22724_p8 = por %p22723_p7, %p22722_p6 }
  0x32   :  { %p22725_p9 = pnand %p22724_p8, %p22718_p5 }
  0x34   :  { %22728 = shalt.err (!%p22725_p9)
}
  0x35   :  { %s22900_s6 = smov 384   ;;  %s22901_s16 = smov 24  }
  0x36   :  { %94 = dma.hbm_to_vmem [thread:$0]  %s24742_s8, 147456, %s89_s18, [#allocation13], %s22900_s6, %s22900_s6, %s22901_s16  }
  0x37   :  { %s22902_s25 = smov [#allocation15]   ;;  %s22729_s29 = scalar_lea.hbm %s24744_s10, 6144 }
  0x38   :  { %s110_s26 = sshll.u32 %s22902_s25, 4  ;;  %p22730_p10 = scmp.ne.s32.totalorder %s24744_s10, %s22729_s29  ;;  %s111_s26 = int_to_ptr.vmem [resolvable:$true] %s110_s26 }
  0x39   :  { %p22733_p11 = scmp.lt.u32.totalorder %s22729_s29, %s24744_s10 }
  0x3b   :  { %p22735_p12 = pnand %p22733_p11, %p22730_p10 }
  0x3d   :  { %22738 = shalt.err (!%p22735_p12)
}
  0x3e   :  { %s22739_s17 = scalar_lea.vmem %s111_s26, 6144  ;;  %p22744_p0 = scmp.lt.s32.totalorder %s111_s26, %s111_s26 }
  0x3f   :  { %p22740_p13 = scmp.ne.s32.totalorder %s111_s26, %s22739_s17  ;;  %p22745_p1 = scmp.lt.s32.totalorder %s22739_s17, %s22739_s17 }
  0x41   :  { %p22746_p2 = por %p22745_p1, %p22744_p0 }
  0x43   :  { %p22747_p3 = pnand %p22746_p2, %p22740_p13 }
  0x45   :  { %22750 = shalt.err (!%p22747_p3)
}
  0x46   :  { %s22903_s8 = smov 64   ;;  %s22904_s18 = smov 4  }
  0x47   :  { %116 = dma.hbm_to_vmem [thread:$0]  %s24744_s10, 6144, %s111_s26, [#allocation16], %s22903_s8, %s22903_s8, %s22904_s18  }
  0x48   :  { %s22905_s21 = smov [#allocation3]   ;;  %s22906_s16 = smov [#allocation8]  }
  0x49   :  { %s32_s6 = sshll.u32 %s22905_s21, 4  ;;  %s57_s23 = sshll.u32 %s22906_s16, 4  ;;  %s33_s6 = int_to_ptr.vmem [resolvable:$true] %s32_s6  ;;  %s58_s23 = int_to_ptr.vmem [resolvable:$true] %s57_s23 }
  0x4a   :  { %s22751_s4 = scalar_lea.hbm %s24736_s2, 1536 }
  0x4b   :  { %p22752_p4 = scmp.ne.s32.totalorder %s24736_s2, %s22751_s4  ;;  %p22755_p5 = scmp.lt.u32.totalorder %s22751_s4, %s24736_s2 }
  0x4d   :  { %p22757_p6 = pnand %p22755_p5, %p22752_p4 }
  0x4f   :  { %22760 = shalt.err (!%p22757_p6)
}
  0x50   :  { %s22761_s10 = scalar_lea.vmem %s33_s6, 1536  ;;  %p22766_p8 = scmp.lt.s32.totalorder %s33_s6, %s33_s6 }
  0x51   :  { %p22762_p7 = scmp.ne.s32.totalorder %s33_s6, %s22761_s10  ;;  %p22767_p9 = scmp.lt.s32.totalorder %s22761_s10, %s22761_s10 }
  0x53   :  { %p22768_p10 = por %p22767_p9, %p22766_p8 }
  0x55   :  { %p22769_p11 = pnand %p22768_p10, %p22762_p7 }
  0x57   :  { %22772 = shalt.err (!%p22769_p11)
}
  0x58   :  { %38 = dma.hbm_to_vmem [thread:$0]  %s24736_s2, 1536, %s33_s6, [#allocation4], %s22898_s22, %s22898_s22, %s22899_s27  }
  0x59   :  { %s22773_s8 = scalar_lea.hbm %s24739_s5, 96 }
  0x5a   :  { %p22774_p12 = scmp.ne.s32.totalorder %s24739_s5, %s22773_s8  ;;  %p22777_p13 = scmp.lt.u32.totalorder %s22773_s8, %s24739_s5 }
  0x5c   :  { %p22779_p0 = pnand %p22777_p13, %p22774_p12 }
  0x5e   :  { %22782 = shalt.err (!%p22779_p0)
}
  0x5f   :  { %s22783_s16 = scalar_lea.vmem %s58_s23, 96  ;;  %p22788_p2 = scmp.lt.s32.totalorder %s58_s23, %s58_s23 }
  0x60   :  { %p22784_p1 = scmp.ne.s32.totalorder %s58_s23, %s22783_s16  ;;  %p22789_p3 = scmp.lt.s32.totalorder %s22783_s16, %s22783_s16 }
  0x62   :  { %p22790_p4 = por %p22789_p3, %p22788_p2 }
  0x64   :  { %p22791_p5 = pnand %p22790_p4, %p22784_p1 }
  0x66   :  { %22794 = shalt.err (!%p22791_p5)
}
  0x67   :  { %60 = dma.hbm_to_vmem [thread:$0]  %s24739_s5, 96, %s58_s23, [#allocation7]  }
  0x68   :  { %s22907_s27 = smov [#allocation11]   ;;  %s22908_s24 = smov [#allocation14]  }
  0x69   :  { %s79_s6 = sshll.u32 %s22907_s27, 4  ;;  %s101_s25 = sshll.u32 %s22908_s24, 4  ;;  %s80_s6 = int_to_ptr.vmem [resolvable:$true] %s79_s6  ;;  %s102_s25 = int_to_ptr.vmem [resolvable:$true] %s101_s25 }
  0x6a   :  { %s22795_s29 = scalar_lea.hbm %s24741_s7, 192 }
  0x6b   :  { %p22796_p6 = scmp.ne.s32.totalorder %s24741_s7, %s22795_s29  ;;  %p22799_p7 = scmp.lt.u32.totalorder %s22795_s29, %s24741_s7 }
  0x6d   :  { %p22801_p8 = pnand %p22799_p7, %p22796_p6 }
  0x6f   :  { %22804 = shalt.err (!%p22801_p8)
}
  0x70   :  { %s22805_s5 = scalar_lea.vmem %s80_s6, 192  ;;  %p22810_p10 = scmp.lt.s32.totalorder %s80_s6, %s80_s6 }
  0x71   :  { %p22806_p9 = scmp.ne.s32.totalorder %s80_s6, %s22805_s5  ;;  %p22811_p11 = scmp.lt.s32.totalorder %s22805_s5, %s22805_s5 }
  0x73   :  { %p22812_p12 = por %p22811_p11, %p22810_p10 }
  0x75   :  { %p22813_p13 = pnand %p22812_p12, %p22806_p9 }
  0x77   :  { %22816 = shalt.err (!%p22813_p13)
}
  0x78   :  { %82 = dma.hbm_to_vmem [thread:$0]  %s24741_s7, 192, %s80_s6, [#allocation10]  }
  0x79   :  { %s22817_s8 = scalar_lea.hbm %s24743_s9, 96 }
  0x7a   :  { %p22818_p0 = scmp.ne.s32.totalorder %s24743_s9, %s22817_s8  ;;  %p22821_p1 = scmp.lt.u32.totalorder %s22817_s8, %s24743_s9 }
  0x7c   :  { %p22823_p2 = pnand %p22821_p1, %p22818_p0 }
  0x7e   :  { %22826 = shalt.err (!%p22823_p2)
}
  0x7f   :  { %s22827_s16 = scalar_lea.vmem %s102_s25, 96  ;;  %p22832_p4 = scmp.lt.s32.totalorder %s102_s25, %s102_s25 }
  0x80   :  { %p22828_p3 = scmp.ne.s32.totalorder %s102_s25, %s22827_s16  ;;  %p22833_p5 = scmp.lt.s32.totalorder %s22827_s16, %s22827_s16 }
  0x82   :  { %p22834_p6 = por %p22833_p5, %p22832_p4 }
  0x84   :  { %p22835_p7 = pnand %p22834_p6, %p22828_p3 }
  0x86   :  { %22838 = shalt.err (!%p22835_p7)
}
  0x87   :  { %104 = dma.hbm_to_vmem [thread:$0]  %s24743_s9, 96, %s102_s25, [#allocation13]  }
  0x88   :  { %s22909_s22 = smov [#allocation17]   ;;  %s22839_s4 = scalar_lea.hbm %s24745_s11, 16 }
  0x89   :  { %s123_s27 = sshll.u32 %s22909_s22, 4  ;;  %p22840_p8 = scmp.ne.s32.totalorder %s24745_s11, %s22839_s4  ;;  %s124_s27 = int_to_ptr.vmem [resolvable:$true] %s123_s27 }
  0x8a   :  { %p22843_p9 = scmp.lt.u32.totalorder %s22839_s4, %s24745_s11 }
  0x8c   :  { %p22845_p10 = pnand %p22843_p9, %p22840_p8 }
  0x8e   :  { %22848 = shalt.err (!%p22845_p10)
}
  0x8f   :  { %s22849_s10 = scalar_lea.vmem %s124_s27, 16  ;;  %s22853_s9 = scalar_lea.vmem %s124_s27, 32 }
  0x90   :  { %p22850_p11 = scmp.ne.s32.totalorder %s124_s27, %s22849_s10  ;;  %p22854_p12 = scmp.lt.s32.totalorder %s124_s27, %s124_s27 }
  0x91   :  { %p22855_p13 = scmp.lt.s32.totalorder %s22853_s9, %s22849_s10 }
  0x93   :  { %p22856_p0 = por %p22855_p13, %p22854_p12 }
  0x95   :  { %p22857_p1 = pnand %p22856_p0, %p22850_p11 }
  0x97   :  { %22860 = shalt.err (!%p22857_p1)
}
  0x98   :  { %126 = dma.hbm_to_vmem [thread:$0]  %s24745_s11, 16, %s124_s27, [#allocation16]  }
  0x99   :  { %22883 = dma.done.wait [#allocation4], 1536  }
  0x9a   :  { %22884 = vsyncadd [#allocation4], 4294965760 }
  0x9b   :  { %22885 = dma.done.wait [#allocation7], 192  }
  0x9c   :  { %22886 = vsyncadd [#allocation7], 4294967104 }
  0x9d   :  { %22887 = dma.done.wait [#allocation10], 73920  }
  0x9e   :  { %22888 = vsyncadd [#allocation10], 4294893376 }
  0x9f   :  { %22889 = dma.done.wait [#allocation13], 147552  }
  0xa0   :  { %22890 = vsyncadd [#allocation13], 4294819744 }
  0xa1   :  { %22891 = dma.done.wait [#allocation16], 6160  }
  0xa2   :  { %22892 = vsyncadd [#allocation16], 4294961136  ;;  %v19527_v0 = vld [vmem:[%s24737_s3 + $0x4] ss:$24 sps:$4 sm:$0xff]   ;;  %v19529_v1 = vld [vmem:[%s24737_s3] ss:$24 sps:$4 sm:$0xff]   ;;  %v470_v9 = vlaneseq }
  0xa3   :  { %2329 = vmatprep.subr.bf16.mxu0 %v19527_v0  ;;  %v19530_v2 = vld [vmem:[%s24737_s3 + $0x34] ss:$24 sps:$4 sm:$0xff]   ;;  %v19532_v3 = vld [vmem:[%s24737_s3 + $0x30] ss:$24 sps:$4 sm:$0xff]   ;;  %v19533_v4 = vld [vmem:[%s24737_s3 + $0x64] ss:$24 sps:$4 sm:$0xff]  }
  0xa4   :  { %2330 = vmatpush1.bf16.msra.mxu0 %v19529_v1  ;;  %v19535_v5 = vld [vmem:[%s24737_s3 + $0x60] ss:$24 sps:$4 sm:$0xff]   ;;  %v19536_v6 = vld [vmem:[%s24737_s3 + $0x94] ss:$24 sps:$4 sm:$0xff]   ;;  %v19538_v7 = vld [vmem:[%s24737_s3 + $0x90] ss:$24 sps:$4 sm:$0xff]  }
  0xa5   :  { %2331 = vmatprep.subr.bf16.mxu0 %v19530_v2  ;;  %v19539_v8 = vld [vmem:[%s24737_s3 + $0xc4] ss:$24 sps:$4 sm:$0xff]   ;;  %v22910_v10 = vmov 1966171168   ;;  %v19541_v12 = vld [vmem:[%s24737_s3 + $0xc0] ss:$24 sps:$4 sm:$0xff]  }
  0xa6   :  { %v510_v11 = vunpack.c.l.s4 %v22910_v10  ;;  %v19542_v13 = vld [vmem:[%s24737_s3 + $0xf4] ss:$24 sps:$4 sm:$0xff]   ;;  %v23126_v14 = vshrl.u32 %v470_v9, 7  ;;  %v19544_v16 = vld [vmem:[%s24737_s3 + $0xf0] ss:$24 sps:$4 sm:$0xff]   ;;  %vm3099_vm0 = vcmask 1041409  }
  0xa7   :  { %v19545_v17 = vld [vmem:[%s24737_s3 + $0x124] ss:$24 sps:$4 sm:$0xff]   ;;  %v19547_v19 = vld [vmem:[%s24737_s3 + $0x120] ss:$24 sps:$4 sm:$0xff]   ;;  %v156_v21 = vld [vmem:[%s24734_s0 + $0x8] sm:$0x3f] }
  0xa8   :  { %2332 = vmatpush1.bf16.msra.mxu0 %v19532_v3  ;;  %v511_v15 = vunpack.c.0.s8 %v510_v11  ;;  %v155_v20 = vld [vmem:[%s24734_s0] sm:$0x3f]  ;;  %v19548_v22 = vld [vmem:[%s24737_s3 + $0x154] ss:$24 sps:$4 sm:$0xff]   ;;  %v158_v24 = vld [vmem:[%s24734_s0 + $0x18] sm:$0x3f] }
  0xa9   :  { %2333 = vmatprep.subr.bf16.mxu0 %v19533_v4  ;;  %v157_v23 = vld [vmem:[%s24734_s0 + $0x10] sm:$0x3f]  ;;  %v159_v25 = vld [vmem:[%s24734_s0 + $0x20] sm:$0x3f]  ;;  %v17128_v26 = vpack.c.bf16 %v156_v21, %v155_v20  ;;  %v160_v27 = vld [vmem:[%s24734_s0 + $0x28] sm:$0x3f] }
  0xaa   :  { %v23135_v18 = vsub.s32 %v511_v15, %v23126_v14  ;;  %v161_v28 = vld [vmem:[%s24734_s0 + $0x30] sm:$0x3f]  ;;  %v162_v29 = vld [vmem:[%s24734_s0 + $0x38] sm:$0x3f]  ;;  %v17129_v30 = vpack.c.bf16 %v158_v24, %v157_v23  ;;  %v163_v31 = vld [vmem:[%s24734_s0 + $0x40] sm:$0x3f]  ;;  %v17130_v34 = vpack.c.bf16 %v160_v27, %v159_v25 }
  0xab   :  { %v164_v32 = vld [vmem:[%s24734_s0 + $0x48] sm:$0x3f]  ;;  %v165_v33 = vld [vmem:[%s24734_s0 + $0x50] sm:$0x3f]  ;;  %v17131_v36 = vpack.c.bf16 %v162_v29, %v161_v28  ;;  %v166_v37 = vld [vmem:[%s24734_s0 + $0x58] sm:$0x3f] }
  0xac   :  { %2334 = vmatpush1.bf16.msra.mxu0 %v19535_v5  ;;  %v515_v35 = vrot.slane %v17128_v26, %v23135_v18  ;;  %v522_v38 = vrot.slane %v17129_v30, %v23135_v18  ;;  %v17132_v39 = vpack.c.bf16 %v164_v32, %v163_v31  ;;  %v23182_v40 = vrot.slane %v17130_v34, %v23135_v18  ;;  %v19550_v43 = vld [vmem:[%s24737_s3 + $0x150] ss:$24 sps:$4 sm:$0xff]   ;;  %v19551_v47 = vld [vmem:[%s24737_s3 + $0x184] ss:$24 sps:$4 sm:$0xff]   ;;  %v19553_v55 = vld [vmem:[%s24737_s3 + $0x180] ss:$24 sps:$4 sm:$0xff]  }
  0xad   :  { %2335 = vmatprep.subr.bf16.mxu0 %v19536_v6  ;;  %v17133_v41 = vpack.c.bf16 %v166_v37, %v165_v33  ;;  %v573_v42 = vrot.slane %v17131_v36, %v23135_v18  ;;  %v19554_v60 = vld [vmem:[%s24737_s3 + $0x1b4] ss:$24 sps:$4 sm:$0xff]   ;;  %v19556_v0 = vld [vmem:[%s24737_s3 + $0x1b0] ss:$24 sps:$4 sm:$0xff]   ;;  %v19557_v3 = vld [vmem:[%s24737_s3 + $0x1e4] ss:$24 sps:$4 sm:$0xff]  }
  0xae   :  { %v530_v44 = vcombine.low %v515_v35, %v522_v38  ;;  %v531_v45 = vcombine.high %v515_v35, %v522_v38  ;;  %v580_v46 = vrot.slane %v17132_v39, %v23135_v18  ;;  %v23194_v48 = vrot.slane %v23182_v40, %v23135_v18  ;;  %v19563_v20 = vld [vmem:[%s24737_s3 + $0x244] ss:$24 sps:$4 sm:$0xff]   ;;  %v19565_v21 = vld [vmem:[%s24737_s3 + $0x240] ss:$24 sps:$4 sm:$0xff]   ;;  %v19568_v24 = vld [vmem:[%s24737_s3 + $0x270] ss:$24 sps:$4 sm:$0xff]  }
  0xaf   :  { %v587_v49 = vrot.slane %v17133_v41, %v23135_v18  ;;  %v532_v25 = vcombine.high %v23182_v40, %v23182_v40  ;;  %v19569_v27 = vld [vmem:[%s24737_s3 + $0x2a4] ss:$24 sps:$4 sm:$0xff]   ;;  %v19571_v31 = vld [vmem:[%s24737_s3 + $0x2a0] ss:$24 sps:$4 sm:$0xff]   ;;  %v19572_v35 = vld [vmem:[%s24737_s3 + $0x2d4] ss:$24 sps:$4 sm:$0xff]  }
  0xb0   :  { %2336 = vmatpush1.bf16.msra.mxu0 %v19538_v7  ;;  %v539_v50 = vrot.slane %v530_v44, %v23135_v18  ;;  %v546_v51 = vrot.slane %v531_v45, %v23135_v18  ;;  %v588_v52 = vcombine.low %v573_v42, %v580_v46  ;;  %v589_v53 = vcombine.high %v573_v42, %v580_v46  ;;  %v19559_v7 = vld [vmem:[%s24737_s3 + $0x1e0] ss:$24 sps:$4 sm:$0xff]   ;;  %v19574_v39 = vld [vmem:[%s24737_s3 + $0x2d0] ss:$24 sps:$4 sm:$0xff]   ;;  %v19577_v42 = vld [vmem:[%s24737_s3 + $0x304] ss:$24 sps:$4 sm:$0xff]  }
  0xb1   :  { %2337 = vmatprep.subr.bf16.mxu0 %v19539_v8  ;;  %v611_v54 = vrot.slane %v587_v49, %v23135_v18  ;;  %v590_v23 = vcombine.high %v587_v49, %v587_v49  ;;  %v560_v28 = vrot.slane %v532_v25, %v23135_v18  ;;  %v19575_v49 = vld [vmem:[%s24737_s3 + $0x300] ss:$24 sps:$4 sm:$0xff]   ;;  %v19628_v25 = vld [vmem:[%s24737_s3 + $0x634] ss:$24 sps:$4 sm:$0xff]   ;;  %vm3009_vm1 = vcmask 1045504  }
  0xb2   :  { %v562_v56 = vcombine.high %v539_v50, %v23194_v48  ;;  %v597_v57 = vrot.slane %v588_v52, %v23135_v18  ;;  %v604_v58 = vrot.slane %v589_v53, %v23135_v18  ;;  %v17134_v59 = vcombine.low %v539_v50, %v546_v51  ;;  %v19580_v52 = vld [vmem:[%s24737_s3 + $0x334] ss:$24 sps:$4 sm:$0xff]  }
  0xb3   :  { %v618_v26 = vrot.slane %v590_v23, %v23135_v18  ;;  %v17135_v32 = vcombine.low %v23194_v48, %v560_v28  ;;  %v19625_v23 = vld [vmem:[%s24737_s3 + $0x604] ss:$24 sps:$4 sm:$0xff]   ;;  %v19629_v28 = vld [vmem:[%s24737_s3 + $0x660] ss:$24 sps:$4 sm:$0xff]   ;;  %vm3103_vm3 = vcmask 41984   ;;  %vm7836_vm4 = vcmask 1043459  }
  0xb4   :  { %2338 = vmatpush1.bf16.msra.mxu0 %v19541_v12  ;;  %v620_v61 = vcombine.high %v597_v57, %v611_v54  ;;  %v17136_v62 = vcombine.low %v562_v56, %v597_v57  ;;  %v686_v63 = vrot.slane %v17134_v59, %v23135_v18  ;;  %v619_v29 = vcombine.low %v597_v57, %v611_v54  ;;  %v19586_v56 = vld [vmem:[%s24737_s3 + $0x394] ss:$24 sps:$4 sm:$0xff]   ;;  %v19584_v57 = vld [vmem:[%s24737_s3 + $0x390] ss:$24 sps:$4 sm:$0xff]   ;;  %v19587_v59 = vld [vmem:[%s24737_s3 + $0x3c0] ss:$24 sps:$4 sm:$0xff]  }
  0xb5   :  { %2339 = vmatprep.subr.bf16.mxu0 %v19542_v13  ;;  %v19560_v13 = vld [vmem:[%s24737_s3 + $0x214] ss:$24 sps:$4 sm:$0xff]   ;;  %v621_v30 = vcombine.low %v604_v58, %v618_v26  ;;  %v693_v36 = vrot.slane %v17135_v32, %v23135_v18  ;;  %v19626_v26 = vld [vmem:[%s24737_s3 + $0x630] ss:$24 sps:$4 sm:$0xff]   ;;  %v19635_v32 = vld [vmem:[%s24737_s3 + $0x6c0] ss:$24 sps:$4 sm:$0xff]  }
  0xb6   :  { %v17138_v1 = vcombine.low %v604_v58, %v620_v61  ;;  %v700_v2 = vrot.slane %v17136_v62, %v23135_v18  ;;  %v17137_v33 = vcombine.high %v23194_v48, %v619_v29  ;;  %v19589_v58 = vld [vmem:[%s24737_s3 + $0x3c4] ss:$24 sps:$4 sm:$0xff]   ;;  %v19590_v61 = vld [vmem:[%s24737_s3 + $0x3f0] ss:$24 sps:$4 sm:$0xff]   ;;  %v19634_v29 = vld [vmem:[%s24737_s3 + $0x694] ss:$24 sps:$4 sm:$0xff]  }
  0xb7   :  { %v17139_v34 = vcombine.high %v621_v30, %v611_v54  ;;  %v19583_v54 = vld [vmem:[%s24737_s3 + $0x364] ss:$24 sps:$4 sm:$0xff]   ;;  %v19632_v30 = vld [vmem:[%s24737_s3 + $0x690] ss:$24 sps:$4 sm:$0xff]   ;;  %vm7838_vm5 = vcmask 1045509   ;;  %vm7840_vm6 = vcmask 1047559  }
  0xb8   :  { %2340 = vmatpush1.bf16.msra.mxu0 %v19544_v16  ;;  %v714_v4 = vrot.slane %v17138_v1, %v23135_v18  ;;  %v723_v5 = vcombine.high %v686_v63, %v700_v2  ;;  %v722_v6 = vcombine.low %v686_v63, %v700_v2  ;;  %v707_v37 = vrot.slane %v17137_v33, %v23135_v18  ;;  %v19595_v62 = vld [vmem:[%s24737_s3 + $0x424] ss:$24 sps:$4 sm:$0xff]   ;;  %v19593_v63 = vld [vmem:[%s24737_s3 + $0x420] ss:$24 sps:$4 sm:$0xff]   ;;  %v19596_v1 = vld [vmem:[%s24737_s3 + $0x450] ss:$24 sps:$4 sm:$0xff]  }
  0xb9   :  { %2341 = vmatprep.subr.bf16.mxu0 %v19545_v17  ;;  %v19562_v17 = vld [vmem:[%s24737_s3 + $0x210] ss:$24 sps:$4 sm:$0xff]   ;;  %v721_v38 = vrot.slane %v17139_v34, %v23135_v18  ;;  %v19601_v2 = vld [vmem:[%s24737_s3 + $0x484] ss:$24 sps:$4 sm:$0xff]   ;;  %v19640_v33 = vld [vmem:[%s24737_s3 + $0x6f4] ss:$24 sps:$4 sm:$0xff]  }
  0xba   :  { %v726_v8 = vcombine.high %v714_v4, %v714_v4  ;;  %v748_v10 = vrot.slane %v723_v5, %v23135_v18  ;;  %v734_v11 = vrot.slane %v722_v6, %v23135_v18  ;;  %v762_v12 = vrot.slane %v714_v4, %v23135_v18  ;;  %v19604_v4 = vld [vmem:[%s24737_s3 + $0x4b4] ss:$24 sps:$4 sm:$0xff]   ;;  %v19602_v5 = vld [vmem:[%s24737_s3 + $0x4b0] ss:$24 sps:$4 sm:$0xff]   ;;  %v19607_v6 = vld [vmem:[%s24737_s3 + $0x4e4] ss:$24 sps:$4 sm:$0xff]  }
  0xbb   :  { %v725_v40 = vcombine.high %v693_v36, %v707_v37  ;;  %v727_v41 = vcombine.high %v721_v38, %v721_v38  ;;  %v769_v48 = vrot.slane %v721_v38, %v23135_v18  ;;  %v19638_v34 = vld [vmem:[%s24737_s3 + $0x6f0] ss:$24 sps:$4 sm:$0xff]  }
  0xbc   :  { %2342 = vmatpush1.bf16.msra.mxu0 %v19547_v19  ;;  %v776_v15 = vrot.slane %v726_v8, %v23135_v18  ;;  %v23228_v16 = vcombine.high %v734_v11, %v762_v12  ;;  %v23274_v46 = vcombine.low %v734_v11, %v762_v12  ;;  %v19610_v8 = vld [vmem:[%s24737_s3 + $0x514] ss:$24 sps:$4 sm:$0xff]   ;;  %v19613_v11 = vld [vmem:[%s24737_s3 + $0x544] ss:$24 sps:$4 sm:$0xff]   ;;  %v19611_v12 = vld [vmem:[%s24737_s3 + $0x540] ss:$24 sps:$4 sm:$0xff]  }
  0xbd   :  { %2343 = vmatprep.subr.bf16.mxu0 %v19548_v22  ;;  %v19566_v22 = vld [vmem:[%s24737_s3 + $0x274] ss:$24 sps:$4 sm:$0xff]   ;;  %v755_v44 = vrot.slane %v725_v40, %v23135_v18  ;;  %v783_v45 = vrot.slane %v727_v41, %v23135_v18  ;;  %v19644_v38 = vld [vmem:[%s24737_s3 + $0x750] ss:$24 sps:$4 sm:$0xff]   ;;  %v19647_v40 = vld [vmem:[%s24737_s3 + $0x780] ss:$24 sps:$4 sm:$0xff]  }
  0xbe   :  { %v23233_v19 = vcombine.low %v748_v10, %v776_v15  ;;  %v23281_v50 = vcombine.high %v748_v10, %v776_v15  ;;  %v19608_v10 = vld [vmem:[%s24737_s3 + $0x510] ss:$24 sps:$4 sm:$0xff]   ;;  %v19652_v41 = vld [vmem:[%s24737_s3 + $0x7b4] ss:$24 sps:$4 sm:$0xff]  }
  0xbf   :  { %v23283_v51 = vcombine.low %v755_v44, %v783_v45  ;;  %v19614_v15 = vld [vmem:[%s24737_s3 + $0x570] ss:$24 sps:$4 sm:$0xff]   ;;  %v19653_v44 = vld [vmem:[%s24737_s3 + $0x7e0] ss:$24 sps:$4 sm:$0xff]   ;;  %v19658_v45 = vld [vmem:[%s24737_s3 + $0x814] ss:$24 sps:$4 sm:$0xff]  }
  0xc0   :  { %2344 = vmatpush1.bf16.msra.mxu0 %v19550_v43  ;;  %2361 = vmatprep.mubr.bf16.mxu0 %v23233_v19  ;;  %v724_v43 = vcombine.low %v693_v36, %v707_v37  ;;  %v19641_v36 = vld [vmem:[%s24737_s3 + $0x720] ss:$24 sps:$4 sm:$0xff]   ;;  %v19646_v37 = vld [vmem:[%s24737_s3 + $0x754] ss:$24 sps:$4 sm:$0xff]  }
  0xc1   :  { %2345 = vmatprep.subr.bf16.mxu0 %v19551_v47 }
  0xc2   :  { %v741_v47 = vrot.slane %v724_v43, %v23135_v18  ;;  %v19578_v18 = vld [vmem:[%s24737_s3 + $0x330] ss:$24 sps:$4 sm:$0xff]   ;;  %v19655_v43 = vld [vmem:[%s24737_s3 + $0x7e4] ss:$24 sps:$4 sm:$0xff]  }
  0xc4   :  { %2346 = vmatpush1.bf16.msra.mxu0 %v19553_v55  ;;  %v23288_v53 = vcombine.low %v741_v47, %v769_v48  ;;  %v19581_v55 = vld [vmem:[%s24737_s3 + $0x360] ss:$24 sps:$4 sm:$0xff]   ;;  %v19656_v47 = vld [vmem:[%s24737_s3 + $0x810] ss:$24 sps:$4 sm:$0xff]   ;;  %v19661_v48 = vld [vmem:[%s24737_s3 + $0x844] ss:$24 sps:$4 sm:$0xff]  }
  0xc5   :  { %2347 = vmatprep.subr.bf16.mxu0 %v19554_v60  ;;  %v19592_v60 = vld [vmem:[%s24737_s3 + $0x3f4] ss:$24 sps:$4 sm:$0xff]  }
  0xc8   :  { %2348 = vmatpush1.bf16.msra.mxu0 %v19556_v0  ;;  %v19598_v0 = vld [vmem:[%s24737_s3 + $0x454] ss:$24 sps:$4 sm:$0xff]  }
  0xc9   :  { %2349 = vmatprep.subr.bf16.mxu0 %v19557_v3  ;;  %v19599_v3 = vld [vmem:[%s24737_s3 + $0x480] ss:$24 sps:$4 sm:$0xff]  }
  0xcc   :  { %2350 = vmatpush1.bf16.msra.mxu0 %v19559_v7  ;;  %v19605_v7 = vld [vmem:[%s24737_s3 + $0x4e0] ss:$24 sps:$4 sm:$0xff]  }
  0xcd   :  { %2351 = vmatprep.subr.bf16.mxu0 %v19560_v13  ;;  %v19616_v13 = vld [vmem:[%s24737_s3 + $0x574] ss:$24 sps:$4 sm:$0xff]  }
  0xd0   :  { %2352 = vmatpush1.bf16.msra.mxu0 %v19562_v17  ;;  %v19619_v17 = vld [vmem:[%s24737_s3 + $0x5a4] ss:$24 sps:$4 sm:$0xff]  }
  0xd1   :  { %2353 = vmatprep.subr.bf16.mxu0 %v19563_v20  ;;  %v19617_v20 = vld [vmem:[%s24737_s3 + $0x5a0] ss:$24 sps:$4 sm:$0xff]  }
  0xd4   :  { %2354 = vmatpush1.bf16.msra.mxu0 %v19565_v21  ;;  %v19622_v21 = vld [vmem:[%s24737_s3 + $0x5d4] ss:$24 sps:$4 sm:$0xff]  }
  0xd5   :  { %2355 = vmatprep.subr.bf16.mxu0 %v19566_v22  ;;  %v19620_v22 = vld [vmem:[%s24737_s3 + $0x5d0] ss:$24 sps:$4 sm:$0xff]  }
  0xd8   :  { %2356 = vmatpush1.bf16.msra.mxu0 %v19568_v24  ;;  %v19623_v24 = vld [vmem:[%s24737_s3 + $0x600] ss:$24 sps:$4 sm:$0xff]  }
  0xd9   :  { %2357 = vmatprep.subr.bf16.mxu0 %v19569_v27  ;;  %v19631_v27 = vld [vmem:[%s24737_s3 + $0x664] ss:$24 sps:$4 sm:$0xff]  }
  0xdc   :  { %2358 = vmatpush1.bf16.msra.mxu0 %v19571_v31  ;;  %v19637_v31 = vld [vmem:[%s24737_s3 + $0x6c4] ss:$24 sps:$4 sm:$0xff]  }
  0xdd   :  { %2359 = vmatprep.subr.bf16.mxu0 %v19572_v35  ;;  %v19643_v35 = vld [vmem:[%s24737_s3 + $0x724] ss:$24 sps:$4 sm:$0xff]  }
  0xe0   :  { %2360 = vmatpush1.bf16.msra.mxu0 %v19574_v39  ;;  %v19649_v39 = vld [vmem:[%s24737_s3 + $0x784] ss:$24 sps:$4 sm:$0xff]  }
  0xe1   :  { %2372 = vmatprep.subr.bf16.mxu0 %v19577_v42  ;;  %v19650_v42 = vld [vmem:[%s24737_s3 + $0x7b0] ss:$24 sps:$4 sm:$0xff]  }
  0xe3   :  { %2362 = vmatmul.mubr.bf16.vlgmr.msra.gmra.mrb[0].mxu0 %v23274_v46 }
  0xe4   :  { %2373 = vmatpush1.bf16.msra.mxu0 %v19575_v49  ;;  %2404 = vmatprep.mubr.bf16.mxu0 %v23281_v50  ;;  %v19659_v49 = vld [vmem:[%s24737_s3 + $0x840] ss:$24 sps:$4 sm:$0xff]  }
  0xe5   :  { %2374 = vmatprep.subr.bf16.mxu0 %v19580_v52  ;;  %v19664_v52 = vld [vmem:[%s24737_s3 + $0x874] ss:$24 sps:$4 sm:$0xff]  }
  0xe8   :  { %2375 = vmatpush1.bf16.msra.mxu0 %v19578_v18  ;;  %v19662_v18 = vld [vmem:[%s24737_s3 + $0x870] ss:$24 sps:$4 sm:$0xff]  }
  0xe9   :  { %2376 = vmatprep.subr.bf16.mxu0 %v19583_v54  ;;  %v19667_v54 = vld [vmem:[%s24737_s3 + $0x8a4] ss:$24 sps:$4 sm:$0xff]  }
  0xec   :  { %2377 = vmatpush1.bf16.msra.mxu0 %v19581_v55  ;;  %v19665_v55 = vld [vmem:[%s24737_s3 + $0x8a0] ss:$24 sps:$4 sm:$0xff]  }
  0xed   :  { %2378 = vmatprep.subr.bf16.mxu0 %v19586_v56  ;;  %v19670_v56 = vld [vmem:[%s24737_s3 + $0x8d4] ss:$24 sps:$4 sm:$0xff]  }
  0xf0   :  { %2379 = vmatpush1.bf16.msra.mxu0 %v19584_v57  ;;  %v19668_v57 = vld [vmem:[%s24737_s3 + $0x8d0] ss:$24 sps:$4 sm:$0xff]  }
  0xf1   :  { %2380 = vmatprep.subr.bf16.mxu0 %v19589_v58  ;;  %v19673_v58 = vld [vmem:[%s24737_s3 + $0xc] ss:$24 sps:$4 sm:$0xff]  }
  0xf4   :  { %2381 = vmatpush1.bf16.msra.mxu0 %v19587_v59  ;;  %v19671_v59 = vld [vmem:[%s24737_s3 + $0x8] ss:$24 sps:$4 sm:$0xff]  }
  0xf5   :  { %2382 = vmatprep.subr.bf16.mxu0 %v19592_v60  ;;  %v19676_v60 = vld [vmem:[%s24737_s3 + $0x3c] ss:$24 sps:$4 sm:$0xff]  }
  0xf8   :  { %2383 = vmatpush1.bf16.msra.mxu0 %v19590_v61  ;;  %v19674_v61 = vld [vmem:[%s24737_s3 + $0x38] ss:$24 sps:$4 sm:$0xff]  }
  0xf9   :  { %2384 = vmatprep.subr.bf16.mxu0 %v19595_v62  ;;  %v19679_v62 = vld [vmem:[%s24737_s3 + $0x6c] ss:$24 sps:$4 sm:$0xff]  }
  0xfc   :  { %2385 = vmatpush1.bf16.msra.mxu0 %v19593_v63  ;;  %v19677_v63 = vld [vmem:[%s24737_s3 + $0x68] ss:$24 sps:$4 sm:$0xff]  }
  0xfd   :  { %2386 = vmatprep.subr.bf16.mxu0 %v19598_v0  ;;  %v19682_v0 = vld [vmem:[%s24737_s3 + $0x9c] ss:$24 sps:$4 sm:$0xff]  }
 0x100   :  { %2387 = vmatpush1.bf16.msra.mxu0 %v19596_v1  ;;  %v19680_v1 = vld [vmem:[%s24737_s3 + $0x98] ss:$24 sps:$4 sm:$0xff]  }
 0x101   :  { %2388 = vmatprep.subr.bf16.mxu0 %v19601_v2  ;;  %v19685_v2 = vld [vmem:[%s24737_s3 + $0xcc] ss:$24 sps:$4 sm:$0xff]  }
 0x104   :  { %2389 = vmatpush1.bf16.msra.mxu0 %v19599_v3  ;;  %v19683_v3 = vld [vmem:[%s24737_s3 + $0xc8] ss:$24 sps:$4 sm:$0xff]  }
 0x105   :  { %2390 = vmatprep.subr.bf16.mxu0 %v19604_v4  ;;  %v19688_v4 = vld [vmem:[%s24737_s3 + $0xfc] ss:$24 sps:$4 sm:$0xff]  }
 0x108   :  { %2391 = vmatpush1.bf16.msra.mxu0 %v19602_v5  ;;  %v19686_v5 = vld [vmem:[%s24737_s3 + $0xf8] ss:$24 sps:$4 sm:$0xff]  }
 0x109   :  { %2392 = vmatprep.subr.bf16.mxu0 %v19607_v6  ;;  %v19691_v6 = vld [vmem:[%s24737_s3 + $0x12c] ss:$24 sps:$4 sm:$0xff]  }
 0x10c   :  { %2393 = vmatpush1.bf16.msra.mxu0 %v19605_v7  ;;  %v19689_v7 = vld [vmem:[%s24737_s3 + $0x128] ss:$24 sps:$4 sm:$0xff]  }
 0x10d   :  { %2394 = vmatprep.subr.bf16.mxu0 %v19610_v8  ;;  %v19694_v8 = vld [vmem:[%s24737_s3 + $0x15c] ss:$24 sps:$4 sm:$0xff]  }
 0x110   :  { %2395 = vmatpush1.bf16.msra.mxu0 %v19608_v10  ;;  %v19692_v10 = vld [vmem:[%s24737_s3 + $0x158] ss:$24 sps:$4 sm:$0xff]  }
 0x111   :  { %2396 = vmatprep.subr.bf16.mxu0 %v19613_v11  ;;  %v19697_v11 = vld [vmem:[%s24737_s3 + $0x18c] ss:$24 sps:$4 sm:$0xff]  }
 0x114   :  { %2397 = vmatpush1.bf16.msra.mxu0 %v19611_v12  ;;  %v19695_v12 = vld [vmem:[%s24737_s3 + $0x188] ss:$24 sps:$4 sm:$0xff]  }
 0x115   :  { %2398 = vmatprep.subr.bf16.mxu0 %v19616_v13  ;;  %v19700_v13 = vld [vmem:[%s24737_s3 + $0x1bc] ss:$24 sps:$4 sm:$0xff]  }
 0x118   :  { %2399 = vmatpush1.bf16.msra.mxu0 %v19614_v15  ;;  %v19698_v15 = vld [vmem:[%s24737_s3 + $0x1b8] ss:$24 sps:$4 sm:$0xff]  }
 0x119   :  { %2400 = vmatprep.subr.bf16.mxu0 %v19619_v17  ;;  %v19703_v17 = vld [vmem:[%s24737_s3 + $0x1ec] ss:$24 sps:$4 sm:$0xff]  }
 0x11c   :  { %2401 = vmatpush1.bf16.msra.mxu0 %v19617_v20  ;;  %v19701_v20 = vld [vmem:[%s24737_s3 + $0x1e8] ss:$24 sps:$4 sm:$0xff]  }
 0x11d   :  { %2402 = vmatprep.subr.bf16.mxu0 %v19622_v21  ;;  %v19706_v21 = vld [vmem:[%s24737_s3 + $0x21c] ss:$24 sps:$4 sm:$0xff]  }
 0x120   :  { %2403 = vmatpush1.bf16.msra.mxu0 %v19620_v22  ;;  %v19704_v22 = vld [vmem:[%s24737_s3 + $0x218] ss:$24 sps:$4 sm:$0xff]  }
 0x121   :  { %2415 = vmatprep.subr.bf16.mxu0 %v19625_v23  ;;  %v19709_v23 = vld [vmem:[%s24737_s3 + $0x24c] ss:$24 sps:$4 sm:$0xff]  }
 0x123   :  { %2405 = vmatmul.mubr.bf16.vlgmr.msra.gmra.mrb[0].mxu0 %v23228_v16 }
 0x124   :  { %2416 = vmatpush1.bf16.msra.mxu0 %v19623_v24  ;;  %2447 = vmatprep.mubr.bf16.mxu0 %v23283_v51  ;;  %v19707_v24 = vld [vmem:[%s24737_s3 + $0x248] ss:$24 sps:$4 sm:$0xff]  }
 0x125   :  { %2417 = vmatprep.subr.bf16.mxu0 %v19628_v25  ;;  %v19712_v25 = vld [vmem:[%s24737_s3 + $0x27c] ss:$24 sps:$4 sm:$0xff]  }
 0x128   :  { %2418 = vmatpush1.bf16.msra.mxu0 %v19626_v26  ;;  %v19710_v26 = vld [vmem:[%s24737_s3 + $0x278] ss:$24 sps:$4 sm:$0xff]  }
 0x129   :  { %2419 = vmatprep.subr.bf16.mxu0 %v19631_v27  ;;  %v19715_v27 = vld [vmem:[%s24737_s3 + $0x2ac] ss:$24 sps:$4 sm:$0xff]  }
 0x12c   :  { %2420 = vmatpush1.bf16.msra.mxu0 %v19629_v28  ;;  %v19713_v28 = vld [vmem:[%s24737_s3 + $0x2a8] ss:$24 sps:$4 sm:$0xff]  }
 0x12d   :  { %2421 = vmatprep.subr.bf16.mxu0 %v19634_v29  ;;  %v19718_v29 = vld [vmem:[%s24737_s3 + $0x2dc] ss:$24 sps:$4 sm:$0xff]  }
 0x130   :  { %2422 = vmatpush1.bf16.msra.mxu0 %v19632_v30  ;;  %v19716_v30 = vld [vmem:[%s24737_s3 + $0x2d8] ss:$24 sps:$4 sm:$0xff]  }
 0x131   :  { %2423 = vmatprep.subr.bf16.mxu0 %v19637_v31  ;;  %v19721_v31 = vld [vmem:[%s24737_s3 + $0x30c] ss:$24 sps:$4 sm:$0xff]  }
 0x134   :  { %2424 = vmatpush1.bf16.msra.mxu0 %v19635_v32  ;;  %v19719_v32 = vld [vmem:[%s24737_s3 + $0x308] ss:$24 sps:$4 sm:$0xff]  }
 0x135   :  { %2425 = vmatprep.subr.bf16.mxu0 %v19640_v33  ;;  %v19724_v33 = vld [vmem:[%s24737_s3 + $0x33c] ss:$24 sps:$4 sm:$0xff]  }
 0x138   :  { %2426 = vmatpush1.bf16.msra.mxu0 %v19638_v34  ;;  %v19722_v34 = vld [vmem:[%s24737_s3 + $0x338] ss:$24 sps:$4 sm:$0xff]  }
 0x139   :  { %2427 = vmatprep.subr.bf16.mxu0 %v19643_v35  ;;  %v19727_v35 = vld [vmem:[%s24737_s3 + $0x36c] ss:$24 sps:$4 sm:$0xff]  }
 0x13c   :  { %2428 = vmatpush1.bf16.msra.mxu0 %v19641_v36  ;;  %v19725_v36 = vld [vmem:[%s24737_s3 + $0x368] ss:$24 sps:$4 sm:$0xff]  }
 0x13d   :  { %2429 = vmatprep.subr.bf16.mxu0 %v19646_v37  ;;  %v19730_v37 = vld [vmem:[%s24737_s3 + $0x39c] ss:$24 sps:$4 sm:$0xff]  }
 0x140   :  { %2430 = vmatpush1.bf16.msra.mxu0 %v19644_v38  ;;  %v19728_v38 = vld [vmem:[%s24737_s3 + $0x398] ss:$24 sps:$4 sm:$0xff]  }
 0x141   :  { %2431 = vmatprep.subr.bf16.mxu0 %v19649_v39  ;;  %v19733_v39 = vld [vmem:[%s24737_s3 + $0x3cc] ss:$24 sps:$4 sm:$0xff]  }
 0x144   :  { %2432 = vmatpush1.bf16.msra.mxu0 %v19647_v40  ;;  %v19731_v40 = vld [vmem:[%s24737_s3 + $0x3c8] ss:$24 sps:$4 sm:$0xff]  }
 0x145   :  { %2433 = vmatprep.subr.bf16.mxu0 %v19652_v41  ;;  %v19736_v41 = vld [vmem:[%s24737_s3 + $0x3fc] ss:$24 sps:$4 sm:$0xff]  }
 0x148   :  { %2434 = vmatpush1.bf16.msra.mxu0 %v19650_v42  ;;  %v19734_v42 = vld [vmem:[%s24737_s3 + $0x3f8] ss:$24 sps:$4 sm:$0xff]  }
 0x149   :  { %2435 = vmatprep.subr.bf16.mxu0 %v19655_v43  ;;  %v19739_v43 = vld [vmem:[%s24737_s3 + $0x42c] ss:$24 sps:$4 sm:$0xff]  }
 0x14c   :  { %2436 = vmatpush1.bf16.msra.mxu0 %v19653_v44  ;;  %v19737_v44 = vld [vmem:[%s24737_s3 + $0x428] ss:$24 sps:$4 sm:$0xff]  }
 0x14d   :  { %2437 = vmatprep.subr.bf16.mxu0 %v19658_v45  ;;  %v19742_v45 = vld [vmem:[%s24737_s3 + $0x45c] ss:$24 sps:$4 sm:$0xff]  }
 0x150   :  { %2438 = vmatpush1.bf16.msra.mxu0 %v19656_v47  ;;  %v19740_v47 = vld [vmem:[%s24737_s3 + $0x458] ss:$24 sps:$4 sm:$0xff]  }
 0x151   :  { %2439 = vmatprep.subr.bf16.mxu0 %v19661_v48  ;;  %v19745_v48 = vld [vmem:[%s24737_s3 + $0x48c] ss:$24 sps:$4 sm:$0xff]  }
 0x154   :  { %2440 = vmatpush1.bf16.msra.mxu0 %v19659_v49  ;;  %v19743_v49 = vld [vmem:[%s24737_s3 + $0x488] ss:$24 sps:$4 sm:$0xff]  }
 0x155   :  { %2441 = vmatprep.subr.bf16.mxu0 %v19664_v52  ;;  %v19748_v52 = vld [vmem:[%s24737_s3 + $0x4bc] ss:$24 sps:$4 sm:$0xff]  }
 0x158   :  { %2442 = vmatpush1.bf16.msra.mxu0 %v19662_v18  ;;  %v19746_v18 = vld [vmem:[%s24737_s3 + $0x4b8] ss:$24 sps:$4 sm:$0xff]  }
 0x159   :  { %2443 = vmatprep.subr.bf16.mxu0 %v19667_v54  ;;  %v19751_v54 = vld [vmem:[%s24737_s3 + $0x4ec] ss:$24 sps:$4 sm:$0xff]  }
 0x15c   :  { %2444 = vmatpush1.bf16.msra.mxu0 %v19665_v55  ;;  %v19749_v55 = vld [vmem:[%s24737_s3 + $0x4e8] ss:$24 sps:$4 sm:$0xff]  }
 0x15d   :  { %2445 = vmatprep.subr.bf16.mxu0 %v19670_v56  ;;  %v19754_v56 = vld [vmem:[%s24737_s3 + $0x51c] ss:$24 sps:$4 sm:$0xff]  }
 0x160   :  { %2446 = vmatpush1.bf16.msra.mxu0 %v19668_v57  ;;  %v19752_v57 = vld [vmem:[%s24737_s3 + $0x518] ss:$24 sps:$4 sm:$0xff]  }
 0x161   :  { %2458 = vmatprep.subr.bf16.mxu0 %v19673_v58  ;;  %v19757_v58 = vld [vmem:[%s24737_s3 + $0x54c] ss:$24 sps:$4 sm:$0xff]  }
 0x163   :  { %2448 = vmatmul.mubr.bf16.vlgmr.msra.gmra.mrb[0].mxu0 %v23288_v53 }
 0x164   :  { %2459 = vmatpush1.bf16.msra.mxu0 %v19671_v59  ;;  %2490 = vmatprep.mubr.bf16.mxu0 %v23233_v19  ;;  %v19755_v59 = vld [vmem:[%s24737_s3 + $0x548] ss:$24 sps:$4 sm:$0xff]  }
 0x165   :  { %2460 = vmatprep.subr.bf16.mxu0 %v19676_v60  ;;  %v19760_v60 = vld [vmem:[%s24737_s3 + $0x57c] ss:$24 sps:$4 sm:$0xff]  }
 0x168   :  { %2461 = vmatpush1.bf16.msra.mxu0 %v19674_v61  ;;  %v19758_v61 = vld [vmem:[%s24737_s3 + $0x578] ss:$24 sps:$4 sm:$0xff]  }
 0x169   :  { %2462 = vmatprep.subr.bf16.mxu0 %v19679_v62  ;;  %v19763_v62 = vld [vmem:[%s24737_s3 + $0x5ac] ss:$24 sps:$4 sm:$0xff]  }
 0x16c   :  { %2463 = vmatpush1.bf16.msra.mxu0 %v19677_v63  ;;  %v19761_v63 = vld [vmem:[%s24737_s3 + $0x5a8] ss:$24 sps:$4 sm:$0xff]  }
 0x16d   :  { %2464 = vmatprep.subr.bf16.mxu0 %v19682_v0  ;;  %v19766_v0 = vld [vmem:[%s24737_s3 + $0x5dc] ss:$24 sps:$4 sm:$0xff]  }
 0x170   :  { %2465 = vmatpush1.bf16.msra.mxu0 %v19680_v1  ;;  %v19764_v1 = vld [vmem:[%s24737_s3 + $0x5d8] ss:$24 sps:$4 sm:$0xff]  }
 0x171   :  { %2466 = vmatprep.subr.bf16.mxu0 %v19685_v2  ;;  %v19769_v2 = vld [vmem:[%s24737_s3 + $0x60c] ss:$24 sps:$4 sm:$0xff]  }
 0x174   :  { %2467 = vmatpush1.bf16.msra.mxu0 %v19683_v3  ;;  %v19767_v3 = vld [vmem:[%s24737_s3 + $0x608] ss:$24 sps:$4 sm:$0xff]  }
 0x175   :  { %2468 = vmatprep.subr.bf16.mxu0 %v19688_v4  ;;  %v19772_v4 = vld [vmem:[%s24737_s3 + $0x63c] ss:$24 sps:$4 sm:$0xff]  }
 0x178   :  { %2469 = vmatpush1.bf16.msra.mxu0 %v19686_v5  ;;  %v19770_v5 = vld [vmem:[%s24737_s3 + $0x638] ss:$24 sps:$4 sm:$0xff]  }
 0x179   :  { %2470 = vmatprep.subr.bf16.mxu0 %v19691_v6  ;;  %v19775_v6 = vld [vmem:[%s24737_s3 + $0x66c] ss:$24 sps:$4 sm:$0xff]  }
 0x17c   :  { %2471 = vmatpush1.bf16.msra.mxu0 %v19689_v7  ;;  %v19773_v7 = vld [vmem:[%s24737_s3 + $0x668] ss:$24 sps:$4 sm:$0xff]  }
 0x17d   :  { %2472 = vmatprep.subr.bf16.mxu0 %v19694_v8  ;;  %v19778_v8 = vld [vmem:[%s24737_s3 + $0x69c] ss:$24 sps:$4 sm:$0xff]  }
 0x180   :  { %2473 = vmatpush1.bf16.msra.mxu0 %v19692_v10  ;;  %v19776_v10 = vld [vmem:[%s24737_s3 + $0x698] ss:$24 sps:$4 sm:$0xff]  }
 0x181   :  { %2474 = vmatprep.subr.bf16.mxu0 %v19697_v11  ;;  %v19781_v11 = vld [vmem:[%s24737_s3 + $0x6cc] ss:$24 sps:$4 sm:$0xff]  }
 0x184   :  { %2475 = vmatpush1.bf16.msra.mxu0 %v19695_v12  ;;  %v19779_v12 = vld [vmem:[%s24737_s3 + $0x6c8] ss:$24 sps:$4 sm:$0xff]  }
 0x185   :  { %2476 = vmatprep.subr.bf16.mxu0 %v19700_v13  ;;  %v19784_v13 = vld [vmem:[%s24737_s3 + $0x6fc] ss:$24 sps:$4 sm:$0xff]  }
 0x188   :  { %2477 = vmatpush1.bf16.msra.mxu0 %v19698_v15  ;;  %v19782_v15 = vld [vmem:[%s24737_s3 + $0x6f8] ss:$24 sps:$4 sm:$0xff]  }
 0x189   :  { %2478 = vmatprep.subr.bf16.mxu0 %v19703_v17  ;;  %v19787_v17 = vld [vmem:[%s24737_s3 + $0x72c] ss:$24 sps:$4 sm:$0xff]  }
 0x18c   :  { %2479 = vmatpush1.bf16.msra.mxu0 %v19701_v20  ;;  %v19785_v20 = vld [vmem:[%s24737_s3 + $0x728] ss:$24 sps:$4 sm:$0xff]  }
 0x18d   :  { %2480 = vmatprep.subr.bf16.mxu0 %v19706_v21  ;;  %v19790_v21 = vld [vmem:[%s24737_s3 + $0x75c] ss:$24 sps:$4 sm:$0xff]  }
 0x190   :  { %2481 = vmatpush1.bf16.msra.mxu0 %v19704_v22  ;;  %v19788_v22 = vld [vmem:[%s24737_s3 + $0x758] ss:$24 sps:$4 sm:$0xff]  }
 0x191   :  { %2482 = vmatprep.subr.bf16.mxu0 %v19709_v23  ;;  %v19793_v23 = vld [vmem:[%s24737_s3 + $0x78c] ss:$24 sps:$4 sm:$0xff]  }
 0x194   :  { %2483 = vmatpush1.bf16.msra.mxu0 %v19707_v24  ;;  %v19791_v24 = vld [vmem:[%s24737_s3 + $0x788] ss:$24 sps:$4 sm:$0xff]  }
 0x195   :  { %2484 = vmatprep.subr.bf16.mxu0 %v19712_v25  ;;  %v19796_v25 = vld [vmem:[%s24737_s3 + $0x7bc] ss:$24 sps:$4 sm:$0xff]  }
 0x198   :  { %2485 = vmatpush1.bf16.msra.mxu0 %v19710_v26  ;;  %v19794_v26 = vld [vmem:[%s24737_s3 + $0x7b8] ss:$24 sps:$4 sm:$0xff]  }
 0x199   :  { %2486 = vmatprep.subr.bf16.mxu0 %v19715_v27  ;;  %v19799_v27 = vld [vmem:[%s24737_s3 + $0x7ec] ss:$24 sps:$4 sm:$0xff]  }
 0x19c   :  { %2487 = vmatpush1.bf16.msra.mxu0 %v19713_v28  ;;  %v19797_v28 = vld [vmem:[%s24737_s3 + $0x7e8] ss:$24 sps:$4 sm:$0xff]  }
 0x19d   :  { %2488 = vmatprep.subr.bf16.mxu0 %v19718_v29  ;;  %v19802_v29 = vld [vmem:[%s24737_s3 + $0x81c] ss:$24 sps:$4 sm:$0xff]  }
 0x1a0   :  { %2489 = vmatpush1.bf16.msra.mxu0 %v19716_v30  ;;  %v19800_v30 = vld [vmem:[%s24737_s3 + $0x818] ss:$24 sps:$4 sm:$0xff]  }
 0x1a1   :  { %2501 = vmatprep.subr.bf16.mxu0 %v19721_v31  ;;  %v19805_v31 = vld [vmem:[%s24737_s3 + $0x84c] ss:$24 sps:$4 sm:$0xff]  }
 0x1a3   :  { %2491 = vmatmul.mubr.bf16.vlgmr.msra.gmra.mrb[4].mxu0 %v23274_v46 }
 0x1a4   :  { %2502 = vmatpush1.bf16.msra.mxu0 %v19719_v32  ;;  %2533 = vmatprep.mubr.bf16.mxu0 %v23281_v50  ;;  %v19803_v32 = vld [vmem:[%s24737_s3 + $0x848] ss:$24 sps:$4 sm:$0xff]  }
 0x1a5   :  { %2503 = vmatprep.subr.bf16.mxu0 %v19724_v33  ;;  %v19808_v33 = vld [vmem:[%s24737_s3 + $0x87c] ss:$24 sps:$4 sm:$0xff]  }
 0x1a8   :  { %2504 = vmatpush1.bf16.msra.mxu0 %v19722_v34  ;;  %v19806_v34 = vld [vmem:[%s24737_s3 + $0x878] ss:$24 sps:$4 sm:$0xff]  }
 0x1a9   :  { %2505 = vmatprep.subr.bf16.mxu0 %v19727_v35  ;;  %v19811_v35 = vld [vmem:[%s24737_s3 + $0x8ac] ss:$24 sps:$4 sm:$0xff]  }
 0x1ac   :  { %2506 = vmatpush1.bf16.msra.mxu0 %v19725_v36  ;;  %v19809_v36 = vld [vmem:[%s24737_s3 + $0x8a8] ss:$24 sps:$4 sm:$0xff]  }
 0x1ad   :  { %2507 = vmatprep.subr.bf16.mxu0 %v19730_v37  ;;  %v19814_v37 = vld [vmem:[%s24737_s3 + $0x8dc] ss:$24 sps:$4 sm:$0xff]  }
 0x1b0   :  { %2508 = vmatpush1.bf16.msra.mxu0 %v19728_v38  ;;  %v468_v38 = vld [vmem:[#allocation6] sm:$0x3f] }
 0x1b1   :  { %2509 = vmatprep.subr.bf16.mxu0 %v19733_v39  ;;  %v23769_v39 = vsub.s32 0, %v23126_v14 }
 0x1b4   :  { %2510 = vmatpush1.bf16.msra.mxu0 %v19731_v40  ;;  %v23772_v40 = vsub.s32 1, %v23126_v14 }
 0x1b5   :  { %2511 = vmatprep.subr.bf16.mxu0 %v19736_v41  ;;  %v22911_v41 = vmov 1983009808  }
 0x1b8   :  { %2512 = vmatpush1.bf16.msra.mxu0 %v19734_v42  ;;  %v627_v42 = vunpack.c.l.s4 %v22911_v41  ;;  %v19944_v41 = vld [vmem:[#allocation9 + $0x6c4] ss:$48 sps:$4 sm:$0xff]  }
 0x1b9   :  { %2513 = vmatprep.subr.bf16.mxu0 %v19739_v43  ;;  %v23775_v43 = vsub.s32 2, %v23126_v14 }
 0x1bc   :  { %2514 = vmatpush1.bf16.msra.mxu0 %v19737_v44  ;;  %v23778_v44 = vsub.s32 3, %v23126_v14 }
 0x1bd   :  { %2515 = vmatprep.subr.bf16.mxu0 %v19742_v45  ;;  %v19812_v45 = vld [vmem:[%s24737_s3 + $0x8d8] ss:$24 sps:$4 sm:$0xff]  }
 0x1c0   :  { %2516 = vmatpush1.bf16.msra.mxu0 %v19740_v47  ;;  %v19817_v47 = vld [vmem:[%s24737_s3 + $0x14] ss:$24 sps:$4 sm:$0xff]  }
 0x1c1   :  { %2517 = vmatprep.subr.bf16.mxu0 %v19745_v48  ;;  %v473_v48 = vrot.slane %v468_v38, %v23769_v39 }
 0x1c4   :  { %2518 = vmatpush1.bf16.msra.mxu0 %v19743_v49  ;;  %v477_v49 = vrot.slane %v468_v38, %v23772_v40 }
 0x1c5   :  { %2519 = vmatprep.subr.bf16.mxu0 %v19748_v52  ;;  %v628_v52 = vunpack.c.0.s8 %v627_v42  ;;  %v19946_v42 = vld [vmem:[#allocation9 + $0x6c0] ss:$48 sps:$4 sm:$0xff]  }
 0x1c8   :  { %2520 = vmatpush1.bf16.msra.mxu0 %v19746_v18  ;;  %v23789_v18 = vrot.slane %v468_v38, %v23775_v43 }
 0x1c9   :  { %2521 = vmatprep.subr.bf16.mxu0 %v19751_v54  ;;  %v23792_v54 = vrot.slane %v468_v38, %v23778_v44 }
 0x1cc   :  { %2522 = vmatpush1.bf16.msra.mxu0 %v19749_v55  ;;  %v19815_v55 = vld [vmem:[%s24737_s3 + $0x10] ss:$24 sps:$4 sm:$0xff]  }
 0x1cd   :  { %2523 = vmatprep.subr.bf16.mxu0 %v19754_v56  ;;  %v19820_v56 = vld [vmem:[%s24737_s3 + $0x44] ss:$24 sps:$4 sm:$0xff]  }
 0x1d0   :  { %2524 = vmatpush1.bf16.msra.mxu0 %v19752_v57  ;;  %v622_v57 = vcombine.low %v473_v48, %v477_v49 }
 0x1d1   :  { %2525 = vmatprep.subr.bf16.mxu0 %v19757_v58  ;;  %v23801_v58 = vsub.s32 %v628_v52, %v23126_v14  ;;  %v19952_v52 = vld [vmem:[#allocation9 + $0x720] ss:$48 sps:$4 sm:$0xff]  }
 0x1d4   :  { %2526 = vmatpush1.bf16.msra.mxu0 %v19755_v59  ;;  %v624_v59 = vcombine.low %v23789_v18, %v23792_v54 }
 0x1d5   :  { %2527 = vmatprep.subr.bf16.mxu0 %v19760_v60  ;;  %v623_v60 = vcombine.high %v473_v48, %v477_v49  ;;  %v19841_v48 = vld [vmem:[%s24737_s3 + $0x194] ss:$24 sps:$4 sm:$0xff]   ;;  %v19950_v49 = vld [vmem:[#allocation9 + $0x724] ss:$48 sps:$4 sm:$0xff]  }
 0x1d8   :  { %2528 = vmatpush1.bf16.msra.mxu0 %v19758_v61  ;;  %v19818_v61 = vld [vmem:[%s24737_s3 + $0x40] ss:$24 sps:$4 sm:$0xff]  }
 0x1d9   :  { %2529 = vmatprep.subr.bf16.mxu0 %v19763_v62  ;;  %v19823_v62 = vld [vmem:[%s24737_s3 + $0x74] ss:$24 sps:$4 sm:$0xff]  }
 0x1dc   :  { %2530 = vmatpush1.bf16.msra.mxu0 %v19761_v63  ;;  %v632_v63 = vrot.slane %v622_v57, %v23801_v58  ;;  %v19956_v57 = vld [vmem:[#allocation9 + $0x784] ss:$48 sps:$4 sm:$0xff]  }
 0x1dd   :  { %2531 = vmatprep.subr.bf16.mxu0 %v19766_v0  ;;  %v23815_v0 = vrot.slane %v624_v59, %v23801_v58  ;;  %v19958_v59 = vld [vmem:[#allocation9 + $0x780] ss:$48 sps:$4 sm:$0xff]  }
 0x1e0   :  { %2532 = vmatpush1.bf16.msra.mxu0 %v19764_v1  ;;  %v23818_v1 = vrot.slane %v623_v60, %v23801_v58  ;;  %v19842_v60 = vld [vmem:[%s24737_s3 + $0x1c0] ss:$24 sps:$4 sm:$0xff]  }
 0x1e1   :  { %2544 = vmatprep.subr.bf16.mxu0 %v19769_v2  ;;  %v19821_v2 = vld [vmem:[%s24737_s3 + $0x70] ss:$24 sps:$4 sm:$0xff]  }
 0x1e3   :  { %2534 = vmatmul.mubr.bf16.vlgmr.msra.gmra.mrb[4].mxu0 %v23228_v16 }
 0x1e4   :  { %2545 = vmatpush1.bf16.msra.mxu0 %v19767_v3  ;;  %2576 = vmatprep.mubr.bf16.mxu0 %v23283_v51  ;;  %v19826_v3 = vld [vmem:[%s24737_s3 + $0xa4] ss:$24 sps:$4 sm:$0xff]  }
 0x1e5   :  { %2546 = vmatprep.subr.bf16.mxu0 %v19772_v4  ;;  %v17428_v4 = vcombine.low %v23818_v1, %v632_v63 }
 0x1e8   :  { %2547 = vmatpush1.bf16.msra.mxu0 %v19770_v5  ;;  %v19824_v5 = vld [vmem:[%s24737_s3 + $0xa0] ss:$24 sps:$4 sm:$0xff]  }
 0x1e9   :  { %2548 = vmatprep.subr.bf16.mxu0 %v19775_v6  ;;  %v19829_v6 = vld [vmem:[%s24737_s3 + $0xd4] ss:$24 sps:$4 sm:$0xff]  }
 0x1ec   :  { %2549 = vmatpush1.bf16.msra.mxu0 %v19773_v7 }
 0x1ed   :  { %2550 = vmatprep.subr.bf16.mxu0 %v19778_v8  ;;  %v2246_v8 = vrot.slane %v632_v63, %v23801_v58 }
 0x1f0   :  { %2551 = vmatpush1.bf16.msra.mxu0 %v19776_v10  ;;  %v2260_v10 = vrot.slane %v17428_v4, %v23801_v58  ;;  %v19970_v4 = vld [vmem:[#allocation9 + $0x840] ss:$48 sps:$4 sm:$0xff]  }
 0x1f1   :  { %2552 = vmatprep.subr.bf16.mxu0 %v19781_v11  ;;  %v19827_v11 = vld [vmem:[%s24737_s3 + $0xd0] ss:$24 sps:$4 sm:$0xff]  }
 0x1f4   :  { %2553 = vmatpush1.bf16.msra.mxu0 %v19779_v12  ;;  %v19832_v12 = vld [vmem:[%s24737_s3 + $0x104] ss:$24 sps:$4 sm:$0xff]  }
 0x1f5   :  { %2554 = vmatprep.subr.bf16.mxu0 %v19784_v13 }
 0x1f8   :  { %2555 = vmatpush1.bf16.msra.mxu0 %v19782_v15  ;;  %v19932_v15 = vld [vmem:[#allocation9 + $0x604] ss:$48 sps:$4 sm:$0xff]  }
 0x1f9   :  { %2556 = vmatprep.subr.bf16.mxu0 %v19787_v17  ;;  %v2268_v17 = vcombine.low %v2246_v8, %v2260_v10  ;;  %7071 = vmatprep.subr.bf16.mxu1 %v19932_v15  ;;  %v19854_v15 = vld [vmem:[%s24737_s3 + $0x280] ss:$24 sps:$4 sm:$0xff]  }
 0x1fc   :  { %2557 = vmatpush1.bf16.msra.mxu0 %v19785_v20  ;;  %v19934_v20 = vld [vmem:[#allocation9 + $0x600] ss:$48 sps:$4 sm:$0xff]  }
 0x1fd   :  { %2558 = vmatprep.subr.bf16.mxu0 %v19790_v21  ;;  %v2269_v21 = vcombine.high %v2246_v8, %v2260_v10  ;;  %7072 = vmatpush1.bf16.msra.mxu1 %v19934_v20  ;;  %v19976_v8 = vld [vmem:[#allocation9 + $0x8a0] ss:$48 sps:$4 sm:$0xff]   ;;  %v19851_v10 = vld [vmem:[%s24737_s3 + $0x250] ss:$24 sps:$4 sm:$0xff]  }
 0x1fe   :  { %v19986_v20 = vld [vmem:[#allocation9 + $0x964] ss:$48 sps:$4 sm:$0xff]  }
 0x200   :  { %2559 = vmatpush1.bf16.msra.mxu0 %v19788_v22  ;;  %v19830_v22 = vld [vmem:[%s24737_s3 + $0x100] ss:$24 sps:$4 sm:$0xff]  }
 0x201   :  { %2560 = vmatprep.subr.bf16.mxu0 %v19793_v23  ;;  %v19835_v23 = vld [vmem:[%s24737_s3 + $0x134] ss:$24 sps:$4 sm:$0xff]  }
 0x204   :  { %2561 = vmatpush1.bf16.msra.mxu0 %v19791_v24 }
 0x205   :  { %2562 = vmatprep.subr.bf16.mxu0 %v19796_v25 }
 0x208   :  { %2563 = vmatpush1.bf16.msra.mxu0 %v19794_v26  ;;  %v19938_v26 = vld [vmem:[#allocation9 + $0x664] ss:$48 sps:$4 sm:$0xff]  }
 0x209   :  { %2564 = vmatprep.subr.bf16.mxu0 %v19799_v27  ;;  %7073 = vmatprep.subr.bf16.mxu1 %v19938_v26  ;;  %v19860_v26 = vld [vmem:[%s24737_s3 + $0x2e0] ss:$24 sps:$4 sm:$0xff]  }
 0x20c   :  { %2565 = vmatpush1.bf16.msra.mxu0 %v19797_v28 }
 0x20d   :  { %2566 = vmatprep.subr.bf16.mxu0 %v19802_v29  ;;  %v19940_v29 = vld [vmem:[#allocation9 + $0x660] ss:$48 sps:$4 sm:$0xff]  }
 0x20e   :  { %7074 = vmatpush1.bf16.msra.mxu1 %v19940_v29  ;;  %v19863_v29 = vld [vmem:[%s24737_s3 + $0x310] ss:$24 sps:$4 sm:$0xff]  }
 0x20f   :  { %7075 = vmatprep.subr.bf16.mxu1 %v19944_v41  ;;  %v3368_v41 = vld [vmem:[#allocation3 + $0x48] sm:$0xff] }
 0x210   :  { %2567 = vmatpush1.bf16.msra.mxu0 %v19800_v30 }
 0x211   :  { %2568 = vmatprep.subr.bf16.mxu0 %v19805_v31 }
 0x212   :  { %7076 = vmatpush1.bf16.msra.mxu1 %v19946_v42  ;;  %v20004_v42 = vld [vmem:[#allocation9 + $0xa84] ss:$48 sps:$4 sm:$0xff]  }
 0x213   :  { %7077 = vmatprep.subr.bf16.mxu1 %v19950_v49  ;;  %v20006_v49 = vld [vmem:[#allocation9 + $0xa80] ss:$48 sps:$4 sm:$0xff]  }
 0x214   :  { %2569 = vmatpush1.bf16.msra.mxu0 %v19803_v32  ;;  %v19833_v32 = vld [vmem:[%s24737_s3 + $0x130] ss:$24 sps:$4 sm:$0xff]  }
 0x215   :  { %2570 = vmatprep.subr.bf16.mxu0 %v19808_v33  ;;  %v19838_v33 = vld [vmem:[%s24737_s3 + $0x164] ss:$24 sps:$4 sm:$0xff]  }
 0x216   :  { %7078 = vmatpush1.bf16.msra.mxu1 %v19952_v52  ;;  %v3361_v52 = vld [vmem:[#allocation3 + $0x10] sm:$0xff] }
 0x217   :  { %7079 = vmatprep.subr.bf16.mxu1 %v19956_v57  ;;  %v19871_v57 = vld [vmem:[%s24737_s3 + $0x374] ss:$24 sps:$4 sm:$0xff]  }
 0x218   :  { %2571 = vmatpush1.bf16.msra.mxu0 %v19806_v34 }
 0x219   :  { %2572 = vmatprep.subr.bf16.mxu0 %v19811_v35 }
 0x21a   :  { %7080 = vmatpush1.bf16.msra.mxu1 %v19958_v59 }
 0x21c   :  { %2573 = vmatpush1.bf16.msra.mxu0 %v19809_v36 }
 0x21d   :  { %2574 = vmatprep.subr.bf16.mxu0 %v19814_v37 }
 0x220   :  { %2575 = vmatpush1.bf16.msra.mxu0 %v19812_v45 }
 0x221   :  { %2587 = vmatprep.subr.bf16.mxu0 %v19817_v47  ;;  %v19836_v47 = vld [vmem:[%s24737_s3 + $0x160] ss:$24 sps:$4 sm:$0xff]  }
 0x223   :  { %2577 = vmatmul.mubr.bf16.vlgmr.msra.gmra.mrb[4].mxu0 %v23288_v53 }
 0x224   :  { %2588 = vmatpush1.bf16.msra.mxu0 %v19815_v55  ;;  %2619 = vmatprep.mubr.bf16.mxu0 %v23233_v19  ;;  %v655_v19 = vcombine.high %v632_v63, %v23815_v0  ;;  %v19839_v55 = vld [vmem:[%s24737_s3 + $0x190] ss:$24 sps:$4 sm:$0xff]   ;;  %v19964_v63 = vld [vmem:[#allocation9 + $0x7e0] ss:$48 sps:$4 sm:$0xff]  }
 0x225   :  { %2589 = vmatprep.subr.bf16.mxu0 %v19820_v56  ;;  %v19844_v56 = vld [vmem:[%s24737_s3 + $0x1c4] ss:$24 sps:$4 sm:$0xff]  }
 0x226   :  { %v17430_v7 = vcombine.low %v655_v19, %v23818_v1  ;;  %v19968_v19 = vld [vmem:[#allocation9 + $0x844] ss:$48 sps:$4 sm:$0xff]  }
 0x228   :  { %2590 = vmatpush1.bf16.msra.mxu0 %v19818_v61  ;;  %v2298_v13 = vrot.slane %v17430_v7, %v23801_v58  ;;  %v19847_v61 = vld [vmem:[%s24737_s3 + $0x1f4] ss:$24 sps:$4 sm:$0xff]   ;;  %v19974_v7 = vld [vmem:[#allocation9 + $0x8a4] ss:$48 sps:$4 sm:$0xff]  }
 0x229   :  { %2591 = vmatprep.subr.bf16.mxu0 %v19823_v62  ;;  %v19962_v62 = vld [vmem:[#allocation9 + $0x7e4] ss:$48 sps:$4 sm:$0xff]  }
 0x22a   :  { %v2306_v25 = vcombine.high %v2298_v13, %v2298_v13  ;;  %7081 = vmatprep.subr.bf16.mxu1 %v19962_v62 }
 0x22b   :  { %7082 = vmatpush1.bf16.msra.mxu1 %v19964_v63 }
 0x22c   :  { %2592 = vmatpush1.bf16.msra.mxu0 %v19821_v2  ;;  %v19845_v2 = vld [vmem:[%s24737_s3 + $0x1f0] ss:$24 sps:$4 sm:$0xff]   ;;  %7083 = vmatprep.subr.bf16.mxu1 %v19968_v19 }
 0x22d   :  { %2593 = vmatprep.subr.bf16.mxu0 %v19826_v3  ;;  %v19850_v3 = vld [vmem:[%s24737_s3 + $0x224] ss:$24 sps:$4 sm:$0xff]  }
 0x22f   :  { %7084 = vmatpush1.bf16.msra.mxu1 %v19970_v4  ;;  %v20012_v4 = vld [vmem:[#allocation9 + $0xae0] ss:$48 sps:$4 sm:$0xff]  }
 0x230   :  { %2594 = vmatpush1.bf16.msra.mxu0 %v19824_v5  ;;  %v19848_v5 = vld [vmem:[%s24737_s3 + $0x220] ss:$24 sps:$4 sm:$0xff]   ;;  %7085 = vmatprep.subr.bf16.mxu1 %v19974_v7 }
 0x231   :  { %2595 = vmatprep.subr.bf16.mxu0 %v19829_v6  ;;  %v19853_v6 = vld [vmem:[%s24737_s3 + $0x254] ss:$24 sps:$4 sm:$0xff]  }
 0x233   :  { %7086 = vmatpush1.bf16.msra.mxu1 %v19976_v8 }
 0x234   :  { %2596 = vmatpush1.bf16.msra.mxu0 %v19827_v11  ;;  %v19856_v11 = vld [vmem:[%s24737_s3 + $0x284] ss:$24 sps:$4 sm:$0xff]  }
 0x235   :  { %2597 = vmatprep.subr.bf16.mxu0 %v19832_v12  ;;  %v19980_v12 = vld [vmem:[#allocation9 + $0x904] ss:$48 sps:$4 sm:$0xff]  }
 0x236   :  { %v2449_v24 = vpop.f32.mrb[0].mxu0  ;;  %7087 = vmatprep.subr.bf16.mxu1 %v19980_v12 }
 0x237   :  { %v23850_v27 = vadd.f32 %v2449_v24, %v2268_v17  ;;  %v2451_v28 = vpop.f32.mrb[1].mxu0  ;;  %v19859_v17 = vld [vmem:[%s24737_s3 + $0x2b4] ss:$24 sps:$4 sm:$0xff]   ;;  %v19992_v24 = vld [vmem:[#allocation9 + $0x9c4] ss:$48 sps:$4 sm:$0xff]  }
 0x238   :  { %v23852_v30 = vadd.f32 %v2451_v28, %v2269_v21  ;;  %v2453_v31 = vpop.f32.mrb[2].mxu0  ;;  %2598 = vmatpush1.bf16.msra.mxu0 %v19830_v22  ;;  %v19988_v21 = vld [vmem:[#allocation9 + $0x960] ss:$48 sps:$4 sm:$0xff]   ;;  %v19857_v22 = vld [vmem:[%s24737_s3 + $0x2b0] ss:$24 sps:$4 sm:$0xff]  }
 0x239   :  { %v23860_v34 = vadd.f32 %v2453_v31, %v2298_v13  ;;  %v2455_v35 = vpop.f32.mrb[3].mxu0  ;;  %2599 = vmatprep.subr.bf16.mxu0 %v19835_v23  ;;  %v19982_v13 = vld [vmem:[#allocation9 + $0x900] ss:$48 sps:$4 sm:$0xff]   ;;  %v19998_v31 = vld [vmem:[#allocation9 + $0xa24] ss:$48 sps:$4 sm:$0xff]  }
 0x23a   :  { %v2728_v36 = vcombine.low %v23850_v27, %v23852_v30  ;;  %v2729_v37 = vcombine.high %v23850_v27, %v23852_v30  ;;  %v23866_v38 = vadd.f32 %v2455_v35, %v2306_v25  ;;  %7088 = vmatpush1.bf16.msra.mxu1 %v19982_v13  ;;  %v19862_v23 = vld [vmem:[%s24737_s3 + $0x2e4] ss:$24 sps:$4 sm:$0xff]   ;;  %v19865_v28 = vld [vmem:[%s24737_s3 + $0x314] ss:$24 sps:$4 sm:$0xff]  }
 0x23b   :  { %7089 = vmatprep.subr.bf16.mxu1 %v19986_v20  ;;  %v19994_v25 = vld [vmem:[#allocation9 + $0x9c0] ss:$48 sps:$4 sm:$0xff]  }
 0x23c   :  { %v2782_v45 = vcombine.low %v23860_v34, %v23866_v38  ;;  %2600 = vmatpush1.bf16.msra.mxu0 %v19833_v32  ;;  %v20000_v32 = vld [vmem:[#allocation9 + $0xa20] ss:$48 sps:$4 sm:$0xff]  }
 0x23d   :  { %2601 = vmatprep.subr.bf16.mxu0 %v19838_v33  ;;  %v19868_v33 = vld [vmem:[%s24737_s3 + $0x344] ss:$24 sps:$4 sm:$0xff]   ;;  %v3362_v35 = vld [vmem:[#allocation3 + $0x18] sm:$0xff] }
 0x23e   :  { %7090 = vmatpush1.bf16.msra.mxu1 %v19988_v21  ;;  %v20018_v20 = vld [vmem:[#allocation9 + $0xb40] ss:$48 sps:$4 sm:$0xff]   ;;  %v19872_v21 = vld [vmem:[%s24737_s3 + $0x3a0] ss:$24 sps:$4 sm:$0xff]   ;;  %v2790_v27 = vrot.slane %v2782_v45, %v23801_v58 }
 0x23f   :  { %7091 = vmatprep.subr.bf16.mxu1 %v19992_v24  ;;  %v20238_v34 = vld [vmem:[#allocation9 + $0x730] ss:$48 sps:$4 sm:$0xff]  }
 0x240   :  { %2602 = vmatpush1.bf16.msra.mxu0 %v19836_v47  ;;  %v3389_v47 = vrot.slane %v3362_v35, 4 }
 0x241   :  { %2603 = vmatprep.subr.bf16.mxu0 %v19841_v48  ;;  %v3425_v48 = vrot.slane %v3368_v41, 4 }
 0x242   :  { %7092 = vmatpush1.bf16.msra.mxu1 %v19994_v25  ;;  %v3390_v59 = vadd.f32 %v3389_v47, %v3362_v35  ;;  %v19880_v35 = vld [vmem:[%s24737_s3 + $0x404] ss:$24 sps:$4 sm:$0xff]  }
 0x243   :  { %7093 = vmatprep.subr.bf16.mxu1 %v19998_v31 }
 0x244   :  { %2604 = vmatpush1.bf16.msra.mxu0 %v19839_v55  ;;  %v3367_v55 = vld [vmem:[#allocation3 + $0x40] sm:$0xff]  ;;  %v3391_v63 = vrot.slane %v3390_v59, 2 }
 0x245   :  { %2605 = vmatprep.subr.bf16.mxu0 %v19844_v56  ;;  %v19866_v56 = vld [vmem:[%s24737_s3 + $0x340] ss:$24 sps:$4 sm:$0xff]   ;;  %v3419_v62 = vrot.slane %v3367_v55, 4 }
 0x246   :  { %7094 = vmatpush1.bf16.msra.mxu1 %v20000_v32 }
 0x247   :  { %7095 = vmatprep.subr.bf16.mxu1 %v20004_v42  ;;  %v3420_v19 = vadd.f32 %v3419_v62, %v3367_v55  ;;  %v20024_v55 = vld [vmem:[#allocation9 + $0xba0] ss:$48 sps:$4 sm:$0xff]  }
 0x248   :  { %2606 = vmatpush1.bf16.msra.mxu0 %v19842_v60  ;;  %v3426_v60 = vadd.f32 %v3425_v48, %v3368_v41 }
 0x249   :  { %2607 = vmatprep.subr.bf16.mxu0 %v19847_v61  ;;  %v3383_v61 = vrot.slane %v3361_v52, 4 }
 0x24a   :  { %7096 = vmatpush1.bf16.msra.mxu1 %v20006_v49  ;;  %v20022_v49 = vld [vmem:[#allocation9 + $0xba4] ss:$48 sps:$4 sm:$0xff]  }
 0x24c   :  { %2608 = vmatpush1.bf16.msra.mxu0 %v19845_v2  ;;  %v3427_v2 = vrot.slane %v3426_v60, 2 }
 0x24d   :  { %2609 = vmatprep.subr.bf16.mxu0 %v19850_v3  ;;  %v3384_v3 = vadd.f32 %v3383_v61, %v3361_v52  ;;  %v19878_v52 = vld [vmem:[%s24737_s3 + $0x400] ss:$24 sps:$4 sm:$0xff]   ;;  %v19883_v61 = vld [vmem:[%s24737_s3 + $0x434] ss:$24 sps:$4 sm:$0xff]  }
 0x24e   :  { %v3428_v7 = vadd.f32 %v3427_v2, %v3426_v60 }
 0x24f   :  { %v3385_v8 = vrot.slane %v3384_v3, 2 }
 0x250   :  { %2610 = vmatpush1.bf16.msra.mxu0 %v19848_v5  ;;  %v19869_v5 = vld [vmem:[%s24737_s3 + $0x370] ss:$24 sps:$4 sm:$0xff]   ;;  %v3429_v13 = vrot.slane %v3428_v7, 1 }
 0x251   :  { %2611 = vmatprep.subr.bf16.mxu0 %v19853_v6  ;;  %v3392_v6 = vadd.f32 %v3391_v63, %v3390_v59 }
 0x252   :  { %v3430_v24 = vadd.f32 %v3429_v13, %v3428_v7  ;;  %v20036_v7 = vld [vmem:[#allocation9 + $0xc64] ss:$48 sps:$4 sm:$0xff]   ;;  %v20040_v13 = vld [vmem:[#allocation9 + $0xcc0] ss:$48 sps:$4 sm:$0xff]  }
 0x253   :  { %v3393_v12 = vrot.slane %v3392_v6, 1 }
 0x254   :  { %2612 = vmatpush1.bf16.msra.mxu0 %v19851_v10  ;;  %v3421_v10 = vrot.slane %v3420_v19, 2 }
 0x255   :  { %2613 = vmatprep.subr.bf16.mxu0 %v19856_v11  ;;  %v20016_v11 = vld [vmem:[#allocation9 + $0xb44] ss:$48 sps:$4 sm:$0xff]  }
 0x258   :  { %2614 = vmatpush1.bf16.msra.mxu0 %v19854_v15  ;;  %v3386_v15 = vadd.f32 %v3385_v8, %v3384_v3  ;;  %v20030_v3 = vld [vmem:[#allocation9 + $0xc04] ss:$48 sps:$4 sm:$0xff]   ;;  %v20034_v8 = vld [vmem:[#allocation9 + $0xc60] ss:$48 sps:$4 sm:$0xff]  }
 0x259   :  { %2615 = vmatprep.subr.bf16.mxu0 %v19859_v17  ;;  %v3422_v17 = vadd.f32 %v3421_v10, %v3420_v19  ;;  %v20028_v19 = vld [vmem:[#allocation9 + $0xc00] ss:$48 sps:$4 sm:$0xff]   ;;  %v19884_v10 = vld [vmem:[%s24737_s3 + $0x460] ss:$24 sps:$4 sm:$0xff]  }
 0x25a   :  { %v3387_v25 = vrot.slane %v3386_v15, 1 }
 0x25c   :  { %2616 = vmatpush1.bf16.msra.mxu0 %v19857_v22  ;;  %v19877_v22 = vld [vmem:[%s24737_s3 + $0x3d4] ss:$24 sps:$4 sm:$0xff]   ;;  %v3388_v31 = vadd.f32 %v3387_v25, %v3386_v15  ;;  %v19887_v15 = vld [vmem:[%s24737_s3 + $0x490] ss:$24 sps:$4 sm:$0xff]  }
 0x25d   :  { %2617 = vmatprep.subr.bf16.mxu0 %v19862_v23  ;;  %v3394_v23 = vadd.f32 %v3393_v12, %v3392_v6  ;;  %v19886_v6 = vld [vmem:[%s24737_s3 + $0x464] ss:$24 sps:$4 sm:$0xff]   ;;  %v20042_v12 = vld [vmem:[#allocation9 + $0xcc4] ss:$48 sps:$4 sm:$0xff]  }
 0x25e   :  { %v3446_v47 = vmul.f32 0.125, %v3388_v31  ;;  %v20054_v25 = vld [vmem:[#allocation9 + $0xd84] ss:$48 sps:$4 sm:$0xff]   ;;  %v20058_v31 = vld [vmem:[#allocation9 + $0xde0] ss:$48 sps:$4 sm:$0xff]  }
 0x260   :  { %2618 = vmatpush1.bf16.msra.mxu0 %v19860_v26  ;;  %v3423_v26 = vrot.slane %v3422_v17, 1  ;;  %v3458_v59 = vpack.c.bf16 %v3446_v47, %v3446_v47  ;;  %v3360_v47 = vld [vmem:[#allocation3 + $0x8] sm:$0xff] }
 0x261   :  { %2630 = vmatprep.subr.bf16.mxu0 %v19865_v28  ;;  %v3447_v28 = vmul.f32 0.125, %v3394_v23  ;;  %v19895_v23 = vld [vmem:[%s24737_s3 + $0x4f4] ss:$24 sps:$4 sm:$0xff]  }
 0x262   :  { %v3424_v32 = vadd.f32 %v3423_v26, %v3422_v17  ;;  %v19892_v17 = vld [vmem:[%s24737_s3 + $0x4c4] ss:$24 sps:$4 sm:$0xff]   ;;  %v19893_v26 = vld [vmem:[%s24737_s3 + $0x4f0] ss:$24 sps:$4 sm:$0xff]  }
 0x263   :  { %2620 = vmatmul.mubr.bf16.vlgmr.msra.gmra.mrb[8].mxu0 %v23274_v46  ;;  %v20010_v46 = vld [vmem:[#allocation9 + $0xae4] ss:$48 sps:$4 sm:$0xff]   ;;  %v3459_v41 = vpack.c.bf16 %v3447_v28, %v3447_v28  ;;  %v19898_v28 = vld [vmem:[%s24737_s3 + $0x524] ss:$24 sps:$4 sm:$0xff]  }
 0x264   :  { %2631 = vmatpush1.bf16.msra.mxu0 %v19863_v29  ;;  %2662 = vmatprep.mubr.bf16.mxu0 %v23281_v50  ;;  %v19874_v50 = vld [vmem:[%s24737_s3 + $0x3a4] ss:$24 sps:$4 sm:$0xff]   ;;  %v3453_v29 = vmul.f32 0.125, %v3430_v24  ;;  %v3452_v48 = vmul.f32 0.125, %v3424_v32  ;;  %v19896_v32 = vld [vmem:[%s24737_s3 + $0x520] ss:$24 sps:$4 sm:$0xff]  }
 0x265   :  { %2632 = vmatprep.subr.bf16.mxu0 %v19868_v33  ;;  %7097 = vmatprep.subr.bf16.mxu1 %v20010_v46  ;;  %v19875_v33 = vld [vmem:[%s24737_s3 + $0x3d0] ss:$24 sps:$4 sm:$0xff]   ;;  %v4122_v46 = vunpack.c.l.b16 %v3458_v59  ;;  %v20052_v24 = vld [vmem:[#allocation9 + $0xd80] ss:$48 sps:$4 sm:$0xff]   ;;  %v19902_v59 = vld [vmem:[%s24737_s3 + $0x580] ss:$24 sps:$4 sm:$0xff]  }
 0x266   :  { %7098 = vmatpush1.bf16.msra.mxu1 %v20012_v4  ;;  %v3465_v42 = vpack.c.bf16 %v3453_v29, %v3453_v29  ;;  %v3464_v60 = vpack.c.bf16 %v3452_v48, %v3452_v48  ;;  %v20060_v29 = vld [vmem:[#allocation9 + $0xde4] ss:$48 sps:$4 sm:$0xff]   ;;  %v19904_v48 = vld [vmem:[%s24737_s3 + $0x584] ss:$24 sps:$4 sm:$0xff]  }
 0x267   :  { %7099 = vmatprep.subr.bf16.mxu1 %v20016_v11  ;;  %v19889_v11 = vld [vmem:[%s24737_s3 + $0x494] ss:$24 sps:$4 sm:$0xff]  }
 0x268   :  { %2633 = vmatpush1.bf16.msra.mxu0 %v19866_v56  ;;  %v4123_v56 = vunpack.c.l.b16 %v3459_v41  ;;  %v4128_v63 = vunpack.c.l.b16 %v3464_v60  ;;  %v20064_v41 = vld [vmem:[#allocation9 + $0xe40] ss:$48 sps:$4 sm:$0xff]  }
 0x269   :  { %2634 = vmatprep.subr.bf16.mxu0 %v19871_v57  ;;  %v4129_v57 = vunpack.c.l.b16 %v3465_v42  ;;  %v19899_v42 = vld [vmem:[%s24737_s3 + $0x550] ss:$24 sps:$4 sm:$0xff]   ;;  %v19907_v60 = vld [vmem:[%s24737_s3 + $0x5b4] ss:$24 sps:$4 sm:$0xff]  }
 0x26a   :  { %7100 = vmatpush1.bf16.msra.mxu1 %v20018_v20  ;;  %v4134_v4 = vsel %vm3099_vm0, %v4128_v63, %v4122_v46  ;;  %v20048_v20 = vld [vmem:[#allocation9 + $0xd24] ss:$48 sps:$4 sm:$0xff]  }
 0x26b   :  { %7101 = vmatprep.subr.bf16.mxu1 %v20022_v49  ;;  %v4135_v62 = vsel %vm3099_vm0, %v4129_v57, %v4123_v56  ;;  %v20072_v49 = vld [vmem:[#allocation9 + $0xea4] ss:$48 sps:$4 sm:$0xff]   ;;  %v20070_v56 = vld [vmem:[#allocation9 + $0xea0] ss:$48 sps:$4 sm:$0xff]  }
 0x26c   :  { %2635 = vmatpush1.bf16.msra.mxu0 %v19869_v5  ;;  %v23963_v2 = vpack.c.b16 %v4135_v62, %v4135_v62  ;;  %v23967_v5 = vpack.c.b16 %v4134_v4, %v4134_v4  ;;  %v19905_v63 = vld [vmem:[%s24737_s3 + $0x5b0] ss:$24 sps:$4 sm:$0xff]  }
 0x26d   :  { %2636 = vmatprep.subr.bf16.mxu0 %v19874_v50  ;;  %v19881_v50 = vld [vmem:[%s24737_s3 + $0x430] ss:$24 sps:$4 sm:$0xff]  }
 0x26e   :  { %7102 = vmatpush1.bf16.msra.mxu1 %v20024_v55  ;;  %7103 = vmatprep.mubr.bf16.mxu1 %v23963_v2  ;;  %v3377_v55 = vrot.slane %v3360_v47, 4  ;;  %v20084_v4 = vld [vmem:[#allocation9 + $0xf64] ss:$48 sps:$4 sm:$0xff]  }
 0x26f   :  { %7112 = vmatprep.subr.bf16.mxu1 %v20030_v3  ;;  %v20076_v3 = vld [vmem:[#allocation9 + $0xf00] ss:$48 sps:$4 sm:$0xff]  }
 0x270   :  { %2637 = vmatpush1.bf16.msra.mxu0 %v19872_v21  ;;  %v20046_v21 = vld [vmem:[#allocation9 + $0xd20] ss:$48 sps:$4 sm:$0xff]   ;;  %v3378_v62 = vadd.f32 %v3377_v55, %v3360_v47 }
 0x271   :  { %2638 = vmatprep.subr.bf16.mxu0 %v19877_v22  ;;  %7104 = vmatmul.mubr.bf16.vlgmr.msra.gmra.mrb[0].mxu1 %v23967_v5  ;;  %v19890_v22 = vld [vmem:[%s24737_s3 + $0x4c0] ss:$24 sps:$4 sm:$0xff]  }
 0x272   :  { %7113 = vmatpush1.bf16.msra.mxu1 %v20028_v19  ;;  %v19910_v19 = vld [vmem:[%s24737_s3 + $0x5e4] ss:$24 sps:$4 sm:$0xff]  }
 0x273   :  { %7114 = vmatprep.subr.bf16.mxu1 %v20036_v7  ;;  %v19908_v7 = vld [vmem:[%s24737_s3 + $0x5e0] ss:$24 sps:$4 sm:$0xff]  }
 0x274   :  { %2639 = vmatpush1.bf16.msra.mxu0 %v19875_v33  ;;  %v19901_v33 = vld [vmem:[%s24737_s3 + $0x554] ss:$24 sps:$4 sm:$0xff]  }
 0x275   :  { %2640 = vmatprep.subr.bf16.mxu0 %v19880_v35  ;;  %v20066_v35 = vld [vmem:[#allocation9 + $0xe44] ss:$48 sps:$4 sm:$0xff]  }
 0x276   :  { %7115 = vmatpush1.bf16.msra.mxu1 %v20034_v8  ;;  %v20082_v8 = vld [vmem:[#allocation9 + $0xf60] ss:$48 sps:$4 sm:$0xff]  }
 0x277   :  { %7116 = vmatprep.subr.bf16.mxu1 %v20042_v12 }
 0x278   :  { %2641 = vmatpush1.bf16.msra.mxu0 %v19878_v52  ;;  %v3366_v52 = vld [vmem:[#allocation3 + $0x38] sm:$0xff] }
 0x279   :  { %2642 = vmatprep.subr.bf16.mxu0 %v19883_v61  ;;  %v3413_v57 = vrot.slane %v3366_v52, 4  ;;  %v20078_v61 = vld [vmem:[#allocation9 + $0xf04] ss:$48 sps:$4 sm:$0xff]  }
 0x27a   :  { %7117 = vmatpush1.bf16.msra.mxu1 %v20040_v13  ;;  %v20090_v13 = vld [vmem:[#allocation9 + $0xfc4] ss:$48 sps:$4 sm:$0xff]  }
 0x27b   :  { %7118 = vmatprep.subr.bf16.mxu1 %v20048_v20  ;;  %v3414_v46 = vadd.f32 %v3413_v57, %v3366_v52  ;;  %v19916_v20 = vld [vmem:[%s24737_s3 + $0x644] ss:$24 sps:$4 sm:$0xff]  }
 0x27c   :  { %2643 = vmatpush1.bf16.msra.mxu0 %v19881_v50  ;;  %v3379_v50 = vrot.slane %v3378_v62, 2 }
 0x27d   :  { %2644 = vmatprep.subr.bf16.mxu0 %v19886_v6  ;;  %v3415_v6 = vrot.slane %v3414_v46, 2 }
 0x27e   :  { %7119 = vmatpush1.bf16.msra.mxu1 %v20046_v21 }
 0x27f   :  { %7120 = vmatprep.subr.bf16.mxu1 %v20054_v25  ;;  %v3416_v12 = vadd.f32 %v3415_v6, %v3414_v46  ;;  %v3370_v25 = vld [vmem:[#allocation3 + $0x58] sm:$0xff] }
 0x280   :  { %2645 = vmatpush1.bf16.msra.mxu0 %v19884_v10  ;;  %v19913_v10 = vld [vmem:[%s24737_s3 + $0x614] ss:$24 sps:$4 sm:$0xff]  }
 0x281   :  { %2646 = vmatprep.subr.bf16.mxu0 %v19889_v11  ;;  %v3380_v11 = vadd.f32 %v3379_v50, %v3378_v62  ;;  %v19917_v62 = vld [vmem:[%s24737_s3 + $0x670] ss:$24 sps:$4 sm:$0xff]  }
 0x282   :  { %7121 = vmatpush1.bf16.msra.mxu1 %v20052_v24  ;;  %v3364_v24 = vld [vmem:[#allocation3 + $0x28] sm:$0xff] }
 0x283   :  { %7122 = vmatprep.subr.bf16.mxu1 %v20060_v29  ;;  %v3381_v21 = vrot.slane %v3380_v11, 1  ;;  %v3363_v29 = vld [vmem:[#allocation3 + $0x20] sm:$0xff] }
 0x284   :  { %2647 = vmatpush1.bf16.msra.mxu0 %v19887_v15  ;;  %v20088_v15 = vld [vmem:[#allocation9 + $0xfc0] ss:$48 sps:$4 sm:$0xff]  }
 0x285   :  { %2648 = vmatprep.subr.bf16.mxu0 %v19892_v17  ;;  %v19911_v17 = vld [vmem:[%s24737_s3 + $0x610] ss:$24 sps:$4 sm:$0xff]  }
 0x286   :  { %7123 = vmatpush1.bf16.msra.mxu1 %v20058_v31  ;;  %v3369_v31 = vld [vmem:[#allocation3 + $0x50] sm:$0xff] }
 0x287   :  { %7124 = vmatprep.subr.bf16.mxu1 %v20066_v35  ;;  %v3431_v35 = vrot.slane %v3369_v31, 4 }
 0x288   :  { %2649 = vmatpush1.bf16.msra.mxu0 %v19890_v22  ;;  %v3417_v22 = vrot.slane %v3416_v12, 1 }
 0x289   :  { %2650 = vmatprep.subr.bf16.mxu0 %v19895_v23  ;;  %v20096_v23 = vld [vmem:[#allocation9 + $0x1024] ss:$48 sps:$4 sm:$0xff]  }
 0x28a   :  { %7125 = vmatpush1.bf16.msra.mxu1 %v20064_v41  ;;  %v19914_v41 = vld [vmem:[%s24737_s3 + $0x640] ss:$24 sps:$4 sm:$0xff]  }
 0x28b   :  { %7126 = vmatprep.subr.bf16.mxu1 %v20072_v49  ;;  %v3418_v49 = vadd.f32 %v3417_v22, %v3416_v12 }
 0x28c   :  { %2651 = vmatpush1.bf16.msra.mxu0 %v19893_v26  ;;  %v20094_v26 = vld [vmem:[#allocation9 + $0x1020] ss:$48 sps:$4 sm:$0xff]  }
 0x28d   :  { %2652 = vmatprep.subr.bf16.mxu0 %v19898_v28  ;;  %v3401_v28 = vrot.slane %v3364_v24, 4 }
 0x28e   :  { %7127 = vmatpush1.bf16.msra.mxu1 %v20070_v56  ;;  %v20100_v56 = vld [vmem:[#allocation9 + $0x1080] ss:$48 sps:$4 sm:$0xff]  }
 0x28f   :  { %7128 = vmatprep.subr.bf16.mxu1 %v20078_v61  ;;  %v3402_v47 = vadd.f32 %v3401_v28, %v3364_v24 }
 0x290   :  { %2653 = vmatpush1.bf16.msra.mxu0 %v19896_v32  ;;  %v3437_v32 = vrot.slane %v3370_v25, 4 }
 0x291   :  { %2654 = vmatprep.subr.bf16.mxu0 %v19901_v33  ;;  %v3395_v33 = vrot.slane %v3363_v29, 4  ;;  %v3403_v57 = vrot.slane %v3402_v47, 2 }
 0x292   :  { %7129 = vmatpush1.bf16.msra.mxu1 %v20076_v3  ;;  %v3438_v52 = vadd.f32 %v3437_v32, %v3370_v25 }
 0x293   :  { %7130 = vmatprep.subr.bf16.mxu1 %v20084_v4  ;;  %v3396_v55 = vadd.f32 %v3395_v33, %v3363_v29  ;;  %v3404_v46 = vadd.f32 %v3403_v57, %v3402_v47  ;;  %v20108_v4 = vld [vmem:[#allocation9 + $0x10e4] ss:$48 sps:$4 sm:$0xff]  }
 0x294   :  { %2655 = vmatpush1.bf16.msra.mxu0 %v19899_v42  ;;  %v19919_v42 = vld [vmem:[%s24737_s3 + $0x674] ss:$24 sps:$4 sm:$0xff]   ;;  %v19923_v33 = vld [vmem:[%s24737_s3 + $0x6d0] ss:$24 sps:$4 sm:$0xff]  }
 0x295   :  { %2656 = vmatprep.subr.bf16.mxu0 %v19904_v48  ;;  %v3382_v48 = vadd.f32 %v3381_v21, %v3380_v11  ;;  %v3397_v61 = vrot.slane %v3396_v55, 2 }
 0x296   :  { %7131 = vmatpush1.bf16.msra.mxu1 %v20082_v8  ;;  %v3405_v8 = vrot.slane %v3404_v46, 1 }
 0x297   :  { %7132 = vmatprep.subr.bf16.mxu1 %v20090_v13  ;;  %v3445_v3 = vmul.f32 0.125, %v3382_v48  ;;  %v3398_v6 = vadd.f32 %v3397_v61, %v3396_v55  ;;  %v19920_v13 = vld [vmem:[%s24737_s3 + $0x6a0] ss:$24 sps:$4 sm:$0xff]   ;;  %v20118_v55 = vld [vmem:[#allocation9 + $0x11a0] ss:$48 sps:$4 sm:$0xff]  }
 0x298   :  { %2657 = vmatpush1.bf16.msra.mxu0 %v19902_v59  ;;  %v3432_v59 = vadd.f32 %v3431_v35, %v3369_v31  ;;  %v19928_v35 = vld [vmem:[%s24737_s3 + $0x704] ss:$24 sps:$4 sm:$0xff]   ;;  %v19926_v61 = vld [vmem:[%s24737_s3 + $0x700] ss:$24 sps:$4 sm:$0xff]  }
 0x299   :  { %2658 = vmatprep.subr.bf16.mxu0 %v19907_v60  ;;  %v3439_v60 = vrot.slane %v3438_v52, 2  ;;  %v3399_v12 = vrot.slane %v3398_v6, 1  ;;  %v3457_v21 = vpack.c.bf16 %v3445_v3, %v3445_v3  ;;  %v20126_v3 = vld [vmem:[#allocation9 + $0x14] ss:$48 sps:$4 sm:$0xff]  }
 0x29a   :  { %7133 = vmatpush1.bf16.msra.mxu1 %v20088_v15  ;;  %v19925_v15 = vld [vmem:[%s24737_s3 + $0x6d4] ss:$24 sps:$4 sm:$0xff]  }
 0x29b   :  { %7134 = vmatprep.subr.bf16.mxu1 %v20096_v23  ;;  %v3440_v50 = vadd.f32 %v3439_v60, %v3438_v52  ;;  %v20114_v23 = vld [vmem:[#allocation9 + $0x1144] ss:$48 sps:$4 sm:$0xff]   ;;  %v3400_v25 = vadd.f32 %v3399_v12, %v3398_v6  ;;  %v4121_v47 = vunpack.c.l.b16 %v3457_v21  ;;  %v20130_v12 = vld [vmem:[#allocation9 + $0x70] ss:$48 sps:$4 sm:$0xff]  }
 0x29c   :  { %2659 = vmatpush1.bf16.msra.mxu0 %v19905_v63  ;;  %v3433_v63 = vrot.slane %v3432_v59, 2  ;;  %v19941_v21 = vld [vmem:[%s24737_s3 + $0x790] ss:$24 sps:$4 sm:$0xff]  }
 0x29d   :  { %2660 = vmatprep.subr.bf16.mxu0 %v19910_v19  ;;  %v3451_v19 = vmul.f32 0.125, %v3418_v49  ;;  %v3441_v11 = vrot.slane %v3440_v50, 1  ;;  %v3448_v32 = vmul.f32 0.125, %v3400_v25  ;;  %v20120_v49 = vld [vmem:[#allocation9 + $0x11a4] ss:$48 sps:$4 sm:$0xff]  }
 0x29e   :  { %7135 = vmatpush1.bf16.msra.mxu1 %v20094_v26  ;;  %v20112_v26 = vld [vmem:[#allocation9 + $0x1140] ss:$48 sps:$4 sm:$0xff]   ;;  %v19947_v25 = vld [vmem:[%s24737_s3 + $0x7c0] ss:$24 sps:$4 sm:$0xff]  }
 0x29f   :  { %v3463_v22 = vpack.c.bf16 %v3451_v19, %v3451_v19  ;;  %v3442_v24 = vadd.f32 %v3441_v11, %v3440_v50  ;;  %v3460_v52 = vpack.c.bf16 %v3448_v32, %v3448_v32  ;;  %v20132_v11 = vld [vmem:[#allocation9 + $0x74] ss:$48 sps:$4 sm:$0xff]   ;;  %v19961_v32 = vld [vmem:[%s24737_s3 + $0x824] ss:$24 sps:$4 sm:$0xff]  }
 0x2a0   :  { %2661 = vmatpush1.bf16.msra.mxu0 %v19908_v7  ;;  %v20106_v7 = vld [vmem:[#allocation9 + $0x10e0] ss:$48 sps:$4 sm:$0xff]  }
 0x2a1   :  { %2673 = vmatprep.subr.bf16.mxu0 %v19913_v10  ;;  %v3434_v10 = vadd.f32 %v3433_v63, %v3432_v59  ;;  %v3455_v31 = vmul.f32 0.125, %v3442_v24  ;;  %v4127_v48 = vunpack.c.l.b16 %v3463_v22  ;;  %v4124_v60 = vunpack.c.l.b16 %v3460_v52  ;;  %v19949_v22 = vld [vmem:[%s24737_s3 + $0x7c4] ss:$24 sps:$4 sm:$0xff]  }
 0x2a2   :  { %v20142_v24 = vld [vmem:[#allocation9 + $0x130] ss:$48 sps:$4 sm:$0xff]  }
 0x2a3   :  { %2663 = vmatmul.mubr.bf16.vlgmr.msra.gmra.mrb[8].mxu0 %v23228_v16  ;;  %v20102_v16 = vld [vmem:[#allocation9 + $0x1084] ss:$48 sps:$4 sm:$0xff]   ;;  %v20160_v52 = vld [vmem:[#allocation9 + $0x250] ss:$48 sps:$4 sm:$0xff]  }
 0x2a4   :  { %2674 = vmatpush1.bf16.msra.mxu0 %v19911_v17  ;;  %2705 = vmatprep.mubr.bf16.mxu0 %v23283_v51  ;;  %v19922_v51 = vld [vmem:[%s24737_s3 + $0x6a4] ss:$24 sps:$4 sm:$0xff]   ;;  %v3406_v17 = vadd.f32 %v3405_v8, %v3404_v46  ;;  %v4133_v46 = vsel %vm3099_vm0, %v4127_v48, %v4121_v47  ;;  %v3359_v47 = vld [vmem:[#allocation3] sm:$0xff] }
 0x2a5   :  { %2675 = vmatprep.subr.bf16.mxu0 %v19916_v20  ;;  %7136 = vmatprep.subr.bf16.mxu1 %v20102_v16  ;;  %v3435_v20 = vrot.slane %v3434_v10, 1  ;;  %v3467_v16 = vpack.c.bf16 %v3455_v31, %v3455_v31  ;;  %v19937_v8 = vld [vmem:[%s24737_s3 + $0x764] ss:$24 sps:$4 sm:$0xff]   ;;  %v19953_v31 = vld [vmem:[%s24737_s3 + $0x7f0] ss:$24 sps:$4 sm:$0xff]  }
 0x2a6   :  { %7137 = vmatpush1.bf16.msra.mxu1 %v20100_v56  ;;  %v3449_v28 = vmul.f32 0.125, %v3406_v17  ;;  %v20138_v17 = vld [vmem:[#allocation9 + $0xd4] ss:$48 sps:$4 sm:$0xff]  }
 0x2a7   :  { %7138 = vmatprep.subr.bf16.mxu1 %v20108_v4  ;;  %v3436_v29 = vadd.f32 %v3435_v20, %v3434_v10  ;;  %v4131_v59 = vunpack.c.l.b16 %v3467_v16  ;;  %v20124_v4 = vld [vmem:[#allocation9 + $0x10] ss:$48 sps:$4 sm:$0xff]   ;;  %v24081_v10 = vpack.c.b16 %v4133_v46, %v4133_v46  ;;  %v3365_v48 = vld [vmem:[#allocation3 + $0x30] sm:$0xff]  ;;  %v19965_v16 = vld [vmem:[%s24737_s3 + $0x850] ss:$24 sps:$4 sm:$0xff]  }
 0x2a8   :  { %2676 = vmatpush1.bf16.msra.mxu0 %v19914_v41  ;;  %v3461_v41 = vpack.c.bf16 %v3449_v28, %v3449_v28  ;;  %v20136_v20 = vld [vmem:[#allocation9 + $0xd0] ss:$48 sps:$4 sm:$0xff]   ;;  %v20150_v28 = vld [vmem:[#allocation9 + $0x194] ss:$48 sps:$4 sm:$0xff]  }
 0x2a9   :  { %2677 = vmatprep.subr.bf16.mxu0 %v19919_v42  ;;  %v3454_v42 = vmul.f32 0.125, %v3436_v29  ;;  %v20148_v29 = vld [vmem:[#allocation9 + $0x190] ss:$48 sps:$4 sm:$0xff]  }
 0x2aa   :  { %7139 = vmatpush1.bf16.msra.mxu1 %v20106_v7  ;;  %v4125_v56 = vunpack.c.l.b16 %v3461_v41  ;;  %v19929_v7 = vld [vmem:[%s24737_s3 + $0x730] ss:$24 sps:$4 sm:$0xff]   ;;  %v20154_v41 = vld [vmem:[#allocation9 + $0x1f0] ss:$48 sps:$4 sm:$0xff]  }
 0x2ab   :  { %7140 = vmatprep.subr.bf16.mxu1 %v20114_v23  ;;  %v3466_v57 = vpack.c.bf16 %v3454_v42, %v3454_v42  ;;  %v20144_v23 = vld [vmem:[#allocation9 + $0x134] ss:$48 sps:$4 sm:$0xff]   ;;  %v19967_v42 = vld [vmem:[%s24737_s3 + $0x854] ss:$24 sps:$4 sm:$0xff]  }
 0x2ac   :  { %2678 = vmatpush1.bf16.msra.mxu0 %v19917_v62  ;;  %v19931_v62 = vld [vmem:[%s24737_s3 + $0x734] ss:$24 sps:$4 sm:$0xff]   ;;  %v4137_v63 = vsel %vm3099_vm0, %v4131_v59, %v4125_v56  ;;  %v3371_v56 = vrot.slane %v3359_v47, 4  ;;  %v20168_v59 = vld [vmem:[#allocation9 + $0x2b4] ss:$48 sps:$4 sm:$0xff]  }
 0x2ad   :  { %2679 = vmatprep.subr.bf16.mxu0 %v19922_v51  ;;  %v4130_v51 = vunpack.c.l.b16 %v3466_v57  ;;  %v24070_v19 = vpack.c.b16 %v4137_v63, %v4137_v63  ;;  %v3407_v57 = vrot.slane %v3365_v48, 4  ;;  %v20174_v63 = vld [vmem:[#allocation9 + $0x314] ss:$48 sps:$4 sm:$0xff]  }
 0x2ae   :  { %7141 = vmatpush1.bf16.msra.mxu1 %v20112_v26  ;;  %v19955_v26 = vld [vmem:[%s24737_s3 + $0x7f4] ss:$24 sps:$4 sm:$0xff]  }
 0x2af   :  { %7142 = vmatprep.subr.bf16.mxu1 %v20120_v49  ;;  %v4136_v50 = vsel %vm3099_vm0, %v4130_v51, %v4124_v60  ;;  %7144 = vmatprep.mubr.bf16.mxu1 %v24070_v19  ;;  %v20162_v49 = vld [vmem:[#allocation9 + $0x254] ss:$48 sps:$4 sm:$0xff]   ;;  %v20166_v60 = vld [vmem:[#allocation9 + $0x2b0] ss:$48 sps:$4 sm:$0xff]   ;;  %v3372_v51 = vadd.f32 %v3371_v56, %v3359_v47  ;;  %v3408_v46 = vadd.f32 %v3407_v57, %v3365_v48 }
 0x2b0   :  { %2680 = vmatpush1.bf16.msra.mxu0 %v19920_v13  ;;  %v24073_v6 = vpack.c.b16 %v4136_v50, %v4136_v50  ;;  %v19935_v13 = vld [vmem:[%s24737_s3 + $0x760] ss:$24 sps:$4 sm:$0xff]   ;;  %v19985_v50 = vld [vmem:[%s24737_s3 + $0x8e4] ss:$24 sps:$4 sm:$0xff]  }
 0x2b1   :  { %2681 = vmatprep.subr.bf16.mxu0 %v19925_v15  ;;  %v19943_v15 = vld [vmem:[%s24737_s3 + $0x794] ss:$24 sps:$4 sm:$0xff]  }
 0x2b2   :  { %7143 = vmatpush1.bf16.msra.mxu1 %v20118_v55  ;;  %v19973_v55 = vld [vmem:[%s24737_s3 + $0x884] ss:$24 sps:$4 sm:$0xff]  }
 0x2b3   :  { %7276 = vmatprep.subr.bf16.mxu1 %v20126_v3  ;;  %v19977_v3 = vld [vmem:[%s24737_s3 + $0x8b0] ss:$24 sps:$4 sm:$0xff]   ;;  %v20001_v47 = vld [vmem:[#allocation9 + $0xc0] ss:$48 sps:$4 sm:$0xff]  }
 0x2b4   :  { %2682 = vmatpush1.bf16.msra.mxu0 %v19923_v33  ;;  %v20156_v33 = vld [vmem:[#allocation9 + $0x1f4] ss:$48 sps:$4 sm:$0xff]   ;;  %v20007_v57 = vld [vmem:[#allocation9 + $0x120] ss:$48 sps:$4 sm:$0xff]  }
 0x2b5   :  { %2683 = vmatprep.subr.bf16.mxu0 %v19928_v35  ;;  %7145 = vmatmul.mubr.bf16.vlgmr.msra.gmra.mrb[0].mxu1 %v24073_v6  ;;  %v19959_v35 = vld [vmem:[%s24737_s3 + $0x820] ss:$24 sps:$4 sm:$0xff]  }
 0x2b6   :  { %7277 = vmatpush1.bf16.msra.mxu1 %v20124_v4  ;;  %7308 = vmatprep.mubr.bf16.mxu1 %v24081_v10  ;;  %v20172_v4 = vld [vmem:[#allocation9 + $0x310] ss:$48 sps:$4 sm:$0xff]  }
 0x2b7   :  { %7278 = vmatprep.subr.bf16.mxu1 %v20132_v11  ;;  %v20180_v11 = vld [vmem:[#allocation9 + $0x374] ss:$48 sps:$4 sm:$0xff]  }
 0x2b8   :  { %2684 = vmatpush1.bf16.msra.mxu0 %v19926_v61  ;;  %v19971_v61 = vld [vmem:[%s24737_s3 + $0x880] ss:$24 sps:$4 sm:$0xff]  }
 0x2b9   :  { %2685 = vmatprep.subr.bf16.mxu0 %v19931_v62  ;;  %v19979_v62 = vld [vmem:[%s24737_s3 + $0x8b4] ss:$24 sps:$4 sm:$0xff]  }
 0x2ba   :  { %7279 = vmatpush1.bf16.msra.mxu1 %v20130_v12  ;;  %v20178_v12 = vld [vmem:[#allocation9 + $0x370] ss:$48 sps:$4 sm:$0xff]  }
 0x2bb   :  { %7280 = vmatprep.subr.bf16.mxu1 %v20138_v17 }
 0x2bc   :  { %2686 = vmatpush1.bf16.msra.mxu0 %v19929_v7  ;;  %v3373_v7 = vrot.slane %v3372_v51, 2 }
 0x2bd   :  { %2687 = vmatprep.subr.bf16.mxu0 %v19937_v8  ;;  %v3409_v8 = vrot.slane %v3408_v46, 2 }
 0x2be   :  { %7281 = vmatpush1.bf16.msra.mxu1 %v20136_v20  ;;  %v3374_v17 = vadd.f32 %v3373_v7, %v3372_v51 }
 0x2bf   :  { %7282 = vmatprep.subr.bf16.mxu1 %v20144_v23  ;;  %v3410_v20 = vadd.f32 %v3409_v8, %v3408_v46  ;;  %v20184_v23 = vld [vmem:[#allocation9 + $0x3d0] ss:$48 sps:$4 sm:$0xff]   ;;  %v20216_v8 = vld [vmem:[#allocation9 + $0x5b4] ss:$48 sps:$4 sm:$0xff]  }
 0x2c0   :  { %2688 = vmatpush1.bf16.msra.mxu0 %v19935_v13  ;;  %v19983_v13 = vld [vmem:[%s24737_s3 + $0x8e0] ss:$24 sps:$4 sm:$0xff]   ;;  %v20208_v46 = vld [vmem:[#allocation9 + $0x550] ss:$48 sps:$4 sm:$0xff]  }
 0x2c1   :  { %2689 = vmatprep.subr.bf16.mxu0 %v19943_v15  ;;  %v19991_v15 = vld [vmem:[#allocation9 + $0x4] ss:$48 sps:$4 sm:$0xff]  }
 0x2c2   :  { %7283 = vmatpush1.bf16.msra.mxu1 %v20142_v24  ;;  %v19997_v24 = vld [vmem:[#allocation9 + $0x64] ss:$48 sps:$4 sm:$0xff]  }
 0x2c3   :  { %7284 = vmatprep.subr.bf16.mxu1 %v20150_v28  ;;  %v20192_v28 = vld [vmem:[#allocation9 + $0x434] ss:$48 sps:$4 sm:$0xff]  }
 0x2c4   :  { %2690 = vmatpush1.bf16.msra.mxu0 %v19941_v21  ;;  %v20186_v21 = vld [vmem:[#allocation9 + $0x3d4] ss:$48 sps:$4 sm:$0xff]  }
 0x2c5   :  { %2691 = vmatprep.subr.bf16.mxu0 %v19949_v22  ;;  %v19989_v22 = vld [vmem:[#allocation9] ss:$48 sps:$4 sm:$0xff]  }
 0x2c6   :  { %7285 = vmatpush1.bf16.msra.mxu1 %v20148_v29  ;;  %v625_v29 = vcombine.high %v23789_v18, %v23792_v54  ;;  %v20009_v18 = vld [vmem:[#allocation9 + $0x124] ss:$48 sps:$4 sm:$0xff]  }
 0x2c7   :  { %7286 = vmatprep.subr.bf16.mxu1 %v20156_v33  ;;  %v20003_v33 = vld [vmem:[#allocation9 + $0xc4] ss:$48 sps:$4 sm:$0xff]  }
 0x2c8   :  { %2692 = vmatpush1.bf16.msra.mxu0 %v19947_v25  ;;  %v3375_v25 = vrot.slane %v3374_v17, 1  ;;  %v653_v48 = vrot.slane %v625_v29, %v23801_v58 }
 0x2c9   :  { %2693 = vmatprep.subr.bf16.mxu0 %v19955_v26  ;;  %v3411_v26 = vrot.slane %v3410_v20, 1 }
 0x2ca   :  { %7287 = vmatpush1.bf16.msra.mxu1 %v20154_v41  ;;  %v17429_v56 = vcombine.low %v653_v48, %v23815_v0 }
 0x2cb   :  { %7288 = vmatprep.subr.bf16.mxu1 %v20162_v49  ;;  %v3412_v41 = vadd.f32 %v3411_v26, %v3410_v20  ;;  %v20196_v49 = vld [vmem:[#allocation9 + $0x490] ss:$48 sps:$4 sm:$0xff]  }
 0x2cc   :  { %2694 = vmatpush1.bf16.msra.mxu0 %v19953_v31  ;;  %v20190_v31 = vld [vmem:[#allocation9 + $0x430] ss:$48 sps:$4 sm:$0xff]  }
 0x2cd   :  { %2695 = vmatprep.subr.bf16.mxu0 %v19961_v32  ;;  %v19995_v32 = vld [vmem:[#allocation9 + $0x60] ss:$48 sps:$4 sm:$0xff]  }
 0x2ce   :  { %7289 = vmatpush1.bf16.msra.mxu1 %v20160_v52  ;;  %v656_v52 = vcombine.low %v23818_v1, %v653_v48  ;;  %v2267_v1 = vrot.slane %v17429_v56, %v23801_v58  ;;  %v20228_v48 = vld [vmem:[#allocation9 + $0x674] ss:$48 sps:$4 sm:$0xff]   ;;  %v2745_v56 = vrot.slane %v2729_v37, %v23801_v58 }
 0x2cf   :  { %7290 = vmatprep.subr.bf16.mxu1 %v20168_v59  ;;  %v20015_v59 = vld [vmem:[#allocation9 + $0x184] ss:$48 sps:$4 sm:$0xff]  }
 0x2d0   :  { %2696 = vmatpush1.bf16.msra.mxu0 %v19959_v35  ;;  %v3376_v35 = vadd.f32 %v3375_v25, %v3374_v17  ;;  %v17431_v51 = vcombine.high %v23815_v0, %v656_v52  ;;  %v20019_v17 = vld [vmem:[#allocation9 + $0x1e0] ss:$48 sps:$4 sm:$0xff]  }
 0x2d1   :  { %2697 = vmatprep.subr.bf16.mxu0 %v19967_v42  ;;  %v20198_v42 = vld [vmem:[#allocation9 + $0x494] ss:$48 sps:$4 sm:$0xff]   ;;  %v20220_v25 = vld [vmem:[#allocation9 + $0x610] ss:$48 sps:$4 sm:$0xff]  }
 0x2d2   :  { %7291 = vmatpush1.bf16.msra.mxu1 %v20166_v60  ;;  %v3444_v54 = vmul.f32 0.125, %v3376_v35  ;;  %v2833_v35 = vld [vmem:[#allocation8] sm:$0x3f] }
 0x2d3   :  { %7292 = vmatprep.subr.bf16.mxu1 %v20174_v63  ;;  %v2253_v63 = vrot.slane %v23815_v0, %v23801_v58  ;;  %v20027_v0 = vld [vmem:[#allocation9 + $0x244] ss:$48 sps:$4 sm:$0xff]   ;;  %v2842_v52 = vrot.slane %v2833_v35, %v23772_v40 }
 0x2d4   :  { %2698 = vmatpush1.bf16.msra.mxu0 %v19965_v16  ;;  %v20204_v16 = vld [vmem:[#allocation9 + $0x4f4] ss:$48 sps:$4 sm:$0xff]   ;;  %v3456_v60 = vpack.c.bf16 %v3444_v54, %v3444_v54 }
 0x2d5   :  { %2699 = vmatprep.subr.bf16.mxu0 %v19973_v55  ;;  %v20202_v55 = vld [vmem:[#allocation9 + $0x4f0] ss:$48 sps:$4 sm:$0xff]  }
 0x2d6   :  { %7293 = vmatpush1.bf16.msra.mxu1 %v20172_v4  ;;  %v20021_v4 = vld [vmem:[#allocation9 + $0x1e4] ss:$48 sps:$4 sm:$0xff]  }
 0x2d7   :  { %7294 = vmatprep.subr.bf16.mxu1 %v20180_v11  ;;  %v2305_v11 = vrot.slane %v17431_v51, %v23801_v58  ;;  %v20234_v51 = vld [vmem:[#allocation9 + $0x6d4] ss:$48 sps:$4 sm:$0xff]  }
 0x2d8   :  { %2700 = vmatpush1.bf16.msra.mxu0 %v19971_v61 }
 0x2d9   :  { %2701 = vmatprep.subr.bf16.mxu0 %v19979_v62  ;;  %v20210_v62 = vld [vmem:[#allocation9 + $0x554] ss:$48 sps:$4 sm:$0xff]  }
 0x2da   :  { %7295 = vmatpush1.bf16.msra.mxu1 %v20178_v12  ;;  %v20214_v12 = vld [vmem:[#allocation9 + $0x5b0] ss:$48 sps:$4 sm:$0xff]  }
 0x2db   :  { %7296 = vmatprep.subr.bf16.mxu1 %v20186_v21  ;;  %v20222_v21 = vld [vmem:[#allocation9 + $0x614] ss:$48 sps:$4 sm:$0xff]  }
 0x2dc   :  { %2702 = vmatpush1.bf16.msra.mxu0 %v19977_v3  ;;  %v20013_v3 = vld [vmem:[#allocation9 + $0x180] ss:$48 sps:$4 sm:$0xff]  }
 0x2dd   :  { %2703 = vmatprep.subr.bf16.mxu0 %v19985_v50  ;;  %v4120_v50 = vunpack.c.l.b16 %v3456_v60 }
 0x2de   :  { %7297 = vmatpush1.bf16.msra.mxu1 %v20184_v23  ;;  %v2307_v23 = vcombine.high %v2305_v11, %v2305_v11 }
 0x2df   :  { %7298 = vmatprep.subr.bf16.mxu1 %v20192_v28 }
 0x2e0   :  { %2704 = vmatpush1.bf16.msra.mxu0 %v19983_v13  ;;  %v2270_v13 = vcombine.low %v2253_v63, %v2267_v1 }
 0x2e1   :  { %7030 = vmatprep.subr.bf16.mxu0 %v19991_v15  ;;  %v2271_v15 = vcombine.high %v2253_v63, %v2267_v1 }
 0x2e2   :  { %7299 = vmatpush1.bf16.msra.mxu1 %v20190_v31 }
 0x2e3   :  { %2706 = vmatmul.mubr.bf16.vlgmr.msra.gmra.mrb[8].mxu0 %v23288_v53  ;;  %7300 = vmatprep.subr.bf16.mxu1 %v20198_v42  ;;  %v3450_v53 = vmul.f32 0.125, %v3412_v41  ;;  %v2738_v41 = vrot.slane %v2728_v36, %v23801_v58  ;;  %v2850_v36 = vrot.slane %v2833_v35, %v23778_v44 }
 0x2e4   :  { %7031 = vmatpush1.bf16.msra.mxu0 %v19989_v22  ;;  %7062 = vmatprep.mubr.bf16.mxu0 %v24081_v10 }
 0x2e5   :  { %7032 = vmatprep.subr.bf16.mxu0 %v19997_v24  ;;  %v3462_v61 = vpack.c.bf16 %v3450_v53, %v3450_v53  ;;  %v20025_v24 = vld [vmem:[#allocation9 + $0x240] ss:$48 sps:$4 sm:$0xff]  }
 0x2e6   :  { %7301 = vmatpush1.bf16.msra.mxu1 %v20196_v49  ;;  %v20226_v53 = vld [vmem:[#allocation9 + $0x670] ss:$48 sps:$4 sm:$0xff]  }
 0x2e7   :  { %7302 = vmatprep.subr.bf16.mxu1 %v20204_v16  ;;  %v4126_v7 = vunpack.c.l.b16 %v3462_v61  ;;  %v2838_v16 = vrot.slane %v2833_v35, %v23769_v39  ;;  %v20031_v61 = vld [vmem:[#allocation9 + $0x2a0] ss:$48 sps:$4 sm:$0xff]  }
 0x2e8   :  { %7033 = vmatpush1.bf16.msra.mxu0 %v19995_v32 }
 0x2e9   :  { %7034 = vmatprep.subr.bf16.mxu0 %v20003_v33  ;;  %v4132_v20 = vsel %vm3099_vm0, %v4126_v7, %v4120_v50  ;;  %v20033_v33 = vld [vmem:[#allocation9 + $0x2a4] ss:$48 sps:$4 sm:$0xff]   ;;  %v2859_v37 = vcombine.low %v2838_v16, %v2842_v52  ;;  %v20037_v7 = vld [vmem:[#allocation9 + $0x300] ss:$48 sps:$4 sm:$0xff]  }
 0x2ea   :  { %7303 = vmatpush1.bf16.msra.mxu1 %v20202_v55  ;;  %v24150_v29 = vpack.c.b16 %v4132_v20, %v4132_v20  ;;  %v2846_v55 = vrot.slane %v2833_v35, %v23775_v43  ;;  %v20051_v20 = vld [vmem:[#allocation9 + $0x3c4] ss:$48 sps:$4 sm:$0xff]  }
 0x2eb   :  { %7304 = vmatprep.subr.bf16.mxu1 %v20210_v62  ;;  %v20039_v62 = vld [vmem:[#allocation9 + $0x304] ss:$48 sps:$4 sm:$0xff]   ;;  %v2869_v38 = vrot.slane %v2859_v37, %v23801_v58 }
 0x2ec   :  { %7035 = vmatpush1.bf16.msra.mxu0 %v20001_v47  ;;  %v2861_v50 = vcombine.low %v2846_v55, %v2850_v36 }
 0x2ed   :  { %7036 = vmatprep.subr.bf16.mxu0 %v20009_v18 }
 0x2ee   :  { %7305 = vmatpush1.bf16.msra.mxu1 %v20208_v46  ;;  %v2883_v45 = vrot.slane %v2861_v50, %v23801_v58  ;;  %v20264_v50 = vld [vmem:[#allocation9 + $0x8b4] ss:$48 sps:$4 sm:$0xff]  }
 0x2ef   :  { %7306 = vmatprep.subr.bf16.mxu1 %v20216_v8  ;;  %v20045_v8 = vld [vmem:[#allocation9 + $0x364] ss:$48 sps:$4 sm:$0xff]  }
 0x2f0   :  { %7037 = vmatpush1.bf16.msra.mxu0 %v20007_v57 }
 0x2f1   :  { %7038 = vmatprep.subr.bf16.mxu0 %v20015_v59 }
 0x2f2   :  { %7307 = vmatpush1.bf16.msra.mxu1 %v20214_v12 }
 0x2f3   :  { %7317 = vmatprep.subr.bf16.mxu1 %v20222_v21 }
 0x2f4   :  { %7039 = vmatpush1.bf16.msra.mxu0 %v20013_v3 }
 0x2f5   :  { %7040 = vmatprep.subr.bf16.mxu0 %v20021_v4  ;;  %7309 = vmatmul.mubr.bf16.vlgmr.msra.gmra.mrb[4].mxu1 %v24150_v29  ;;  %v20232_v4 = vld [vmem:[#allocation9 + $0x6d0] ss:$48 sps:$4 sm:$0xff]  }
 0x2f6   :  { %v2578_v22 = vpop.f32.mrb[4].mxu0  ;;  %7318 = vmatpush1.bf16.msra.mxu1 %v20220_v25  ;;  %7349 = vmatprep.mubr.bf16.mxu1 %v23963_v2  ;;  %v2891_v25 = vcombine.low %v2869_v38, %v2883_v45 }
 0x2f7   :  { %v19281_v26 = vadd.f32 %v2578_v22, %v2270_v13  ;;  %v2580_v28 = vpop.f32.mrb[5].mxu0  ;;  %7319 = vmatprep.subr.bf16.mxu1 %v20228_v48 }
 0x2f8   :  { %v19282_v31 = vadd.f32 %v2580_v28, %v2271_v15  ;;  %v2582_v32 = vpop.f32.mrb[6].mxu0  ;;  %7041 = vmatpush1.bf16.msra.mxu0 %v20019_v17  ;;  %v2862_v15 = vcombine.high %v2846_v55, %v2850_v36  ;;  %v20240_v17 = vld [vmem:[#allocation9 + $0x734] ss:$48 sps:$4 sm:$0xff]  }
 0x2f9   :  { %v19283_v42 = vadd.f32 %v2582_v32, %v2305_v11  ;;  %v2584_v47 = vpop.f32.mrb[7].mxu0  ;;  %7042 = vmatprep.subr.bf16.mxu0 %v20027_v0  ;;  %v2860_v11 = vcombine.high %v2838_v16, %v2842_v52  ;;  %v20043_v0 = vld [vmem:[#allocation9 + $0x360] ss:$48 sps:$4 sm:$0xff]   ;;  %v20057_v28 = vld [vmem:[#allocation9 + $0x424] ss:$48 sps:$4 sm:$0xff]  }
 0x2fa   :  { %v2730_v49 = vcombine.low %v19281_v26, %v19282_v31  ;;  %v2731_v18 = vcombine.high %v19281_v26, %v19282_v31  ;;  %v19284_v54 = vadd.f32 %v2584_v47, %v2307_v23  ;;  %7320 = vmatpush1.bf16.msra.mxu1 %v20226_v53  ;;  %v2890_v22 = vrot.slane %v2862_v15, %v23801_v58  ;;  %v20246_v23 = vld [vmem:[#allocation9 + $0x794] ss:$48 sps:$4 sm:$0xff]   ;;  %v20049_v26 = vld [vmem:[#allocation9 + $0x3c0] ss:$48 sps:$4 sm:$0xff]  }
 0x2fb   :  { %7321 = vmatprep.subr.bf16.mxu1 %v20234_v51  ;;  %v2876_v21 = vrot.slane %v2860_v11, %v23801_v58  ;;  %v2892_v31 = vcombine.high %v2869_v38, %v2883_v45  ;;  %v20258_v52 = vld [vmem:[#allocation9 + $0x854] ss:$48 sps:$4 sm:$0xff]   ;;  %v20061_v51 = vld [vmem:[#allocation9 + $0x480] ss:$48 sps:$4 sm:$0xff]  }
 0x2fc   :  { %v2752_v57 = vrot.slane %v2730_v49, %v23801_v58  ;;  %v2759_v59 = vrot.slane %v2731_v18, %v23801_v58  ;;  %v2783_v60 = vcombine.low %v19283_v42, %v19284_v54  ;;  %7043 = vmatpush1.bf16.msra.mxu0 %v20025_v24  ;;  %v20244_v24 = vld [vmem:[#allocation9 + $0x790] ss:$48 sps:$4 sm:$0xff]   ;;  %v20063_v18 = vld [vmem:[#allocation9 + $0x484] ss:$48 sps:$4 sm:$0xff]  }
 0x2fd   :  { %7044 = vmatprep.subr.bf16.mxu0 %v20033_v33  ;;  %v2893_v32 = vcombine.low %v2876_v21, %v2890_v22  ;;  %v20252_v33 = vld [vmem:[#allocation9 + $0x7f4] ss:$48 sps:$4 sm:$0xff]   ;;  %v20055_v49 = vld [vmem:[#allocation9 + $0x420] ss:$48 sps:$4 sm:$0xff]  }
 0x2fe   :  { %v2760_v46 = vcombine.low %v2738_v41, %v2752_v57  ;;  %v2761_v63 = vcombine.high %v2738_v41, %v2752_v57  ;;  %v2762_v1 = vcombine.low %v2745_v56, %v2759_v59  ;;  %v2763_v3 = vcombine.high %v2745_v56, %v2759_v59  ;;  %7322 = vmatpush1.bf16.msra.mxu1 %v20232_v4  ;;  %v20250_v41 = vld [vmem:[#allocation9 + $0x7f0] ss:$48 sps:$4 sm:$0xff]   ;;  %v20075_v21 = vld [vmem:[#allocation9 + $0x544] ss:$48 sps:$4 sm:$0xff]  }
 0x2ff   :  { %v2797_v30 = vrot.slane %v2783_v60, %v23801_v58  ;;  %7323 = vmatprep.subr.bf16.mxu1 %v20240_v17  ;;  %v20256_v57 = vld [vmem:[#allocation9 + $0x850] ss:$48 sps:$4 sm:$0xff]  }
 0x300   :  { %22603 = vtanh.f32 %v2760_v46  ;;  %7045 = vmatpush1.bf16.msra.mxu0 %v20031_v61  ;;  %v20069_v46 = vld [vmem:[#allocation9 + $0x4e4] ss:$48 sps:$4 sm:$0xff]   ;;  %v20067_v45 = vld [vmem:[#allocation9 + $0x4e0] ss:$48 sps:$4 sm:$0xff]  }
 0x301   :  { %22605 = vtanh.f32 %v2761_v63  ;;  %v2798_v12 = vcombine.low %v2790_v27, %v2797_v30  ;;  %v2799_v13 = vcombine.high %v2790_v27, %v2797_v30  ;;  %7046 = vmatprep.subr.bf16.mxu0 %v20039_v62 }
 0x302   :  { %22607 = vtanh.f32 %v2762_v1  ;;  %7324 = vmatpush1.bf16.msra.mxu1 %v20238_v34 }
 0x303   :  { %22609 = vtanh.f32 %v2763_v3  ;;  %7325 = vmatprep.subr.bf16.mxu1 %v20246_v23 }
 0x304   :  { %22611 = vtanh.f32 %v2798_v12  ;;  %7047 = vmatpush1.bf16.msra.mxu0 %v20037_v7 }
 0x305   :  { %22613 = vtanh.f32 %v2799_v13  ;;  %7048 = vmatprep.subr.bf16.mxu0 %v20045_v8  ;;  %v20262_v13 = vld [vmem:[#allocation9 + $0x8b0] ss:$48 sps:$4 sm:$0xff]  }
 0x306   :  { %7326 = vmatpush1.bf16.msra.mxu1 %v20244_v24 }
 0x307   :  { %7327 = vmatprep.subr.bf16.mxu1 %v20252_v33 }
 0x308   :  { %7049 = vmatpush1.bf16.msra.mxu0 %v20043_v0 }
 0x309   :  { %7050 = vmatprep.subr.bf16.mxu0 %v20051_v20 }
 0x30a   :  { %v22604_v35 = vpop.eup %22603  ;;  %7328 = vmatpush1.bf16.msra.mxu1 %v20250_v41 }
 0x30b   :  { %v22606_v42 = vpop.eup %22605  ;;  %v2917_v47 = vmul.f32 %v22604_v35, %v2891_v25  ;;  %7329 = vmatprep.subr.bf16.mxu1 %v20258_v52  ;;  %v20079_v52 = vld [vmem:[#allocation9 + $0x5a0] ss:$48 sps:$4 sm:$0xff]  }
 0x30c   :  { %v22608_v48 = vpop.eup %22607  ;;  %7051 = vmatpush1.bf16.msra.mxu0 %v20049_v26  ;;  %v2919_v54 = vmul.f32 %v22606_v42, %v2892_v31  ;;  %v20270_v26 = vld [vmem:[#allocation9 + $0x914] ss:$48 sps:$4 sm:$0xff]  }
 0x30d   :  { %v22610_v53 = vpop.eup %22609  ;;  %7052 = vmatprep.subr.bf16.mxu0 %v20057_v28  ;;  %v2921_v16 = vmul.f32 %v22608_v48, %v2893_v32 }
 0x30e   :  { %v22612_v55 = vpop.eup %22611  ;;  %v2935_v36 = vcombine.low %v2917_v47, %v2919_v54  ;;  %v2936_v56 = vcombine.high %v2917_v47, %v2919_v54  ;;  %v2923_v61 = vmul.f32 %v22610_v53, %v2891_v25  ;;  %7330 = vmatpush1.bf16.msra.mxu1 %v20256_v57  ;;  %v20073_v47 = vld [vmem:[#allocation9 + $0x540] ss:$48 sps:$4 sm:$0xff]   ;;  %v20276_v54 = vld [vmem:[#allocation9 + $0x974] ss:$48 sps:$4 sm:$0xff]   ;;  %v20085_v57 = vld [vmem:[#allocation9 + $0x8] ss:$48 sps:$4 sm:$0xff]  }
 0x30f   :  { %v22614_v59 = vpop.eup %22613  ;;  %v2937_v60 = vcombine.high %v2921_v16, %v2921_v16  ;;  %v2925_v62 = vmul.f32 %v22612_v55, %v2892_v31  ;;  %v2958_v3 = vrot.slane %v2921_v16, %v23801_v58  ;;  %7331 = vmatprep.subr.bf16.mxu1 %v20264_v50  ;;  %v20274_v16 = vld [vmem:[#allocation9 + $0x970] ss:$48 sps:$4 sm:$0xff]   ;;  %v20087_v55 = vld [vmem:[#allocation9 + $0xc] ss:$48 sps:$4 sm:$0xff]   ;;  %v20103_v50 = vld [vmem:[#allocation9 + $0x128] ss:$48 sps:$4 sm:$0xff]  }
 0x310   :  { %7053 = vmatpush1.bf16.msra.mxu0 %v20055_v49  ;;  %v2944_v63 = vrot.slane %v2935_v36, %v23801_v58  ;;  %v24179_v1 = vrot.slane %v2936_v56, %v23801_v58  ;;  %v2927_v4 = vmul.f32 %v22614_v59, %v2893_v32  ;;  %v20268_v32 = vld [vmem:[#allocation9 + $0x910] ss:$48 sps:$4 sm:$0xff]   ;;  %v20081_v49 = vld [vmem:[#allocation9 + $0x5a4] ss:$48 sps:$4 sm:$0xff]   ;;  %v20093_v59 = vld [vmem:[#allocation9 + $0x6c] ss:$48 sps:$4 sm:$0xff]  }
 0x311   :  { %7054 = vmatprep.subr.bf16.mxu0 %v20063_v18  ;;  %v24183_v27 = vrot.slane %v2937_v60, %v23801_v58  ;;  %v2969_v30 = vcombine.low %v2923_v61, %v2925_v62  ;;  %v2970_v37 = vcombine.high %v2923_v61, %v2925_v62  ;;  %v20282_v36 = vld [vmem:[#allocation9 + $0x9d4] ss:$48 sps:$4 sm:$0xff]   ;;  %v20280_v56 = vld [vmem:[#allocation9 + $0x9d0] ss:$48 sps:$4 sm:$0xff]   ;;  %v20091_v61 = vld [vmem:[#allocation9 + $0x68] ss:$48 sps:$4 sm:$0xff]  }
 0x312   :  { %v2966_v7 = vcombine.low %v2944_v63, %v2958_v3  ;;  %v2967_v8 = vcombine.high %v2944_v63, %v2958_v3  ;;  %v2971_v11 = vcombine.high %v2927_v4, %v2927_v4  ;;  %v2992_v12 = vrot.slane %v2927_v4, %v23801_v58  ;;  %7332 = vmatpush1.bf16.msra.mxu1 %v20262_v13  ;;  %v20288_v60 = vld [vmem:[#allocation9 + $0xa34] ss:$48 sps:$4 sm:$0xff]   ;;  %v20286_v62 = vld [vmem:[#allocation9 + $0xa30] ss:$48 sps:$4 sm:$0xff]   ;;  %v20097_v3 = vld [vmem:[#allocation9 + $0xc8] ss:$48 sps:$4 sm:$0xff]  }
 0x313   :  { %v2968_v15 = vcombine.low %v24179_v1, %v24183_v27  ;;  %v2978_v17 = vrot.slane %v2969_v30, %v23801_v58  ;;  %v24190_v34 = vrot.slane %v2970_v37, %v23801_v58  ;;  %v3030_v38 = vcombine.high %v24179_v1, %v24183_v27  ;;  %7333 = vmatprep.subr.bf16.mxu1 %v20270_v26  ;;  %v20292_v63 = vld [vmem:[#allocation9 + $0xa90] ss:$48 sps:$4 sm:$0xff]   ;;  %v20105_v4 = vld [vmem:[#allocation9 + $0x12c] ss:$48 sps:$4 sm:$0xff]   ;;  %v20300_v30 = vld [vmem:[#allocation9 + $0xaf4] ss:$48 sps:$4 sm:$0xff]  }
 0x314   :  { %7055 = vmatpush1.bf16.msra.mxu0 %v20061_v51  ;;  %v3010_v0 = vsel %vm3009_vm1, %v2966_v7, 0.0  ;;  %v3011_v20 = vsel %vm3009_vm1, %v2967_v8, 0.0  ;;  %v24197_v22 = vrot.slane %v2971_v11, %v23801_v58  ;;  %v20099_v51 = vld [vmem:[#allocation9 + $0xcc] ss:$48 sps:$4 sm:$0xff]   ;;  %v20298_v37 = vld [vmem:[#allocation9 + $0xaf0] ss:$48 sps:$4 sm:$0xff]  }
 0x315   :  { %7056 = vmatprep.subr.bf16.mxu0 %v20069_v46  ;;  %v3012_v23 = vadd.f32 %v3011_v20, %v3010_v0  ;;  %v3000_v24 = vcombine.low %v2978_v17, %v2992_v12  ;;  %v3001_v25 = vcombine.high %v2978_v17, %v2992_v12  ;;  %v3013_v28 = vsel %vm3009_vm1, %v2968_v15, 0.0  ;;  %v20294_v46 = vld [vmem:[#allocation9 + $0xa94] ss:$48 sps:$4 sm:$0xff]   ;;  %v20111_v7 = vld [vmem:[#allocation9 + $0x18c] ss:$48 sps:$4 sm:$0xff]  }
 0x316   :  { %v3002_v31 = vcombine.low %v24190_v34, %v24197_v22  ;;  %v3048_v33 = vcombine.high %v24190_v34, %v24197_v22  ;;  %7334 = vmatpush1.bf16.msra.mxu1 %v20268_v32  ;;  %v20306_v8 = vld [vmem:[#allocation9 + $0xb54] ss:$48 sps:$4 sm:$0xff]   ;;  %v20304_v11 = vld [vmem:[#allocation9 + $0xb50] ss:$48 sps:$4 sm:$0xff]   ;;  %v20109_v12 = vld [vmem:[#allocation9 + $0x188] ss:$48 sps:$4 sm:$0xff]  }
 0x317   :  { %v3014_v35 = vadd.f32 %v3013_v28, %v3012_v23  ;;  %v3017_v41 = vsel %vm3009_vm1, %v3000_v24, 0.0  ;;  %v3018_v42 = vsel %vm3009_vm1, %v3001_v25, 0.0  ;;  %7335 = vmatprep.subr.bf16.mxu1 %v20276_v54  ;;  %v20117_v13 = vld [vmem:[#allocation9 + $0x1ec] ss:$48 sps:$4 sm:$0xff]   ;;  %v20312_v15 = vld [vmem:[#allocation9 + $0xbb4] ss:$48 sps:$4 sm:$0xff]  }
 0x318   :  { %7057 = vmatpush1.bf16.msra.mxu0 %v20067_v45  ;;  %v3019_v48 = vadd.f32 %v3018_v42, %v3017_v41  ;;  %v3020_v18 = vsel %vm3009_vm1, %v3002_v31, 0.0  ;;  %v20115_v17 = vld [vmem:[#allocation9 + $0x1e8] ss:$48 sps:$4 sm:$0xff]   ;;  %v20310_v45 = vld [vmem:[#allocation9 + $0xbb0] ss:$48 sps:$4 sm:$0xff]  }
 0x319   :  { %3015 = vadd.xlane.f32.xlu0 %v3014_v35  ;;  %7058 = vmatprep.subr.bf16.mxu0 %v20075_v21  ;;  %v20123_v0 = vld [vmem:[#allocation9 + $0x24c] ss:$48 sps:$4 sm:$0xff]   ;;  %v20318_v20 = vld [vmem:[#allocation9 + $0xc14] ss:$48 sps:$4 sm:$0xff]   ;;  %v20316_v21 = vld [vmem:[#allocation9 + $0xc10] ss:$48 sps:$4 sm:$0xff]  }
 0x31a   :  { %v3021_v53 = vadd.f32 %v3020_v18, %v3019_v48  ;;  %7336 = vmatpush1.bf16.msra.mxu1 %v20274_v16  ;;  %v20121_v23 = vld [vmem:[#allocation9 + $0x248] ss:$48 sps:$4 sm:$0xff]   ;;  %v20129_v24 = vld [vmem:[#allocation9 + $0x2ac] ss:$48 sps:$4 sm:$0xff]   ;;  %v20324_v25 = vld [vmem:[#allocation9 + $0xc74] ss:$48 sps:$4 sm:$0xff]  }
 0x31b   :  { %7337 = vmatprep.subr.bf16.mxu1 %v20282_v36  ;;  %v20322_v26 = vld [vmem:[#allocation9 + $0xc70] ss:$48 sps:$4 sm:$0xff]   ;;  %v20127_v28 = vld [vmem:[#allocation9 + $0x2a8] ss:$48 sps:$4 sm:$0xff]   ;;  %v20135_v31 = vld [vmem:[#allocation9 + $0x30c] ss:$48 sps:$4 sm:$0xff]  }
 0x31c   :  { %7059 = vmatpush1.bf16.msra.mxu0 %v20073_v47  ;;  %v20330_v32 = vld [vmem:[#allocation9 + $0xcd4] ss:$48 sps:$4 sm:$0xff]   ;;  %v20328_v35 = vld [vmem:[#allocation9 + $0xcd0] ss:$48 sps:$4 sm:$0xff]   ;;  %v20133_v41 = vld [vmem:[#allocation9 + $0x308] ss:$48 sps:$4 sm:$0xff]  }
 0x31d   :  { %3022 = vadd.xlane.f32.xlu0 %v3021_v53  ;;  %7060 = vmatprep.subr.bf16.mxu0 %v20081_v49  ;;  %v20141_v42 = vld [vmem:[#allocation9 + $0x36c] ss:$48 sps:$4 sm:$0xff]   ;;  %v20336_v47 = vld [vmem:[#allocation9 + $0xd34] ss:$48 sps:$4 sm:$0xff]   ;;  %v20334_v48 = vld [vmem:[#allocation9 + $0xd30] ss:$48 sps:$4 sm:$0xff]  }
 0x31e   :  { %7338 = vmatpush1.bf16.msra.mxu1 %v20280_v56  ;;  %v20139_v49 = vld [vmem:[#allocation9 + $0x368] ss:$48 sps:$4 sm:$0xff]   ;;  %v20147_v18 = vld [vmem:[#allocation9 + $0x3cc] ss:$48 sps:$4 sm:$0xff]   ;;  %v20342_v54 = vld [vmem:[#allocation9 + $0xd94] ss:$48 sps:$4 sm:$0xff]  }
 0x31f   :  { %7339 = vmatprep.subr.bf16.mxu1 %v20288_v60  ;;  %v20340_v53 = vld [vmem:[#allocation9 + $0xd90] ss:$48 sps:$4 sm:$0xff]   ;;  %v20145_v16 = vld [vmem:[#allocation9 + $0x3c8] ss:$48 sps:$4 sm:$0xff]  }
 0x320   :  { %7061 = vmatpush1.bf16.msra.mxu0 %v20079_v52  ;;  %v20153_v52 = vld [vmem:[#allocation9 + $0x42c] ss:$48 sps:$4 sm:$0xff]   ;;  %v20346_v36 = vld [vmem:[#allocation9 + $0xdf0] ss:$48 sps:$4 sm:$0xff]   ;;  %v20151_v56 = vld [vmem:[#allocation9 + $0x428] ss:$48 sps:$4 sm:$0xff]  }
 0x321   :  { %7153 = vmatprep.subr.bf16.mxu0 %v20087_v55  ;;  %v20348_v55 = vld [vmem:[#allocation9 + $0xdf4] ss:$48 sps:$4 sm:$0xff]   ;;  %v20352_v60 = vld [vmem:[#allocation9 + $0xe50] ss:$48 sps:$4 sm:$0xff]  }
 0x322   :  { %7340 = vmatpush1.bf16.msra.mxu1 %v20286_v62  ;;  %v20165_v62 = vld [vmem:[#allocation9 + $0x4ec] ss:$48 sps:$4 sm:$0xff]  }
 0x323   :  { %7063 = vmatmul.mubr.bf16.vlgmr.msra.gmra.mrb[12].mxu0 %v24150_v29  ;;  %7341 = vmatprep.subr.bf16.mxu1 %v20294_v46  ;;  %v20358_v46 = vld [vmem:[#allocation9 + $0xeb0] ss:$48 sps:$4 sm:$0xff]  }
 0x324   :  { %7154 = vmatpush1.bf16.msra.mxu0 %v20085_v57  ;;  %7185 = vmatprep.mubr.bf16.mxu0 %v24081_v10  ;;  %v20159_v57 = vld [vmem:[#allocation9 + $0x48c] ss:$48 sps:$4 sm:$0xff]  }
 0x325   :  { %7155 = vmatprep.subr.bf16.mxu0 %v20093_v59  ;;  %v20354_v59 = vld [vmem:[#allocation9 + $0xe54] ss:$48 sps:$4 sm:$0xff]  }
 0x326   :  { %7342 = vmatpush1.bf16.msra.mxu1 %v20292_v63  ;;  %v20163_v63 = vld [vmem:[#allocation9 + $0x4e8] ss:$48 sps:$4 sm:$0xff]  }
 0x327   :  { %7343 = vmatprep.subr.bf16.mxu1 %v20300_v30  ;;  %v20364_v30 = vld [vmem:[#allocation9 + $0xf10] ss:$48 sps:$4 sm:$0xff]  }
 0x328   :  { %7156 = vmatpush1.bf16.msra.mxu0 %v20091_v61  ;;  %v20157_v61 = vld [vmem:[#allocation9 + $0x488] ss:$48 sps:$4 sm:$0xff]  }
 0x329   :  { %7157 = vmatprep.subr.bf16.mxu0 %v20099_v51  ;;  %v20360_v51 = vld [vmem:[#allocation9 + $0xeb4] ss:$48 sps:$4 sm:$0xff]  }
 0x32a   :  { %7344 = vmatpush1.bf16.msra.mxu1 %v20298_v37  ;;  %v20169_v37 = vld [vmem:[#allocation9 + $0x548] ss:$48 sps:$4 sm:$0xff]  }
 0x32b   :  { %7345 = vmatprep.subr.bf16.mxu1 %v20306_v8  ;;  %v20370_v8 = vld [vmem:[#allocation9 + $0xf70] ss:$48 sps:$4 sm:$0xff]  }
 0x32c   :  { %7158 = vmatpush1.bf16.msra.mxu0 %v20097_v3  ;;  %v20171_v3 = vld [vmem:[#allocation9 + $0x54c] ss:$48 sps:$4 sm:$0xff]  }
 0x32d   :  { %7159 = vmatprep.subr.bf16.mxu0 %v20105_v4  ;;  %v20366_v4 = vld [vmem:[#allocation9 + $0xf14] ss:$48 sps:$4 sm:$0xff]  }
 0x32e   :  { %7346 = vmatpush1.bf16.msra.mxu1 %v20304_v11  ;;  %v20175_v11 = vld [vmem:[#allocation9 + $0x5a8] ss:$48 sps:$4 sm:$0xff]  }
 0x32f   :  { %7347 = vmatprep.subr.bf16.mxu1 %v20312_v15  ;;  %v20376_v15 = vld [vmem:[#allocation9 + $0xfd0] ss:$48 sps:$4 sm:$0xff]  }
 0x330   :  { %7160 = vmatpush1.bf16.msra.mxu0 %v20103_v50  ;;  %v20177_v50 = vld [vmem:[#allocation9 + $0x5ac] ss:$48 sps:$4 sm:$0xff]  }
 0x331   :  { %7161 = vmatprep.subr.bf16.mxu0 %v20111_v7  ;;  %v20372_v7 = vld [vmem:[#allocation9 + $0xf74] ss:$48 sps:$4 sm:$0xff]  }
 0x332   :  { %7348 = vmatpush1.bf16.msra.mxu1 %v20310_v45  ;;  %v20189_v45 = vld [vmem:[#allocation9 + $0x66c] ss:$48 sps:$4 sm:$0xff]  }
 0x333   :  { %7358 = vmatprep.subr.bf16.mxu1 %v20318_v20  ;;  %v20382_v20 = vld [vmem:[#allocation9 + $0x1030] ss:$48 sps:$4 sm:$0xff]  }
 0x334   :  { %7162 = vmatpush1.bf16.msra.mxu0 %v20109_v12  ;;  %v20183_v12 = vld [vmem:[#allocation9 + $0x60c] ss:$48 sps:$4 sm:$0xff]  }
 0x335   :  { %7163 = vmatprep.subr.bf16.mxu0 %v20117_v13  ;;  %7350 = vmatmul.mubr.bf16.vlgmr.msra.gmra.mrb[4].mxu1 %v23967_v5  ;;  %v20378_v13 = vld [vmem:[#allocation9 + $0xfd4] ss:$48 sps:$4 sm:$0xff]  }
 0x336   :  { %7359 = vmatpush1.bf16.msra.mxu1 %v20316_v21  ;;  %7390 = vmatprep.mubr.bf16.mxu1 %v24070_v19  ;;  %v20187_v21 = vld [vmem:[#allocation9 + $0x668] ss:$48 sps:$4 sm:$0xff]  }
 0x337   :  { %7360 = vmatprep.subr.bf16.mxu1 %v20324_v25  ;;  %v20388_v25 = vld [vmem:[#allocation9 + $0x1090] ss:$48 sps:$4 sm:$0xff]  }
 0x338   :  { %7164 = vmatpush1.bf16.msra.mxu0 %v20115_v17  ;;  %v20181_v17 = vld [vmem:[#allocation9 + $0x608] ss:$48 sps:$4 sm:$0xff]  }
 0x339   :  { %7165 = vmatprep.subr.bf16.mxu0 %v20123_v0  ;;  %v20384_v0 = vld [vmem:[#allocation9 + $0x1034] ss:$48 sps:$4 sm:$0xff]  }
 0x33a   :  { %7361 = vmatpush1.bf16.msra.mxu1 %v20322_v26  ;;  %v20193_v26 = vld [vmem:[#allocation9 + $0x6c8] ss:$48 sps:$4 sm:$0xff]  }
 0x33b   :  { %7362 = vmatprep.subr.bf16.mxu1 %v20330_v32  ;;  %v20394_v32 = vld [vmem:[#allocation9 + $0x10f0] ss:$48 sps:$4 sm:$0xff]  }
 0x33c   :  { %7166 = vmatpush1.bf16.msra.mxu0 %v20121_v23  ;;  %v20195_v23 = vld [vmem:[#allocation9 + $0x6cc] ss:$48 sps:$4 sm:$0xff]  }
 0x33d   :  { %7167 = vmatprep.subr.bf16.mxu0 %v20129_v24  ;;  %v20390_v24 = vld [vmem:[#allocation9 + $0x1094] ss:$48 sps:$4 sm:$0xff]  }
 0x33e   :  { %7363 = vmatpush1.bf16.msra.mxu1 %v20328_v35  ;;  %v20199_v35 = vld [vmem:[#allocation9 + $0x728] ss:$48 sps:$4 sm:$0xff]  }
 0x33f   :  { %7364 = vmatprep.subr.bf16.mxu1 %v20336_v47  ;;  %v20400_v47 = vld [vmem:[#allocation9 + $0x1150] ss:$48 sps:$4 sm:$0xff]  }
 0x340   :  { %7168 = vmatpush1.bf16.msra.mxu0 %v20127_v28  ;;  %v20201_v28 = vld [vmem:[#allocation9 + $0x72c] ss:$48 sps:$4 sm:$0xff]  }
 0x341   :  { %7169 = vmatprep.subr.bf16.mxu0 %v20135_v31  ;;  %v20396_v31 = vld [vmem:[#allocation9 + $0x10f4] ss:$48 sps:$4 sm:$0xff]  }
 0x342   :  { %7365 = vmatpush1.bf16.msra.mxu1 %v20334_v48  ;;  %v20205_v48 = vld [vmem:[#allocation9 + $0x788] ss:$48 sps:$4 sm:$0xff]  }
 0x343   :  { %7366 = vmatprep.subr.bf16.mxu1 %v20342_v54  ;;  %v20406_v54 = vld [vmem:[#allocation9 + $0x11b0] ss:$48 sps:$4 sm:$0xff]  }
 0x344   :  { %7170 = vmatpush1.bf16.msra.mxu0 %v20133_v41  ;;  %v20207_v41 = vld [vmem:[#allocation9 + $0x78c] ss:$48 sps:$4 sm:$0xff]  }
 0x345   :  { %7171 = vmatprep.subr.bf16.mxu0 %v20141_v42  ;;  %v20402_v42 = vld [vmem:[#allocation9 + $0x1154] ss:$48 sps:$4 sm:$0xff]  }
 0x346   :  { %7367 = vmatpush1.bf16.msra.mxu1 %v20340_v53  ;;  %v20211_v53 = vld [vmem:[#allocation9 + $0x7e8] ss:$48 sps:$4 sm:$0xff]  }
 0x347   :  { %7368 = vmatprep.subr.bf16.mxu1 %v20348_v55  ;;  %v20225_v55 = vld [vmem:[#allocation9 + $0x8ac] ss:$48 sps:$4 sm:$0xff]  }
 0x348   :  { %7172 = vmatpush1.bf16.msra.mxu0 %v20139_v49  ;;  %v20213_v49 = vld [vmem:[#allocation9 + $0x7ec] ss:$48 sps:$4 sm:$0xff]  }
 0x349   :  { %7173 = vmatprep.subr.bf16.mxu0 %v20147_v18  ;;  %v20408_v18 = vld [vmem:[#allocation9 + $0x11b4] ss:$48 sps:$4 sm:$0xff]  }
 0x34a   :  { %7369 = vmatpush1.bf16.msra.mxu1 %v20346_v36  ;;  %v20223_v36 = vld [vmem:[#allocation9 + $0x8a8] ss:$48 sps:$4 sm:$0xff]  }
 0x34b   :  { %7370 = vmatprep.subr.bf16.mxu1 %v20354_v59  ;;  %v20237_v59 = vld [vmem:[#allocation9 + $0x96c] ss:$48 sps:$4 sm:$0xff]  }
 0x34c   :  { %7174 = vmatpush1.bf16.msra.mxu0 %v20145_v16  ;;  %v20219_v16 = vld [vmem:[#allocation9 + $0x84c] ss:$48 sps:$4 sm:$0xff]  }
 0x34d   :  { %7175 = vmatprep.subr.bf16.mxu0 %v20153_v52  ;;  %v20217_v52 = vld [vmem:[#allocation9 + $0x848] ss:$48 sps:$4 sm:$0xff]  }
 0x34e   :  { %7371 = vmatpush1.bf16.msra.mxu1 %v20352_v60  ;;  %v20235_v60 = vld [vmem:[#allocation9 + $0x968] ss:$48 sps:$4 sm:$0xff]  }
 0x34f   :  { %7372 = vmatprep.subr.bf16.mxu1 %v20360_v51  ;;  %v20249_v51 = vld [vmem:[#allocation9 + $0xa2c] ss:$48 sps:$4 sm:$0xff]  }
 0x350   :  { %7176 = vmatpush1.bf16.msra.mxu0 %v20151_v56  ;;  %v20231_v56 = vld [vmem:[#allocation9 + $0x90c] ss:$48 sps:$4 sm:$0xff]  }
 0x351   :  { %7177 = vmatprep.subr.bf16.mxu0 %v20159_v57  ;;  %v20229_v57 = vld [vmem:[#allocation9 + $0x908] ss:$48 sps:$4 sm:$0xff]  }
 0x352   :  { %7373 = vmatpush1.bf16.msra.mxu1 %v20358_v46  ;;  %v20247_v46 = vld [vmem:[#allocation9 + $0xa28] ss:$48 sps:$4 sm:$0xff]  }
 0x353   :  { %7374 = vmatprep.subr.bf16.mxu1 %v20366_v4  ;;  %v20261_v4 = vld [vmem:[#allocation9 + $0xaec] ss:$48 sps:$4 sm:$0xff]  }
 0x354   :  { %7178 = vmatpush1.bf16.msra.mxu0 %v20157_v61  ;;  %v20243_v61 = vld [vmem:[#allocation9 + $0x9cc] ss:$48 sps:$4 sm:$0xff]  }
 0x355   :  { %7179 = vmatprep.subr.bf16.mxu0 %v20165_v62  ;;  %v20241_v62 = vld [vmem:[#allocation9 + $0x9c8] ss:$48 sps:$4 sm:$0xff]  }
 0x356   :  { %7375 = vmatpush1.bf16.msra.mxu1 %v20364_v30  ;;  %v20259_v30 = vld [vmem:[#allocation9 + $0xae8] ss:$48 sps:$4 sm:$0xff]  }
 0x357   :  { %7376 = vmatprep.subr.bf16.mxu1 %v20372_v7  ;;  %v24219_v7 = vsub.s32 5, %v23126_v14 }
 0x358   :  { %7180 = vmatpush1.bf16.msra.mxu0 %v20163_v63  ;;  %v20255_v63 = vld [vmem:[#allocation9 + $0xa8c] ss:$48 sps:$4 sm:$0xff]  }
 0x359   :  { %7181 = vmatprep.subr.bf16.mxu0 %v20171_v3  ;;  %v20253_v3 = vld [vmem:[#allocation9 + $0xa88] ss:$48 sps:$4 sm:$0xff]  }
 0x35a   :  { %7377 = vmatpush1.bf16.msra.mxu1 %v20370_v8  ;;  %v20265_v8 = vld [vmem:[#allocation9 + $0xb48] ss:$48 sps:$4 sm:$0xff]  }
 0x35b   :  { %7378 = vmatprep.subr.bf16.mxu1 %v20378_v13 }
 0x35c   :  { %7182 = vmatpush1.bf16.msra.mxu0 %v20169_v37  ;;  %v20267_v37 = vld [vmem:[#allocation9 + $0xb4c] ss:$48 sps:$4 sm:$0xff]  }
 0x35d   :  { %7183 = vmatprep.subr.bf16.mxu0 %v20177_v50  ;;  %v24216_v50 = vsub.s32 4, %v23126_v14 }
 0x35e   :  { %7379 = vmatpush1.bf16.msra.mxu1 %v20376_v15 }
 0x35f   :  { %7380 = vmatprep.subr.bf16.mxu1 %v20384_v0 }
 0x360   :  { %7184 = vmatpush1.bf16.msra.mxu0 %v20175_v11  ;;  %v20273_v11 = vld [vmem:[#allocation9 + $0xbac] ss:$48 sps:$4 sm:$0xff]  }
 0x361   :  { %7194 = vmatprep.subr.bf16.mxu0 %v20183_v12  ;;  %v22635_v12 = vld [vmem:[#allocation6] sm:$0x3f] }
 0x362   :  { %7381 = vmatpush1.bf16.msra.mxu1 %v20382_v20  ;;  %v489_v13 = vrot.slane %v22635_v12, %v24216_v50  ;;  %v493_v15 = vrot.slane %v22635_v12, %v24219_v7  ;;  %v20277_v20 = vld [vmem:[#allocation9 + $0xc08] ss:$48 sps:$4 sm:$0xff]  }
 0x363   :  { %7186 = vmatmul.mubr.bf16.vlgmr.msra.gmra.mrb[16].mxu0 %v24150_v29  ;;  %7382 = vmatprep.subr.bf16.mxu1 %v20390_v24 }
 0x364   :  { %7195 = vmatpush1.bf16.msra.mxu0 %v20181_v17  ;;  %7226 = vmatprep.mubr.bf16.mxu0 %v23963_v2  ;;  %v20271_v17 = vld [vmem:[#allocation9 + $0xba8] ss:$48 sps:$4 sm:$0xff]   ;;  %v657_v0 = vcombine.low %v489_v13, %v493_v15  ;;  %v658_v24 = vcombine.high %v489_v13, %v493_v15 }
 0x365   :  { %7196 = vmatprep.subr.bf16.mxu0 %v20189_v45  ;;  %v20279_v45 = vld [vmem:[#allocation9 + $0xc0c] ss:$48 sps:$4 sm:$0xff]   ;;  %v20313_v15 = vld [vmem:[#allocation9 + $0xe48] ss:$48 sps:$4 sm:$0xff]  }
 0x366   :  { %7383 = vmatpush1.bf16.msra.mxu1 %v20388_v25  ;;  %v665_v25 = vrot.slane %v657_v0, %v23801_v58 }
 0x367   :  { %7384 = vmatprep.subr.bf16.mxu1 %v20396_v31  ;;  %v24230_v31 = vld [vmem:[%s24735_s1] sm:$0x3] }
 0x368   :  { %7197 = vmatpush1.bf16.msra.mxu0 %v20187_v21  ;;  %v20285_v21 = vld [vmem:[#allocation9 + $0xc6c] ss:$48 sps:$4 sm:$0xff]   ;;  %vm3086_vm2 = vcmp.gt.f32.partialorder %v24230_v31, 0.0 }
 0x369   :  { %7198 = vmatprep.subr.bf16.mxu0 %v20195_v23  ;;  %v3090_v23 = vand.u32 127, %v470_v9  ;;  %v672_v9 = vrot.slane %v658_v24, %v23801_v58  ;;  %v20319_v24 = vld [vmem:[#allocation9 + $0xea8] ss:$48 sps:$4 sm:$0xff]   ;;  %v20940_v31 = vld [vmem:[#allocation12 + $0x450] ss:$24 sps:$4 sm:$0xff]  }
 0x36a   :  { %7385 = vmatpush1.bf16.msra.mxu1 %v20394_v32 }
 0x36b   :  { %7386 = vmatprep.subr.bf16.mxu1 %v20402_v42  ;;  %v20289_v42 = vld [vmem:[#allocation9 + $0xcc8] ss:$48 sps:$4 sm:$0xff]  }
 0x36c   :  { %7199 = vmatpush1.bf16.msra.mxu0 %v20193_v26  ;;  %v20283_v26 = vld [vmem:[#allocation9 + $0xc68] ss:$48 sps:$4 sm:$0xff]  }
 0x36d   :  { %7200 = vmatprep.subr.bf16.mxu0 %v20201_v28  ;;  %v20291_v28 = vld [vmem:[#allocation9 + $0xccc] ss:$48 sps:$4 sm:$0xff]  }
 0x36e   :  { %7387 = vmatpush1.bf16.msra.mxu1 %v20400_v47  ;;  %v20297_v47 = vld [vmem:[#allocation9 + $0xd2c] ss:$48 sps:$4 sm:$0xff]  }
 0x36f   :  { %7388 = vmatprep.subr.bf16.mxu1 %v20408_v18 }
 0x370   :  { %7201 = vmatpush1.bf16.msra.mxu0 %v20199_v35  ;;  %v24233_v35 = vsub.s32 %v3090_v23, %v23126_v14 }
 0x371   :  { %7202 = vmatprep.subr.bf16.mxu0 %v20207_v41  ;;  %v673_v41 = vcombine.high %v665_v25, %v665_v25 }
 0x372   :  { %7389 = vmatpush1.bf16.msra.mxu1 %v20406_v54 }
 0x373   :  { %v2272_v54 = vcombine.low %v665_v25, %v673_v41 }
 0x374   :  { %7203 = vmatpush1.bf16.msra.mxu0 %v20205_v48 }
 0x375   :  { %7204 = vmatprep.subr.bf16.mxu0 %v20213_v49  ;;  %7391 = vmatmul.mubr.bf16.vlgmr.msra.gmra.mrb[4].mxu1 %v24073_v6 }
 0x376   :  { %7554 = vmatprep.mubr.bf16.mxu1 %v24081_v10 }
 0x378   :  { %7205 = vmatpush1.bf16.msra.mxu0 %v20211_v53  ;;  %v2273_v53 = vcombine.low %v672_v9, %v665_v25  ;;  %v20327_v25 = vld [vmem:[#allocation9 + $0xf0c] ss:$48 sps:$4 sm:$0xff]  }
 0x379   :  { %7206 = vmatprep.subr.bf16.mxu0 %v20219_v16  ;;  %v20295_v16 = vld [vmem:[#allocation9 + $0xd28] ss:$48 sps:$4 sm:$0xff]  }
 0x37c   :  { %7207 = vmatpush1.bf16.msra.mxu0 %v20217_v52  ;;  %v20303_v52 = vld [vmem:[#allocation9 + $0xd8c] ss:$48 sps:$4 sm:$0xff]  }
 0x37d   :  { %7208 = vmatprep.subr.bf16.mxu0 %v20225_v55 }
 0x380   :  { %7209 = vmatpush1.bf16.msra.mxu0 %v20223_v36 }
 0x381   :  { %7210 = vmatprep.subr.bf16.mxu0 %v20231_v56  ;;  %v2308_v56 = vcombine.low %v673_v41, %v672_v9 }
 0x384   :  { %7211 = vmatpush1.bf16.msra.mxu0 %v20229_v57 }
 0x385   :  { %7212 = vmatprep.subr.bf16.mxu0 %v20237_v59  ;;  %v2280_v59 = vrot.slane %v2272_v54, %v23801_v58 }
 0x388   :  { %7213 = vmatpush1.bf16.msra.mxu0 %v20235_v60  ;;  %v2287_v60 = vrot.slane %v2273_v53, %v23801_v58  ;;  %v20325_v53 = vld [vmem:[#allocation9 + $0xf08] ss:$48 sps:$4 sm:$0xff]  }
 0x389   :  { %7214 = vmatprep.subr.bf16.mxu0 %v20243_v61  ;;  %v20301_v61 = vld [vmem:[#allocation9 + $0xd88] ss:$48 sps:$4 sm:$0xff]  }
 0x38c   :  { %7215 = vmatpush1.bf16.msra.mxu0 %v20241_v62  ;;  %v20309_v62 = vld [vmem:[#allocation9 + $0xdec] ss:$48 sps:$4 sm:$0xff]  }
 0x38d   :  { %7216 = vmatprep.subr.bf16.mxu0 %v20249_v51  ;;  %v2315_v51 = vrot.slane %v2308_v56, %v23801_v58  ;;  %v20331_v56 = vld [vmem:[#allocation9 + $0xf68] ss:$48 sps:$4 sm:$0xff]  }
 0x390   :  { %7217 = vmatpush1.bf16.msra.mxu0 %v20247_v46  ;;  %v2288_v46 = vcombine.low %v2280_v59, %v2287_v60 }
 0x391   :  { %7218 = vmatprep.subr.bf16.mxu0 %v20255_v63  ;;  %v2289_v63 = vcombine.high %v2280_v59, %v2287_v60 }
 0x394   :  { %7219 = vmatpush1.bf16.msra.mxu0 %v20253_v3  ;;  %v20307_v3 = vld [vmem:[#allocation9 + $0xde8] ss:$48 sps:$4 sm:$0xff]  }
 0x395   :  { %7220 = vmatprep.subr.bf16.mxu0 %v20261_v4  ;;  %v20315_v4 = vld [vmem:[#allocation9 + $0xe4c] ss:$48 sps:$4 sm:$0xff]  }
 0x398   :  { %7221 = vmatpush1.bf16.msra.mxu0 %v20259_v30 }
 0x399   :  { %7222 = vmatprep.subr.bf16.mxu0 %v20267_v37  ;;  %v2316_v37 = vcombine.high %v2315_v51, %v2315_v51 }
 0x39c   :  { %7223 = vmatpush1.bf16.msra.mxu0 %v20265_v8 }
 0x39d   :  { %7224 = vmatprep.subr.bf16.mxu0 %v20273_v11 }
 0x3a0   :  { %7225 = vmatpush1.bf16.msra.mxu0 %v20271_v17  ;;  %v20321_v17 = vld [vmem:[#allocation9 + $0xeac] ss:$48 sps:$4 sm:$0xff]  }
 0x3a1   :  { %7235 = vmatprep.subr.bf16.mxu0 %v20279_v45 }
 0x3a3   :  { %7227 = vmatmul.mubr.bf16.vlgmr.msra.gmra.mrb[16].mxu0 %v23967_v5 }
 0x3a4   :  { %7236 = vmatpush1.bf16.msra.mxu0 %v20277_v20  ;;  %7267 = vmatprep.mubr.bf16.mxu0 %v24070_v19 }
 0x3a5   :  { %7237 = vmatprep.subr.bf16.mxu0 %v20285_v21 }
 0x3a6   :  { %v3016_v32 = vpop.xlane.xlu0 %3015 }
 0x3a7   :  { %v3094_v49 = vrot.slane %v3016_v32, %v24233_v35 }
 0x3a8   :  { %7238 = vmatpush1.bf16.msra.mxu0 %v20283_v26  ;;  %v22636_v26 = vld [vmem:[#allocation8] sm:$0x3f] }
 0x3a9   :  { %7239 = vmatprep.subr.bf16.mxu0 %v20291_v28  ;;  %v2854_v28 = vrot.slane %v22636_v26, %v24216_v50  ;;  %v2858_v32 = vrot.slane %v22636_v26, %v24219_v7  ;;  %v20357_v26 = vld [vmem:[#allocation9 + $0x10ec] ss:$48 sps:$4 sm:$0xff]  }
 0x3aa   :  { %v3023_v48 = vpop.xlane.xlu0 %3022 }
 0x3ab   :  { %v3098_v18 = vrot.slane %v3023_v48, %v24233_v35 }
 0x3ac   :  { %7240 = vmatpush1.bf16.msra.mxu0 %v20289_v42 }
 0x3ad   :  { %7241 = vmatprep.subr.bf16.mxu0 %v20297_v47  ;;  %v3100_v55 = vsel %vm3099_vm0, %v3098_v18, %v3094_v49  ;;  %v2894_v18 = vcombine.low %v2854_v28, %v2858_v32 }
 0x3ae   :  { %v24242_v36 = vsel %vm3086_vm2, %v3100_v55, -1e+30 }
 0x3af   :  { %v3104_v57 = vsel %vm3103_vm3, %v24242_v36, -inf  ;;  %v2902_v55 = vrot.slane %v2894_v18, %v23801_v58 }
 0x3b0   :  { %3105 = vmax.xlane.f32.xlu1 %v3104_v57  ;;  %7242 = vmatpush1.bf16.msra.mxu0 %v20295_v16  ;;  %v20333_v16 = vld [vmem:[#allocation9 + $0xf6c] ss:$48 sps:$4 sm:$0xff]  }
 0x3b1   :  { %7243 = vmatprep.subr.bf16.mxu0 %v20303_v52  ;;  %v2895_v52 = vcombine.high %v2854_v28, %v2858_v32  ;;  %v20339_v57 = vld [vmem:[#allocation9 + $0xfcc] ss:$48 sps:$4 sm:$0xff]   ;;  %v2910_v60 = vcombine.high %v2902_v55, %v2902_v55 }
 0x3b3   :  { %v2909_v59 = vrot.slane %v2895_v52, %v23801_v58 }
 0x3b4   :  { %7244 = vmatpush1.bf16.msra.mxu0 %v20301_v61 }
 0x3b5   :  { %7245 = vmatprep.subr.bf16.mxu0 %v20309_v62  ;;  %v20337_v62 = vld [vmem:[#allocation9 + $0xfc8] ss:$48 sps:$4 sm:$0xff]  }
 0x3b6   :  { %v2707_v30 = vpop.f32.mrb[8].mxu0 }
 0x3b7   :  { %v19285_v8 = vadd.f32 %v2707_v30, %v2288_v46  ;;  %v2709_v11 = vpop.f32.mrb[9].mxu0 }
 0x3b8   :  { %v19286_v12 = vadd.f32 %v2709_v11, %v2289_v63  ;;  %v2711_v13 = vpop.f32.mrb[10].mxu0  ;;  %7246 = vmatpush1.bf16.msra.mxu0 %v20307_v3 }
 0x3b9   :  { %v19287_v45 = vadd.f32 %v2711_v13, %v2315_v51  ;;  %v2713_v0 = vpop.f32.mrb[11].mxu0  ;;  %7247 = vmatprep.subr.bf16.mxu0 %v20315_v4  ;;  %v20345_v51 = vld [vmem:[#allocation9 + $0x102c] ss:$48 sps:$4 sm:$0xff]   ;;  %v20343_v4 = vld [vmem:[#allocation9 + $0x1028] ss:$48 sps:$4 sm:$0xff]  }
 0x3ba   :  { %v2764_v20 = vcombine.low %v19285_v8, %v19286_v12  ;;  %v2765_v21 = vcombine.high %v19285_v8, %v19286_v12  ;;  %v19288_v23 = vadd.f32 %v2713_v0, %v2316_v37  ;;  %v20351_v8 = vld [vmem:[#allocation9 + $0x108c] ss:$48 sps:$4 sm:$0xff]  }
 0x3bc   :  { %v2772_v9 = vrot.slane %v2764_v20, %v23801_v58  ;;  %v2779_v41 = vrot.slane %v2765_v21, %v23801_v58  ;;  %v2800_v42 = vcombine.low %v19287_v45, %v19288_v23  ;;  %7248 = vmatpush1.bf16.msra.mxu0 %v20313_v15  ;;  %v3072_v21 = vsel %vm3009_vm1, %v3030_v38, 0.0 }
 0x3bd   :  { %7249 = vmatprep.subr.bf16.mxu0 %v20321_v17 }
 0x3be   :  { %v2780_v47 = vcombine.high %v2772_v9, %v2772_v9  ;;  %v2781_v48 = vcombine.high %v2779_v41, %v2779_v41  ;;  %22615 = vtanh.f32 %v2772_v9  ;;  %v2807_v49 = vrot.slane %v2800_v42, %v23801_v58 }
 0x3bf   :  { %22617 = vtanh.f32 %v2779_v41  ;;  %v3079_v9 = vsel %vm3009_vm1, %v3048_v33, 0.0  ;;  %v20361_v33 = vld [vmem:[#allocation9 + $0x1148] ss:$48 sps:$4 sm:$0xff]  }
 0x3c0   :  { %22619 = vtanh.f32 %v2780_v47  ;;  %v2808_v54 = vcombine.high %v2807_v49, %v2807_v49  ;;  %7250 = vmatpush1.bf16.msra.mxu0 %v20319_v24 }
 0x3c1   :  { %22621 = vtanh.f32 %v2781_v48  ;;  %7251 = vmatprep.subr.bf16.mxu0 %v20327_v25  ;;  %v20349_v25 = vld [vmem:[#allocation9 + $0x1088] ss:$48 sps:$4 sm:$0xff]  }
 0x3c2   :  { %22623 = vtanh.f32 %v2807_v49  ;;  %v20355_v48 = vld [vmem:[#allocation9 + $0x10e8] ss:$48 sps:$4 sm:$0xff]   ;;  %v20363_v49 = vld [vmem:[#allocation9 + $0x114c] ss:$48 sps:$4 sm:$0xff]  }
 0x3c3   :  { %22625 = vtanh.f32 %v2808_v54 }
 0x3c4   :  { %7252 = vmatpush1.bf16.msra.mxu0 %v20325_v53 }
 0x3c5   :  { %7253 = vmatprep.subr.bf16.mxu0 %v20333_v16  ;;  %v20369_v16 = vld [vmem:[#allocation9 + $0x11ac] ss:$48 sps:$4 sm:$0xff]  }
 0x3c8   :  { %v22616_v61 = vpop.eup %22615  ;;  %7254 = vmatpush1.bf16.msra.mxu0 %v20331_v56  ;;  %v20375_v56 = vld [vmem:[#allocation9 + $0x1c] ss:$48 sps:$4 sm:$0xff]  }
 0x3c9   :  { %v22618_v46 = vpop.eup %22617  ;;  %7255 = vmatprep.subr.bf16.mxu0 %v20339_v57  ;;  %v2918_v63 = vmul.f32 %v22616_v61, %v2902_v55  ;;  %v20373_v57 = vld [vmem:[#allocation9 + $0x18] ss:$48 sps:$4 sm:$0xff]   ;;  %v20387_v61 = vld [vmem:[#allocation9 + $0xdc] ss:$48 sps:$4 sm:$0xff]  }
 0x3ca   :  { %v22620_v3 = vpop.eup %22619  ;;  %v2922_v30 = vmul.f32 %v22618_v46, %v2909_v59  ;;  %v20391_v46 = vld [vmem:[#allocation9 + $0x138] ss:$48 sps:$4 sm:$0xff]  }
 0x3cb   :  { %v22622_v37 = vpop.eup %22621  ;;  %v2920_v11 = vmul.f32 %v22620_v3, %v2910_v60  ;;  %v20504_v3 = vld [vmem:[#allocation9 + $0x24] ss:$48 sps:$4 sm:$0xff]  }
 0x3cc   :  { %v22624_v12 = vpop.eup %22623  ;;  %7256 = vmatpush1.bf16.msra.mxu0 %v20337_v62  ;;  %v2924_v13 = vmul.f32 %v22622_v37, %v2902_v55  ;;  %v3045_v0 = vrot.slane %v2922_v30, %v23801_v58  ;;  %v20367_v55 = vld [vmem:[#allocation9 + $0x11a8] ss:$48 sps:$4 sm:$0xff]   ;;  %v20405_v30 = vld [vmem:[#allocation9 + $0x1fc] ss:$48 sps:$4 sm:$0xff]   ;;  %v20502_v37 = vld [vmem:[#allocation9 + $0x20] ss:$48 sps:$4 sm:$0xff]   ;;  %7522 = vmatprep.subr.bf16.mxu1 %v20504_v3 }
 0x3cd   :  { %v22626_v15 = vpop.eup %22625  ;;  %7257 = vmatprep.subr.bf16.mxu0 %v20345_v51  ;;  %v2926_v17 = vmul.f32 %v22624_v12, %v2910_v60  ;;  %v3031_v45 = vcombine.low %v2918_v63, %v2920_v11  ;;  %v20379_v60 = vld [vmem:[#allocation9 + $0x78] ss:$48 sps:$4 sm:$0xff]   ;;  %v20393_v51 = vld [vmem:[#allocation9 + $0x13c] ss:$48 sps:$4 sm:$0xff]   ;;  %7523 = vmatpush1.bf16.msra.mxu1 %v20502_v37  ;;  %v20576_v37 = vld [vmem:[#allocation9 + $0x4a4] ss:$48 sps:$4 sm:$0xff]  }
 0x3ce   :  { %v2928_v20 = vmul.f32 %v22626_v15, %v2909_v59  ;;  %v20381_v59 = vld [vmem:[#allocation9 + $0x7c] ss:$48 sps:$4 sm:$0xff]   ;;  %v20385_v62 = vld [vmem:[#allocation9 + $0xd8] ss:$48 sps:$4 sm:$0xff]   ;;  %v20516_v15 = vld [vmem:[#allocation9 + $0xe4] ss:$48 sps:$4 sm:$0xff]  }
 0x3cf   :  { %v3049_v23 = vcombine.low %v2924_v13, %v2926_v17  ;;  %v3038_v24 = vrot.slane %v3031_v45, %v23801_v58  ;;  %v20399_v63 = vld [vmem:[#allocation9 + $0x19c] ss:$48 sps:$4 sm:$0xff]   ;;  %v20403_v11 = vld [vmem:[#allocation9 + $0x1f8] ss:$48 sps:$4 sm:$0xff]   ;;  %v20508_v13 = vld [vmem:[#allocation9 + $0x80] ss:$48 sps:$4 sm:$0xff]  }
 0x3d0   :  { %7258 = vmatpush1.bf16.msra.mxu0 %v20343_v4  ;;  %v3063_v28 = vrot.slane %v2928_v20, %v23801_v58  ;;  %v20397_v4 = vld [vmem:[#allocation9 + $0x198] ss:$48 sps:$4 sm:$0xff]   ;;  %v20411_v12 = vld [vmem:[#allocation9 + $0x25c] ss:$48 sps:$4 sm:$0xff]   ;;  %v20522_v20 = vld [vmem:[#allocation9 + $0x144] ss:$48 sps:$4 sm:$0xff]  }
 0x3d1   :  { %7259 = vmatprep.subr.bf16.mxu0 %v20351_v8  ;;  %v3056_v32 = vrot.slane %v3049_v23, %v23801_v58  ;;  %v3046_v41 = vcombine.low %v3038_v24, %v3045_v0  ;;  %v3047_v1 = vcombine.high %v3038_v24, %v3045_v0  ;;  %v20510_v8 = vld [vmem:[#allocation9 + $0x84] ss:$48 sps:$4 sm:$0xff]   ;;  %v20409_v17 = vld [vmem:[#allocation9 + $0x258] ss:$48 sps:$4 sm:$0xff]   ;;  %v20414_v45 = vld [vmem:[#allocation9 + $0x2bc] ss:$48 sps:$4 sm:$0xff]  }
 0x3d2   :  { %7524 = vmatprep.subr.bf16.mxu1 %v20510_v8  ;;  %v20514_v0 = vld [vmem:[#allocation9 + $0xe0] ss:$48 sps:$4 sm:$0xff]   ;;  %v20417_v23 = vld [vmem:[#allocation9 + $0x31c] ss:$48 sps:$4 sm:$0xff]   ;;  %v20436_v3 = vld [vmem:[#allocation9 + $0x5b8] ss:$48 sps:$4 sm:$0xff]  }
 0x3d3   :  { %v3064_v27 = vcombine.low %v3056_v32, %v3063_v28  ;;  %v3065_v38 = vcombine.high %v3056_v32, %v3063_v28  ;;  %v3073_v42 = vsel %vm3009_vm1, %v3046_v41, 0.0  ;;  %v3075_v47 = vsel %vm3009_vm1, %v3047_v1, 0.0  ;;  %7525 = vmatpush1.bf16.msra.mxu1 %v20508_v13  ;;  %v20520_v24 = vld [vmem:[#allocation9 + $0x140] ss:$48 sps:$4 sm:$0xff]   ;;  %v20420_v28 = vld [vmem:[#allocation9 + $0x37c] ss:$48 sps:$4 sm:$0xff]  }
 0x3d4   :  { %7260 = vmatpush1.bf16.msra.mxu0 %v20349_v25  ;;  %v3074_v18 = vadd.f32 %v3073_v42, %v3072_v21  ;;  %7526 = vmatprep.subr.bf16.mxu1 %v20516_v15  ;;  %v20412_v21 = vld [vmem:[#allocation9 + $0x2b8] ss:$48 sps:$4 sm:$0xff]   ;;  %v20528_v25 = vld [vmem:[#allocation9 + $0x1a4] ss:$48 sps:$4 sm:$0xff]   ;;  %v20526_v32 = vld [vmem:[#allocation9 + $0x1a0] ss:$48 sps:$4 sm:$0xff]  }
 0x3d5   :  { %7261 = vmatprep.subr.bf16.mxu0 %v20357_v26  ;;  %v3080_v54 = vsel %vm3009_vm1, %v3064_v27, 0.0  ;;  %v3082_v53 = vsel %vm3009_vm1, %v3065_v38, 0.0  ;;  %v20415_v26 = vld [vmem:[#allocation9 + $0x318] ss:$48 sps:$4 sm:$0xff]   ;;  %v20423_v1 = vld [vmem:[#allocation9 + $0x3dc] ss:$48 sps:$4 sm:$0xff]  }
 0x3d6   :  { %v3081_v34 = vadd.f32 %v3080_v54, %v3079_v9  ;;  %v24272_v22 = vadd.f32 %v3075_v47, %v3074_v18  ;;  %v20534_v9 = vld [vmem:[#allocation9 + $0x204] ss:$48 sps:$4 sm:$0xff]   ;;  %v20418_v41 = vld [vmem:[#allocation9 + $0x378] ss:$48 sps:$4 sm:$0xff]   ;;  %v20532_v27 = vld [vmem:[#allocation9 + $0x200] ss:$48 sps:$4 sm:$0xff]  }
 0x3d7   :  { %7527 = vmatpush1.bf16.msra.mxu1 %v20514_v0  ;;  %v20540_v38 = vld [vmem:[#allocation9 + $0x264] ss:$48 sps:$4 sm:$0xff]   ;;  %v20421_v42 = vld [vmem:[#allocation9 + $0x3d8] ss:$48 sps:$4 sm:$0xff]   ;;  %v20426_v47 = vld [vmem:[#allocation9 + $0x43c] ss:$48 sps:$4 sm:$0xff]  }
 0x3d8   :  { %7262 = vmatpush1.bf16.msra.mxu0 %v20355_v48  ;;  %v24274_v52 = vadd.f32 %v3082_v53, %v3081_v34  ;;  %7528 = vmatprep.subr.bf16.mxu1 %v20522_v20  ;;  %v20538_v48 = vld [vmem:[#allocation9 + $0x260] ss:$48 sps:$4 sm:$0xff]   ;;  %v20424_v18 = vld [vmem:[#allocation9 + $0x438] ss:$48 sps:$4 sm:$0xff]   ;;  %v20429_v54 = vld [vmem:[#allocation9 + $0x49c] ss:$48 sps:$4 sm:$0xff]  }
 0x3d9   :  { %7263 = vmatprep.subr.bf16.mxu0 %v20363_v49  ;;  %v20546_v49 = vld [vmem:[#allocation9 + $0x2c4] ss:$48 sps:$4 sm:$0xff]   ;;  %v20544_v53 = vld [vmem:[#allocation9 + $0x2c0] ss:$48 sps:$4 sm:$0xff]   ;;  %v20439_v8 = vld [vmem:[#allocation9 + $0x618] ss:$48 sps:$4 sm:$0xff]  }
 0x3da   :  { %v20552_v34 = vld [vmem:[#allocation9 + $0x324] ss:$48 sps:$4 sm:$0xff]   ;;  %v20442_v15 = vld [vmem:[#allocation9 + $0x678] ss:$48 sps:$4 sm:$0xff]  }
 0x3db   :  { %7529 = vmatpush1.bf16.msra.mxu1 %v20520_v24  ;;  %v20582_v13 = vld [vmem:[#allocation9 + $0x504] ss:$48 sps:$4 sm:$0xff]   ;;  %v20445_v20 = vld [vmem:[#allocation9 + $0x6d8] ss:$48 sps:$4 sm:$0xff]  }
 0x3dc   :  { %7264 = vmatpush1.bf16.msra.mxu0 %v20361_v33  ;;  %7530 = vmatprep.subr.bf16.mxu1 %v20528_v25  ;;  %v20427_v33 = vld [vmem:[#allocation9 + $0x498] ss:$48 sps:$4 sm:$0xff]   ;;  %v20588_v0 = vld [vmem:[#allocation9 + $0x564] ss:$48 sps:$4 sm:$0xff]  }
 0x3dd   :  { %7265 = vmatprep.subr.bf16.mxu0 %v20369_v16  ;;  %v20432_v16 = vld [vmem:[#allocation9 + $0x4fc] ss:$48 sps:$4 sm:$0xff]   ;;  %v20594_v24 = vld [vmem:[#allocation9 + $0x5c4] ss:$48 sps:$4 sm:$0xff]   ;;  %v20448_v25 = vld [vmem:[#allocation9 + $0x738] ss:$48 sps:$4 sm:$0xff]  }
 0x3df   :  { %7531 = vmatpush1.bf16.msra.mxu1 %v20526_v32  ;;  %v20600_v32 = vld [vmem:[#allocation9 + $0x624] ss:$48 sps:$4 sm:$0xff]  }
 0x3e0   :  { %7266 = vmatpush1.bf16.msra.mxu0 %v20367_v55  ;;  %7532 = vmatprep.subr.bf16.mxu1 %v20534_v9  ;;  %v20550_v55 = vld [vmem:[#allocation9 + $0x320] ss:$48 sps:$4 sm:$0xff]   ;;  %v20451_v9 = vld [vmem:[#allocation9 + $0x798] ss:$48 sps:$4 sm:$0xff]  }
 0x3e1   :  { %7399 = vmatprep.subr.bf16.mxu0 %v20375_v56  ;;  %v20558_v56 = vld [vmem:[#allocation9 + $0x384] ss:$48 sps:$4 sm:$0xff]  }
 0x3e3   :  { %7268 = vmatmul.mubr.bf16.vlgmr.msra.gmra.mrb[16].mxu0 %v24073_v6  ;;  %7533 = vmatpush1.bf16.msra.mxu1 %v20532_v27  ;;  %v20606_v27 = vld [vmem:[#allocation9 + $0x684] ss:$48 sps:$4 sm:$0xff]  }
 0x3e4   :  { %7400 = vmatpush1.bf16.msra.mxu0 %v20373_v57  ;;  %7431 = vmatprep.mubr.bf16.mxu0 %v24081_v10  ;;  %v20430_v57 = vld [vmem:[#allocation9 + $0x4f8] ss:$48 sps:$4 sm:$0xff]  }
 0x3e5   :  { %7401 = vmatprep.subr.bf16.mxu0 %v20381_v59  ;;  %7534 = vmatprep.subr.bf16.mxu1 %v20540_v38  ;;  %v20435_v59 = vld [vmem:[#allocation9 + $0x55c] ss:$48 sps:$4 sm:$0xff]   ;;  %v20454_v38 = vld [vmem:[#allocation9 + $0x7f8] ss:$48 sps:$4 sm:$0xff]  }
 0x3e7   :  { %7535 = vmatpush1.bf16.msra.mxu1 %v20538_v48  ;;  %v20612_v48 = vld [vmem:[#allocation9 + $0x6e4] ss:$48 sps:$4 sm:$0xff]  }
 0x3e8   :  { %7402 = vmatpush1.bf16.msra.mxu0 %v20379_v60  ;;  %7536 = vmatprep.subr.bf16.mxu1 %v20546_v49  ;;  %v20556_v60 = vld [vmem:[#allocation9 + $0x380] ss:$48 sps:$4 sm:$0xff]   ;;  %v20457_v49 = vld [vmem:[#allocation9 + $0x858] ss:$48 sps:$4 sm:$0xff]  }
 0x3e9   :  { %7403 = vmatprep.subr.bf16.mxu0 %v20387_v61  ;;  %v20564_v61 = vld [vmem:[#allocation9 + $0x3e4] ss:$48 sps:$4 sm:$0xff]  }
 0x3eb   :  { %7537 = vmatpush1.bf16.msra.mxu1 %v20544_v53  ;;  %v20618_v53 = vld [vmem:[#allocation9 + $0x744] ss:$48 sps:$4 sm:$0xff]  }
 0x3ec   :  { %7404 = vmatpush1.bf16.msra.mxu0 %v20385_v62  ;;  %7538 = vmatprep.subr.bf16.mxu1 %v20552_v34  ;;  %v20433_v62 = vld [vmem:[#allocation9 + $0x558] ss:$48 sps:$4 sm:$0xff]  }
 0x3ed   :  { %7405 = vmatprep.subr.bf16.mxu0 %v20393_v51  ;;  %v20438_v51 = vld [vmem:[#allocation9 + $0x5bc] ss:$48 sps:$4 sm:$0xff]   ;;  %v20460_v34 = vld [vmem:[#allocation9 + $0x8b8] ss:$48 sps:$4 sm:$0xff]  }
 0x3ef   :  { %7539 = vmatpush1.bf16.msra.mxu1 %v20550_v55 }
 0x3f0   :  { %7406 = vmatpush1.bf16.msra.mxu0 %v20391_v46  ;;  %7540 = vmatprep.subr.bf16.mxu1 %v20558_v56  ;;  %v20562_v46 = vld [vmem:[#allocation9 + $0x3e0] ss:$48 sps:$4 sm:$0xff]  }
 0x3f1   :  { %7407 = vmatprep.subr.bf16.mxu0 %v20399_v63  ;;  %v20570_v63 = vld [vmem:[#allocation9 + $0x444] ss:$48 sps:$4 sm:$0xff]  }
 0x3f3   :  { %7541 = vmatpush1.bf16.msra.mxu1 %v20556_v60  ;;  %v20463_v60 = vld [vmem:[#allocation9 + $0x918] ss:$48 sps:$4 sm:$0xff]  }
 0x3f4   :  { %7408 = vmatpush1.bf16.msra.mxu0 %v20397_v4  ;;  %7542 = vmatprep.subr.bf16.mxu1 %v20564_v61  ;;  %v20441_v4 = vld [vmem:[#allocation9 + $0x61c] ss:$48 sps:$4 sm:$0xff]  }
 0x3f5   :  { %7409 = vmatprep.subr.bf16.mxu0 %v20405_v30  ;;  %v20568_v30 = vld [vmem:[#allocation9 + $0x440] ss:$48 sps:$4 sm:$0xff]   ;;  %v20468_v61 = vld [vmem:[#allocation9 + $0x97c] ss:$48 sps:$4 sm:$0xff]  }
 0x3f7   :  { %7543 = vmatpush1.bf16.msra.mxu1 %v20562_v46  ;;  %v24283_v46 = vld [vmem:[#allocation11] sm:$0xff] }
 0x3f8   :  { %7410 = vmatpush1.bf16.msra.mxu0 %v20403_v11  ;;  %7544 = vmatprep.subr.bf16.mxu1 %v20570_v63  ;;  %v20444_v11 = vld [vmem:[#allocation9 + $0x67c] ss:$48 sps:$4 sm:$0xff]  }
 0x3f9   :  { %7411 = vmatprep.subr.bf16.mxu0 %v20411_v12  ;;  %v20574_v12 = vld [vmem:[#allocation9 + $0x4a0] ss:$48 sps:$4 sm:$0xff]  }
 0x3fb   :  { %7545 = vmatpush1.bf16.msra.mxu1 %v20568_v30  ;;  %v20471_v30 = vld [vmem:[#allocation9 + $0x9dc] ss:$48 sps:$4 sm:$0xff]  }
 0x3fc   :  { %7412 = vmatpush1.bf16.msra.mxu0 %v20409_v17  ;;  %7546 = vmatprep.subr.bf16.mxu1 %v20576_v37  ;;  %v20447_v17 = vld [vmem:[#allocation9 + $0x6dc] ss:$48 sps:$4 sm:$0xff]   ;;  %v4055_v37 = vrot.slane %v24283_v46, %v23772_v40 }
 0x3fd   :  { %7413 = vmatprep.subr.bf16.mxu0 %v20414_v45  ;;  %v20580_v45 = vld [vmem:[#allocation9 + $0x500] ss:$48 sps:$4 sm:$0xff]  }
 0x3ff   :  { %7547 = vmatpush1.bf16.msra.mxu1 %v20574_v12 }
 0x400   :  { %7414 = vmatpush1.bf16.msra.mxu0 %v20412_v21  ;;  %7548 = vmatprep.subr.bf16.mxu1 %v20582_v13  ;;  %v20450_v21 = vld [vmem:[#allocation9 + $0x73c] ss:$48 sps:$4 sm:$0xff]  }
 0x401   :  { %7415 = vmatprep.subr.bf16.mxu0 %v20417_v23  ;;  %v20586_v23 = vld [vmem:[#allocation9 + $0x560] ss:$48 sps:$4 sm:$0xff]  }
 0x403   :  { %7549 = vmatpush1.bf16.msra.mxu1 %v20580_v45 }
 0x404   :  { %7416 = vmatpush1.bf16.msra.mxu0 %v20415_v26  ;;  %7550 = vmatprep.subr.bf16.mxu1 %v20588_v0  ;;  %v20453_v26 = vld [vmem:[#allocation9 + $0x79c] ss:$48 sps:$4 sm:$0xff]  }
 0x405   :  { %7417 = vmatprep.subr.bf16.mxu0 %v20420_v28  ;;  %v20592_v28 = vld [vmem:[#allocation9 + $0x5c0] ss:$48 sps:$4 sm:$0xff]  }
 0x407   :  { %7551 = vmatpush1.bf16.msra.mxu1 %v20586_v23  ;;  %v20469_v23 = vld [vmem:[#allocation9 + $0x9d8] ss:$48 sps:$4 sm:$0xff]  }
 0x408   :  { %7418 = vmatpush1.bf16.msra.mxu0 %v20418_v41  ;;  %7552 = vmatprep.subr.bf16.mxu1 %v20594_v24  ;;  %v20456_v41 = vld [vmem:[#allocation9 + $0x7fc] ss:$48 sps:$4 sm:$0xff]  }
 0x409   :  { %7419 = vmatprep.subr.bf16.mxu0 %v20423_v1  ;;  %v20598_v1 = vld [vmem:[#allocation9 + $0x620] ss:$48 sps:$4 sm:$0xff]   ;;  %v20474_v24 = vld [vmem:[#allocation9 + $0xa3c] ss:$48 sps:$4 sm:$0xff]  }
 0x40b   :  { %7553 = vmatpush1.bf16.msra.mxu1 %v20592_v28  ;;  %v20634_v28 = vld [vmem:[#allocation9 + $0x860] ss:$48 sps:$4 sm:$0xff]  }
 0x40c   :  { %7420 = vmatpush1.bf16.msra.mxu0 %v20421_v42  ;;  %7563 = vmatprep.subr.bf16.mxu1 %v20600_v32  ;;  %v20459_v42 = vld [vmem:[#allocation9 + $0x85c] ss:$48 sps:$4 sm:$0xff]  }
 0x40d   :  { %7421 = vmatprep.subr.bf16.mxu0 %v20426_v47  ;;  %v20604_v47 = vld [vmem:[#allocation9 + $0x680] ss:$48 sps:$4 sm:$0xff]  }
 0x40e   :  { %7555 = vmatmul.mubr.bf16.vlgmr.msra.gmra.mrb[8].mxu1 %v24150_v29 }
 0x40f   :  { %7564 = vmatpush1.bf16.msra.mxu1 %v20598_v1  ;;  %7595 = vmatprep.mubr.bf16.mxu1 %v23963_v2  ;;  %v20642_v1 = vld [vmem:[#allocation9 + $0x8c4] ss:$48 sps:$4 sm:$0xff]  }
 0x410   :  { %7422 = vmatpush1.bf16.msra.mxu0 %v20424_v18  ;;  %7565 = vmatprep.subr.bf16.mxu1 %v20606_v27  ;;  %v20462_v18 = vld [vmem:[#allocation9 + $0x8bc] ss:$48 sps:$4 sm:$0xff]  }
 0x411   :  { %7423 = vmatprep.subr.bf16.mxu0 %v20429_v54  ;;  %v20610_v54 = vld [vmem:[#allocation9 + $0x6e0] ss:$48 sps:$4 sm:$0xff]  }
 0x413   :  { %7566 = vmatpush1.bf16.msra.mxu1 %v20604_v47 }
 0x414   :  { %7424 = vmatpush1.bf16.msra.mxu0 %v20427_v33  ;;  %7567 = vmatprep.subr.bf16.mxu1 %v20612_v48  ;;  %v20465_v33 = vld [vmem:[#allocation9 + $0x91c] ss:$48 sps:$4 sm:$0xff]  }
 0x415   :  { %7425 = vmatprep.subr.bf16.mxu0 %v20432_v16  ;;  %v20616_v16 = vld [vmem:[#allocation9 + $0x740] ss:$48 sps:$4 sm:$0xff]  }
 0x417   :  { %7568 = vmatpush1.bf16.msra.mxu1 %v20610_v54  ;;  %v20640_v54 = vld [vmem:[#allocation9 + $0x8c0] ss:$48 sps:$4 sm:$0xff]  }
 0x418   :  { %7426 = vmatpush1.bf16.msra.mxu0 %v20430_v57  ;;  %7569 = vmatprep.subr.bf16.mxu1 %v20618_v53  ;;  %v20624_v57 = vld [vmem:[#allocation9 + $0x7a4] ss:$48 sps:$4 sm:$0xff]  }
 0x419   :  { %7427 = vmatprep.subr.bf16.mxu0 %v20435_v59 }
 0x41b   :  { %7570 = vmatpush1.bf16.msra.mxu1 %v20616_v16 }
 0x41c   :  { %7428 = vmatpush1.bf16.msra.mxu0 %v20433_v62  ;;  %v20622_v62 = vld [vmem:[#allocation9 + $0x7a0] ss:$48 sps:$4 sm:$0xff]   ;;  %7571 = vmatprep.subr.bf16.mxu1 %v20624_v57 }
 0x41d   :  { %7429 = vmatprep.subr.bf16.mxu0 %v20438_v51  ;;  %v7064_v51 = vpop.f32.mrb[12].mxu0 }
 0x41e   :  { %v7066_v63 = vpop.f32.mrb[13].mxu0 }
 0x41f   :  { %7572 = vmatpush1.bf16.msra.mxu1 %v20622_v62  ;;  %v7067_v45 = vadd.f32 %v7066_v63, %v4055_v37  ;;  %v20483_v62 = vld [vmem:[#allocation9 + $0xb5c] ss:$48 sps:$4 sm:$0xff]   ;;  %v20481_v63 = vld [vmem:[#allocation9 + $0xb58] ss:$48 sps:$4 sm:$0xff]  }
 0x420   :  { %7430 = vmatpush1.bf16.msra.mxu0 %v20436_v3  ;;  %v20630_v3 = vld [vmem:[#allocation9 + $0x804] ss:$48 sps:$4 sm:$0xff]   ;;  %v20484_v37 = vld [vmem:[#allocation9 + $0xbb8] ss:$48 sps:$4 sm:$0xff]  }
 0x421   :  { %7440 = vmatprep.subr.bf16.mxu0 %v20441_v4  ;;  %v20466_v4 = vld [vmem:[#allocation9 + $0x978] ss:$48 sps:$4 sm:$0xff]   ;;  %7573 = vmatprep.subr.bf16.mxu1 %v20630_v3  ;;  %v20486_v3 = vld [vmem:[#allocation9 + $0xbbc] ss:$48 sps:$4 sm:$0xff]  }
 0x423   :  { %7432 = vmatmul.mubr.bf16.vlgmr.msra.gmra.mrb[20].mxu0 %v24150_v29 }
 0x424   :  { %7441 = vmatpush1.bf16.msra.mxu0 %v20439_v8  ;;  %7472 = vmatprep.mubr.bf16.mxu0 %v23963_v2  ;;  %v7068_v8 = vpop.f32.mrb[14].mxu0 }
 0x425   :  { %7442 = vmatprep.subr.bf16.mxu0 %v20444_v11  ;;  %v7146_v11 = vpop.f32.mrb[0].mxu1  ;;  %v7069_v12 = vpop.f32.mrb[15].mxu0  ;;  %v20489_v8 = vld [vmem:[#allocation9 + $0xc1c] ss:$48 sps:$4 sm:$0xff]  }
 0x426   :  { %v7148_v13 = vpop.f32.mrb[1].mxu1  ;;  %v20672_v12 = vld [vmem:[#allocation9 + $0xaa4] ss:$48 sps:$4 sm:$0xff]  }
 0x427   :  { %v7150_v0 = vpop.f32.mrb[2].mxu1 }
 0x428   :  { %7443 = vmatpush1.bf16.msra.mxu0 %v20442_v15  ;;  %v20628_v15 = vld [vmem:[#allocation9 + $0x800] ss:$48 sps:$4 sm:$0xff]   ;;  %v20490_v0 = vld [vmem:[#allocation9 + $0xc78] ss:$48 sps:$4 sm:$0xff]  }
 0x429   :  { %7444 = vmatprep.subr.bf16.mxu0 %v20447_v17  ;;  %7574 = vmatpush1.bf16.msra.mxu1 %v20628_v15  ;;  %v20492_v15 = vld [vmem:[#allocation9 + $0xc7c] ss:$48 sps:$4 sm:$0xff]  }
 0x42c   :  { %7445 = vmatpush1.bf16.msra.mxu0 %v20445_v20  ;;  %v7151_v20 = vpop.f32.mrb[3].mxu1 }
 0x42d   :  { %7446 = vmatprep.subr.bf16.mxu0 %v20450_v21  ;;  %v20636_v21 = vld [vmem:[#allocation9 + $0x864] ss:$48 sps:$4 sm:$0xff]   ;;  %v20495_v20 = vld [vmem:[#allocation9 + $0xcdc] ss:$48 sps:$4 sm:$0xff]  }
 0x42e   :  { %7575 = vmatprep.subr.bf16.mxu1 %v20636_v21  ;;  %v20676_v21 = vld [vmem:[#allocation9 + $0xb00] ss:$48 sps:$4 sm:$0xff]  }
 0x42f   :  { %7576 = vmatpush1.bf16.msra.mxu1 %v20634_v28  ;;  %v20684_v28 = vld [vmem:[#allocation9 + $0xb64] ss:$48 sps:$4 sm:$0xff]  }
 0x430   :  { %7447 = vmatpush1.bf16.msra.mxu0 %v20448_v25  ;;  %7577 = vmatprep.subr.bf16.mxu1 %v20642_v1  ;;  %v20496_v1 = vld [vmem:[#allocation9 + $0xd38] ss:$48 sps:$4 sm:$0xff]  }
 0x431   :  { %7448 = vmatprep.subr.bf16.mxu0 %v20453_v26  ;;  %v24291_v26 = vadd.f32 %v7148_v13, %v7067_v45  ;;  %v20487_v13 = vld [vmem:[#allocation9 + $0xc18] ss:$48 sps:$4 sm:$0xff]   ;;  %v20678_v45 = vld [vmem:[#allocation9 + $0xb04] ss:$48 sps:$4 sm:$0xff]  }
 0x433   :  { %7578 = vmatpush1.bf16.msra.mxu1 %v20640_v54  ;;  %v20702_v54 = vld [vmem:[#allocation9 + $0xc84] ss:$48 sps:$4 sm:$0xff]  }
 0x434   :  { %7449 = vmatpush1.bf16.msra.mxu0 %v20451_v9  ;;  %v4067_v9 = vrot.slane %v24283_v46, %v24216_v50 }
 0x435   :  { %7450 = vmatprep.subr.bf16.mxu0 %v20456_v41  ;;  %v4071_v41 = vrot.slane %v24283_v46, %v24219_v7 }
 0x438   :  { %7451 = vmatpush1.bf16.msra.mxu0 %v20454_v38  ;;  %v20472_v38 = vld [vmem:[#allocation9 + $0xa38] ss:$48 sps:$4 sm:$0xff]  }
 0x439   :  { %7452 = vmatprep.subr.bf16.mxu0 %v20459_v42  ;;  %v20477_v42 = vld [vmem:[#allocation9 + $0xa9c] ss:$48 sps:$4 sm:$0xff]  }
 0x43c   :  { %7453 = vmatpush1.bf16.msra.mxu0 %v20457_v49 }
 0x43d   :  { %v3106_v55 = vpop.xlane.xlu1 %3105  ;;  %7454 = vmatprep.subr.bf16.mxu0 %v20462_v18 }
 0x43e   :  { %v3107_v56 = vsub.f32 %v24242_v36, %v3106_v55  ;;  %v4051_v36 = vrot.slane %v24283_v46, %v23769_v39  ;;  %v20475_v55 = vld [vmem:[#allocation9 + $0xa98] ss:$48 sps:$4 sm:$0xff]  }
 0x440   :  { %v3108_v59 = vmul.f32 1.442695, %v3107_v56  ;;  %7455 = vmatpush1.bf16.msra.mxu0 %v20460_v34  ;;  %v7065_v17 = vadd.f32 %v7064_v51, %v4051_v36  ;;  %v20480_v56 = vld [vmem:[#allocation9 + $0xafc] ss:$48 sps:$4 sm:$0xff]   ;;  %v20652_v51 = vld [vmem:[#allocation9 + $0x980] ss:$48 sps:$4 sm:$0xff]  }
 0x441   :  { %7456 = vmatprep.subr.bf16.mxu0 %v20465_v33  ;;  %v20648_v33 = vld [vmem:[#allocation9 + $0x924] ss:$48 sps:$4 sm:$0xff]  }
 0x442   :  { %22627 = vpow2.f32 %v3108_v59  ;;  %v24289_v25 = vadd.f32 %v7146_v11, %v7065_v17  ;;  %v20646_v59 = vld [vmem:[#allocation9 + $0x920] ss:$48 sps:$4 sm:$0xff]   ;;  %7579 = vmatprep.subr.bf16.mxu1 %v20648_v33  ;;  %v20666_v36 = vld [vmem:[#allocation9 + $0xa44] ss:$48 sps:$4 sm:$0xff]   ;;  %v20513_v33 = vld [vmem:[#allocation9 + $0xe5c] ss:$48 sps:$4 sm:$0xff]  }
 0x443   :  { %7580 = vmatpush1.bf16.msra.mxu1 %v20646_v59  ;;  %v20664_v11 = vld [vmem:[#allocation9 + $0xa40] ss:$48 sps:$4 sm:$0xff]   ;;  %v20714_v59 = vld [vmem:[#allocation9 + $0xd44] ss:$48 sps:$4 sm:$0xff]  }
 0x444   :  { %7457 = vmatpush1.bf16.msra.mxu0 %v20463_v60  ;;  %v7859_v32 = vcombine.low %v24289_v25, %v24291_v26  ;;  %v20654_v60 = vld [vmem:[#allocation9 + $0x984] ss:$48 sps:$4 sm:$0xff]   ;;  %v20670_v17 = vld [vmem:[#allocation9 + $0xaa0] ss:$48 sps:$4 sm:$0xff]   ;;  %v20625_v25 = vld [vmem:[#allocation9 + $0x388] ss:$48 sps:$4 sm:$0xff]  }
 0x445   :  { %7458 = vmatprep.subr.bf16.mxu0 %v20468_v61  ;;  %v20478_v61 = vld [vmem:[#allocation9 + $0xaf8] ss:$48 sps:$4 sm:$0xff]   ;;  %7581 = vmatprep.subr.bf16.mxu1 %v20654_v60  ;;  %v20808_v26 = vld [vmem:[#allocation12 + $0x30] ss:$24 sps:$4 sm:$0xff]  }
 0x446   :  { %v20517_v60 = vld [vmem:[#allocation9 + $0xeb8] ss:$48 sps:$4 sm:$0xff]  }
 0x447   :  { %7582 = vmatpush1.bf16.msra.mxu1 %v20652_v51  ;;  %v20720_v51 = vld [vmem:[#allocation9 + $0xda4] ss:$48 sps:$4 sm:$0xff]  }
 0x448   :  { %7459 = vmatpush1.bf16.msra.mxu0 %v20466_v4  ;;  %v7392_v47 = vpop.f32.mrb[4].mxu1  ;;  %v20660_v4 = vld [vmem:[#allocation9 + $0x9e4] ss:$48 sps:$4 sm:$0xff]  }
 0x449   :  { %7460 = vmatprep.subr.bf16.mxu0 %v20471_v30  ;;  %v19295_v49 = vadd.f32 %v7392_v47, %v4067_v9  ;;  %v7394_v18 = vpop.f32.mrb[5].mxu1  ;;  %v20658_v30 = vld [vmem:[#allocation9 + $0x9e0] ss:$48 sps:$4 sm:$0xff]   ;;  %7583 = vmatprep.subr.bf16.mxu1 %v20660_v4  ;;  %v20696_v47 = vld [vmem:[#allocation9 + $0xc24] ss:$48 sps:$4 sm:$0xff]  }
 0x44a   :  { %v19296_v53 = vadd.f32 %v7394_v18, %v4071_v41  ;;  %v7396_v34 = vpop.f32.mrb[6].mxu1  ;;  %v20682_v9 = vld [vmem:[#allocation9 + $0xb60] ss:$48 sps:$4 sm:$0xff]   ;;  %v20690_v41 = vld [vmem:[#allocation9 + $0xbc4] ss:$48 sps:$4 sm:$0xff]  }
 0x44b   :  { %v7397_v16 = vpop.f32.mrb[7].mxu1  ;;  %7584 = vmatpush1.bf16.msra.mxu1 %v20658_v30  ;;  %v20694_v18 = vld [vmem:[#allocation9 + $0xc20] ss:$48 sps:$4 sm:$0xff]   ;;  %v20531_v4 = vld [vmem:[#allocation9 + $0xf7c] ss:$48 sps:$4 sm:$0xff]  }
 0x44c   :  { %v24299_v27 = vpop.eup %22627  ;;  %7461 = vmatpush1.bf16.msra.mxu0 %v20469_v23  ;;  %v7876_v57 = vcombine.low %v19295_v49, %v19296_v53  ;;  %7585 = vmatprep.subr.bf16.mxu1 %v20666_v36  ;;  %v20493_v23 = vld [vmem:[#allocation9 + $0xcd8] ss:$48 sps:$4 sm:$0xff]   ;;  %v20507_v49 = vld [vmem:[#allocation9 + $0xdfc] ss:$48 sps:$4 sm:$0xff]   ;;  %v20700_v34 = vld [vmem:[#allocation9 + $0xc80] ss:$48 sps:$4 sm:$0xff]  }
 0x44d   :  { %v3110_v48 = vsel %vm3103_vm3, %v24299_v27, 0.0  ;;  %7462 = vmatprep.subr.bf16.mxu0 %v20474_v24  ;;  %v20498_v24 = vld [vmem:[#allocation9 + $0xd3c] ss:$48 sps:$4 sm:$0xff]   ;;  %v20505_v53 = vld [vmem:[#allocation9 + $0xdf8] ss:$48 sps:$4 sm:$0xff]  }
 0x44e   :  { %3111 = vadd.xlane.f32.xlu1 %v3110_v48  ;;  %18008 = vst.sshfl [vmem:[#allocation2 + $0x14] sm:$0x33 pattern:$0x76325410] %v7876_v57  ;;  %v20499_v48 = vld [vmem:[#allocation9 + $0xd98] ss:$48 sps:$4 sm:$0xff]  }
 0x44f   :  { %7586 = vmatpush1.bf16.msra.mxu1 %v20664_v11  ;;  %v20708_v16 = vld [vmem:[#allocation9 + $0xce4] ss:$48 sps:$4 sm:$0xff]   ;;  %v20519_v57 = vld [vmem:[#allocation9 + $0xebc] ss:$48 sps:$4 sm:$0xff]   ;;  %v20529_v36 = vld [vmem:[#allocation9 + $0xf78] ss:$48 sps:$4 sm:$0xff]  }
 0x450   :  { %7463 = vmatpush1.bf16.msra.mxu0 %v20472_v38  ;;  %7587 = vmatprep.subr.bf16.mxu1 %v20672_v12  ;;  %v20501_v38 = vld [vmem:[#allocation9 + $0xd9c] ss:$48 sps:$4 sm:$0xff]   ;;  %v20726_v30 = vld [vmem:[#allocation9 + $0xe04] ss:$48 sps:$4 sm:$0xff]   ;;  %v20535_v12 = vld [vmem:[#allocation9 + $0xfd8] ss:$48 sps:$4 sm:$0xff]  }
 0x451   :  { %7464 = vmatprep.subr.bf16.mxu0 %v20477_v42  ;;  %v20688_v42 = vld [vmem:[#allocation9 + $0xbc0] ss:$48 sps:$4 sm:$0xff]   ;;  %v20732_v11 = vld [vmem:[#allocation9 + $0xe64] ss:$48 sps:$4 sm:$0xff]  }
 0x453   :  { %7588 = vmatpush1.bf16.msra.mxu1 %v20670_v17  ;;  %v20738_v17 = vld [vmem:[#allocation9 + $0xec4] ss:$48 sps:$4 sm:$0xff]  }
 0x454   :  { %7465 = vmatpush1.bf16.msra.mxu0 %v20475_v55  ;;  %7589 = vmatprep.subr.bf16.mxu1 %v20678_v45  ;;  %v20511_v55 = vld [vmem:[#allocation9 + $0xe58] ss:$48 sps:$4 sm:$0xff]  }
 0x455   :  { %7466 = vmatprep.subr.bf16.mxu0 %v20480_v56  ;;  %v20706_v56 = vld [vmem:[#allocation9 + $0xce0] ss:$48 sps:$4 sm:$0xff]   ;;  %v20541_v45 = vld [vmem:[#allocation9 + $0x1038] ss:$48 sps:$4 sm:$0xff]  }
 0x457   :  { %7590 = vmatpush1.bf16.msra.mxu1 %v20676_v21  ;;  %v20744_v21 = vld [vmem:[#allocation9 + $0xf24] ss:$48 sps:$4 sm:$0xff]  }
 0x458   :  { %7467 = vmatpush1.bf16.msra.mxu0 %v20478_v61  ;;  %7591 = vmatprep.subr.bf16.mxu1 %v20684_v28  ;;  %v20712_v61 = vld [vmem:[#allocation9 + $0xd40] ss:$48 sps:$4 sm:$0xff]   ;;  %v20555_v28 = vld [vmem:[#allocation9 + $0x10fc] ss:$48 sps:$4 sm:$0xff]  }
 0x459   :  { %7468 = vmatprep.subr.bf16.mxu0 %v20483_v62  ;;  %v20525_v62 = vld [vmem:[#allocation9 + $0xf1c] ss:$48 sps:$4 sm:$0xff]  }
 0x45b   :  { %7592 = vmatpush1.bf16.msra.mxu1 %v20682_v9  ;;  %v20750_v9 = vld [vmem:[#allocation9 + $0xf84] ss:$48 sps:$4 sm:$0xff]  }
 0x45c   :  { %7469 = vmatpush1.bf16.msra.mxu0 %v20481_v63  ;;  %7593 = vmatprep.subr.bf16.mxu1 %v20690_v41  ;;  %v20523_v63 = vld [vmem:[#allocation9 + $0xf18] ss:$48 sps:$4 sm:$0xff]  }
 0x45d   :  { %7470 = vmatprep.subr.bf16.mxu0 %v20486_v3  ;;  %v20718_v3 = vld [vmem:[#allocation9 + $0xda0] ss:$48 sps:$4 sm:$0xff]   ;;  %v20553_v41 = vld [vmem:[#allocation9 + $0x10f8] ss:$48 sps:$4 sm:$0xff]  }
 0x45f   :  { %7594 = vmatpush1.bf16.msra.mxu1 %v20688_v42  ;;  %v20756_v42 = vld [vmem:[#allocation9 + $0xfe4] ss:$48 sps:$4 sm:$0xff]  }
 0x460   :  { %7471 = vmatpush1.bf16.msra.mxu0 %v20484_v37  ;;  %7604 = vmatprep.subr.bf16.mxu1 %v20696_v47  ;;  %v20724_v37 = vld [vmem:[#allocation9 + $0xe00] ss:$48 sps:$4 sm:$0xff]   ;;  %v20559_v47 = vld [vmem:[#allocation9 + $0x1158] ss:$48 sps:$4 sm:$0xff]  }
 0x461   :  { %7481 = vmatprep.subr.bf16.mxu0 %v20489_v8  ;;  %v20537_v8 = vld [vmem:[#allocation9 + $0xfdc] ss:$48 sps:$4 sm:$0xff]  }
 0x462   :  { %7596 = vmatmul.mubr.bf16.vlgmr.msra.gmra.mrb[8].mxu1 %v23967_v5 }
 0x463   :  { %7473 = vmatmul.mubr.bf16.vlgmr.msra.gmra.mrb[20].mxu0 %v23967_v5  ;;  %7605 = vmatpush1.bf16.msra.mxu1 %v20694_v18  ;;  %v20762_v18 = vld [vmem:[#allocation9 + $0x1044] ss:$48 sps:$4 sm:$0xff]  }
 0x464   :  { %7482 = vmatpush1.bf16.msra.mxu0 %v20487_v13  ;;  %7513 = vmatprep.mubr.bf16.mxu0 %v24070_v19  ;;  %v20730_v13 = vld [vmem:[#allocation9 + $0xe60] ss:$48 sps:$4 sm:$0xff]  }
 0x465   :  { %7483 = vmatprep.subr.bf16.mxu0 %v20492_v15  ;;  %7636 = vmatprep.mubr.bf16.mxu1 %v24070_v19  ;;  %v20543_v15 = vld [vmem:[#allocation9 + $0x103c] ss:$48 sps:$4 sm:$0xff]  }
 0x466   :  { %7606 = vmatprep.subr.bf16.mxu1 %v20702_v54  ;;  %v20565_v54 = vld [vmem:[#allocation9 + $0x11b8] ss:$48 sps:$4 sm:$0xff]  }
 0x467   :  { %7607 = vmatpush1.bf16.msra.mxu1 %v20700_v34  ;;  %v20573_v34 = vld [vmem:[#allocation9 + $0x2c] ss:$48 sps:$4 sm:$0xff]  }
 0x468   :  { %7484 = vmatpush1.bf16.msra.mxu0 %v20490_v0  ;;  %7608 = vmatprep.subr.bf16.mxu1 %v20708_v16  ;;  %v20736_v0 = vld [vmem:[#allocation9 + $0xec0] ss:$48 sps:$4 sm:$0xff]   ;;  %v20571_v16 = vld [vmem:[#allocation9 + $0x28] ss:$48 sps:$4 sm:$0xff]  }
 0x469   :  { %7485 = vmatprep.subr.bf16.mxu0 %v20495_v20  ;;  %v20549_v20 = vld [vmem:[#allocation9 + $0x109c] ss:$48 sps:$4 sm:$0xff]  }
 0x46b   :  { %7609 = vmatpush1.bf16.msra.mxu1 %v20706_v56  ;;  %v20579_v56 = vld [vmem:[#allocation9 + $0x8c] ss:$48 sps:$4 sm:$0xff]  }
 0x46c   :  { %7486 = vmatpush1.bf16.msra.mxu0 %v20493_v23  ;;  %7610 = vmatprep.subr.bf16.mxu1 %v20714_v59  ;;  %v20547_v23 = vld [vmem:[#allocation9 + $0x1098] ss:$48 sps:$4 sm:$0xff]  }
 0x46d   :  { %7487 = vmatprep.subr.bf16.mxu0 %v20498_v24  ;;  %v20742_v24 = vld [vmem:[#allocation9 + $0xf20] ss:$48 sps:$4 sm:$0xff]   ;;  %v20577_v59 = vld [vmem:[#allocation9 + $0x88] ss:$48 sps:$4 sm:$0xff]  }
 0x46f   :  { %7611 = vmatpush1.bf16.msra.mxu1 %v20712_v61  ;;  %v20585_v61 = vld [vmem:[#allocation9 + $0xec] ss:$48 sps:$4 sm:$0xff]  }
 0x470   :  { %7488 = vmatpush1.bf16.msra.mxu0 %v20496_v1  ;;  %7612 = vmatprep.subr.bf16.mxu1 %v20720_v51  ;;  %v20748_v1 = vld [vmem:[#allocation9 + $0xf80] ss:$48 sps:$4 sm:$0xff]   ;;  %v20583_v51 = vld [vmem:[#allocation9 + $0xe8] ss:$48 sps:$4 sm:$0xff]  }
 0x471   :  { %7489 = vmatprep.subr.bf16.mxu0 %v20501_v38  ;;  %v20561_v38 = vld [vmem:[#allocation9 + $0x115c] ss:$48 sps:$4 sm:$0xff]  }
 0x473   :  { %7613 = vmatpush1.bf16.msra.mxu1 %v20718_v3  ;;  %v20591_v3 = vld [vmem:[#allocation9 + $0x14c] ss:$48 sps:$4 sm:$0xff]  }
 0x474   :  { %7490 = vmatpush1.bf16.msra.mxu0 %v20499_v48  ;;  %7614 = vmatprep.subr.bf16.mxu1 %v20726_v30  ;;  %v20754_v48 = vld [vmem:[#allocation9 + $0xfe0] ss:$48 sps:$4 sm:$0xff]   ;;  %v20589_v30 = vld [vmem:[#allocation9 + $0x148] ss:$48 sps:$4 sm:$0xff]  }
 0x475   :  { %7491 = vmatprep.subr.bf16.mxu0 %v20507_v49  ;;  %v20567_v49 = vld [vmem:[#allocation9 + $0x11bc] ss:$48 sps:$4 sm:$0xff]  }
 0x477   :  { %7615 = vmatpush1.bf16.msra.mxu1 %v20724_v37  ;;  %v20597_v37 = vld [vmem:[#allocation9 + $0x1ac] ss:$48 sps:$4 sm:$0xff]  }
 0x478   :  { %7492 = vmatpush1.bf16.msra.mxu0 %v20505_v53  ;;  %7616 = vmatprep.subr.bf16.mxu1 %v20732_v11  ;;  %v20760_v53 = vld [vmem:[#allocation9 + $0x1040] ss:$48 sps:$4 sm:$0xff]   ;;  %v4059_v11 = vrot.slane %v24283_v46, %v23775_v43 }
 0x479   :  { %7493 = vmatprep.subr.bf16.mxu0 %v20513_v33  ;;  %v20768_v33 = vld [vmem:[#allocation9 + $0x10a4] ss:$48 sps:$4 sm:$0xff]  }
 0x47b   :  { %7617 = vmatpush1.bf16.msra.mxu1 %v20730_v13  ;;  %v4063_v13 = vrot.slane %v24283_v46, %v23778_v44  ;;  %v20613_v46 = vld [vmem:[#allocation9 + $0x2c8] ss:$48 sps:$4 sm:$0xff]  }
 0x47c   :  { %7494 = vmatpush1.bf16.msra.mxu0 %v20511_v55  ;;  %7618 = vmatprep.subr.bf16.mxu1 %v20738_v17  ;;  %v20766_v55 = vld [vmem:[#allocation9 + $0x10a0] ss:$48 sps:$4 sm:$0xff]  }
 0x47d   :  { %7495 = vmatprep.subr.bf16.mxu0 %v20519_v57  ;;  %v20774_v57 = vld [vmem:[#allocation9 + $0x1104] ss:$48 sps:$4 sm:$0xff]  }
 0x47f   :  { %7619 = vmatpush1.bf16.msra.mxu1 %v20736_v0 }
 0x480   :  { %7496 = vmatpush1.bf16.msra.mxu0 %v20517_v60  ;;  %7620 = vmatprep.subr.bf16.mxu1 %v20744_v21  ;;  %v20772_v60 = vld [vmem:[#allocation9 + $0x1100] ss:$48 sps:$4 sm:$0xff]  }
 0x481   :  { %7497 = vmatprep.subr.bf16.mxu0 %v20525_v62  ;;  %v20780_v62 = vld [vmem:[#allocation9 + $0x1164] ss:$48 sps:$4 sm:$0xff]  }
 0x483   :  { %7621 = vmatpush1.bf16.msra.mxu1 %v20742_v24  ;;  %v20615_v24 = vld [vmem:[#allocation9 + $0x2cc] ss:$48 sps:$4 sm:$0xff]  }
 0x484   :  { %7498 = vmatpush1.bf16.msra.mxu0 %v20523_v63  ;;  %7622 = vmatprep.subr.bf16.mxu1 %v20750_v9  ;;  %v20778_v63 = vld [vmem:[#allocation9 + $0x1160] ss:$48 sps:$4 sm:$0xff]   ;;  %v7867_v9 = vrot.slane %v7859_v32, %v23801_v58  ;;  %v20633_v32 = vld [vmem:[#allocation9 + $0x3ec] ss:$48 sps:$4 sm:$0xff]  }
 0x485   :  { %7499 = vmatprep.subr.bf16.mxu0 %v20531_v4  ;;  %v20786_v4 = vld [vmem:[#allocation9 + $0x11c4] ss:$48 sps:$4 sm:$0xff]  }
 0x487   :  { %7623 = vmatpush1.bf16.msra.mxu1 %v20748_v1 }
 0x488   :  { %7500 = vmatpush1.bf16.msra.mxu0 %v20529_v36  ;;  %7624 = vmatprep.subr.bf16.mxu1 %v20756_v42  ;;  %v20784_v36 = vld [vmem:[#allocation9 + $0x11c0] ss:$48 sps:$4 sm:$0xff]  }
 0x489   :  { %7501 = vmatprep.subr.bf16.mxu0 %v20537_v8  ;;  %v20603_v8 = vld [vmem:[#allocation9 + $0x20c] ss:$48 sps:$4 sm:$0xff]  }
 0x48b   :  { %7625 = vmatpush1.bf16.msra.mxu1 %v20754_v48  ;;  %v20619_v48 = vld [vmem:[#allocation9 + $0x328] ss:$48 sps:$4 sm:$0xff]  }
 0x48c   :  { %7502 = vmatpush1.bf16.msra.mxu0 %v20535_v12  ;;  %7626 = vmatprep.subr.bf16.mxu1 %v20762_v18  ;;  %v20601_v12 = vld [vmem:[#allocation9 + $0x208] ss:$48 sps:$4 sm:$0xff]   ;;  %v20627_v18 = vld [vmem:[#allocation9 + $0x38c] ss:$48 sps:$4 sm:$0xff]  }
 0x48d   :  { %7503 = vmatprep.subr.bf16.mxu0 %v20543_v15  ;;  %v20609_v15 = vld [vmem:[#allocation9 + $0x26c] ss:$48 sps:$4 sm:$0xff]  }
 0x48f   :  { %7627 = vmatpush1.bf16.msra.mxu1 %v20760_v53  ;;  %v20816_v53 = vld [vmem:[#allocation12 + $0x64] ss:$24 sps:$4 sm:$0xff]  }
 0x490   :  { %7504 = vmatpush1.bf16.msra.mxu0 %v20541_v45  ;;  %7628 = vmatprep.subr.bf16.mxu1 %v20768_v33  ;;  %v20814_v33 = vld [vmem:[#allocation12 + $0x60] ss:$24 sps:$4 sm:$0xff]  }
 0x491   :  { %7505 = vmatprep.subr.bf16.mxu0 %v20549_v20  ;;  %v20607_v20 = vld [vmem:[#allocation9 + $0x268] ss:$48 sps:$4 sm:$0xff]  }
 0x493   :  { %7629 = vmatpush1.bf16.msra.mxu1 %v20766_v55  ;;  %v20822_v55 = vld [vmem:[#allocation12 + $0x94] ss:$24 sps:$4 sm:$0xff]  }
 0x494   :  { %7506 = vmatpush1.bf16.msra.mxu0 %v20547_v23  ;;  %7630 = vmatprep.subr.bf16.mxu1 %v20774_v57  ;;  %v20820_v57 = vld [vmem:[#allocation12 + $0x90] ss:$24 sps:$4 sm:$0xff]  }
 0x495   :  { %7507 = vmatprep.subr.bf16.mxu0 %v20555_v28 }
 0x497   :  { %7631 = vmatpush1.bf16.msra.mxu1 %v20772_v60  ;;  %v20828_v60 = vld [vmem:[#allocation12 + $0xc4] ss:$24 sps:$4 sm:$0xff]  }
 0x498   :  { %7508 = vmatpush1.bf16.msra.mxu0 %v20553_v41  ;;  %7632 = vmatprep.subr.bf16.mxu1 %v20780_v62  ;;  %v20826_v62 = vld [vmem:[#allocation12 + $0xc0] ss:$24 sps:$4 sm:$0xff]  }
 0x499   :  { %7509 = vmatprep.subr.bf16.mxu0 %v20561_v38  ;;  %v20621_v38 = vld [vmem:[#allocation9 + $0x32c] ss:$48 sps:$4 sm:$0xff]  }
 0x49b   :  { %7633 = vmatpush1.bf16.msra.mxu1 %v20778_v63  ;;  %v20834_v63 = vld [vmem:[#allocation12 + $0xf4] ss:$24 sps:$4 sm:$0xff]  }
 0x49c   :  { %7510 = vmatpush1.bf16.msra.mxu0 %v20559_v47  ;;  %7634 = vmatprep.subr.bf16.mxu1 %v20786_v4  ;;  %v20804_v47 = vld [vmem:[#allocation12 + $0x4] ss:$24 sps:$4 sm:$0xff]   ;;  %v20832_v4 = vld [vmem:[#allocation12 + $0xf0] ss:$24 sps:$4 sm:$0xff]  }
 0x49d   :  { %7511 = vmatprep.subr.bf16.mxu0 %v20567_v49  ;;  %v20802_v49 = vld [vmem:[#allocation12] ss:$24 sps:$4 sm:$0xff]  }
 0x49f   :  { %7635 = vmatpush1.bf16.msra.mxu1 %v20784_v36  ;;  %v20655_v36 = vld [vmem:[#allocation9 + $0x568] ss:$48 sps:$4 sm:$0xff]  }
 0x4a0   :  { %7512 = vmatpush1.bf16.msra.mxu0 %v20565_v54  ;;  %15109 = vmatprep.subr.bf16.mxu1 %v20804_v47  ;;  %v20810_v54 = vld [vmem:[#allocation12 + $0x34] ss:$24 sps:$4 sm:$0xff]  }
 0x4a1   :  { %7645 = vmatprep.subr.bf16.mxu0 %v20573_v34  ;;  %v20631_v34 = vld [vmem:[#allocation9 + $0x3e8] ss:$48 sps:$4 sm:$0xff]  }
 0x4a2   :  { %7637 = vmatmul.mubr.bf16.vlgmr.msra.gmra.mrb[8].mxu1 %v24073_v6  ;;  %v20697_v47 = vld [vmem:[#allocation9 + $0x808] ss:$48 sps:$4 sm:$0xff]  }
 0x4a3   :  { %7514 = vmatmul.mubr.bf16.vlgmr.msra.gmra.mrb[20].mxu0 %v24073_v6  ;;  %15110 = vmatpush1.bf16.msra.mxu1 %v20802_v49  ;;  %v20705_v49 = vld [vmem:[#allocation9 + $0x86c] ss:$48 sps:$4 sm:$0xff]  }
 0x4a4   :  { %7646 = vmatpush1.bf16.msra.mxu0 %v20571_v16  ;;  %7677 = vmatprep.mubr.bf16.mxu0 %v24081_v10  ;;  %v20595_v10 = vld [vmem:[#allocation9 + $0x1a8] ss:$48 sps:$4 sm:$0xff]   ;;  %v20639_v16 = vld [vmem:[#allocation9 + $0x44c] ss:$48 sps:$4 sm:$0xff]  }
 0x4a5   :  { %7647 = vmatprep.subr.bf16.mxu0 %v20579_v56  ;;  %15111 = vmatprep.subr.bf16.mxu1 %v20810_v54  ;;  %v20637_v56 = vld [vmem:[#allocation9 + $0x448] ss:$48 sps:$4 sm:$0xff]  }
 0x4a6   :  { %v20703_v54 = vld [vmem:[#allocation9 + $0x868] ss:$48 sps:$4 sm:$0xff]  }
 0x4a7   :  { %15112 = vmatpush1.bf16.msra.mxu1 %v20808_v26  ;;  %v20711_v26 = vld [vmem:[#allocation9 + $0x8cc] ss:$48 sps:$4 sm:$0xff]  }
 0x4a8   :  { %7648 = vmatpush1.bf16.msra.mxu0 %v20577_v59  ;;  %15113 = vmatprep.subr.bf16.mxu1 %v20816_v53  ;;  %v20645_v59 = vld [vmem:[#allocation9 + $0x4ac] ss:$48 sps:$4 sm:$0xff]   ;;  %v20709_v53 = vld [vmem:[#allocation9 + $0x8c8] ss:$48 sps:$4 sm:$0xff]  }
 0x4a9   :  { %7649 = vmatprep.subr.bf16.mxu0 %v20585_v61  ;;  %v20643_v61 = vld [vmem:[#allocation9 + $0x4a8] ss:$48 sps:$4 sm:$0xff]  }
 0x4ab   :  { %15114 = vmatpush1.bf16.msra.mxu1 %v20814_v33  ;;  %v20717_v33 = vld [vmem:[#allocation9 + $0x92c] ss:$48 sps:$4 sm:$0xff]  }
 0x4ac   :  { %7650 = vmatpush1.bf16.msra.mxu0 %v20583_v51  ;;  %15115 = vmatprep.subr.bf16.mxu1 %v20822_v55  ;;  %v20651_v51 = vld [vmem:[#allocation9 + $0x50c] ss:$48 sps:$4 sm:$0xff]   ;;  %v20715_v55 = vld [vmem:[#allocation9 + $0x928] ss:$48 sps:$4 sm:$0xff]  }
 0x4ad   :  { %7651 = vmatprep.subr.bf16.mxu0 %v20591_v3  ;;  %v20649_v3 = vld [vmem:[#allocation9 + $0x508] ss:$48 sps:$4 sm:$0xff]  }
 0x4af   :  { %15116 = vmatpush1.bf16.msra.mxu1 %v20820_v57  ;;  %v20723_v57 = vld [vmem:[#allocation9 + $0x98c] ss:$48 sps:$4 sm:$0xff]  }
 0x4b0   :  { %7652 = vmatpush1.bf16.msra.mxu0 %v20589_v30  ;;  %15117 = vmatprep.subr.bf16.mxu1 %v20828_v60  ;;  %v20657_v30 = vld [vmem:[#allocation9 + $0x56c] ss:$48 sps:$4 sm:$0xff]   ;;  %v20721_v60 = vld [vmem:[#allocation9 + $0x988] ss:$48 sps:$4 sm:$0xff]  }
 0x4b1   :  { %7653 = vmatprep.subr.bf16.mxu0 %v20597_v37  ;;  %v20663_v37 = vld [vmem:[#allocation9 + $0x5cc] ss:$48 sps:$4 sm:$0xff]  }
 0x4b3   :  { %15118 = vmatpush1.bf16.msra.mxu1 %v20826_v62  ;;  %v20729_v62 = vld [vmem:[#allocation9 + $0x9ec] ss:$48 sps:$4 sm:$0xff]  }
 0x4b4   :  { %7654 = vmatpush1.bf16.msra.mxu0 %v20595_v10  ;;  %15119 = vmatprep.subr.bf16.mxu1 %v20834_v63  ;;  %v20727_v63 = vld [vmem:[#allocation9 + $0x9e8] ss:$48 sps:$4 sm:$0xff]  }
 0x4b5   :  { %7655 = vmatprep.subr.bf16.mxu0 %v20603_v8  ;;  %v20661_v8 = vld [vmem:[#allocation9 + $0x5c8] ss:$48 sps:$4 sm:$0xff]  }
 0x4b6   :  { %v7269_v17 = vpop.f32.mrb[16].mxu0 }
 0x4b7   :  { %v19293_v45 = vadd.f32 %v7269_v17, %v4059_v11  ;;  %v7271_v0 = vpop.f32.mrb[17].mxu0  ;;  %15120 = vmatpush1.bf16.msra.mxu1 %v20832_v4  ;;  %v20669_v11 = vld [vmem:[#allocation9 + $0x62c] ss:$48 sps:$4 sm:$0xff]  }
 0x4b8   :  { %7656 = vmatpush1.bf16.msra.mxu0 %v20601_v12  ;;  %v19294_v21 = vadd.f32 %v7271_v0, %v4063_v13  ;;  %v7273_v23 = vpop.f32.mrb[18].mxu0  ;;  %v20667_v12 = vld [vmem:[#allocation9 + $0x628] ss:$48 sps:$4 sm:$0xff]   ;;  %v20675_v13 = vld [vmem:[#allocation9 + $0x68c] ss:$48 sps:$4 sm:$0xff]  }
 0x4b9   :  { %7657 = vmatprep.subr.bf16.mxu0 %v20609_v15  ;;  %v7274_v28 = vpop.f32.mrb[19].mxu0  ;;  %v20673_v15 = vld [vmem:[#allocation9 + $0x688] ss:$48 sps:$4 sm:$0xff]   ;;  %v20681_v17 = vld [vmem:[#allocation9 + $0x6ec] ss:$48 sps:$4 sm:$0xff]  }
 0x4ba   :  { %v7860_v41 = vcombine.low %v19293_v45, %v19294_v21  ;;  %v20840_v21 = vld [vmem:[#allocation12 + $0x124] ss:$24 sps:$4 sm:$0xff]   ;;  %v20687_v28 = vld [vmem:[#allocation9 + $0x74c] ss:$48 sps:$4 sm:$0xff]  }
 0x4bb   :  { %15121 = vmatprep.subr.bf16.mxu1 %v20840_v21  ;;  %v20886_v4 = vld [vmem:[#allocation12 + $0x2a0] ss:$24 sps:$4 sm:$0xff]  }
 0x4bc   :  { %7658 = vmatpush1.bf16.msra.mxu0 %v20607_v20  ;;  %v7874_v1 = vrot.slane %v7860_v41, %v23801_v58  ;;  %v20679_v20 = vld [vmem:[#allocation9 + $0x6e8] ss:$48 sps:$4 sm:$0xff]   ;;  %v20693_v41 = vld [vmem:[#allocation9 + $0x7ac] ss:$48 sps:$4 sm:$0xff]  }
 0x4bd   :  { %7659 = vmatprep.subr.bf16.mxu0 %v20615_v24  ;;  %v20771_v21 = vld [vmem:[#allocation9 + $0xc8c] ss:$48 sps:$4 sm:$0xff]  }
 0x4be   :  { %v7875_v42 = vcombine.low %v7867_v9, %v7874_v1  ;;  %v20838_v9 = vld [vmem:[#allocation12 + $0x120] ss:$24 sps:$4 sm:$0xff]   ;;  %v20852_v1 = vld [vmem:[#allocation12 + $0x184] ss:$24 sps:$4 sm:$0xff]  }
 0x4bf   :  { %15122 = vmatpush1.bf16.msra.mxu1 %v20838_v9  ;;  %v20783_v9 = vld [vmem:[#allocation9 + $0xd4c] ss:$48 sps:$4 sm:$0xff]  }
 0x4c0   :  { %7660 = vmatpush1.bf16.msra.mxu0 %v20613_v46  ;;  %7886 = vst [vmem:[#allocation2 + $0xc] sm:$0xff] %v7875_v42  ;;  %v20691_v46 = vld [vmem:[#allocation9 + $0x7a8] ss:$48 sps:$4 sm:$0xff]   ;;  %v20850_v42 = vld [vmem:[#allocation12 + $0x180] ss:$24 sps:$4 sm:$0xff]  }
 0x4c1   :  { %7661 = vmatprep.subr.bf16.mxu0 %v20621_v38  ;;  %v20699_v38 = vld [vmem:[#allocation9 + $0x80c] ss:$48 sps:$4 sm:$0xff]  }
 0x4c4   :  { %7662 = vmatpush1.bf16.msra.mxu0 %v20619_v48  ;;  %v20858_v48 = vld [vmem:[#allocation12 + $0x1b4] ss:$24 sps:$4 sm:$0xff]  }
 0x4c5   :  { %7663 = vmatprep.subr.bf16.mxu0 %v20627_v18  ;;  %v20856_v18 = vld [vmem:[#allocation12 + $0x1b0] ss:$24 sps:$4 sm:$0xff]  }
 0x4c8   :  { %7664 = vmatpush1.bf16.msra.mxu0 %v20625_v25  ;;  %v20864_v25 = vld [vmem:[#allocation12 + $0x1e4] ss:$24 sps:$4 sm:$0xff]  }
 0x4c9   :  { %7665 = vmatprep.subr.bf16.mxu0 %v20633_v32  ;;  %v20862_v32 = vld [vmem:[#allocation12 + $0x1e0] ss:$24 sps:$4 sm:$0xff]  }
 0x4cc   :  { %7666 = vmatpush1.bf16.msra.mxu0 %v20631_v34  ;;  %v20870_v34 = vld [vmem:[#allocation12 + $0x214] ss:$24 sps:$4 sm:$0xff]  }
 0x4cd   :  { %7667 = vmatprep.subr.bf16.mxu0 %v20639_v16  ;;  %v20868_v16 = vld [vmem:[#allocation12 + $0x210] ss:$24 sps:$4 sm:$0xff]  }
 0x4d0   :  { %7668 = vmatpush1.bf16.msra.mxu0 %v20637_v56  ;;  %v20876_v56 = vld [vmem:[#allocation12 + $0x244] ss:$24 sps:$4 sm:$0xff]  }
 0x4d1   :  { %7669 = vmatprep.subr.bf16.mxu0 %v20645_v59  ;;  %v20874_v59 = vld [vmem:[#allocation12 + $0x240] ss:$24 sps:$4 sm:$0xff]  }
 0x4d4   :  { %7670 = vmatpush1.bf16.msra.mxu0 %v20643_v61  ;;  %v20882_v61 = vld [vmem:[#allocation12 + $0x274] ss:$24 sps:$4 sm:$0xff]  }
 0x4d5   :  { %7671 = vmatprep.subr.bf16.mxu0 %v20651_v51  ;;  %v20880_v51 = vld [vmem:[#allocation12 + $0x270] ss:$24 sps:$4 sm:$0xff]  }
 0x4d8   :  { %7672 = vmatpush1.bf16.msra.mxu0 %v20649_v3  ;;  %v20735_v3 = vld [vmem:[#allocation9 + $0xa4c] ss:$48 sps:$4 sm:$0xff]  }
 0x4d9   :  { %7673 = vmatprep.subr.bf16.mxu0 %v20657_v30  ;;  %v20888_v30 = vld [vmem:[#allocation12 + $0x2a4] ss:$24 sps:$4 sm:$0xff]  }
 0x4db   :  { %v3112_v10 = vpop.xlane.xlu1 %3111 }
 0x4dc   :  { %22629 = vrcp.f32 %v3112_v10  ;;  %7674 = vmatpush1.bf16.msra.mxu0 %v20655_v36  ;;  %v20894_v36 = vld [vmem:[#allocation12 + $0x2d4] ss:$24 sps:$4 sm:$0xff]   ;;  %v20892_v10 = vld [vmem:[#allocation12 + $0x2d0] ss:$24 sps:$4 sm:$0xff]  }
 0x4dd   :  { %7675 = vmatprep.subr.bf16.mxu0 %v20663_v37  ;;  %v20733_v37 = vld [vmem:[#allocation9 + $0xa48] ss:$48 sps:$4 sm:$0xff]  }
 0x4e0   :  { %7676 = vmatpush1.bf16.msra.mxu0 %v20661_v8  ;;  %v20741_v8 = vld [vmem:[#allocation9 + $0xaac] ss:$48 sps:$4 sm:$0xff]  }
 0x4e1   :  { %7686 = vmatprep.subr.bf16.mxu0 %v20669_v11  ;;  %v20900_v11 = vld [vmem:[#allocation12 + $0x304] ss:$24 sps:$4 sm:$0xff]  }
 0x4e3   :  { %7678 = vmatmul.mubr.bf16.vlgmr.msra.gmra.mrb[24].mxu0 %v24150_v29  ;;  %v20846_v29 = vld [vmem:[#allocation12 + $0x154] ss:$24 sps:$4 sm:$0xff]  }
 0x4e4   :  { %7687 = vmatpush1.bf16.msra.mxu0 %v20667_v12  ;;  %7718 = vmatprep.mubr.bf16.mxu0 %v23963_v2  ;;  %v20685_v2 = vld [vmem:[#allocation9 + $0x748] ss:$48 sps:$4 sm:$0xff]  }
 0x4e5   :  { %7688 = vmatprep.subr.bf16.mxu0 %v20675_v13  ;;  %15123 = vmatprep.subr.bf16.mxu1 %v20846_v29  ;;  %v20739_v12 = vld [vmem:[#allocation9 + $0xaa8] ss:$48 sps:$4 sm:$0xff]   ;;  %v20747_v13 = vld [vmem:[#allocation9 + $0xb0c] ss:$48 sps:$4 sm:$0xff]  }
 0x4e6   :  { %v22630_v45 = vpop.eup %22629  ;;  %v20789_v29 = vld [vmem:[#allocation9 + $0xdac] ss:$48 sps:$4 sm:$0xff]  }
 0x4e7   :  { %v3114_v0 = vmul.f32 %v22630_v45, %v24299_v27  ;;  %v20844_v27 = vld [vmem:[#allocation12 + $0x150] ss:$24 sps:$4 sm:$0xff]  }
 0x4e8   :  { %7689 = vmatpush1.bf16.msra.mxu0 %v20673_v15  ;;  %15124 = vmatpush1.bf16.msra.mxu1 %v20844_v27  ;;  %v20753_v15 = vld [vmem:[#allocation9 + $0xb6c] ss:$48 sps:$4 sm:$0xff]  }
 0x4e9   :  { %v3125_v23 = vrot.slane %v3114_v0, %v23772_v40  ;;  %v3118_v24 = vrot.slane %v3114_v0, %v23769_v39  ;;  %7690 = vmatprep.subr.bf16.mxu0 %v20681_v17  ;;  %15125 = vmatprep.subr.bf16.mxu1 %v20852_v1  ;;  %v20751_v17 = vld [vmem:[#allocation9 + $0xb68] ss:$48 sps:$4 sm:$0xff]   ;;  %v20759_v45 = vld [vmem:[#allocation9 + $0xbcc] ss:$48 sps:$4 sm:$0xff]  }
 0x4ea   :  { %v20757_v0 = vld [vmem:[#allocation9 + $0xbc8] ss:$48 sps:$4 sm:$0xff]   ;;  %v20792_v27 = vld [vmem:[#allocation9 + $0xe0c] ss:$48 sps:$4 sm:$0xff]  }
 0x4eb   :  { %3127 = vbcast.lane.b32.xlu0 %v3125_v23, 256  ;;  %3120 = vbcast.lane.b32.xlu1 %v3118_v24, 256  ;;  %v20769_v23 = vld [vmem:[#allocation9 + $0xc88] ss:$48 sps:$4 sm:$0xff]   ;;  %v20777_v24 = vld [vmem:[#allocation9 + $0xcec] ss:$48 sps:$4 sm:$0xff]  }
 0x4ec   :  { %7691 = vmatpush1.bf16.msra.mxu0 %v20679_v20  ;;  %15126 = vmatpush1.bf16.msra.mxu1 %v20850_v42  ;;  %v20765_v20 = vld [vmem:[#allocation9 + $0xc2c] ss:$48 sps:$4 sm:$0xff]  }
 0x4ed   :  { %7692 = vmatprep.subr.bf16.mxu0 %v20687_v28  ;;  %15127 = vmatprep.subr.bf16.mxu1 %v20858_v48  ;;  %v20775_v28 = vld [vmem:[#allocation9 + $0xce8] ss:$48 sps:$4 sm:$0xff]   ;;  %v20798_v1 = vld [vmem:[#allocation9 + $0xecc] ss:$48 sps:$4 sm:$0xff]  }
 0x4ee   :  { %v20801_v42 = vld [vmem:[#allocation9 + $0xf2c] ss:$48 sps:$4 sm:$0xff]  }
 0x4ef   :  { %v20807_v48 = vld [vmem:[#allocation9 + $0xf8c] ss:$48 sps:$4 sm:$0xff]  }
 0x4f0   :  { %7693 = vmatpush1.bf16.msra.mxu0 %v20685_v2  ;;  %15128 = vmatpush1.bf16.msra.mxu1 %v20856_v18  ;;  %v20781_v2 = vld [vmem:[#allocation9 + $0xd48] ss:$48 sps:$4 sm:$0xff]   ;;  %v20813_v18 = vld [vmem:[#allocation9 + $0xfec] ss:$48 sps:$4 sm:$0xff]  }
 0x4f1   :  { %7694 = vmatprep.subr.bf16.mxu0 %v20693_v41  ;;  %15129 = vmatprep.subr.bf16.mxu1 %v20864_v25  ;;  %v20787_v41 = vld [vmem:[#allocation9 + $0xda8] ss:$48 sps:$4 sm:$0xff]   ;;  %v20819_v25 = vld [vmem:[#allocation9 + $0x104c] ss:$48 sps:$4 sm:$0xff]  }
 0x4f4   :  { %7695 = vmatpush1.bf16.msra.mxu0 %v20691_v46  ;;  %15130 = vmatpush1.bf16.msra.mxu1 %v20862_v32  ;;  %v20795_v46 = vld [vmem:[#allocation9 + $0xe6c] ss:$48 sps:$4 sm:$0xff]  }
 0x4f5   :  { %7696 = vmatprep.subr.bf16.mxu0 %v20699_v38  ;;  %15131 = vmatprep.subr.bf16.mxu1 %v20870_v34  ;;  %v20796_v38 = vld [vmem:[#allocation9 + $0xec8] ss:$48 sps:$4 sm:$0xff]   ;;  %v20825_v32 = vld [vmem:[#allocation9 + $0x10ac] ss:$48 sps:$4 sm:$0xff]  }
 0x4f6   :  { %v20831_v34 = vld [vmem:[#allocation9 + $0x110c] ss:$48 sps:$4 sm:$0xff]  }
 0x4f8   :  { %7697 = vmatpush1.bf16.msra.mxu0 %v20697_v47  ;;  %15132 = vmatpush1.bf16.msra.mxu1 %v20868_v16  ;;  %v20799_v47 = vld [vmem:[#allocation9 + $0xf28] ss:$48 sps:$4 sm:$0xff]   ;;  %v20837_v16 = vld [vmem:[#allocation9 + $0x116c] ss:$48 sps:$4 sm:$0xff]  }
 0x4f9   :  { %7698 = vmatprep.subr.bf16.mxu0 %v20705_v49  ;;  %15133 = vmatprep.subr.bf16.mxu1 %v20876_v56  ;;  %v20805_v49 = vld [vmem:[#allocation9 + $0xf88] ss:$48 sps:$4 sm:$0xff]   ;;  %v20843_v56 = vld [vmem:[#allocation9 + $0x11cc] ss:$48 sps:$4 sm:$0xff]  }
 0x4fc   :  { %7699 = vmatpush1.bf16.msra.mxu0 %v20703_v54  ;;  %15134 = vmatpush1.bf16.msra.mxu1 %v20874_v59  ;;  %v20811_v54 = vld [vmem:[#allocation9 + $0xfe8] ss:$48 sps:$4 sm:$0xff]  }
 0x4fd   :  { %7700 = vmatprep.subr.bf16.mxu0 %v20711_v26  ;;  %15135 = vmatprep.subr.bf16.mxu1 %v20882_v61  ;;  %v20817_v26 = vld [vmem:[#allocation9 + $0x1048] ss:$48 sps:$4 sm:$0xff]  }
 0x4fe   :  { %v22637_v61 = vld [vmem:[%s24734_s0 + $0x30] sm:$0x3f] }
 0x500   :  { %7701 = vmatpush1.bf16.msra.mxu0 %v20709_v53  ;;  %15136 = vmatpush1.bf16.msra.mxu1 %v20880_v51  ;;  %v20823_v53 = vld [vmem:[#allocation9 + $0x10a8] ss:$48 sps:$4 sm:$0xff]   ;;  %v22638_v51 = vld [vmem:[%s24734_s0 + $0x38] sm:$0x3f] }
 0x501   :  { %7702 = vmatprep.subr.bf16.mxu0 %v20717_v33  ;;  %15137 = vmatprep.subr.bf16.mxu1 %v20888_v30  ;;  %v20829_v33 = vld [vmem:[#allocation9 + $0x1108] ss:$48 sps:$4 sm:$0xff]   ;;  %v22640_v30 = vld [vmem:[%s24734_s0 + $0x48] sm:$0x3f] }
 0x504   :  { %7703 = vmatpush1.bf16.msra.mxu0 %v20715_v55  ;;  %15138 = vmatpush1.bf16.msra.mxu1 %v20886_v4  ;;  %v20835_v55 = vld [vmem:[#allocation9 + $0x1168] ss:$48 sps:$4 sm:$0xff]  }
 0x505   :  { %7704 = vmatprep.subr.bf16.mxu0 %v20723_v57  ;;  %15139 = vmatprep.subr.bf16.mxu1 %v20894_v36  ;;  %v20841_v57 = vld [vmem:[#allocation9 + $0x11c8] ss:$48 sps:$4 sm:$0xff]  }
 0x508   :  { %7705 = vmatpush1.bf16.msra.mxu0 %v20721_v60  ;;  %15140 = vmatpush1.bf16.msra.mxu1 %v20892_v10  ;;  %v20849_v60 = vld [vmem:[#allocation12 + $0xc] ss:$24 sps:$4 sm:$0xff]  }
 0x509   :  { %7706 = vmatprep.subr.bf16.mxu0 %v20729_v62  ;;  %15150 = vmatprep.subr.bf16.mxu1 %v20900_v11 }
 0x50a   :  { %3084 = vadd.xlane.f32.xlu0 %v24274_v52  ;;  %v20745_v52 = vld [vmem:[#allocation9 + $0xb08] ss:$48 sps:$4 sm:$0xff]  }
 0x50c   :  { %7707 = vmatpush1.bf16.msra.mxu0 %v20727_v63 }
 0x50d   :  { %7708 = vmatprep.subr.bf16.mxu0 %v20735_v3  ;;  %v22639_v3 = vld [vmem:[%s24734_s0 + $0x40] sm:$0x3f] }
 0x50f   :  { %3077 = vadd.xlane.f32.xlu1 %v24272_v22  ;;  %v20763_v22 = vld [vmem:[#allocation9 + $0xc28] ss:$48 sps:$4 sm:$0xff]  }
 0x510   :  { %7709 = vmatpush1.bf16.msra.mxu0 %v20733_v37  ;;  %v22641_v37 = vld [vmem:[%s24734_s0 + $0x50] sm:$0x3f] }
 0x511   :  { %7710 = vmatprep.subr.bf16.mxu0 %v20741_v8  ;;  %v22642_v8 = vld [vmem:[%s24734_s0 + $0x58] sm:$0x3f] }
 0x514   :  { %7711 = vmatpush1.bf16.msra.mxu0 %v20739_v12 }
 0x515   :  { %7712 = vmatprep.subr.bf16.mxu0 %v20747_v13 }
 0x518   :  { %7713 = vmatpush1.bf16.msra.mxu0 %v20745_v52 }
 0x519   :  { %7714 = vmatprep.subr.bf16.mxu0 %v20753_v15 }
 0x51c   :  { %7715 = vmatpush1.bf16.msra.mxu0 %v20751_v17 }
 0x51d   :  { %7716 = vmatprep.subr.bf16.mxu0 %v20759_v45  ;;  %v20847_v45 = vld [vmem:[#allocation12 + $0x8] ss:$24 sps:$4 sm:$0xff]  }
 0x520   :  { %7717 = vmatpush1.bf16.msra.mxu0 %v20757_v0 }
 0x521   :  { %7727 = vmatprep.subr.bf16.mxu0 %v20765_v20 }
 0x523   :  { %7719 = vmatmul.mubr.bf16.vlgmr.msra.gmra.mrb[24].mxu0 %v23967_v5  ;;  %v20790_v5 = vld [vmem:[#allocation9 + $0xe08] ss:$48 sps:$4 sm:$0xff]  }
 0x524   :  { %7728 = vmatpush1.bf16.msra.mxu0 %v20763_v22  ;;  %7759 = vmatprep.mubr.bf16.mxu0 %v24070_v19  ;;  %v20793_v19 = vld [vmem:[#allocation9 + $0xe68] ss:$48 sps:$4 sm:$0xff]  }
 0x525   :  { %7729 = vmatprep.subr.bf16.mxu0 %v20771_v21 }
 0x528   :  { %7730 = vmatpush1.bf16.msra.mxu0 %v20769_v23  ;;  %v20855_v23 = vld [vmem:[#allocation12 + $0x3c] ss:$24 sps:$4 sm:$0xff]  }
 0x529   :  { %7731 = vmatprep.subr.bf16.mxu0 %v20777_v24 }
 0x52c   :  { %7732 = vmatpush1.bf16.msra.mxu0 %v20775_v28 }
 0x52d   :  { %7733 = vmatprep.subr.bf16.mxu0 %v20783_v9  ;;  %v22643_v9 = vld [vmem:[%s24734_s0] sm:$0x3f] }
 0x530   :  { %7734 = vmatpush1.bf16.msra.mxu0 %v20781_v2 }
 0x531   :  { %7735 = vmatprep.subr.bf16.mxu0 %v20789_v29  ;;  %v22644_v29 = vld [vmem:[%s24734_s0 + $0x8] sm:$0x3f] }
 0x534   :  { %7736 = vmatpush1.bf16.msra.mxu0 %v20787_v41 }
 0x535   :  { %7737 = vmatprep.subr.bf16.mxu0 %v20792_v27 }
 0x538   :  { %7738 = vmatpush1.bf16.msra.mxu0 %v20790_v5 }
 0x539   :  { %7739 = vmatprep.subr.bf16.mxu0 %v20795_v46 }
 0x53c   :  { %7740 = vmatpush1.bf16.msra.mxu0 %v20793_v19 }
 0x53d   :  { %7741 = vmatprep.subr.bf16.mxu0 %v20798_v1 }
 0x540   :  { %7742 = vmatpush1.bf16.msra.mxu0 %v20796_v38 }
 0x541   :  { %7743 = vmatprep.subr.bf16.mxu0 %v20801_v42  ;;  %v22645_v42 = vld [vmem:[%s24734_s0 + $0x10] sm:$0x3f] }
 0x544   :  { %7744 = vmatpush1.bf16.msra.mxu0 %v20799_v47 }
 0x545   :  { %7745 = vmatprep.subr.bf16.mxu0 %v20807_v48  ;;  %v22646_v48 = vld [vmem:[%s24734_s0 + $0x18] sm:$0x3f] }
 0x548   :  { %7746 = vmatpush1.bf16.msra.mxu0 %v20805_v49 }
 0x549   :  { %7747 = vmatprep.subr.bf16.mxu0 %v20813_v18  ;;  %v20853_v18 = vld [vmem:[#allocation12 + $0x38] ss:$24 sps:$4 sm:$0xff]  }
 0x54c   :  { %7748 = vmatpush1.bf16.msra.mxu0 %v20811_v54 }
 0x54d   :  { %7749 = vmatprep.subr.bf16.mxu0 %v20819_v25 }
 0x550   :  { %7750 = vmatpush1.bf16.msra.mxu0 %v20817_v26 }
 0x551   :  { %7751 = vmatprep.subr.bf16.mxu0 %v20825_v32  ;;  %v20861_v32 = vld [vmem:[#allocation12 + $0x6c] ss:$24 sps:$4 sm:$0xff]  }
 0x554   :  { %7752 = vmatpush1.bf16.msra.mxu0 %v20823_v53 }
 0x555   :  { %7753 = vmatprep.subr.bf16.mxu0 %v20831_v34 }
 0x558   :  { %7754 = vmatpush1.bf16.msra.mxu0 %v20829_v33 }
 0x559   :  { %7755 = vmatprep.subr.bf16.mxu0 %v20837_v16 }
 0x55c   :  { %7756 = vmatpush1.bf16.msra.mxu0 %v20835_v55 }
 0x55d   :  { %v3128_v59 = vpop.permute.xlu0 %3127  ;;  %7757 = vmatprep.subr.bf16.mxu0 %v20843_v56  ;;  %v24346_v12 = vpop.permute.xlu1 %3120 }
 0x55e   :  { %v3135_v62 = vmul.f32 %v22637_v61, %v3128_v59  ;;  %v3136_v63 = vmul.f32 %v22638_v51, %v3128_v59  ;;  %v3137_v4 = vmul.f32 %v22639_v3, %v3128_v59  ;;  %v3138_v36 = vmul.f32 %v22640_v30, %v3128_v59 }
 0x55f   :  { %v3139_v10 = vmul.f32 %v22641_v37, %v3128_v59  ;;  %v3140_v11 = vmul.f32 %v22642_v8, %v3128_v59  ;;  %v3129_v2 = vmul.f32 %v22643_v9, %v24346_v12  ;;  %v3130_v41 = vmul.f32 %v22644_v29, %v24346_v12  ;;  %v20867_v37 = vld [vmem:[#allocation12 + $0x9c] ss:$24 sps:$4 sm:$0xff]   ;;  %v20873_v9 = vld [vmem:[#allocation12 + $0xcc] ss:$24 sps:$4 sm:$0xff]  }
 0x560   :  { %v3183_v13 = vsel %vm3009_vm1, %v3135_v62, 0.0  ;;  %v3190_v52 = vsel %vm3009_vm1, %v3136_v63, 0.0  ;;  %v3197_v15 = vsel %vm3009_vm1, %v3137_v4, 0.0  ;;  %v3204_v17 = vsel %vm3009_vm1, %v3138_v36, 0.0  ;;  %7758 = vmatpush1.bf16.msra.mxu0 %v20841_v57  ;;  %v20859_v63 = vld [vmem:[#allocation12 + $0x68] ss:$24 sps:$4 sm:$0xff]  }
 0x561   :  { %v3184_v0 = vrot.slane %v3183_v13, 4  ;;  %v3191_v20 = vrot.slane %v3190_v52, 4  ;;  %v3198_v22 = vrot.slane %v3197_v15, 4  ;;  %v3205_v21 = vrot.slane %v3204_v17, 4  ;;  %15601 = vmatprep.subr.bf16.mxu0 %v20849_v60 }
 0x562   :  { %v3211_v24 = vsel %vm3009_vm1, %v3139_v10, 0.0  ;;  %v3218_v28 = vsel %vm3009_vm1, %v3140_v11, 0.0  ;;  %v3131_v47 = vmul.f32 %v22645_v42, %v24346_v12  ;;  %v3132_v49 = vmul.f32 %v22646_v48, %v24346_v12 }
 0x563   :  { %v3185_v27 = vadd.f32 %v3184_v0, %v3183_v13  ;;  %v3192_v5 = vadd.f32 %v3191_v20, %v3190_v52  ;;  %v3199_v46 = vadd.f32 %v3198_v22, %v3197_v15  ;;  %v3206_v19 = vadd.f32 %v3205_v21, %v3204_v17  ;;  %7760 = vmatmul.mubr.bf16.vlgmr.msra.gmra.mrb[24].mxu0 %v24073_v6  ;;  %v22647_v52 = vld [vmem:[%s24734_s0 + $0x20] sm:$0x3f] }
 0x564   :  { %v3212_v1 = vrot.slane %v3211_v24, 4  ;;  %v3219_v38 = vrot.slane %v3218_v28, 4  ;;  %15602 = vmatpush1.bf16.msra.mxu0 %v20847_v45  ;;  %v3141_v33 = vsel %vm3009_vm1, %v3129_v2, 0.0  ;;  %v3148_v16 = vsel %vm3009_vm1, %v3130_v41, 0.0  ;;  %v20865_v22 = vld [vmem:[#allocation12 + $0x98] ss:$24 sps:$4 sm:$0xff]  }
 0x565   :  { %v3186_v54 = vrot.slane %v3185_v27, 2  ;;  %v3193_v25 = vrot.slane %v3192_v5, 2  ;;  %v3200_v26 = vrot.slane %v3199_v46, 2  ;;  %v3207_v6 = vrot.slane %v3206_v19, 2  ;;  %15603 = vmatprep.subr.bf16.mxu0 %v20855_v23  ;;  %v22648_v2 = vld [vmem:[%s24734_s0 + $0x28] sm:$0x3f] }
 0x566   :  { %v3213_v53 = vadd.f32 %v3212_v1, %v3211_v24  ;;  %v3220_v34 = vadd.f32 %v3219_v38, %v3218_v28  ;;  %v3142_v62 = vrot.slane %v3141_v33, 4  ;;  %v3149_v51 = vrot.slane %v3148_v16, 4 }
 0x567   :  { %v3187_v55 = vadd.f32 %v3186_v54, %v3185_v27  ;;  %v3194_v56 = vadd.f32 %v3193_v25, %v3192_v5  ;;  %v3201_v57 = vadd.f32 %v3200_v26, %v3199_v46  ;;  %v3208_v59 = vadd.f32 %v3207_v6, %v3206_v19  ;;  %v20879_v6 = vld [vmem:[#allocation12 + $0xfc] ss:$24 sps:$4 sm:$0xff]  }
 0x568   :  { %v3214_v60 = vrot.slane %v3213_v53, 2  ;;  %v3221_v61 = vrot.slane %v3220_v34, 2  ;;  %15604 = vmatpush1.bf16.msra.mxu0 %v20853_v18  ;;  %v3143_v10 = vadd.f32 %v3142_v62, %v3141_v33  ;;  %v3150_v8 = vadd.f32 %v3149_v51, %v3148_v16 }
 0x569   :  { %v3188_v3 = vrot.slane %v3187_v55, 1  ;;  %v3195_v4 = vrot.slane %v3194_v56, 1  ;;  %v3202_v30 = vrot.slane %v3201_v57, 1  ;;  %v3209_v36 = vrot.slane %v3208_v59, 1  ;;  %15605 = vmatprep.subr.bf16.mxu0 %v20861_v32 }
 0x56a   :  { %v3215_v11 = vadd.f32 %v3214_v60, %v3213_v53  ;;  %v3222_v13 = vadd.f32 %v3221_v61, %v3220_v34  ;;  %v3133_v15 = vmul.f32 %v22647_v52, %v24346_v12  ;;  %v3144_v0 = vrot.slane %v3143_v10, 2  ;;  %v20877_v60 = vld [vmem:[#allocation12 + $0xf8] ss:$24 sps:$4 sm:$0xff]  }
 0x56b   :  { %v3189_v17 = vadd.f32 %v3188_v3, %v3187_v55  ;;  %v3196_v45 = vadd.f32 %v3195_v4, %v3194_v56  ;;  %v3151_v20 = vrot.slane %v3150_v8, 2  ;;  %v3203_v21 = vadd.f32 %v3202_v30, %v3201_v57  ;;  %v20885_v3 = vld [vmem:[#allocation12 + $0x12c] ss:$24 sps:$4 sm:$0xff]  }
 0x56c   :  { %15606 = vmatpush1.bf16.msra.mxu0 %v20859_v63  ;;  %v3210_v23 = vadd.f32 %v3209_v36, %v3208_v59  ;;  %v3155_v24 = vsel %vm3009_vm1, %v3131_v47, 0.0  ;;  %v3162_v28 = vsel %vm3009_vm1, %v3132_v49, 0.0  ;;  %v3134_v29 = vmul.f32 %v22648_v2, %v24346_v12  ;;  %v20871_v49 = vld [vmem:[#allocation12 + $0xc8] ss:$24 sps:$4 sm:$0xff]  }
 0x56d   :  { %15607 = vmatprep.subr.bf16.mxu0 %v20867_v37  ;;  %v3145_v41 = vadd.f32 %v3144_v0, %v3143_v10  ;;  %v3152_v27 = vadd.f32 %v3151_v20, %v3150_v8  ;;  %v3216_v5 = vrot.slane %v3215_v11, 1  ;;  %v3223_v46 = vrot.slane %v3222_v13, 1  ;;  %v20891_v0 = vld [vmem:[#allocation12 + $0x15c] ss:$24 sps:$4 sm:$0xff]  }
 0x56e   :  { %v3156_v19 = vrot.slane %v3155_v24, 4  ;;  %v3163_v1 = vrot.slane %v3162_v28, 4  ;;  %v7805_v38 = vcombine.low %v3189_v17, %v3196_v45  ;;  %v3169_v47 = vsel %vm3009_vm1, %v3133_v15, 0.0 }
 0x56f   :  { %v3146_v42 = vrot.slane %v3145_v41, 1  ;;  %v3153_v48 = vrot.slane %v3152_v27, 1  ;;  %v7806_v18 = vcombine.low %v3203_v21, %v3210_v23  ;;  %v3170_v26 = vrot.slane %v3169_v47, 4 }
 0x570   :  { %15608 = vmatpush1.bf16.msra.mxu0 %v20865_v22  ;;  %v3157_v54 = vadd.f32 %v3156_v19, %v3155_v24  ;;  %v3164_v25 = vadd.f32 %v3163_v1, %v3162_v28  ;;  %v3176_v32 = vsel %vm3009_vm1, %v3134_v29, 0.0  ;;  %v3217_v55 = vadd.f32 %v3216_v5, %v3215_v11  ;;  %v20895_v1 = vld [vmem:[#allocation12 + $0x188] ss:$24 sps:$4 sm:$0xff]  }
 0x571   :  { %15609 = vmatprep.subr.bf16.mxu0 %v20873_v9  ;;  %v3147_v12 = vadd.f32 %v3146_v42, %v3145_v41  ;;  %v3154_v53 = vadd.f32 %v3153_v48, %v3152_v27  ;;  %v3171_v16 = vadd.f32 %v3170_v26, %v3169_v47  ;;  %v3224_v56 = vadd.f32 %v3223_v46, %v3222_v13  ;;  %v20883_v13 = vld [vmem:[#allocation12 + $0x128] ss:$24 sps:$4 sm:$0xff]   ;;  %v20889_v9 = vld [vmem:[#allocation12 + $0x158] ss:$24 sps:$4 sm:$0xff]   ;;  %v20897_v41 = vld [vmem:[#allocation12 + $0x18c] ss:$24 sps:$4 sm:$0xff]  }
 0x572   :  { %v3158_v34 = vrot.slane %v3157_v54, 2  ;;  %v3165_v33 = vrot.slane %v3164_v25, 2  ;;  %v7813_v57 = vrot.slane %v7805_v38, %v23801_v58  ;;  %v3177_v59 = vrot.slane %v3176_v32, 4  ;;  %v20903_v42 = vld [vmem:[#allocation12 + $0x1bc] ss:$24 sps:$4 sm:$0xff]  }
 0x573   :  { %v7820_v61 = vrot.slane %v7806_v18, %v23801_v58  ;;  %v3172_v63 = vrot.slane %v3171_v16, 2  ;;  %v7780_v10 = vcombine.low %v3147_v12, %v3154_v53  ;;  %v7822_v8 = vcombine.low %v3217_v55, %v3224_v56  ;;  %v20907_v55 = vld [vmem:[#allocation12 + $0x1e8] ss:$24 sps:$4 sm:$0xff]  }
 0x574   :  { %15610 = vmatpush1.bf16.msra.mxu0 %v20871_v49  ;;  %v3159_v62 = vadd.f32 %v3158_v34, %v3157_v54  ;;  %v3166_v51 = vadd.f32 %v3165_v33, %v3164_v25  ;;  %v3178_v4 = vadd.f32 %v3177_v59, %v3176_v32  ;;  %v20901_v25 = vld [vmem:[#allocation12 + $0x1b8] ss:$24 sps:$4 sm:$0xff]   ;;  %v20909_v32 = vld [vmem:[#allocation12 + $0x1ec] ss:$24 sps:$4 sm:$0xff]  }
 0x575   :  { %15611 = vmatprep.subr.bf16.mxu0 %v20879_v6  ;;  %v3173_v37 = vadd.f32 %v3172_v63, %v3171_v16  ;;  %v7821_v52 = vcombine.low %v7813_v57, %v7820_v61  ;;  %v7788_v21 = vrot.slane %v7780_v10, %v23801_v58  ;;  %v7829_v23 = vrot.slane %v7822_v8, %v23801_v58  ;;  %v20898_v57 = vld [vmem:[#allocation12 + $0x300] ss:$24 sps:$4 sm:$0xff]   ;;  %v20906_v61 = vld [vmem:[#allocation12 + $0x334] ss:$24 sps:$4 sm:$0xff]   ;;  %v7638_v10 = vpop.f32.mrb[8].mxu1 }
 0x576   :  { %v3160_v30 = vrot.slane %v3159_v62, 1  ;;  %v3167_v36 = vrot.slane %v3166_v51, 1  ;;  %v3179_v11 = vrot.slane %v3178_v4, 2  ;;  %v20913_v63 = vld [vmem:[#allocation12 + $0x218] ss:$24 sps:$4 sm:$0xff]  }
 0x577   :  { %v3174_v45 = vrot.slane %v3173_v37, 1  ;;  %v7834_v2 = vrot.slane %v7821_v52, 7  ;;  %v7844_v46 = vrot.slane %v7829_v23, 7  ;;  %v7515_v52 = vpop.f32.mrb[20].mxu0 }
 0x578   :  { %15612 = vmatpush1.bf16.msra.mxu0 %v20877_v60  ;;  %v3161_v15 = vadd.f32 %v3160_v30, %v3159_v62  ;;  %v3168_v17 = vadd.f32 %v3167_v36, %v3166_v51  ;;  %v3180_v20 = vadd.f32 %v3179_v11, %v3178_v4  ;;  %v20915_v62 = vld [vmem:[#allocation12 + $0x21c] ss:$24 sps:$4 sm:$0xff]   ;;  %v20921_v4 = vld [vmem:[#allocation12 + $0x24c] ss:$24 sps:$4 sm:$0xff]   ;;  %v4074_v11 = vsub.s32 6, %v23126_v14 }
 0x579   :  { %15613 = vmatprep.subr.bf16.mxu0 %v20885_v3  ;;  %v3175_v24 = vadd.f32 %v3174_v45, %v3173_v37  ;;  %v20904_v3 = vld [vmem:[#allocation12 + $0x330] ss:$24 sps:$4 sm:$0xff]   ;;  %v24415_v30 = vld [vmem:[#allocation11 + $0x8] sm:$0xf] }
 0x57a   :  { %v7781_v22 = vcombine.low %v3161_v15, %v3168_v17  ;;  %v3181_v28 = vrot.slane %v3180_v20, 1  ;;  %v20912_v36 = vld [vmem:[#allocation12 + $0x364] ss:$24 sps:$4 sm:$0xff]   ;;  %v4083_v37 = vrot.slane %v24415_v30, %v23769_v39  ;;  %v4087_v8 = vrot.slane %v24415_v30, %v23772_v40  ;;  %v20919_v15 = vld [vmem:[#allocation12 + $0x248] ss:$24 sps:$4 sm:$0xff]  }
 0x57c   :  { %15614 = vmatpush1.bf16.msra.mxu0 %v20883_v13  ;;  %v7795_v29 = vrot.slane %v7781_v22, %v23801_v58  ;;  %v3182_v27 = vadd.f32 %v3181_v28, %v3180_v20  ;;  %v7640_v13 = vpop.f32.mrb[9].mxu1  ;;  %v19299_v17 = vadd.f32 %v7638_v10, %v4083_v37  ;;  %v20910_v20 = vld [vmem:[#allocation12 + $0x360] ss:$24 sps:$4 sm:$0xff]   ;;  %v20927_v22 = vld [vmem:[#allocation12 + $0x27c] ss:$24 sps:$4 sm:$0xff]   ;;  %v7517_v28 = vpop.f32.mrb[21].mxu0 }
 0x57d   :  { %15615 = vmatprep.subr.bf16.mxu0 %v20891_v0  ;;  %v19300_v45 = vadd.f32 %v7640_v13, %v4087_v8  ;;  %v7642_v0 = vpop.f32.mrb[10].mxu1  ;;  %v20949_v37 = vld [vmem:[#allocation12 + $0x338] ss:$24 sps:$4 sm:$0xff]   ;;  %v20957_v10 = vld [vmem:[#allocation12 + $0x36c] ss:$24 sps:$4 sm:$0xff]  }
 0x57e   :  { %v7796_v5 = vcombine.low %v7788_v21, %v7795_v29  ;;  %v7797_v19 = vcombine.low %v3175_v24, %v3182_v27  ;;  %v22649_v21 = vld [vmem:[#allocation11] sm:$0xff]  ;;  %v4078_v24 = vsub.s32 7, %v23126_v14  ;;  %v7643_v29 = vpop.f32.mrb[11].mxu1  ;;  %v20948_v8 = vld [vmem:[#allocation12 + $0x484] ss:$24 sps:$4 sm:$0xff]  }
 0x57f   :  { %v4075_v23 = vrot.slane %v22649_v21, %v4074_v11  ;;  %v20955_v11 = vld [vmem:[#allocation12 + $0x368] ss:$24 sps:$4 sm:$0xff]   ;;  %v20969_v0 = vld [vmem:[#allocation12 + $0x3cc] ss:$24 sps:$4 sm:$0xff]  }
 0x580   :  { %15616 = vmatpush1.bf16.msra.mxu0 %v20889_v9  ;;  %v7835_v38 = vsel %vm3099_vm0, %v7834_v2, %v7796_v5  ;;  %v7804_v48 = vrot.slane %v7797_v19, %v23801_v58  ;;  %v20918_v9 = vld [vmem:[#allocation12 + $0x394] ss:$24 sps:$4 sm:$0xff]   ;;  %v4079_v5 = vrot.slane %v22649_v21, %v4078_v24  ;;  %v20925_v19 = vld [vmem:[#allocation12 + $0x278] ss:$24 sps:$4 sm:$0xff]   ;;  %v20972_v29 = vld [vmem:[#allocation12 + $0x544] ss:$24 sps:$4 sm:$0xff]  }
 0x581   :  { %15617 = vmatprep.subr.bf16.mxu0 %v20897_v41  ;;  %v7837_v47 = vsel %vm7836_vm4, %v7834_v2, %v7835_v38  ;;  %v7519_v41 = vpop.f32.mrb[22].mxu0  ;;  %v19297_v27 = vadd.f32 %v7515_v52, %v4075_v23  ;;  %v20933_v38 = vld [vmem:[#allocation12 + $0x2ac] ss:$24 sps:$4 sm:$0xff]   ;;  %v20946_v13 = vld [vmem:[#allocation12 + $0x480] ss:$24 sps:$4 sm:$0xff]  }
 0x582   :  { %v7839_v49 = vsel %vm7838_vm5, %v7834_v2, %v7837_v47  ;;  %v7845_v54 = vsel %vm3099_vm0, %v7844_v46, %v7804_v48  ;;  %v20924_v48 = vld [vmem:[#allocation12 + $0x3c4] ss:$24 sps:$4 sm:$0xff]   ;;  %v20958_v21 = vld [vmem:[#allocation12 + $0x4e0] ss:$24 sps:$4 sm:$0xff]   ;;  %v20966_v24 = vld [vmem:[#allocation12 + $0x514] ss:$24 sps:$4 sm:$0xff]  }
 0x583   :  { %v7841_v18 = vsel %vm7840_vm6, %v7834_v2, %v7839_v49  ;;  %v7846_v26 = vsel %vm7836_vm4, %v7844_v46, %v7845_v54  ;;  %v7975_v2 = vcombine.low %v19299_v17, %v19300_v45  ;;  %v20931_v49 = vld [vmem:[#allocation12 + $0x2a8] ss:$24 sps:$4 sm:$0xff]   ;;  %v20939_v54 = vld [vmem:[#allocation12 + $0x2dc] ss:$24 sps:$4 sm:$0xff]   ;;  %v20961_v17 = vld [vmem:[#allocation12 + $0x398] ss:$24 sps:$4 sm:$0xff]  }
 0x584   :  { %15618 = vmatpush1.bf16.msra.mxu0 %v20895_v1  ;;  %v8022_v6 = vrot.slane %v7841_v18, %v23801_v58  ;;  %v8015_v12 = vcombine.high %v7841_v18, %v7841_v18  ;;  %v7847_v53 = vsel %vm7838_vm5, %v7844_v46, %v7846_v26  ;;  %v20916_v1 = vld [vmem:[#allocation12 + $0x390] ss:$24 sps:$4 sm:$0xff]   ;;  %v20922_v18 = vld [vmem:[#allocation12 + $0x3c0] ss:$24 sps:$4 sm:$0xff]   ;;  %v20963_v52 = vld [vmem:[#allocation12 + $0x39c] ss:$24 sps:$4 sm:$0xff]  }
 0x585   :  { %15619 = vmatprep.subr.bf16.mxu0 %v20903_v42  ;;  %v7848_v34 = vsel %vm7840_vm6, %v7844_v46, %v7847_v53  ;;  %v7520_v46 = vpop.f32.mrb[23].mxu0  ;;  %v19298_v42 = vadd.f32 %v7517_v28, %v4079_v5  ;;  %v7989_v14 = vrot.slane %v7975_v2, %v23801_v58  ;;  %v20937_v53 = vld [vmem:[#allocation12 + $0x2d8] ss:$24 sps:$4 sm:$0xff]   ;;  %v20975_v23 = vld [vmem:[#allocation12 + $0x3fc] ss:$24 sps:$4 sm:$0xff]  }
 0x586   :  { %v8030_v33 = vcombine.high %v8022_v6, %v8022_v6  ;;  %v24401_v16 = vrot.slane %v8015_v12, %v23801_v58  ;;  %7852 = vst [vmem:[#allocation2 + $0x8] sm:$0xf] %v7848_v34  ;;  %v24407_v60 = vpack.c.bf16 %v8022_v6, %v8022_v6  ;;  %v20930_v6 = vld [vmem:[#allocation12 + $0x3f4] ss:$24 sps:$4 sm:$0xff]   ;;  %v20952_v45 = vld [vmem:[#allocation12 + $0x4b0] ss:$24 sps:$4 sm:$0xff]  }
 0x587   :  { %v7974_v47 = vcombine.low %v19297_v27, %v19298_v42  ;;  %v20973_v28 = vld [vmem:[#allocation12 + $0x3f8] ss:$24 sps:$4 sm:$0xff]   ;;  %v20981_v2 = vld [vmem:[#allocation12 + $0x42c] ss:$24 sps:$4 sm:$0xff]   ;;  %v20979_v41 = vld [vmem:[#allocation12 + $0x428] ss:$24 sps:$4 sm:$0xff]  }
 0x588   :  { %15620 = vmatpush1.bf16.msra.mxu0 %v20901_v25  ;;  %v24403_v56 = vpack.c.bf16 %v8030_v33, %v8030_v33  ;;  %v8031_v59 = vcombine.high %v24401_v16, %v24401_v16  ;;  %v20928_v33 = vld [vmem:[#allocation12 + $0x3f0] ss:$24 sps:$4 sm:$0xff]   ;;  %v20970_v27 = vld [vmem:[#allocation12 + $0x540] ss:$24 sps:$4 sm:$0xff]   ;;  %v20987_v5 = vld [vmem:[#allocation12 + $0x45c] ss:$24 sps:$4 sm:$0xff]  }
 0x589   :  { %15621 = vmatprep.subr.bf16.mxu0 %v20909_v32  ;;  %v7982_v25 = vrot.slane %v7974_v47, %v23801_v58  ;;  %v20978_v46 = vld [vmem:[#allocation12 + $0x574] ss:$24 sps:$4 sm:$0xff]   ;;  %v20984_v42 = vld [vmem:[#allocation12 + $0x5a4] ss:$24 sps:$4 sm:$0xff]   ;;  %v20982_v47 = vld [vmem:[#allocation12 + $0x5a0] ss:$24 sps:$4 sm:$0xff]  }
 0x58a   :  { %15141 = vmatprep.mubr.bf16.mxu1 %v24403_v56  ;;  %15633 = vmatprep.mubr.bf16.mxu0 %v24403_v56  ;;  %v24411_v51 = vpack.c.bf16 %v8031_v59, %v8031_v59  ;;  %v20936_v59 = vld [vmem:[#allocation12 + $0x424] ss:$24 sps:$4 sm:$0xff]  }
 0x58b   :  { %15142 = vmatmul.mubr.bf16.vlgmr.msra.gmra.mrb[12].mxu1 %v24407_v60  ;;  %v7990_v12 = vcombine.low %v7982_v25, %v7989_v14  ;;  %v20997_v25 = vld [vmem:[#allocation12 + $0x4b8] ss:$24 sps:$4 sm:$0xff]  }
 0x58c   :  { %15622 = vmatpush1.bf16.msra.mxu0 %v20907_v55  ;;  %15151 = vmatpush1.bf16.msra.mxu1 %v20898_v57  ;;  %v20945_v57 = vld [vmem:[#allocation12 + $0x30c] ss:$24 sps:$4 sm:$0xff]  }
 0x58d   :  { %15182 = vmatprep.mubr.bf16.mxu1 %v24411_v51  ;;  %15152 = vmatprep.subr.bf16.mxu1 %v20906_v61  ;;  %8001 = vst [vmem:[#allocation2 + $0x24] sm:$0xff] %v7990_v12  ;;  %v24436_v14 = vld [vmem:[#allocation2 + $0x8] sm:$0xff] }
 0x58e   :  { %15623 = vmatprep.subr.bf16.mxu0 %v20915_v62  ;;  %v20996_v12 = vld [vmem:[#allocation12 + $0x604] ss:$24 sps:$4 sm:$0xff]  }
 0x590   :  { %15624 = vmatpush1.bf16.msra.mxu0 %v20913_v63  ;;  %15153 = vmatpush1.bf16.msra.mxu1 %v20904_v3  ;;  %v20943_v63 = vld [vmem:[#allocation12 + $0x308] ss:$24 sps:$4 sm:$0xff]  }
 0x591   :  { %15625 = vmatprep.subr.bf16.mxu0 %v20921_v4  ;;  %15154 = vmatprep.subr.bf16.mxu1 %v20912_v36  ;;  %v20934_v3 = vld [vmem:[#allocation12 + $0x420] ss:$24 sps:$4 sm:$0xff]   ;;  %v20942_v36 = vld [vmem:[#allocation12 + $0x454] ss:$24 sps:$4 sm:$0xff]  }
 0x594   :  { %15626 = vmatpush1.bf16.msra.mxu0 %v20919_v15  ;;  %15155 = vmatpush1.bf16.msra.mxu1 %v20910_v20  ;;  %v20954_v15 = vld [vmem:[#allocation12 + $0x4b4] ss:$24 sps:$4 sm:$0xff]   ;;  %v20960_v20 = vld [vmem:[#allocation12 + $0x4e4] ss:$24 sps:$4 sm:$0xff]  }
 0x595   :  { %15627 = vmatprep.subr.bf16.mxu0 %v20927_v22  ;;  %15156 = vmatprep.subr.bf16.mxu1 %v20918_v9  ;;  %v20967_v22 = vld [vmem:[#allocation12 + $0x3c8] ss:$24 sps:$4 sm:$0xff]  }
 0x596   :  { %v20964_v9 = vld [vmem:[#allocation12 + $0x510] ss:$24 sps:$4 sm:$0xff]  }
 0x597   :  { %v3085_v26 = vpop.xlane.xlu0 %3084 }
 0x598   :  { %15628 = vmatpush1.bf16.msra.mxu0 %v20925_v19  ;;  %15157 = vmatpush1.bf16.msra.mxu1 %v20916_v1  ;;  %v3234_v34 = vrot.slane %v3085_v26, %v24233_v35  ;;  %v20985_v19 = vld [vmem:[#allocation12 + $0x458] ss:$24 sps:$4 sm:$0xff]  }
 0x599   :  { %15629 = vmatprep.subr.bf16.mxu0 %v20933_v38  ;;  %15158 = vmatprep.subr.bf16.mxu1 %v20924_v48  ;;  %v20976_v1 = vld [vmem:[#allocation12 + $0x570] ss:$24 sps:$4 sm:$0xff]   ;;  %v20993_v38 = vld [vmem:[#allocation12 + $0x48c] ss:$24 sps:$4 sm:$0xff]  }
 0x59a   :  { %v20991_v48 = vld [vmem:[#allocation12 + $0x488] ss:$24 sps:$4 sm:$0xff]  }
 0x59b   :  { %v20988_v26 = vld [vmem:[#allocation12 + $0x5d0] ss:$24 sps:$4 sm:$0xff]  }
 0x59c   :  { %v3078_v32 = vpop.xlane.xlu1 %3077  ;;  %15630 = vmatpush1.bf16.msra.mxu0 %v20931_v49  ;;  %15159 = vmatpush1.bf16.msra.mxu1 %v20922_v18  ;;  %v20999_v49 = vld [vmem:[#allocation12 + $0x4bc] ss:$24 sps:$4 sm:$0xff]  }
 0x59d   :  { %v3230_v55 = vrot.slane %v3078_v32, %v24233_v35  ;;  %15631 = vmatprep.subr.bf16.mxu0 %v20939_v54  ;;  %15160 = vmatprep.subr.bf16.mxu1 %v20930_v6  ;;  %v20951_v35 = vld [vmem:[#allocation12 + $0x33c] ss:$24 sps:$4 sm:$0xff]   ;;  %v24440_v54 = vrot.slane %v24436_v14, %v23801_v58  ;;  %v21005_v6 = vld [vmem:[#allocation12 + $0x4ec] ss:$24 sps:$4 sm:$0xff]  }
 0x59e   :  { %v20990_v18 = vld [vmem:[#allocation12 + $0x5d4] ss:$24 sps:$4 sm:$0xff]  }
 0x59f   :  { %v3235_v61 = vsel %vm3099_vm0, %v3234_v34, %v3230_v55  ;;  %v8047_v32 = vcombine.high %v24440_v54, %v24440_v54  ;;  %v20994_v34 = vld [vmem:[#allocation12 + $0x600] ss:$24 sps:$4 sm:$0xff]   ;;  %v21002_v55 = vld [vmem:[#allocation12 + $0x634] ss:$24 sps:$4 sm:$0xff]  }
 0x5a0   :  { %15632 = vmatpush1.bf16.msra.mxu0 %v20937_v53  ;;  %v24430_v62 = vsel %vm3086_vm2, %v3235_v61, -1e+30  ;;  %15161 = vmatpush1.bf16.msra.mxu1 %v20928_v33  ;;  %v21003_v53 = vld [vmem:[#allocation12 + $0x4e8] ss:$24 sps:$4 sm:$0xff]   ;;  %v24446_v33 = vpack.c.bf16 %v24401_v16, %v24401_v16  ;;  %v21009_v61 = vld [vmem:[#allocation12 + $0x518] ss:$24 sps:$4 sm:$0xff]  }
 0x5a1   :  { %v3238_v4 = vsel %vm3103_vm3, %v24430_v62, -inf  ;;  %15642 = vmatprep.subr.bf16.mxu0 %v20945_v57  ;;  %15162 = vmatprep.subr.bf16.mxu1 %v20936_v59  ;;  %v21011_v57 = vld [vmem:[#allocation12 + $0x51c] ss:$24 sps:$4 sm:$0xff]   ;;  %v24448_v59 = vpack.c.bf16 %v8047_v32, %v8047_v32  ;;  %v21015_v16 = vld [vmem:[#allocation12 + $0x548] ss:$24 sps:$4 sm:$0xff]  }
 0x5a2   :  { %3239 = vmax.xlane.f32.xlu0 %v3238_v4  ;;  %v21008_v4 = vld [vmem:[#allocation12 + $0x664] ss:$24 sps:$4 sm:$0xff]  }
 0x5a3   :  { %15634 = vmatmul.mubr.bf16.vlgmr.msra.gmra.mrb[28].mxu0 %v24407_v60  ;;  %v21068_v32 = vld [vmem:[#allocation12 + $0x844] ss:$24 sps:$4 sm:$0xff]  }
 0x5a4   :  { %15643 = vmatpush1.bf16.msra.mxu0 %v20943_v63  ;;  %15674 = vmatprep.mubr.bf16.mxu0 %v24411_v51  ;;  %v21000_v63 = vld [vmem:[#allocation12 + $0x630] ss:$24 sps:$4 sm:$0xff]  }
 0x5a5   :  { %15163 = vmatpush1.bf16.msra.mxu1 %v20934_v3  ;;  %15644 = vmatprep.subr.bf16.mxu0 %v20951_v35  ;;  %v21017_v3 = vld [vmem:[#allocation12 + $0x54c] ss:$24 sps:$4 sm:$0xff]   ;;  %v21006_v35 = vld [vmem:[#allocation12 + $0x660] ss:$24 sps:$4 sm:$0xff]  }
 0x5a6   :  { %15164 = vmatprep.subr.bf16.mxu1 %v20942_v36  ;;  %v21023_v36 = vld [vmem:[#allocation12 + $0x57c] ss:$24 sps:$4 sm:$0xff]  }
 0x5a8   :  { %15645 = vmatpush1.bf16.msra.mxu0 %v20949_v37  ;;  %v21014_v37 = vld [vmem:[#allocation12 + $0x694] ss:$24 sps:$4 sm:$0xff]  }
 0x5a9   :  { %15165 = vmatpush1.bf16.msra.mxu1 %v20940_v31  ;;  %15646 = vmatprep.subr.bf16.mxu0 %v20957_v10  ;;  %v21021_v31 = vld [vmem:[#allocation12 + $0x578] ss:$24 sps:$4 sm:$0xff]  }
 0x5aa   :  { %15166 = vmatprep.subr.bf16.mxu1 %v20948_v8  ;;  %v21012_v10 = vld [vmem:[#allocation12 + $0x690] ss:$24 sps:$4 sm:$0xff]   ;;  %v21029_v8 = vld [vmem:[#allocation12 + $0x5ac] ss:$24 sps:$4 sm:$0xff]  }
 0x5ac   :  { %15647 = vmatpush1.bf16.msra.mxu0 %v20955_v11  ;;  %v21020_v11 = vld [vmem:[#allocation12 + $0x6c4] ss:$24 sps:$4 sm:$0xff]  }
 0x5ad   :  { %15167 = vmatpush1.bf16.msra.mxu1 %v20946_v13  ;;  %15648 = vmatprep.subr.bf16.mxu0 %v20963_v52  ;;  %v21027_v13 = vld [vmem:[#allocation12 + $0x5a8] ss:$24 sps:$4 sm:$0xff]  }
 0x5ae   :  { %15168 = vmatprep.subr.bf16.mxu1 %v20954_v15  ;;  %v21018_v52 = vld [vmem:[#allocation12 + $0x6c0] ss:$24 sps:$4 sm:$0xff]   ;;  %v21035_v15 = vld [vmem:[#allocation12 + $0x5dc] ss:$24 sps:$4 sm:$0xff]  }
 0x5b0   :  { %15649 = vmatpush1.bf16.msra.mxu0 %v20961_v17  ;;  %v21026_v17 = vld [vmem:[#allocation12 + $0x6f4] ss:$24 sps:$4 sm:$0xff]  }
 0x5b1   :  { %15169 = vmatpush1.bf16.msra.mxu1 %v20952_v45  ;;  %15650 = vmatprep.subr.bf16.mxu0 %v20969_v0  ;;  %v21033_v45 = vld [vmem:[#allocation12 + $0x5d8] ss:$24 sps:$4 sm:$0xff]  }
 0x5b2   :  { %15170 = vmatprep.subr.bf16.mxu1 %v20960_v20  ;;  %v21024_v0 = vld [vmem:[#allocation12 + $0x6f0] ss:$24 sps:$4 sm:$0xff]   ;;  %v21041_v20 = vld [vmem:[#allocation12 + $0x60c] ss:$24 sps:$4 sm:$0xff]  }
 0x5b4   :  { %15651 = vmatpush1.bf16.msra.mxu0 %v20967_v22  ;;  %v21032_v22 = vld [vmem:[#allocation12 + $0x724] ss:$24 sps:$4 sm:$0xff]  }
 0x5b5   :  { %15171 = vmatpush1.bf16.msra.mxu1 %v20958_v21  ;;  %15652 = vmatprep.subr.bf16.mxu0 %v20975_v23  ;;  %v21039_v21 = vld [vmem:[#allocation12 + $0x608] ss:$24 sps:$4 sm:$0xff]  }
 0x5b6   :  { %15172 = vmatprep.subr.bf16.mxu1 %v20966_v24  ;;  %v21030_v23 = vld [vmem:[#allocation12 + $0x720] ss:$24 sps:$4 sm:$0xff]   ;;  %v21047_v24 = vld [vmem:[#allocation12 + $0x63c] ss:$24 sps:$4 sm:$0xff]  }
 0x5b8   :  { %15653 = vmatpush1.bf16.msra.mxu0 %v20973_v28  ;;  %v21038_v28 = vld [vmem:[#allocation12 + $0x754] ss:$24 sps:$4 sm:$0xff]  }
 0x5b9   :  { %15173 = vmatpush1.bf16.msra.mxu1 %v20964_v9  ;;  %15654 = vmatprep.subr.bf16.mxu0 %v20981_v2  ;;  %v21045_v9 = vld [vmem:[#allocation12 + $0x638] ss:$24 sps:$4 sm:$0xff]  }
 0x5ba   :  { %15174 = vmatprep.subr.bf16.mxu1 %v20972_v29  ;;  %v21036_v2 = vld [vmem:[#allocation12 + $0x750] ss:$24 sps:$4 sm:$0xff]   ;;  %v21053_v29 = vld [vmem:[#allocation12 + $0x66c] ss:$24 sps:$4 sm:$0xff]  }
 0x5bc   :  { %15655 = vmatpush1.bf16.msra.mxu0 %v20979_v41  ;;  %v21044_v41 = vld [vmem:[#allocation12 + $0x784] ss:$24 sps:$4 sm:$0xff]  }
 0x5bd   :  { %15175 = vmatpush1.bf16.msra.mxu1 %v20970_v27  ;;  %15656 = vmatprep.subr.bf16.mxu0 %v20987_v5  ;;  %v21051_v27 = vld [vmem:[#allocation12 + $0x668] ss:$24 sps:$4 sm:$0xff]  }
 0x5be   :  { %15176 = vmatprep.subr.bf16.mxu1 %v20978_v46  ;;  %v21042_v5 = vld [vmem:[#allocation12 + $0x780] ss:$24 sps:$4 sm:$0xff]   ;;  %v21059_v46 = vld [vmem:[#allocation12 + $0x69c] ss:$24 sps:$4 sm:$0xff]  }
 0x5c0   :  { %15657 = vmatpush1.bf16.msra.mxu0 %v20985_v19  ;;  %v21050_v19 = vld [vmem:[#allocation12 + $0x7b4] ss:$24 sps:$4 sm:$0xff]  }
 0x5c1   :  { %15177 = vmatpush1.bf16.msra.mxu1 %v20976_v1  ;;  %15658 = vmatprep.subr.bf16.mxu0 %v20993_v38  ;;  %v21057_v1 = vld [vmem:[#allocation12 + $0x698] ss:$24 sps:$4 sm:$0xff]  }
 0x5c2   :  { %15178 = vmatprep.subr.bf16.mxu1 %v20984_v42  ;;  %v21048_v38 = vld [vmem:[#allocation12 + $0x7b0] ss:$24 sps:$4 sm:$0xff]   ;;  %v21065_v42 = vld [vmem:[#allocation12 + $0x6cc] ss:$24 sps:$4 sm:$0xff]  }
 0x5c4   :  { %15659 = vmatpush1.bf16.msra.mxu0 %v20991_v48  ;;  %v21056_v48 = vld [vmem:[#allocation12 + $0x7e4] ss:$24 sps:$4 sm:$0xff]  }
 0x5c5   :  { %15179 = vmatpush1.bf16.msra.mxu1 %v20982_v47  ;;  %15660 = vmatprep.subr.bf16.mxu0 %v20999_v49  ;;  %v21063_v47 = vld [vmem:[#allocation12 + $0x6c8] ss:$24 sps:$4 sm:$0xff]  }
 0x5c6   :  { %15180 = vmatprep.subr.bf16.mxu1 %v20990_v18  ;;  %v21054_v49 = vld [vmem:[#allocation12 + $0x7e0] ss:$24 sps:$4 sm:$0xff]   ;;  %v21071_v18 = vld [vmem:[#allocation12 + $0x6fc] ss:$24 sps:$4 sm:$0xff]  }
 0x5c8   :  { %15661 = vmatpush1.bf16.msra.mxu0 %v20997_v25  ;;  %v21062_v25 = vld [vmem:[#allocation12 + $0x814] ss:$24 sps:$4 sm:$0xff]  }
 0x5c9   :  { %15181 = vmatpush1.bf16.msra.mxu1 %v20988_v26  ;;  %15662 = vmatprep.subr.bf16.mxu0 %v21005_v6  ;;  %v21069_v26 = vld [vmem:[#allocation12 + $0x6f8] ss:$24 sps:$4 sm:$0xff]  }
 0x5ca   :  { %15191 = vmatprep.subr.bf16.mxu1 %v20996_v12  ;;  %v21060_v6 = vld [vmem:[#allocation12 + $0x810] ss:$24 sps:$4 sm:$0xff]   ;;  %v21077_v12 = vld [vmem:[#allocation12 + $0x72c] ss:$24 sps:$4 sm:$0xff]  }
 0x5cc   :  { %15183 = vmatmul.mubr.bf16.vlgmr.msra.gmra.mrb[12].mxu1 %v24446_v33  ;;  %15663 = vmatpush1.bf16.msra.mxu0 %v21003_v53  ;;  %v21075_v53 = vld [vmem:[#allocation12 + $0x728] ss:$24 sps:$4 sm:$0xff]  }
 0x5cd   :  { %15192 = vmatpush1.bf16.msra.mxu1 %v20994_v34  ;;  %15223 = vmatprep.mubr.bf16.mxu1 %v24448_v59  ;;  %v21066_v34 = vld [vmem:[#allocation12 + $0x840] ss:$24 sps:$4 sm:$0xff]  }
 0x5ce   :  { %15193 = vmatprep.subr.bf16.mxu1 %v21002_v55  ;;  %15664 = vmatprep.subr.bf16.mxu0 %v21011_v57  ;;  %v21083_v55 = vld [vmem:[#allocation12 + $0x75c] ss:$24 sps:$4 sm:$0xff]  }
 0x5cf   :  { %v21074_v57 = vld [vmem:[#allocation12 + $0x874] ss:$24 sps:$4 sm:$0xff]  }
 0x5d0   :  { %15665 = vmatpush1.bf16.msra.mxu0 %v21009_v61  ;;  %v21081_v61 = vld [vmem:[#allocation12 + $0x758] ss:$24 sps:$4 sm:$0xff]  }
 0x5d1   :  { %15194 = vmatpush1.bf16.msra.mxu1 %v21000_v63  ;;  %15666 = vmatprep.subr.bf16.mxu0 %v21017_v3  ;;  %v21072_v63 = vld [vmem:[#allocation12 + $0x870] ss:$24 sps:$4 sm:$0xff]   ;;  %v21089_v3 = vld [vmem:[#allocation12 + $0x78c] ss:$24 sps:$4 sm:$0xff]  }
 0x5d2   :  { %15195 = vmatprep.subr.bf16.mxu1 %v21008_v4  ;;  %v21080_v4 = vld [vmem:[#allocation12 + $0x8a4] ss:$24 sps:$4 sm:$0xff]  }
 0x5d4   :  { %15667 = vmatpush1.bf16.msra.mxu0 %v21015_v16  ;;  %v8032_v16 = vcombine.high %v24436_v14, %v24436_v14 }
 0x5d5   :  { %15196 = vmatpush1.bf16.msra.mxu1 %v21006_v35  ;;  %15668 = vmatprep.subr.bf16.mxu0 %v21023_v36  ;;  %v21087_v35 = vld [vmem:[#allocation12 + $0x788] ss:$24 sps:$4 sm:$0xff]  }
 0x5d6   :  { %15197 = vmatprep.subr.bf16.mxu1 %v21014_v37  ;;  %v21078_v36 = vld [vmem:[#allocation12 + $0x8a0] ss:$24 sps:$4 sm:$0xff]   ;;  %v21096_v37 = vld [vmem:[#allocation12 + $0x7bc] ss:$24 sps:$4 sm:$0xff]  }
 0x5d8   :  { %15669 = vmatpush1.bf16.msra.mxu0 %v21021_v31  ;;  %v21086_v31 = vld [vmem:[#allocation12 + $0x8d4] ss:$24 sps:$4 sm:$0xff]  }
 0x5d9   :  { %15198 = vmatpush1.bf16.msra.mxu1 %v21012_v10  ;;  %15670 = vmatprep.subr.bf16.mxu0 %v21029_v8  ;;  %v24457_v10 = vrot.slane %v8032_v16, %v23801_v58  ;;  %v21094_v8 = vld [vmem:[#allocation12 + $0x7b8] ss:$24 sps:$4 sm:$0xff]  }
 0x5da   :  { %15199 = vmatprep.subr.bf16.mxu1 %v21020_v11  ;;  %v21084_v11 = vld [vmem:[#allocation12 + $0x8d0] ss:$24 sps:$4 sm:$0xff]  }
 0x5db   :  { %v8048_v14 = vcombine.high %v24457_v10, %v24457_v10  ;;  %v21145_v16 = vld [vmem:[#allocation12 + $0xab0] ss:$24 sps:$4 sm:$0xff]  }
 0x5dc   :  { %15671 = vmatpush1.bf16.msra.mxu0 %v21027_v13  ;;  %v21102_v13 = vld [vmem:[#allocation12 + $0x7ec] ss:$24 sps:$4 sm:$0xff]  }
 0x5dd   :  { %15200 = vmatpush1.bf16.msra.mxu1 %v21018_v52  ;;  %15672 = vmatprep.subr.bf16.mxu0 %v21035_v15  ;;  %v21092_v52 = vld [vmem:[#allocation12 + $0x904] ss:$24 sps:$4 sm:$0xff]   ;;  %v21100_v15 = vld [vmem:[#allocation12 + $0x7e8] ss:$24 sps:$4 sm:$0xff]  }
 0x5de   :  { %15201 = vmatprep.subr.bf16.mxu1 %v21026_v17  ;;  %v21090_v17 = vld [vmem:[#allocation12 + $0x900] ss:$24 sps:$4 sm:$0xff]  }
 0x5e0   :  { %15673 = vmatpush1.bf16.msra.mxu0 %v21033_v45  ;;  %v24463_v45 = vpack.c.bf16 %v24440_v54, %v24440_v54  ;;  %v21112_v54 = vld [vmem:[#allocation12 + $0x848] ss:$24 sps:$4 sm:$0xff]  }
 0x5e1   :  { %15202 = vmatpush1.bf16.msra.mxu1 %v21024_v0  ;;  %15683 = vmatprep.subr.bf16.mxu0 %v21041_v20  ;;  %v21099_v0 = vld [vmem:[#allocation12 + $0x934] ss:$24 sps:$4 sm:$0xff]  }
 0x5e2   :  { %15203 = vmatprep.subr.bf16.mxu1 %v21032_v22  ;;  %v21108_v20 = vld [vmem:[#allocation12 + $0x81c] ss:$24 sps:$4 sm:$0xff]   ;;  %v24465_v22 = vpack.c.bf16 %v8048_v14, %v8048_v14 }
 0x5e3   :  { %15675 = vmatmul.mubr.bf16.vlgmr.msra.gmra.mrb[28].mxu0 %v24446_v33  ;;  %v21159_v14 = vld [vmem:[#allocation12 + $0xb14] ss:$24 sps:$4 sm:$0xff]  }
 0x5e4   :  { %15684 = vmatpush1.bf16.msra.mxu0 %v21039_v21  ;;  %15715 = vmatprep.mubr.bf16.mxu0 %v24448_v59  ;;  %v21106_v21 = vld [vmem:[#allocation12 + $0x818] ss:$24 sps:$4 sm:$0xff]  }
 0x5e5   :  { %15204 = vmatpush1.bf16.msra.mxu1 %v21030_v23  ;;  %15685 = vmatprep.subr.bf16.mxu0 %v21047_v24  ;;  %v21097_v23 = vld [vmem:[#allocation12 + $0x930] ss:$24 sps:$4 sm:$0xff]   ;;  %v21114_v24 = vld [vmem:[#allocation12 + $0x84c] ss:$24 sps:$4 sm:$0xff]  }
 0x5e6   :  { %15205 = vmatprep.subr.bf16.mxu1 %v21038_v28  ;;  %v21105_v28 = vld [vmem:[#allocation12 + $0x964] ss:$24 sps:$4 sm:$0xff]  }
 0x5e8   :  { %15686 = vmatpush1.bf16.msra.mxu0 %v21045_v9  ;;  %v21103_v9 = vld [vmem:[#allocation12 + $0x960] ss:$24 sps:$4 sm:$0xff]  }
 0x5e9   :  { %15206 = vmatpush1.bf16.msra.mxu1 %v21036_v2  ;;  %15687 = vmatprep.subr.bf16.mxu0 %v21053_v29  ;;  %v21120_v2 = vld [vmem:[#allocation12 + $0x87c] ss:$24 sps:$4 sm:$0xff]  }
 0x5ea   :  { %15207 = vmatprep.subr.bf16.mxu1 %v21044_v41  ;;  %v21111_v29 = vld [vmem:[#allocation12 + $0x994] ss:$24 sps:$4 sm:$0xff]   ;;  %v21118_v41 = vld [vmem:[#allocation12 + $0x878] ss:$24 sps:$4 sm:$0xff]  }
 0x5ec   :  { %15688 = vmatpush1.bf16.msra.mxu0 %v21051_v27  ;;  %v21109_v27 = vld [vmem:[#allocation12 + $0x990] ss:$24 sps:$4 sm:$0xff]  }
 0x5ed   :  { %15208 = vmatpush1.bf16.msra.mxu1 %v21042_v5  ;;  %15689 = vmatprep.subr.bf16.mxu0 %v21059_v46  ;;  %v21126_v5 = vld [vmem:[#allocation12 + $0x8ac] ss:$24 sps:$4 sm:$0xff]  }
 0x5ee   :  { %15209 = vmatprep.subr.bf16.mxu1 %v21050_v19  ;;  %v21117_v46 = vld [vmem:[#allocation12 + $0x9c4] ss:$24 sps:$4 sm:$0xff]   ;;  %v21124_v19 = vld [vmem:[#allocation12 + $0x8a8] ss:$24 sps:$4 sm:$0xff]  }
 0x5f0   :  { %15690 = vmatpush1.bf16.msra.mxu0 %v21057_v1  ;;  %v21115_v1 = vld [vmem:[#allocation12 + $0x9c0] ss:$24 sps:$4 sm:$0xff]  }
 0x5f1   :  { %15210 = vmatpush1.bf16.msra.mxu1 %v21048_v38  ;;  %15691 = vmatprep.subr.bf16.mxu0 %v21065_v42  ;;  %v21132_v38 = vld [vmem:[#allocation12 + $0x8dc] ss:$24 sps:$4 sm:$0xff]  }
 0x5f2   :  { %15211 = vmatprep.subr.bf16.mxu1 %v21056_v48  ;;  %v21123_v42 = vld [vmem:[#allocation12 + $0x9f4] ss:$24 sps:$4 sm:$0xff]   ;;  %v21130_v48 = vld [vmem:[#allocation12 + $0x8d8] ss:$24 sps:$4 sm:$0xff]  }
 0x5f4   :  { %15692 = vmatpush1.bf16.msra.mxu0 %v21063_v47  ;;  %v21121_v47 = vld [vmem:[#allocation12 + $0x9f0] ss:$24 sps:$4 sm:$0xff]  }
 0x5f5   :  { %15212 = vmatpush1.bf16.msra.mxu1 %v21054_v49  ;;  %15693 = vmatprep.subr.bf16.mxu0 %v21071_v18  ;;  %v21138_v49 = vld [vmem:[#allocation12 + $0x90c] ss:$24 sps:$4 sm:$0xff]  }
 0x5f6   :  { %15213 = vmatprep.subr.bf16.mxu1 %v21062_v25  ;;  %v21129_v18 = vld [vmem:[#allocation12 + $0xa24] ss:$24 sps:$4 sm:$0xff]   ;;  %v21136_v25 = vld [vmem:[#allocation12 + $0x908] ss:$24 sps:$4 sm:$0xff]  }
 0x5f8   :  { %15694 = vmatpush1.bf16.msra.mxu0 %v21069_v26  ;;  %v21127_v26 = vld [vmem:[#allocation12 + $0xa20] ss:$24 sps:$4 sm:$0xff]  }
 0x5f9   :  { %15214 = vmatpush1.bf16.msra.mxu1 %v21060_v6  ;;  %15695 = vmatprep.subr.bf16.mxu0 %v21077_v12  ;;  %v21144_v6 = vld [vmem:[#allocation12 + $0x93c] ss:$24 sps:$4 sm:$0xff]  }
 0x5fa   :  { %15215 = vmatprep.subr.bf16.mxu1 %v21068_v32  ;;  %v21135_v12 = vld [vmem:[#allocation12 + $0xa54] ss:$24 sps:$4 sm:$0xff]   ;;  %v21142_v32 = vld [vmem:[#allocation12 + $0x938] ss:$24 sps:$4 sm:$0xff]  }
 0x5fc   :  { %15696 = vmatpush1.bf16.msra.mxu0 %v21075_v53  ;;  %v21133_v53 = vld [vmem:[#allocation12 + $0xa50] ss:$24 sps:$4 sm:$0xff]  }
 0x5fd   :  { %15216 = vmatpush1.bf16.msra.mxu1 %v21066_v34  ;;  %15697 = vmatprep.subr.bf16.mxu0 %v21083_v55  ;;  %v21150_v34 = vld [vmem:[#allocation12 + $0x96c] ss:$24 sps:$4 sm:$0xff]  }
 0x5fe   :  { %15217 = vmatprep.subr.bf16.mxu1 %v21074_v57  ;;  %v21141_v55 = vld [vmem:[#allocation12 + $0xa84] ss:$24 sps:$4 sm:$0xff]   ;;  %v21148_v57 = vld [vmem:[#allocation12 + $0x968] ss:$24 sps:$4 sm:$0xff]  }
 0x600   :  { %15698 = vmatpush1.bf16.msra.mxu0 %v21081_v61  ;;  %v21139_v61 = vld [vmem:[#allocation12 + $0xa80] ss:$24 sps:$4 sm:$0xff]  }
 0x601   :  { %15218 = vmatpush1.bf16.msra.mxu1 %v21072_v63  ;;  %15699 = vmatprep.subr.bf16.mxu0 %v21089_v3  ;;  %v21156_v63 = vld [vmem:[#allocation12 + $0x99c] ss:$24 sps:$4 sm:$0xff]  }
 0x602   :  { %15219 = vmatprep.subr.bf16.mxu1 %v21080_v4  ;;  %v21147_v3 = vld [vmem:[#allocation12 + $0xab4] ss:$24 sps:$4 sm:$0xff]   ;;  %v21154_v4 = vld [vmem:[#allocation12 + $0x998] ss:$24 sps:$4 sm:$0xff]  }
 0x604   :  { %15700 = vmatpush1.bf16.msra.mxu0 %v21087_v35  ;;  %v21162_v35 = vld [vmem:[#allocation12 + $0x9cc] ss:$24 sps:$4 sm:$0xff]  }
 0x605   :  { %15220 = vmatpush1.bf16.msra.mxu1 %v21078_v36  ;;  %15701 = vmatprep.subr.bf16.mxu0 %v21096_v37  ;;  %v21153_v36 = vld [vmem:[#allocation12 + $0xae4] ss:$24 sps:$4 sm:$0xff]  }
 0x606   :  { %15221 = vmatprep.subr.bf16.mxu1 %v21086_v31 }
 0x608   :  { %15702 = vmatpush1.bf16.msra.mxu0 %v21094_v8  ;;  %v21160_v8 = vld [vmem:[#allocation12 + $0x9c8] ss:$24 sps:$4 sm:$0xff]  }
 0x609   :  { %15222 = vmatpush1.bf16.msra.mxu1 %v21084_v11  ;;  %15703 = vmatprep.subr.bf16.mxu0 %v21102_v13  ;;  %v21151_v11 = vld [vmem:[#allocation12 + $0xae0] ss:$24 sps:$4 sm:$0xff]   ;;  %v21168_v13 = vld [vmem:[#allocation12 + $0x9fc] ss:$24 sps:$4 sm:$0xff]  }
 0x60a   :  { %15232 = vmatprep.subr.bf16.mxu1 %v21092_v52 }
 0x60c   :  { %15224 = vmatmul.mubr.bf16.vlgmr.msra.gmra.mrb[12].mxu1 %v24463_v45  ;;  %15704 = vmatpush1.bf16.msra.mxu0 %v21100_v15  ;;  %v4091_v15 = vrot.slane %v24415_v30, %v23775_v43 }
 0x60d   :  { %15233 = vmatpush1.bf16.msra.mxu1 %v21090_v17  ;;  %15264 = vmatprep.mubr.bf16.mxu1 %v24465_v22  ;;  %v4095_v17 = vrot.slane %v24415_v30, %v23778_v44 }
 0x60e   :  { %15234 = vmatprep.subr.bf16.mxu1 %v21099_v0  ;;  %15705 = vmatprep.subr.bf16.mxu0 %v21108_v20  ;;  %v21166_v0 = vld [vmem:[#allocation12 + $0x9f8] ss:$24 sps:$4 sm:$0xff]   ;;  %v21174_v20 = vld [vmem:[#allocation12 + $0xa2c] ss:$24 sps:$4 sm:$0xff]  }
 0x610   :  { %15706 = vmatpush1.bf16.msra.mxu0 %v21106_v21 }
 0x611   :  { %15235 = vmatpush1.bf16.msra.mxu1 %v21097_v23  ;;  %15707 = vmatprep.subr.bf16.mxu0 %v21114_v24  ;;  %v21165_v23 = vld [vmem:[#allocation12 + $0xb44] ss:$24 sps:$4 sm:$0xff]  }
 0x612   :  { %15236 = vmatprep.subr.bf16.mxu1 %v21105_v28 }
 0x614   :  { %15708 = vmatpush1.bf16.msra.mxu0 %v21112_v54 }
 0x615   :  { %15237 = vmatpush1.bf16.msra.mxu1 %v21103_v9  ;;  %15709 = vmatprep.subr.bf16.mxu0 %v21120_v2  ;;  %v21172_v9 = vld [vmem:[#allocation12 + $0xa28] ss:$24 sps:$4 sm:$0xff]  }
 0x616   :  { %15238 = vmatprep.subr.bf16.mxu1 %v21111_v29  ;;  %v21163_v29 = vld [vmem:[#allocation12 + $0xb40] ss:$24 sps:$4 sm:$0xff]  }
 0x618   :  { %15710 = vmatpush1.bf16.msra.mxu0 %v21118_v41  ;;  %v21180_v41 = vld [vmem:[#allocation12 + $0xa5c] ss:$24 sps:$4 sm:$0xff]  }
 0x619   :  { %15239 = vmatpush1.bf16.msra.mxu1 %v21109_v27  ;;  %15711 = vmatprep.subr.bf16.mxu0 %v21126_v5  ;;  %v21171_v27 = vld [vmem:[#allocation12 + $0xb74] ss:$24 sps:$4 sm:$0xff]  }
 0x61a   :  { %15240 = vmatprep.subr.bf16.mxu1 %v21117_v46  ;;  %v21178_v46 = vld [vmem:[#allocation12 + $0xa58] ss:$24 sps:$4 sm:$0xff]  }
 0x61c   :  { %15712 = vmatpush1.bf16.msra.mxu0 %v21124_v19  ;;  %v21169_v19 = vld [vmem:[#allocation12 + $0xb70] ss:$24 sps:$4 sm:$0xff]  }
 0x61d   :  { %15241 = vmatpush1.bf16.msra.mxu1 %v21115_v1  ;;  %15713 = vmatprep.subr.bf16.mxu0 %v21132_v38  ;;  %v21186_v1 = vld [vmem:[#allocation12 + $0xa8c] ss:$24 sps:$4 sm:$0xff]  }
 0x61e   :  { %15242 = vmatprep.subr.bf16.mxu1 %v21123_v42  ;;  %v21177_v42 = vld [vmem:[#allocation12 + $0xba4] ss:$24 sps:$4 sm:$0xff]  }
 0x620   :  { %15714 = vmatpush1.bf16.msra.mxu0 %v21130_v48 }
 0x621   :  { %15243 = vmatpush1.bf16.msra.mxu1 %v21121_v47  ;;  %15724 = vmatprep.subr.bf16.mxu0 %v21138_v49  ;;  %v21184_v47 = vld [vmem:[#allocation12 + $0xa88] ss:$24 sps:$4 sm:$0xff]  }
 0x622   :  { %15244 = vmatprep.subr.bf16.mxu1 %v21129_v18  ;;  %v24480_v49 = vld [vmem:[#allocation2 + $0x10] sm:$0xff]  ;;  %v21175_v18 = vld [vmem:[#allocation12 + $0xba0] ss:$24 sps:$4 sm:$0xff]  }
 0x623   :  { %15716 = vmatmul.mubr.bf16.vlgmr.msra.gmra.mrb[28].mxu0 %v24463_v45 }
 0x624   :  { %15725 = vmatpush1.bf16.msra.mxu0 %v21136_v25  ;;  %15756 = vmatprep.mubr.bf16.mxu0 %v24465_v22  ;;  %v21192_v25 = vld [vmem:[#allocation12 + $0xabc] ss:$24 sps:$4 sm:$0xff]  }
 0x625   :  { %15245 = vmatpush1.bf16.msra.mxu1 %v21127_v26  ;;  %15726 = vmatprep.subr.bf16.mxu0 %v21144_v6  ;;  %v21183_v26 = vld [vmem:[#allocation12 + $0xbd4] ss:$24 sps:$4 sm:$0xff]   ;;  %v24484_v6 = vrot.slane %v24480_v49, %v23801_v58 }
 0x626   :  { %15246 = vmatprep.subr.bf16.mxu1 %v21135_v12  ;;  %v21190_v12 = vld [vmem:[#allocation12 + $0xab8] ss:$24 sps:$4 sm:$0xff]  }
 0x628   :  { %15727 = vmatpush1.bf16.msra.mxu0 %v21142_v32  ;;  %v21181_v32 = vld [vmem:[#allocation12 + $0xbd0] ss:$24 sps:$4 sm:$0xff]  }
 0x629   :  { %15247 = vmatpush1.bf16.msra.mxu1 %v21133_v53  ;;  %15728 = vmatprep.subr.bf16.mxu0 %v21150_v34  ;;  %v21198_v53 = vld [vmem:[#allocation12 + $0xaec] ss:$24 sps:$4 sm:$0xff]  }
 0x62a   :  { %15248 = vmatprep.subr.bf16.mxu1 %v21141_v55  ;;  %v21189_v34 = vld [vmem:[#allocation12 + $0xc04] ss:$24 sps:$4 sm:$0xff]   ;;  %v8064_v55 = vcombine.high %v24484_v6, %v24484_v6 }
 0x62c   :  { %15729 = vmatpush1.bf16.msra.mxu0 %v21148_v57  ;;  %v21196_v57 = vld [vmem:[#allocation12 + $0xae8] ss:$24 sps:$4 sm:$0xff]  }
 0x62d   :  { %15249 = vmatpush1.bf16.msra.mxu1 %v21139_v61  ;;  %15730 = vmatprep.subr.bf16.mxu0 %v21156_v63  ;;  %v21187_v61 = vld [vmem:[#allocation12 + $0xc00] ss:$24 sps:$4 sm:$0xff]   ;;  %v24490_v63 = vpack.c.bf16 %v24457_v10, %v24457_v10 }
 0x62e   :  { %15250 = vmatprep.subr.bf16.mxu1 %v21147_v3  ;;  %v21195_v3 = vld [vmem:[#allocation12 + $0xc34] ss:$24 sps:$4 sm:$0xff]   ;;  %v21208_v10 = vld [vmem:[#allocation12 + $0xb48] ss:$24 sps:$4 sm:$0xff]  }
 0x62f   :  { %v3240_v37 = vpop.xlane.xlu0 %3239 }
 0x630   :  { %v3241_v31 = vsub.f32 %v24430_v62, %v3240_v37  ;;  %15731 = vmatpush1.bf16.msra.mxu0 %v21154_v4  ;;  %v21157_v62 = vld [vmem:[#allocation12 + $0xb10] ss:$24 sps:$4 sm:$0xff]   ;;  %v21204_v4 = vld [vmem:[#allocation12 + $0xb1c] ss:$24 sps:$4 sm:$0xff]   ;;  %v21210_v37 = vld [vmem:[#allocation12 + $0xb4c] ss:$24 sps:$4 sm:$0xff]  }
 0x631   :  { %15251 = vmatpush1.bf16.msra.mxu1 %v21145_v16  ;;  %15732 = vmatprep.subr.bf16.mxu0 %v21162_v35  ;;  %v24492_v16 = vpack.c.bf16 %v8064_v55, %v8064_v55  ;;  %v21202_v35 = vld [vmem:[#allocation12 + $0xb18] ss:$24 sps:$4 sm:$0xff]  }
 0x632   :  { %15252 = vmatprep.subr.bf16.mxu1 %v21153_v36  ;;  %v3242_v52 = vmul.f32 1.442695, %v3241_v31  ;;  %v21193_v36 = vld [vmem:[#allocation12 + $0xc30] ss:$24 sps:$4 sm:$0xff]   ;;  %v21201_v31 = vld [vmem:[#allocation12 + $0xc64] ss:$24 sps:$4 sm:$0xff]  }
 0x633   :  { %v21262_v55 = vld [vmem:[#allocation12 + $0xcf8] ss:$24 sps:$4 sm:$0xff]  }
 0x634   :  { %22631 = vpow2.f32 %v3242_v52  ;;  %15733 = vmatpush1.bf16.msra.mxu0 %v21160_v8  ;;  %v21199_v8 = vld [vmem:[#allocation12 + $0xc60] ss:$24 sps:$4 sm:$0xff]  }
 0x635   :  { %15253 = vmatpush1.bf16.msra.mxu1 %v21151_v11  ;;  %15734 = vmatprep.subr.bf16.mxu0 %v21168_v13  ;;  %v21216_v11 = vld [vmem:[#allocation12 + $0xb7c] ss:$24 sps:$4 sm:$0xff]   ;;  %v21214_v52 = vld [vmem:[#allocation12 + $0xb78] ss:$24 sps:$4 sm:$0xff]  }
 0x636   :  { %15254 = vmatprep.subr.bf16.mxu1 %v21159_v14  ;;  %v7761_v21 = vpop.f32.mrb[24].mxu0  ;;  %v21207_v13 = vld [vmem:[#allocation12 + $0xc94] ss:$24 sps:$4 sm:$0xff]   ;;  %v21205_v14 = vld [vmem:[#allocation12 + $0xc90] ss:$24 sps:$4 sm:$0xff]  }
 0x637   :  { %v19301_v24 = vadd.f32 %v7761_v21, %v4091_v15  ;;  %v7763_v28 = vpop.f32.mrb[25].mxu0  ;;  %v21222_v15 = vld [vmem:[#allocation12 + $0xbac] ss:$24 sps:$4 sm:$0xff]  }
 0x638   :  { %v19302_v54 = vadd.f32 %v7763_v28, %v4095_v17  ;;  %15735 = vmatpush1.bf16.msra.mxu0 %v21166_v0  ;;  %v7765_v2 = vpop.f32.mrb[26].mxu0  ;;  %v21213_v17 = vld [vmem:[#allocation12 + $0xcc4] ss:$24 sps:$4 sm:$0xff]   ;;  %v21220_v0 = vld [vmem:[#allocation12 + $0xba8] ss:$24 sps:$4 sm:$0xff]  }
 0x639   :  { %15255 = vmatpush1.bf16.msra.mxu1 %v21157_v62  ;;  %15736 = vmatprep.subr.bf16.mxu0 %v21174_v20  ;;  %v7766_v5 = vpop.f32.mrb[27].mxu0  ;;  %v21211_v62 = vld [vmem:[#allocation12 + $0xcc0] ss:$24 sps:$4 sm:$0xff]   ;;  %v21228_v20 = vld [vmem:[#allocation12 + $0xbdc] ss:$24 sps:$4 sm:$0xff]  }
 0x63a   :  { %15256 = vmatprep.subr.bf16.mxu1 %v21165_v23  ;;  %v7991_v30 = vcombine.low %v19301_v24, %v19302_v54  ;;  %v21219_v21 = vld [vmem:[#allocation12 + $0xcf4] ss:$24 sps:$4 sm:$0xff]   ;;  %v21226_v23 = vld [vmem:[#allocation12 + $0xbd8] ss:$24 sps:$4 sm:$0xff]   ;;  %v21225_v54 = vld [vmem:[#allocation12 + $0xd24] ss:$24 sps:$4 sm:$0xff]  }
 0x63b   :  { %v21217_v24 = vld [vmem:[#allocation12 + $0xcf0] ss:$24 sps:$4 sm:$0xff]   ;;  %v21234_v28 = vld [vmem:[#allocation12 + $0xc0c] ss:$24 sps:$4 sm:$0xff]   ;;  %v21223_v2 = vld [vmem:[#allocation12 + $0xd20] ss:$24 sps:$4 sm:$0xff]  }
 0x63c   :  { %18009 = vst.sshfl [vmem:[#allocation2 + $0x2c] sm:$0x33 pattern:$0x76325410] %v7991_v30  ;;  %15737 = vmatpush1.bf16.msra.mxu0 %v21172_v9  ;;  %v21232_v9 = vld [vmem:[#allocation12 + $0xc08] ss:$24 sps:$4 sm:$0xff]  }
 0x63d   :  { %15257 = vmatpush1.bf16.msra.mxu1 %v21163_v29  ;;  %15738 = vmatprep.subr.bf16.mxu0 %v21180_v41  ;;  %v21240_v29 = vld [vmem:[#allocation12 + $0xc3c] ss:$24 sps:$4 sm:$0xff]   ;;  %v21238_v30 = vld [vmem:[#allocation12 + $0xc38] ss:$24 sps:$4 sm:$0xff]   ;;  %v21246_v5 = vld [vmem:[#allocation12 + $0xc6c] ss:$24 sps:$4 sm:$0xff]  }
 0x63e   :  { %v24476_v38 = vpop.eup %22631  ;;  %15258 = vmatprep.subr.bf16.mxu1 %v21171_v27  ;;  %v21231_v41 = vld [vmem:[#allocation12 + $0xd54] ss:$24 sps:$4 sm:$0xff]   ;;  %v21229_v27 = vld [vmem:[#allocation12 + $0xd50] ss:$24 sps:$4 sm:$0xff]  }
 0x63f   :  { %v3244_v48 = vsel %vm3103_vm3, %v24476_v38, 0.0 }
 0x640   :  { %3245 = vadd.xlane.f32.xlu1 %v3244_v48  ;;  %15739 = vmatpush1.bf16.msra.mxu0 %v21178_v46  ;;  %v21237_v46 = vld [vmem:[#allocation12 + $0xd84] ss:$24 sps:$4 sm:$0xff]   ;;  %v21243_v48 = vld [vmem:[#allocation12 + $0xdb4] ss:$24 sps:$4 sm:$0xff]  }
 0x641   :  { %15259 = vmatpush1.bf16.msra.mxu1 %v21169_v19  ;;  %15740 = vmatprep.subr.bf16.mxu0 %v21186_v1  ;;  %v21244_v19 = vld [vmem:[#allocation12 + $0xc68] ss:$24 sps:$4 sm:$0xff]  }
 0x642   :  { %15260 = vmatprep.subr.bf16.mxu1 %v21177_v42  ;;  %v21235_v1 = vld [vmem:[#allocation12 + $0xd80] ss:$24 sps:$4 sm:$0xff]   ;;  %v21252_v42 = vld [vmem:[#allocation12 + $0xc9c] ss:$24 sps:$4 sm:$0xff]  }
 0x644   :  { %15741 = vmatpush1.bf16.msra.mxu0 %v21184_v47  ;;  %v21250_v47 = vld [vmem:[#allocation12 + $0xc98] ss:$24 sps:$4 sm:$0xff]  }
 0x645   :  { %15261 = vmatpush1.bf16.msra.mxu1 %v21175_v18  ;;  %15742 = vmatprep.subr.bf16.mxu0 %v21192_v25  ;;  %v21241_v18 = vld [vmem:[#allocation12 + $0xdb0] ss:$24 sps:$4 sm:$0xff]   ;;  %v21258_v25 = vld [vmem:[#allocation12 + $0xccc] ss:$24 sps:$4 sm:$0xff]  }
 0x646   :  { %15262 = vmatprep.subr.bf16.mxu1 %v21183_v26  ;;  %v21249_v26 = vld [vmem:[#allocation12 + $0xde4] ss:$24 sps:$4 sm:$0xff]  }
 0x648   :  { %15743 = vmatpush1.bf16.msra.mxu0 %v21190_v12  ;;  %v21256_v12 = vld [vmem:[#allocation12 + $0xcc8] ss:$24 sps:$4 sm:$0xff]  }
 0x649   :  { %15263 = vmatpush1.bf16.msra.mxu1 %v21181_v32  ;;  %15744 = vmatprep.subr.bf16.mxu0 %v21198_v53  ;;  %v21247_v32 = vld [vmem:[#allocation12 + $0xde0] ss:$24 sps:$4 sm:$0xff]   ;;  %v21264_v53 = vld [vmem:[#allocation12 + $0xcfc] ss:$24 sps:$4 sm:$0xff]  }
 0x64a   :  { %15273 = vmatprep.subr.bf16.mxu1 %v21189_v34  ;;  %v21255_v34 = vld [vmem:[#allocation12 + $0xe14] ss:$24 sps:$4 sm:$0xff]  }
 0x64c   :  { %15265 = vmatmul.mubr.bf16.vlgmr.msra.gmra.mrb[12].mxu1 %v24490_v63  ;;  %15745 = vmatpush1.bf16.msra.mxu0 %v21196_v57  ;;  %v21253_v57 = vld [vmem:[#allocation12 + $0xe10] ss:$24 sps:$4 sm:$0xff]  }
 0x64d   :  { %15274 = vmatpush1.bf16.msra.mxu1 %v21187_v61  ;;  %15305 = vmatprep.mubr.bf16.mxu1 %v24492_v16  ;;  %v21270_v61 = vld [vmem:[#allocation12 + $0xd2c] ss:$24 sps:$4 sm:$0xff]  }
 0x64e   :  { %15275 = vmatprep.subr.bf16.mxu1 %v21195_v3  ;;  %15746 = vmatprep.subr.bf16.mxu0 %v21204_v4  ;;  %v21261_v3 = vld [vmem:[#allocation12 + $0xe44] ss:$24 sps:$4 sm:$0xff]   ;;  %v21268_v4 = vld [vmem:[#allocation12 + $0xd28] ss:$24 sps:$4 sm:$0xff]  }
 0x650   :  { %15747 = vmatpush1.bf16.msra.mxu0 %v21202_v35  ;;  %v21259_v35 = vld [vmem:[#allocation12 + $0xe40] ss:$24 sps:$4 sm:$0xff]  }
 0x651   :  { %15276 = vmatpush1.bf16.msra.mxu1 %v21193_v36  ;;  %15748 = vmatprep.subr.bf16.mxu0 %v21210_v37  ;;  %v21276_v36 = vld [vmem:[#allocation12 + $0xd5c] ss:$24 sps:$4 sm:$0xff]  }
 0x652   :  { %15277 = vmatprep.subr.bf16.mxu1 %v21201_v31  ;;  %v21267_v37 = vld [vmem:[#allocation12 + $0xe74] ss:$24 sps:$4 sm:$0xff]   ;;  %v21274_v31 = vld [vmem:[#allocation12 + $0xd58] ss:$24 sps:$4 sm:$0xff]  }
 0x654   :  { %15749 = vmatpush1.bf16.msra.mxu0 %v21208_v10  ;;  %v21265_v10 = vld [vmem:[#allocation12 + $0xe70] ss:$24 sps:$4 sm:$0xff]  }
 0x655   :  { %15278 = vmatpush1.bf16.msra.mxu1 %v21199_v8  ;;  %15750 = vmatprep.subr.bf16.mxu0 %v21216_v11  ;;  %v21282_v8 = vld [vmem:[#allocation12 + $0xd8c] ss:$24 sps:$4 sm:$0xff]  }
 0x656   :  { %15279 = vmatprep.subr.bf16.mxu1 %v21207_v13  ;;  %v21273_v11 = vld [vmem:[#allocation12 + $0xea4] ss:$24 sps:$4 sm:$0xff]   ;;  %v8049_v13 = vcombine.high %v24480_v49, %v24480_v49 }
 0x658   :  { %15751 = vmatpush1.bf16.msra.mxu0 %v21214_v52  ;;  %v21280_v52 = vld [vmem:[#allocation12 + $0xd88] ss:$24 sps:$4 sm:$0xff]  }
 0x659   :  { %15280 = vmatpush1.bf16.msra.mxu1 %v21205_v14  ;;  %15752 = vmatprep.subr.bf16.mxu0 %v21222_v15  ;;  %v21271_v14 = vld [vmem:[#allocation12 + $0xea0] ss:$24 sps:$4 sm:$0xff]   ;;  %v21289_v15 = vld [vmem:[#allocation12 + $0xdbc] ss:$24 sps:$4 sm:$0xff]  }
 0x65a   :  { %15281 = vmatprep.subr.bf16.mxu1 %v21213_v17  ;;  %v21279_v17 = vld [vmem:[#allocation12 + $0xed4] ss:$24 sps:$4 sm:$0xff]  }
 0x65c   :  { %15753 = vmatpush1.bf16.msra.mxu0 %v21220_v0  ;;  %v24501_v0 = vrot.slane %v8049_v13, %v23801_v58  ;;  %v21349_v13 = vld [vmem:[#allocation12 + $0xf9c] ss:$24 sps:$4 sm:$0xff]  }
 0x65d   :  { %15282 = vmatpush1.bf16.msra.mxu1 %v21211_v62  ;;  %15754 = vmatprep.subr.bf16.mxu0 %v21228_v20  ;;  %v21287_v62 = vld [vmem:[#allocation12 + $0xdb8] ss:$24 sps:$4 sm:$0xff]  }
 0x65e   :  { %15283 = vmatprep.subr.bf16.mxu1 %v21219_v21  ;;  %v21277_v20 = vld [vmem:[#allocation12 + $0xed0] ss:$24 sps:$4 sm:$0xff]   ;;  %v21295_v21 = vld [vmem:[#allocation12 + $0xdec] ss:$24 sps:$4 sm:$0xff]   ;;  %v8065_v49 = vcombine.high %v24501_v0, %v24501_v0 }
 0x660   :  { %15755 = vmatpush1.bf16.msra.mxu0 %v21226_v23  ;;  %v21285_v23 = vld [vmem:[#allocation12 + $0xf04] ss:$24 sps:$4 sm:$0xff]  }
 0x661   :  { %15284 = vmatpush1.bf16.msra.mxu1 %v21217_v24  ;;  %15765 = vmatprep.subr.bf16.mxu0 %v21234_v28  ;;  %v21293_v24 = vld [vmem:[#allocation12 + $0xde8] ss:$24 sps:$4 sm:$0xff]  }
 0x662   :  { %15285 = vmatprep.subr.bf16.mxu1 %v21225_v54  ;;  %v21283_v28 = vld [vmem:[#allocation12 + $0xf00] ss:$24 sps:$4 sm:$0xff]   ;;  %v24507_v54 = vpack.c.bf16 %v24484_v6, %v24484_v6 }
 0x663   :  { %15757 = vmatmul.mubr.bf16.vlgmr.msra.gmra.mrb[28].mxu0 %v24490_v63  ;;  %v21305_v6 = vld [vmem:[#allocation12 + $0xe48] ss:$24 sps:$4 sm:$0xff]  }
 0x664   :  { %15766 = vmatpush1.bf16.msra.mxu0 %v21232_v9  ;;  %15797 = vmatprep.mubr.bf16.mxu0 %v24492_v16  ;;  %v21292_v9 = vld [vmem:[#allocation12 + $0xf34] ss:$24 sps:$4 sm:$0xff]  }
 0x665   :  { %15286 = vmatpush1.bf16.msra.mxu1 %v21223_v2  ;;  %15767 = vmatprep.subr.bf16.mxu0 %v21240_v29  ;;  %v21301_v2 = vld [vmem:[#allocation12 + $0xe1c] ss:$24 sps:$4 sm:$0xff]   ;;  %v24509_v29 = vpack.c.bf16 %v8065_v49, %v8065_v49 }
 0x666   :  { %15287 = vmatprep.subr.bf16.mxu1 %v21231_v41  ;;  %v21299_v41 = vld [vmem:[#allocation12 + $0xe18] ss:$24 sps:$4 sm:$0xff]   ;;  %v21352_v49 = vld [vmem:[#allocation12 + $0x1114] ss:$24 sps:$4 sm:$0xff]  }
 0x668   :  { %15768 = vmatpush1.bf16.msra.mxu0 %v21238_v30  ;;  %v21290_v30 = vld [vmem:[#allocation12 + $0xf30] ss:$24 sps:$4 sm:$0xff]  }
 0x669   :  { %15288 = vmatpush1.bf16.msra.mxu1 %v21229_v27  ;;  %15769 = vmatprep.subr.bf16.mxu0 %v21246_v5  ;;  %v21307_v27 = vld [vmem:[#allocation12 + $0xe4c] ss:$24 sps:$4 sm:$0xff]  }
 0x66a   :  { %15289 = vmatprep.subr.bf16.mxu1 %v21237_v46  ;;  %v21298_v5 = vld [vmem:[#allocation12 + $0xf64] ss:$24 sps:$4 sm:$0xff]   ;;  %v21296_v46 = vld [vmem:[#allocation12 + $0xf60] ss:$24 sps:$4 sm:$0xff]  }
 0x66c   :  { %15770 = vmatpush1.bf16.msra.mxu0 %v21244_v19  ;;  %v21313_v19 = vld [vmem:[#allocation12 + $0xe7c] ss:$24 sps:$4 sm:$0xff]  }
 0x66d   :  { %15290 = vmatpush1.bf16.msra.mxu1 %v21235_v1  ;;  %15771 = vmatprep.subr.bf16.mxu0 %v21252_v42  ;;  %v21304_v1 = vld [vmem:[#allocation12 + $0xf94] ss:$24 sps:$4 sm:$0xff]   ;;  %v21311_v42 = vld [vmem:[#allocation12 + $0xe78] ss:$24 sps:$4 sm:$0xff]  }
 0x66e   :  { %15291 = vmatprep.subr.bf16.mxu1 %v21243_v48  ;;  %v21302_v48 = vld [vmem:[#allocation12 + $0xf90] ss:$24 sps:$4 sm:$0xff]  }
 0x670   :  { %15772 = vmatpush1.bf16.msra.mxu0 %v21250_v47  ;;  %v21319_v47 = vld [vmem:[#allocation12 + $0xeac] ss:$24 sps:$4 sm:$0xff]  }
 0x671   :  { %15292 = vmatpush1.bf16.msra.mxu1 %v21241_v18  ;;  %15773 = vmatprep.subr.bf16.mxu0 %v21258_v25  ;;  %v21310_v18 = vld [vmem:[#allocation12 + $0xfc4] ss:$24 sps:$4 sm:$0xff]   ;;  %v21317_v25 = vld [vmem:[#allocation12 + $0xea8] ss:$24 sps:$4 sm:$0xff]  }
 0x672   :  { %15293 = vmatprep.subr.bf16.mxu1 %v21249_v26  ;;  %v21308_v26 = vld [vmem:[#allocation12 + $0xfc0] ss:$24 sps:$4 sm:$0xff]  }
 0x674   :  { %15774 = vmatpush1.bf16.msra.mxu0 %v21256_v12  ;;  %v21325_v12 = vld [vmem:[#allocation12 + $0xedc] ss:$24 sps:$4 sm:$0xff]  }
 0x675   :  { %15294 = vmatpush1.bf16.msra.mxu1 %v21247_v32  ;;  %15775 = vmatprep.subr.bf16.mxu0 %v21264_v53  ;;  %v21316_v32 = vld [vmem:[#allocation12 + $0xff4] ss:$24 sps:$4 sm:$0xff]   ;;  %v21323_v53 = vld [vmem:[#allocation12 + $0xed8] ss:$24 sps:$4 sm:$0xff]  }
 0x676   :  { %15295 = vmatprep.subr.bf16.mxu1 %v21255_v34  ;;  %v21314_v34 = vld [vmem:[#allocation12 + $0xff0] ss:$24 sps:$4 sm:$0xff]  }
 0x678   :  { %15776 = vmatpush1.bf16.msra.mxu0 %v21262_v55  ;;  %v21331_v55 = vld [vmem:[#allocation12 + $0xf0c] ss:$24 sps:$4 sm:$0xff]  }
 0x679   :  { %15296 = vmatpush1.bf16.msra.mxu1 %v21253_v57  ;;  %15777 = vmatprep.subr.bf16.mxu0 %v21270_v61  ;;  %v21322_v57 = vld [vmem:[#allocation12 + $0x1024] ss:$24 sps:$4 sm:$0xff]   ;;  %v21329_v61 = vld [vmem:[#allocation12 + $0xf08] ss:$24 sps:$4 sm:$0xff]  }
 0x67a   :  { %15297 = vmatprep.subr.bf16.mxu1 %v21261_v3  ;;  %v21320_v3 = vld [vmem:[#allocation12 + $0x1020] ss:$24 sps:$4 sm:$0xff]  }
 0x67c   :  { %15778 = vmatpush1.bf16.msra.mxu0 %v21268_v4  ;;  %v21337_v4 = vld [vmem:[#allocation12 + $0xf3c] ss:$24 sps:$4 sm:$0xff]  }
 0x67d   :  { %15298 = vmatpush1.bf16.msra.mxu1 %v21259_v35  ;;  %15779 = vmatprep.subr.bf16.mxu0 %v21276_v36  ;;  %v21328_v35 = vld [vmem:[#allocation12 + $0x1054] ss:$24 sps:$4 sm:$0xff]   ;;  %v21335_v36 = vld [vmem:[#allocation12 + $0xf38] ss:$24 sps:$4 sm:$0xff]  }
 0x67e   :  { %15299 = vmatprep.subr.bf16.mxu1 %v21267_v37  ;;  %v21326_v37 = vld [vmem:[#allocation12 + $0x1050] ss:$24 sps:$4 sm:$0xff]  }
 0x680   :  { %15780 = vmatpush1.bf16.msra.mxu0 %v21274_v31  ;;  %v21343_v31 = vld [vmem:[#allocation12 + $0xf6c] ss:$24 sps:$4 sm:$0xff]  }
 0x681   :  { %15300 = vmatpush1.bf16.msra.mxu1 %v21265_v10  ;;  %15781 = vmatprep.subr.bf16.mxu0 %v21282_v8  ;;  %v21334_v10 = vld [vmem:[#allocation12 + $0x1084] ss:$24 sps:$4 sm:$0xff]   ;;  %v21341_v8 = vld [vmem:[#allocation12 + $0xf68] ss:$24 sps:$4 sm:$0xff]  }
 0x682   :  { %15301 = vmatprep.subr.bf16.mxu1 %v21273_v11  ;;  %v21332_v11 = vld [vmem:[#allocation12 + $0x1080] ss:$24 sps:$4 sm:$0xff]  }
 0x684   :  { %15782 = vmatpush1.bf16.msra.mxu0 %v21280_v52  ;;  %v21340_v52 = vld [vmem:[#allocation12 + $0x10b4] ss:$24 sps:$4 sm:$0xff]  }
 0x685   :  { %15302 = vmatpush1.bf16.msra.mxu1 %v21271_v14  ;;  %15783 = vmatprep.subr.bf16.mxu0 %v21289_v15  ;;  %v21347_v14 = vld [vmem:[#allocation12 + $0xf98] ss:$24 sps:$4 sm:$0xff]  }
 0x686   :  { %15303 = vmatprep.subr.bf16.mxu1 %v21279_v17  ;;  %v21338_v15 = vld [vmem:[#allocation12 + $0x10b0] ss:$24 sps:$4 sm:$0xff]   ;;  %v21355_v17 = vld [vmem:[#allocation12 + $0xfcc] ss:$24 sps:$4 sm:$0xff]  }
 0x688   :  { %15784 = vmatpush1.bf16.msra.mxu0 %v21287_v62  ;;  %v21346_v62 = vld [vmem:[#allocation12 + $0x10e4] ss:$24 sps:$4 sm:$0xff]  }
 0x689   :  { %15304 = vmatpush1.bf16.msra.mxu1 %v21277_v20  ;;  %15785 = vmatprep.subr.bf16.mxu0 %v21295_v21  ;;  %v21353_v20 = vld [vmem:[#allocation12 + $0xfc8] ss:$24 sps:$4 sm:$0xff]  }
 0x68a   :  { %15314 = vmatprep.subr.bf16.mxu1 %v21285_v23  ;;  %v21344_v21 = vld [vmem:[#allocation12 + $0x10e0] ss:$24 sps:$4 sm:$0xff]   ;;  %v21361_v23 = vld [vmem:[#allocation12 + $0xffc] ss:$24 sps:$4 sm:$0xff]  }
 0x68c   :  { %15306 = vmatmul.mubr.bf16.vlgmr.msra.gmra.mrb[12].mxu1 %v24507_v54  ;;  %15786 = vmatpush1.bf16.msra.mxu0 %v21293_v24  ;;  %v21359_v24 = vld [vmem:[#allocation12 + $0xff8] ss:$24 sps:$4 sm:$0xff]  }
 0x68d   :  { %15315 = vmatpush1.bf16.msra.mxu1 %v21283_v28  ;;  %15346 = vmatprep.mubr.bf16.mxu1 %v24509_v29  ;;  %v21350_v28 = vld [vmem:[#allocation12 + $0x1110] ss:$24 sps:$4 sm:$0xff]  }
 0x68e   :  { %15316 = vmatprep.subr.bf16.mxu1 %v21292_v9  ;;  %15787 = vmatprep.subr.bf16.mxu0 %v21301_v2  ;;  %v21367_v9 = vld [vmem:[#allocation12 + $0x102c] ss:$24 sps:$4 sm:$0xff]  }
 0x68f   :  { %v21358_v2 = vld [vmem:[#allocation12 + $0x1144] ss:$24 sps:$4 sm:$0xff]  }
 0x690   :  { %15788 = vmatpush1.bf16.msra.mxu0 %v21299_v41  ;;  %v21365_v41 = vld [vmem:[#allocation12 + $0x1028] ss:$24 sps:$4 sm:$0xff]  }
 0x691   :  { %15317 = vmatpush1.bf16.msra.mxu1 %v21290_v30  ;;  %15789 = vmatprep.subr.bf16.mxu0 %v21307_v27  ;;  %v21356_v30 = vld [vmem:[#allocation12 + $0x1140] ss:$24 sps:$4 sm:$0xff]   ;;  %v21373_v27 = vld [vmem:[#allocation12 + $0x105c] ss:$24 sps:$4 sm:$0xff]  }
 0x692   :  { %15318 = vmatprep.subr.bf16.mxu1 %v21298_v5  ;;  %v21364_v5 = vld [vmem:[#allocation12 + $0x1174] ss:$24 sps:$4 sm:$0xff]  }
 0x694   :  { %15790 = vmatpush1.bf16.msra.mxu0 %v21305_v6  ;;  %v21371_v6 = vld [vmem:[#allocation12 + $0x1058] ss:$24 sps:$4 sm:$0xff]  }
 0x695   :  { %15319 = vmatpush1.bf16.msra.mxu1 %v21296_v46  ;;  %15791 = vmatprep.subr.bf16.mxu0 %v21313_v19  ;;  %v21362_v46 = vld [vmem:[#allocation12 + $0x1170] ss:$24 sps:$4 sm:$0xff]   ;;  %v21379_v19 = vld [vmem:[#allocation12 + $0x108c] ss:$24 sps:$4 sm:$0xff]  }
 0x696   :  { %15320 = vmatprep.subr.bf16.mxu1 %v21304_v1  ;;  %v21370_v1 = vld [vmem:[#allocation12 + $0x11a4] ss:$24 sps:$4 sm:$0xff]  }
 0x698   :  { %15792 = vmatpush1.bf16.msra.mxu0 %v21311_v42  ;;  %v21377_v42 = vld [vmem:[#allocation12 + $0x1088] ss:$24 sps:$4 sm:$0xff]  }
 0x699   :  { %15321 = vmatpush1.bf16.msra.mxu1 %v21302_v48  ;;  %15793 = vmatprep.subr.bf16.mxu0 %v21319_v47  ;;  %v21368_v48 = vld [vmem:[#allocation12 + $0x11a0] ss:$24 sps:$4 sm:$0xff]   ;;  %v21382_v47 = vld [vmem:[#allocation12 + $0x10bc] ss:$24 sps:$4 sm:$0xff]  }
 0x69a   :  { %15322 = vmatprep.subr.bf16.mxu1 %v21310_v18  ;;  %v21376_v18 = vld [vmem:[#allocation12 + $0x11d4] ss:$24 sps:$4 sm:$0xff]  }
 0x69c   :  { %15794 = vmatpush1.bf16.msra.mxu0 %v21317_v25  ;;  %v21380_v25 = vld [vmem:[#allocation12 + $0x10b8] ss:$24 sps:$4 sm:$0xff]  }
 0x69d   :  { %15323 = vmatpush1.bf16.msra.mxu1 %v21308_v26  ;;  %15795 = vmatprep.subr.bf16.mxu0 %v21325_v12  ;;  %v21374_v26 = vld [vmem:[#allocation12 + $0x11d0] ss:$24 sps:$4 sm:$0xff]   ;;  %v21385_v12 = vld [vmem:[#allocation12 + $0x10ec] ss:$24 sps:$4 sm:$0xff]  }
 0x69e   :  { %15324 = vmatprep.subr.bf16.mxu1 %v21316_v32  ;;  %v21403_v32 = vld [vmem:[#allocation12 + $0x1204] ss:$24 sps:$4 sm:$0xff]  }
 0x6a0   :  { %15796 = vmatpush1.bf16.msra.mxu0 %v21323_v53  ;;  %v21383_v53 = vld [vmem:[#allocation12 + $0x10e8] ss:$24 sps:$4 sm:$0xff]  }
 0x6a1   :  { %15325 = vmatpush1.bf16.msra.mxu1 %v21314_v34  ;;  %15806 = vmatprep.subr.bf16.mxu0 %v21331_v55  ;;  %v21388_v34 = vld [vmem:[#allocation12 + $0x111c] ss:$24 sps:$4 sm:$0xff]   ;;  %v21401_v55 = vld [vmem:[#allocation12 + $0x1200] ss:$24 sps:$4 sm:$0xff]  }
 0x6a2   :  { %15326 = vmatprep.subr.bf16.mxu1 %v21322_v57  ;;  %v24517_v57 = vpack.c.bf16 %v24501_v0, %v24501_v0  ;;  %v21413_v0 = vld [vmem:[#allocation12 + $0x1260] ss:$24 sps:$4 sm:$0xff]  }
 0x6a3   :  { %15798 = vmatmul.mubr.bf16.vlgmr.msra.gmra.mrb[28].mxu0 %v24507_v54 }
 0x6a4   :  { %15807 = vmatpush1.bf16.msra.mxu0 %v21329_v61  ;;  %15838 = vmatprep.mubr.bf16.mxu0 %v24509_v29  ;;  %v21409_v61 = vld [vmem:[#allocation12 + $0x1234] ss:$24 sps:$4 sm:$0xff]  }
 0x6a5   :  { %15327 = vmatpush1.bf16.msra.mxu1 %v21320_v3  ;;  %15808 = vmatprep.subr.bf16.mxu0 %v21337_v4  ;;  %v21386_v3 = vld [vmem:[#allocation12 + $0x1118] ss:$24 sps:$4 sm:$0xff]  }
 0x6a6   :  { %15328 = vmatprep.subr.bf16.mxu1 %v21328_v35  ;;  %v21391_v35 = vld [vmem:[#allocation12 + $0x114c] ss:$24 sps:$4 sm:$0xff]  }
 0x6a8   :  { %15809 = vmatpush1.bf16.msra.mxu0 %v21335_v36  ;;  %v21407_v36 = vld [vmem:[#allocation12 + $0x1230] ss:$24 sps:$4 sm:$0xff]  }
 0x6a9   :  { %15329 = vmatpush1.bf16.msra.mxu1 %v21326_v37  ;;  %15810 = vmatprep.subr.bf16.mxu0 %v21343_v31  ;;  %v21415_v37 = vld [vmem:[#allocation12 + $0x1264] ss:$24 sps:$4 sm:$0xff]   ;;  %v21389_v31 = vld [vmem:[#allocation12 + $0x1148] ss:$24 sps:$4 sm:$0xff]  }
 0x6aa   :  { %15330 = vmatprep.subr.bf16.mxu1 %v21334_v10  ;;  %v21394_v10 = vld [vmem:[#allocation12 + $0x117c] ss:$24 sps:$4 sm:$0xff]  }
 0x6ac   :  { %15811 = vmatpush1.bf16.msra.mxu0 %v21341_v8  ;;  %v21421_v8 = vld [vmem:[#allocation12 + $0x1294] ss:$24 sps:$4 sm:$0xff]  }
 0x6ad   :  { %15331 = vmatpush1.bf16.msra.mxu1 %v21332_v11  ;;  %15812 = vmatprep.subr.bf16.mxu0 %v21349_v13  ;;  %v21392_v11 = vld [vmem:[#allocation12 + $0x1178] ss:$24 sps:$4 sm:$0xff]   ;;  %v21397_v13 = vld [vmem:[#allocation12 + $0x11ac] ss:$24 sps:$4 sm:$0xff]  }
 0x6ae   :  { %15332 = vmatprep.subr.bf16.mxu1 %v21340_v52  ;;  %v21419_v52 = vld [vmem:[#allocation12 + $0x1290] ss:$24 sps:$4 sm:$0xff]  }
 0x6b0   :  { %15813 = vmatpush1.bf16.msra.mxu0 %v21347_v14  ;;  %v21427_v14 = vld [vmem:[#allocation12 + $0x12c4] ss:$24 sps:$4 sm:$0xff]  }
 0x6b1   :  { %15333 = vmatpush1.bf16.msra.mxu1 %v21338_v15  ;;  %15814 = vmatprep.subr.bf16.mxu0 %v21355_v17  ;;  %v21395_v17 = vld [vmem:[#allocation12 + $0x11a8] ss:$24 sps:$4 sm:$0xff]  }
 0x6b2   :  { %15334 = vmatprep.subr.bf16.mxu1 %v21346_v62 }
 0x6b4   :  { %15815 = vmatpush1.bf16.msra.mxu0 %v21353_v20  ;;  %v21400_v20 = vld [vmem:[#allocation12 + $0x11dc] ss:$24 sps:$4 sm:$0xff]  }
 0x6b5   :  { %15335 = vmatpush1.bf16.msra.mxu1 %v21344_v21  ;;  %15816 = vmatprep.subr.bf16.mxu0 %v21361_v23  ;;  %v21425_v21 = vld [vmem:[#allocation12 + $0x12c0] ss:$24 sps:$4 sm:$0xff]  }
 0x6b6   :  { %15336 = vmatprep.subr.bf16.mxu1 %v21352_v49 }
 0x6b8   :  { %15817 = vmatpush1.bf16.msra.mxu0 %v21359_v24  ;;  %v21433_v24 = vld [vmem:[#allocation12 + $0x12f4] ss:$24 sps:$4 sm:$0xff]  }
 0x6b9   :  { %15337 = vmatpush1.bf16.msra.mxu1 %v21350_v28  ;;  %15818 = vmatprep.subr.bf16.mxu0 %v21367_v9  ;;  %v21398_v28 = vld [vmem:[#allocation12 + $0x11d8] ss:$24 sps:$4 sm:$0xff]   ;;  %v21406_v9 = vld [vmem:[#allocation12 + $0x120c] ss:$24 sps:$4 sm:$0xff]  }
 0x6ba   :  { %15338 = vmatprep.subr.bf16.mxu1 %v21358_v2  ;;  %v21431_v2 = vld [vmem:[#allocation12 + $0x12f0] ss:$24 sps:$4 sm:$0xff]  }
 0x6bc   :  { %15819 = vmatpush1.bf16.msra.mxu0 %v21365_v41  ;;  %v21439_v41 = vld [vmem:[#allocation12 + $0x1324] ss:$24 sps:$4 sm:$0xff]  }
 0x6bd   :  { %15339 = vmatpush1.bf16.msra.mxu1 %v21356_v30  ;;  %15820 = vmatprep.subr.bf16.mxu0 %v21373_v27  ;;  %v21412_v30 = vld [vmem:[#allocation12 + $0x123c] ss:$24 sps:$4 sm:$0xff]   ;;  %v21437_v27 = vld [vmem:[#allocation12 + $0x1320] ss:$24 sps:$4 sm:$0xff]  }
 0x6be   :  { %15340 = vmatprep.subr.bf16.mxu1 %v21364_v5  ;;  %v21445_v5 = vld [vmem:[#allocation12 + $0x1354] ss:$24 sps:$4 sm:$0xff]  }
 0x6c0   :  { %15821 = vmatpush1.bf16.msra.mxu0 %v21371_v6  ;;  %v21410_v6 = vld [vmem:[#allocation12 + $0x1238] ss:$24 sps:$4 sm:$0xff]  }
 0x6c1   :  { %15341 = vmatpush1.bf16.msra.mxu1 %v21362_v46  ;;  %15822 = vmatprep.subr.bf16.mxu0 %v21379_v19  ;;  %v21418_v46 = vld [vmem:[#allocation12 + $0x126c] ss:$24 sps:$4 sm:$0xff]   ;;  %v21443_v19 = vld [vmem:[#allocation12 + $0x1350] ss:$24 sps:$4 sm:$0xff]  }
 0x6c2   :  { %15342 = vmatprep.subr.bf16.mxu1 %v21370_v1  ;;  %v21451_v1 = vld [vmem:[#allocation12 + $0x1384] ss:$24 sps:$4 sm:$0xff]  }
 0x6c4   :  { %15823 = vmatpush1.bf16.msra.mxu0 %v21377_v42  ;;  %v21416_v42 = vld [vmem:[#allocation12 + $0x1268] ss:$24 sps:$4 sm:$0xff]  }
 0x6c5   :  { %15343 = vmatpush1.bf16.msra.mxu1 %v21368_v48  ;;  %15824 = vmatprep.subr.bf16.mxu0 %v21382_v47  ;;  %v21424_v48 = vld [vmem:[#allocation12 + $0x129c] ss:$24 sps:$4 sm:$0xff]   ;;  %v21449_v47 = vld [vmem:[#allocation12 + $0x1380] ss:$24 sps:$4 sm:$0xff]  }
 0x6c6   :  { %15344 = vmatprep.subr.bf16.mxu1 %v21376_v18  ;;  %v21457_v18 = vld [vmem:[#allocation12 + $0x13b4] ss:$24 sps:$4 sm:$0xff]  }
 0x6c8   :  { %15825 = vmatpush1.bf16.msra.mxu0 %v21380_v25  ;;  %v21422_v25 = vld [vmem:[#allocation12 + $0x1298] ss:$24 sps:$4 sm:$0xff]  }
 0x6c9   :  { %15345 = vmatpush1.bf16.msra.mxu1 %v21374_v26  ;;  %15826 = vmatprep.subr.bf16.mxu0 %v21385_v12  ;;  %v21430_v26 = vld [vmem:[#allocation12 + $0x12cc] ss:$24 sps:$4 sm:$0xff]   ;;  %v21455_v12 = vld [vmem:[#allocation12 + $0x13b0] ss:$24 sps:$4 sm:$0xff]  }
 0x6ca   :  { %15355 = vmatprep.subr.bf16.mxu1 %v21403_v32  ;;  %v21463_v32 = vld [vmem:[#allocation12 + $0x13e4] ss:$24 sps:$4 sm:$0xff]  }
 0x6cc   :  { %15347 = vmatmul.mubr.bf16.vlgmr.msra.gmra.mrb[12].mxu1 %v24517_v57  ;;  %15827 = vmatpush1.bf16.msra.mxu0 %v21383_v53  ;;  %v21428_v53 = vld [vmem:[#allocation12 + $0x12c8] ss:$24 sps:$4 sm:$0xff]  }
 0x6cd   :  { %v3246_v4 = vpop.xlane.xlu1 %3245  ;;  %15828 = vmatprep.subr.bf16.mxu0 %v21388_v34  ;;  %15356 = vmatpush1.bf16.msra.mxu1 %v21401_v55  ;;  %v21436_v34 = vld [vmem:[#allocation12 + $0x12fc] ss:$24 sps:$4 sm:$0xff]   ;;  %v21461_v55 = vld [vmem:[#allocation12 + $0x13e0] ss:$24 sps:$4 sm:$0xff]  }
 0x6ce   :  { %22633 = vrcp.f32 %v3246_v4  ;;  %15357 = vmatprep.subr.bf16.mxu1 %v21409_v61  ;;  %v21469_v61 = vld [vmem:[#allocation12 + $0x1414] ss:$24 sps:$4 sm:$0xff]  }
 0x6cf   :  { %v21442_v4 = vld [vmem:[#allocation12 + $0x132c] ss:$24 sps:$4 sm:$0xff]  }
 0x6d0   :  { %15829 = vmatpush1.bf16.msra.mxu0 %v21386_v3  ;;  %v21434_v3 = vld [vmem:[#allocation12 + $0x12f8] ss:$24 sps:$4 sm:$0xff]  }
 0x6d1   :  { %15830 = vmatprep.subr.bf16.mxu0 %v21391_v35  ;;  %15358 = vmatpush1.bf16.msra.mxu1 %v21407_v36  ;;  %v21467_v35 = vld [vmem:[#allocation12 + $0x1410] ss:$24 sps:$4 sm:$0xff]   ;;  %v21475_v36 = vld [vmem:[#allocation12 + $0x1444] ss:$24 sps:$4 sm:$0xff]  }
 0x6d2   :  { %15359 = vmatprep.subr.bf16.mxu1 %v21415_v37  ;;  %v21440_v37 = vld [vmem:[#allocation12 + $0x1328] ss:$24 sps:$4 sm:$0xff]  }
 0x6d4   :  { %15831 = vmatpush1.bf16.msra.mxu0 %v21389_v31  ;;  %v21448_v31 = vld [vmem:[#allocation12 + $0x135c] ss:$24 sps:$4 sm:$0xff]  }
 0x6d5   :  { %15832 = vmatprep.subr.bf16.mxu0 %v21394_v10  ;;  %15360 = vmatpush1.bf16.msra.mxu1 %v21413_v0  ;;  %v21473_v10 = vld [vmem:[#allocation12 + $0x1440] ss:$24 sps:$4 sm:$0xff]   ;;  %v21481_v0 = vld [vmem:[#allocation12 + $0x1474] ss:$24 sps:$4 sm:$0xff]  }
 0x6d6   :  { %15361 = vmatprep.subr.bf16.mxu1 %v21421_v8  ;;  %v21446_v8 = vld [vmem:[#allocation12 + $0x1358] ss:$24 sps:$4 sm:$0xff]  }
 0x6d8   :  { %v22634_v15 = vpop.eup %22633  ;;  %15833 = vmatpush1.bf16.msra.mxu0 %v21392_v11  ;;  %v21454_v11 = vld [vmem:[#allocation12 + $0x138c] ss:$24 sps:$4 sm:$0xff]  }
 0x6d9   :  { %15834 = vmatprep.subr.bf16.mxu0 %v21397_v13  ;;  %v3248_v62 = vmul.f32 %v22634_v15, %v24476_v38  ;;  %15362 = vmatpush1.bf16.msra.mxu1 %v21419_v52  ;;  %v21404_v38 = vld [vmem:[#allocation12 + $0x1208] ss:$24 sps:$4 sm:$0xff]   ;;  %v21487_v52 = vld [vmem:[#allocation12 + $0x14a4] ss:$24 sps:$4 sm:$0xff]  }
 0x6da   :  { %15363 = vmatprep.subr.bf16.mxu1 %v21427_v14  ;;  %v21479_v13 = vld [vmem:[#allocation12 + $0x1470] ss:$24 sps:$4 sm:$0xff]   ;;  %v21460_v15 = vld [vmem:[#allocation12 + $0x13bc] ss:$24 sps:$4 sm:$0xff]  }
 0x6db   :  { %v3259_v23 = vrot.slane %v3248_v62, %v23772_v40  ;;  %v3252_v49 = vrot.slane %v3248_v62, %v23769_v39  ;;  %v21452_v14 = vld [vmem:[#allocation12 + $0x1388] ss:$24 sps:$4 sm:$0xff]   ;;  %v21493_v62 = vld [vmem:[#allocation12 + $0x14d4] ss:$24 sps:$4 sm:$0xff]  }
 0x6dc   :  { %15835 = vmatpush1.bf16.msra.mxu0 %v21395_v17  ;;  %v21485_v17 = vld [vmem:[#allocation12 + $0x14a0] ss:$24 sps:$4 sm:$0xff]  }
 0x6dd   :  { %3261 = vbcast.lane.b32.xlu0 %v3259_v23, 256  ;;  %3254 = vbcast.lane.b32.xlu1 %v3252_v49, 256  ;;  %v21491_v23 = vld [vmem:[#allocation12 + $0x14d0] ss:$24 sps:$4 sm:$0xff]   ;;  %v21499_v49 = vld [vmem:[#allocation12 + $0x1504] ss:$24 sps:$4 sm:$0xff]  }
 0x6de   :  { %15836 = vmatprep.subr.bf16.mxu0 %v21400_v20  ;;  %15364 = vmatpush1.bf16.msra.mxu1 %v21425_v21  ;;  %v21458_v20 = vld [vmem:[#allocation12 + $0x13b8] ss:$24 sps:$4 sm:$0xff]   ;;  %v21466_v21 = vld [vmem:[#allocation12 + $0x13ec] ss:$24 sps:$4 sm:$0xff]  }
 0x6df   :  { %15365 = vmatprep.subr.bf16.mxu1 %v21433_v24  ;;  %v21464_v24 = vld [vmem:[#allocation12 + $0x13e8] ss:$24 sps:$4 sm:$0xff]  }
 0x6e0   :  { %15837 = vmatpush1.bf16.msra.mxu0 %v21398_v28  ;;  %v21472_v28 = vld [vmem:[#allocation12 + $0x141c] ss:$24 sps:$4 sm:$0xff]  }
 0x6e1   :  { %15847 = vmatprep.subr.bf16.mxu0 %v21406_v9  ;;  %v21470_v9 = vld [vmem:[#allocation12 + $0x1418] ss:$24 sps:$4 sm:$0xff]  }
 0x6e2   :  { %15366 = vmatpush1.bf16.msra.mxu1 %v21431_v2  ;;  %v21478_v2 = vld [vmem:[#allocation12 + $0x144c] ss:$24 sps:$4 sm:$0xff]  }
 0x6e3   :  { %15839 = vmatmul.mubr.bf16.vlgmr.msra.gmra.mrb[28].mxu0 %v24517_v57  ;;  %15367 = vmatprep.subr.bf16.mxu1 %v21439_v41  ;;  %v21476_v41 = vld [vmem:[#allocation12 + $0x1448] ss:$24 sps:$4 sm:$0xff]  }
 0x6e4   :  { %15848 = vmatpush1.bf16.msra.mxu0 %v21404_v38  ;;  %v21484_v38 = vld [vmem:[#allocation12 + $0x147c] ss:$24 sps:$4 sm:$0xff]  }
 0x6e5   :  { %15849 = vmatprep.subr.bf16.mxu0 %v21412_v30  ;;  %v21482_v30 = vld [vmem:[#allocation12 + $0x1478] ss:$24 sps:$4 sm:$0xff]  }
 0x6e6   :  { %15368 = vmatpush1.bf16.msra.mxu1 %v21437_v27  ;;  %v21490_v27 = vld [vmem:[#allocation12 + $0x14ac] ss:$24 sps:$4 sm:$0xff]  }
 0x6e7   :  { %15369 = vmatprep.subr.bf16.mxu1 %v21445_v5  ;;  %v21488_v5 = vld [vmem:[#allocation12 + $0x14a8] ss:$24 sps:$4 sm:$0xff]  }
 0x6e8   :  { %15850 = vmatpush1.bf16.msra.mxu0 %v21410_v6  ;;  %v21496_v6 = vld [vmem:[#allocation12 + $0x14dc] ss:$24 sps:$4 sm:$0xff]  }
 0x6e9   :  { %15851 = vmatprep.subr.bf16.mxu0 %v21418_v46  ;;  %v21494_v46 = vld [vmem:[#allocation12 + $0x14d8] ss:$24 sps:$4 sm:$0xff]  }
 0x6ea   :  { %15370 = vmatpush1.bf16.msra.mxu1 %v21443_v19  ;;  %v21502_v19 = vld [vmem:[#allocation12 + $0x150c] ss:$24 sps:$4 sm:$0xff]  }
 0x6eb   :  { %15371 = vmatprep.subr.bf16.mxu1 %v21451_v1 }
 0x6ec   :  { %15852 = vmatpush1.bf16.msra.mxu0 %v21416_v42  ;;  %v22650_v42 = vld [vmem:[%s24734_s0 + $0x30] sm:$0x3f] }
 0x6ed   :  { %15853 = vmatprep.subr.bf16.mxu0 %v21424_v48 }
 0x6ee   :  { %15372 = vmatpush1.bf16.msra.mxu1 %v21449_v47  ;;  %v22651_v47 = vld [vmem:[%s24734_s0 + $0x38] sm:$0x3f] }
 0x6ef   :  { %15373 = vmatprep.subr.bf16.mxu1 %v21457_v18 }
 0x6f0   :  { %15854 = vmatpush1.bf16.msra.mxu0 %v21422_v25  ;;  %v22652_v25 = vld [vmem:[%s24734_s0 + $0x40] sm:$0x3f] }
 0x6f1   :  { %15855 = vmatprep.subr.bf16.mxu0 %v21430_v26 }
 0x6f2   :  { %15374 = vmatpush1.bf16.msra.mxu1 %v21455_v12  ;;  %v22653_v12 = vld [vmem:[%s24734_s0 + $0x48] sm:$0x3f] }
 0x6f3   :  { %15375 = vmatprep.subr.bf16.mxu1 %v21463_v32 }
 0x6f4   :  { %15856 = vmatpush1.bf16.msra.mxu0 %v21428_v53  ;;  %v22654_v53 = vld [vmem:[%s24734_s0 + $0x50] sm:$0x3f] }
 0x6f5   :  { %15857 = vmatprep.subr.bf16.mxu0 %v21436_v34 }
 0x6f6   :  { %15376 = vmatpush1.bf16.msra.mxu1 %v21461_v55  ;;  %v22655_v55 = vld [vmem:[%s24734_s0 + $0x58] sm:$0x3f] }
 0x6f7   :  { %15377 = vmatprep.subr.bf16.mxu1 %v21469_v61 }
 0x6f8   :  { %15858 = vmatpush1.bf16.msra.mxu0 %v21434_v3 }
 0x6f9   :  { %15859 = vmatprep.subr.bf16.mxu0 %v21442_v4 }
 0x6fa   :  { %15378 = vmatpush1.bf16.msra.mxu1 %v21467_v35 }
 0x6fb   :  { %15379 = vmatprep.subr.bf16.mxu1 %v21475_v36 }
 0x6fc   :  { %15860 = vmatpush1.bf16.msra.mxu0 %v21440_v37 }
 0x6fd   :  { %15861 = vmatprep.subr.bf16.mxu0 %v21448_v31 }
 0x6fe   :  { %15380 = vmatpush1.bf16.msra.mxu1 %v21473_v10 }
 0x6ff   :  { %15381 = vmatprep.subr.bf16.mxu1 %v21481_v0 }
 0x700   :  { %15862 = vmatpush1.bf16.msra.mxu0 %v21446_v8 }
 0x701   :  { %15863 = vmatprep.subr.bf16.mxu0 %v21454_v11 }
 0x702   :  { %15382 = vmatpush1.bf16.msra.mxu1 %v21479_v13 }
 0x703   :  { %15383 = vmatprep.subr.bf16.mxu1 %v21487_v52  ;;  %v22656_v52 = vld [vmem:[%s24734_s0] sm:$0x3f] }
 0x704   :  { %15864 = vmatpush1.bf16.msra.mxu0 %v21452_v14 }
 0x705   :  { %15865 = vmatprep.subr.bf16.mxu0 %v21460_v15  ;;  %v22657_v15 = vld [vmem:[%s24734_s0 + $0x8] sm:$0x3f] }
 0x706   :  { %15384 = vmatpush1.bf16.msra.mxu1 %v21485_v17 }
 0x707   :  { %15385 = vmatprep.subr.bf16.mxu1 %v21493_v62 }
 0x708   :  { %15866 = vmatpush1.bf16.msra.mxu0 %v21458_v20 }
 0x709   :  { %15867 = vmatprep.subr.bf16.mxu0 %v21466_v21 }
 0x70a   :  { %15386 = vmatpush1.bf16.msra.mxu1 %v21491_v23 }
 0x70b   :  { %15396 = vmatprep.subr.bf16.mxu1 %v21499_v49 }
 0x70c   :  { %15868 = vmatpush1.bf16.msra.mxu0 %v21464_v24 }
 0x70d   :  { %15869 = vmatprep.subr.bf16.mxu0 %v21472_v28  ;;  %v22658_v28 = vld [vmem:[%s24734_s0 + $0x10] sm:$0x3f] }
 0x710   :  { %15870 = vmatpush1.bf16.msra.mxu0 %v21470_v9 }
 0x711   :  { %15871 = vmatprep.subr.bf16.mxu0 %v21478_v2  ;;  %v22659_v2 = vld [vmem:[%s24734_s0 + $0x18] sm:$0x3f] }
 0x714   :  { %15872 = vmatpush1.bf16.msra.mxu0 %v21476_v41 }
 0x715   :  { %15873 = vmatprep.subr.bf16.mxu0 %v21484_v38 }
 0x718   :  { %15874 = vmatpush1.bf16.msra.mxu0 %v21482_v30 }
 0x719   :  { %15875 = vmatprep.subr.bf16.mxu0 %v21490_v27 }
 0x71c   :  { %15876 = vmatpush1.bf16.msra.mxu0 %v21488_v5 }
 0x71d   :  { %15877 = vmatprep.subr.bf16.mxu0 %v21496_v6 }
 0x720   :  { %15878 = vmatpush1.bf16.msra.mxu0 %v21494_v46 }
 0x721   :  { %15888 = vmatprep.subr.bf16.mxu0 %v21502_v19 }
 0x74f   :  { %v3262_v1 = vpop.permute.xlu0 %3261  ;;  %v3255_v3 = vpop.permute.xlu1 %3254 }
 0x750   :  { %v3269_v48 = vmul.f32 %v22650_v42, %v3262_v1  ;;  %v3270_v18 = vmul.f32 %v22651_v47, %v3262_v1  ;;  %v3271_v26 = vmul.f32 %v22652_v25, %v3262_v1  ;;  %v3272_v32 = vmul.f32 %v22653_v12, %v3262_v1 }
 0x751   :  { %v3273_v34 = vmul.f32 %v22654_v53, %v3262_v1  ;;  %v3274_v61 = vmul.f32 %v22655_v55, %v3262_v1  ;;  %v3263_v14 = vmul.f32 %v22656_v52, %v3255_v3  ;;  %v3264_v17 = vmul.f32 %v22657_v15, %v3255_v3 }
 0x752   :  { %v3317_v4 = vsel %vm3009_vm1, %v3269_v48, 0.0  ;;  %v3324_v35 = vsel %vm3009_vm1, %v3270_v18, 0.0  ;;  %v3331_v36 = vsel %vm3009_vm1, %v3271_v26, 0.0  ;;  %v3338_v37 = vsel %vm3009_vm1, %v3272_v32, 0.0 }
 0x753   :  { %v3318_v31 = vrot.slane %v3317_v4, 4  ;;  %v3325_v10 = vrot.slane %v3324_v35, 4  ;;  %v3332_v0 = vrot.slane %v3331_v36, 4  ;;  %v3339_v8 = vrot.slane %v3338_v37, 4 }
 0x754   :  { %v3345_v11 = vsel %vm3009_vm1, %v3273_v34, 0.0  ;;  %v3352_v13 = vsel %vm3009_vm1, %v3274_v61, 0.0  ;;  %v3265_v9 = vmul.f32 %v22658_v28, %v3255_v3  ;;  %v3266_v41 = vmul.f32 %v22659_v2, %v3255_v3 }
 0x755   :  { %v3319_v62 = vadd.f32 %v3318_v31, %v3317_v4  ;;  %v3326_v20 = vadd.f32 %v3325_v10, %v3324_v35  ;;  %v3333_v21 = vadd.f32 %v3332_v0, %v3331_v36  ;;  %v3340_v23 = vadd.f32 %v3339_v8, %v3338_v37  ;;  %v22660_v31 = vld [vmem:[%s24734_s0 + $0x20] sm:$0x3f] }
 0x756   :  { %v3346_v49 = vrot.slane %v3345_v11, 4  ;;  %v3353_v24 = vrot.slane %v3352_v13, 4  ;;  %v3275_v19 = vsel %vm3009_vm1, %v3263_v14, 0.0  ;;  %v3282_v1 = vsel %vm3009_vm1, %v3264_v17, 0.0 }
 0x757   :  { %v3320_v38 = vrot.slane %v3319_v62, 2  ;;  %v3327_v30 = vrot.slane %v3326_v20, 2  ;;  %v3334_v27 = vrot.slane %v3333_v21, 2  ;;  %v3341_v5 = vrot.slane %v3340_v23, 2 }
 0x758   :  { %v3347_v6 = vadd.f32 %v3346_v49, %v3345_v11  ;;  %v3354_v46 = vadd.f32 %v3353_v24, %v3352_v13  ;;  %v3276_v12 = vrot.slane %v3275_v19, 4  ;;  %v3283_v32 = vrot.slane %v3282_v1, 4 }
 0x759   :  { %v3321_v42 = vadd.f32 %v3320_v38, %v3319_v62  ;;  %v3328_v48 = vadd.f32 %v3327_v30, %v3326_v20  ;;  %v3335_v47 = vadd.f32 %v3334_v27, %v3333_v21  ;;  %v3342_v18 = vadd.f32 %v3341_v5, %v3340_v23  ;;  %v22661_v62 = vld [vmem:[%s24734_s0 + $0x28] sm:$0x3f]  ;;  %s22912_s0 = smov [#allocation18]  }
 0x75a   :  { %v3348_v25 = vrot.slane %v3347_v6, 2  ;;  %v3355_v26 = vrot.slane %v3354_v46, 2  ;;  %v3277_v4 = vadd.f32 %v3276_v12, %v3275_v19  ;;  %v3284_v35 = vadd.f32 %v3283_v32, %v3282_v1  ;;  %s17115_s25 = sshll.u32 %s22912_s0, 4  ;;  %s17116_s25 = int_to_ptr.vmem [resolvable:$true] %s17115_s25 }
 0x75b   :  { %v3322_v53 = vrot.slane %v3321_v42, 1  ;;  %v3329_v34 = vrot.slane %v3328_v48, 1  ;;  %v3336_v55 = vrot.slane %v3335_v47, 1  ;;  %v3343_v61 = vrot.slane %v3342_v18, 1  ;;  %s22861_s26 = scalar_lea.vmem %s17116_s25, 32  ;;  %p22866_p3 = scmp.lt.s32.totalorder %s17116_s25, %s17116_s25 }
 0x75c   :  { %v3349_v36 = vadd.f32 %v3348_v25, %v3347_v6  ;;  %v3356_v37 = vadd.f32 %v3355_v26, %v3354_v46  ;;  %v3267_v10 = vmul.f32 %v22660_v31, %v3255_v3  ;;  %v3278_v11 = vrot.slane %v3277_v4, 2  ;;  %p22862_p2 = scmp.ne.s32.totalorder %s17116_s25, %s22861_s26  ;;  %p22867_p4 = scmp.lt.s32.totalorder %s22861_s26, %s22861_s26 }
 0x75d   :  { %v3323_v0 = vadd.f32 %v3322_v53, %v3321_v42  ;;  %v3330_v8 = vadd.f32 %v3329_v34, %v3328_v48  ;;  %v3285_v13 = vrot.slane %v3284_v35, 2  ;;  %v3337_v52 = vadd.f32 %v3336_v55, %v3335_v47 }
 0x75e   :  { %v3344_v14 = vadd.f32 %v3343_v61, %v3342_v18  ;;  %v3289_v15 = vsel %vm3009_vm1, %v3265_v9, 0.0  ;;  %v3296_v17 = vsel %vm3009_vm1, %v3266_v41, 0.0  ;;  %v3268_v20 = vmul.f32 %v22661_v62, %v3255_v3  ;;  %p22868_p5 = por %p22867_p4, %p22866_p3 }
 0x75f   :  { %v3279_v21 = vadd.f32 %v3278_v11, %v3277_v4  ;;  %v3286_v23 = vadd.f32 %v3285_v13, %v3284_v35  ;;  %v3350_v49 = vrot.slane %v3349_v36, 1  ;;  %v3357_v24 = vrot.slane %v3356_v37, 1 }
 0x760   :  { %v3290_v28 = vrot.slane %v3289_v15, 4  ;;  %v3297_v2 = vrot.slane %v3296_v17, 4  ;;  %v7925_v38 = vcombine.low %v3323_v0, %v3330_v8  ;;  %v3303_v5 = vsel %vm3009_vm1, %v3267_v10, 0.0  ;;  %p22869_p6 = pnand %p22868_p5, %p22862_p2 }
 0x761   :  { %v3280_v30 = vrot.slane %v3279_v21, 1  ;;  %v3287_v27 = vrot.slane %v3286_v23, 1  ;;  %v7926_v6 = vcombine.low %v3337_v52, %v3344_v14  ;;  %v3304_v41 = vrot.slane %v3303_v5, 4 }
 0x762   :  { %v3291_v9 = vadd.f32 %v3290_v28, %v3289_v15  ;;  %v3298_v46 = vadd.f32 %v3297_v2, %v3296_v17  ;;  %v3310_v1 = vsel %vm3009_vm1, %v3268_v20, 0.0  ;;  %v3351_v18 = vadd.f32 %v3350_v49, %v3349_v36 }
 0x763   :  { %v3281_v19 = vadd.f32 %v3280_v30, %v3279_v21  ;;  %v3288_v42 = vadd.f32 %v3287_v27, %v3286_v23  ;;  %v3305_v47 = vadd.f32 %v3304_v41, %v3303_v5  ;;  %v3358_v25 = vadd.f32 %v3357_v24, %v3356_v37 }
 0x764   :  { %v3292_v3 = vrot.slane %v3291_v9, 2  ;;  %v3299_v48 = vrot.slane %v3298_v46, 2  ;;  %v7933_v26 = vrot.slane %v7925_v38, %v23801_v58  ;;  %v3311_v12 = vrot.slane %v3310_v1, 4 }
 0x765   :  { %v7940_v32 = vrot.slane %v7926_v6, %v23801_v58  ;;  %v3306_v55 = vrot.slane %v3305_v47, 2  ;;  %v7900_v10 = vcombine.low %v3281_v19, %v3288_v42  ;;  %v7942_v0 = vcombine.low %v3351_v18, %v3358_v25  ;;  %v21497_v18 = vld [vmem:[#allocation12 + $0x1500] ss:$24 sps:$4 sm:$0xff]  }
 0x766   :  { %v3293_v53 = vadd.f32 %v3292_v3, %v3291_v9  ;;  %v3300_v34 = vadd.f32 %v3299_v48, %v3298_v46  ;;  %v3312_v61 = vadd.f32 %v3311_v12, %v3310_v1  ;;  %v21500_v25 = vld [vmem:[#allocation12 + $0x1508] ss:$24 sps:$4 sm:$0xff]  }
 0x767   :  { %v3307_v31 = vadd.f32 %v3306_v55, %v3305_v47  ;;  %v7941_v11 = vcombine.low %v7933_v26, %v7940_v32  ;;  %v7908_v15 = vrot.slane %v7900_v10, %v23801_v58  ;;  %v7949_v17 = vrot.slane %v7942_v0, %v23801_v58  ;;  %v21503_v55 = vld [vmem:[#allocation12 + $0x1530] ss:$24 sps:$4 sm:$0xff]   ;;  %v21517_v0 = vld [vmem:[#allocation12 + $0x1594] ss:$24 sps:$4 sm:$0xff]  }
 0x768   :  { %v3294_v4 = vrot.slane %v3293_v53, 1  ;;  %v3301_v35 = vrot.slane %v3300_v34, 1  ;;  %v3313_v8 = vrot.slane %v3312_v61, 2  ;;  %v21512_v10 = vld [vmem:[#allocation12 + $0x1568] ss:$24 sps:$4 sm:$0xff]  }
 0x769   :  { %v3308_v36 = vrot.slane %v3307_v31, 1  ;;  %v7952_v21 = vrot.slane %v7941_v11, 7  ;;  %v7959_v28 = vrot.slane %v7949_v17, 7  ;;  %v21515_v11 = vld [vmem:[#allocation12 + $0x1590] ss:$24 sps:$4 sm:$0xff]  }
 0x76a   :  { %v3295_v13 = vadd.f32 %v3294_v4, %v3293_v53  ;;  %v3302_v52 = vadd.f32 %v3301_v35, %v3300_v34  ;;  %v3314_v37 = vadd.f32 %v3313_v8, %v3312_v61  ;;  %v21505_v53 = vld [vmem:[#allocation12 + $0x1534] ss:$24 sps:$4 sm:$0xff]   ;;  %v21506_v61 = vld [vmem:[#allocation12 + $0x1538] ss:$24 sps:$4 sm:$0xff]   ;;  %v21511_v4 = vld [vmem:[#allocation12 + $0x1564] ss:$24 sps:$4 sm:$0xff]  }
 0x76b   :  { %v3309_v62 = vadd.f32 %v3308_v36, %v3307_v31  ;;  %v21508_v34 = vld [vmem:[#allocation12 + $0x153c] ss:$24 sps:$4 sm:$0xff]   ;;  %v21514_v35 = vld [vmem:[#allocation12 + $0x156c] ss:$24 sps:$4 sm:$0xff]   ;;  %v21509_v31 = vld [vmem:[#allocation12 + $0x1560] ss:$24 sps:$4 sm:$0xff]  }
 0x76c   :  { %v7901_v14 = vcombine.low %v3295_v13, %v3302_v52  ;;  %v3315_v20 = vrot.slane %v3314_v37, 1  ;;  %v21520_v8 = vld [vmem:[#allocation12 + $0x159c] ss:$24 sps:$4 sm:$0xff]   ;;  %v21518_v13 = vld [vmem:[#allocation12 + $0x1598] ss:$24 sps:$4 sm:$0xff]  }
 0x76d   :  { %v21523_v52 = vld [vmem:[#allocation12 + $0x15c4] ss:$24 sps:$4 sm:$0xff]  }
 0x76e   :  { %v7915_v23 = vrot.slane %v7901_v14, %v23801_v58  ;;  %v3316_v49 = vadd.f32 %v3315_v20, %v3314_v37  ;;  %v21526_v36 = vld [vmem:[#allocation12 + $0x15cc] ss:$24 sps:$4 sm:$0xff]   ;;  %v21521_v37 = vld [vmem:[#allocation12 + $0x15c0] ss:$24 sps:$4 sm:$0xff]   ;;  %v21532_v17 = vld [vmem:[#allocation12 + $0x15fc] ss:$24 sps:$4 sm:$0xff]  }
 0x76f   :  { %v21524_v14 = vld [vmem:[#allocation12 + $0x15c8] ss:$24 sps:$4 sm:$0xff]   ;;  %v21530_v20 = vld [vmem:[#allocation12 + $0x15f8] ss:$24 sps:$4 sm:$0xff]  }
 0x770   :  { %v7916_v24 = vcombine.low %v7908_v15, %v7915_v23  ;;  %v7917_v2 = vcombine.low %v3309_v62, %v3316_v49  ;;  %v21529_v15 = vld [vmem:[#allocation12 + $0x15f4] ss:$24 sps:$4 sm:$0xff]   ;;  %v21527_v62 = vld [vmem:[#allocation12 + $0x15f0] ss:$24 sps:$4 sm:$0xff]   ;;  %v21533_v49 = vld [vmem:[#allocation12 + $0x1620] ss:$24 sps:$4 sm:$0xff]  }
 0x771   :  { %v21538_v23 = vld [vmem:[#allocation12 + $0x162c] ss:$24 sps:$4 sm:$0xff]  }
 0x772   :  { %v7953_v38 = vsel %vm3099_vm0, %v7952_v21, %v7916_v24  ;;  %v7924_v30 = vrot.slane %v7917_v2, %v23801_v58  ;;  %v21536_v24 = vld [vmem:[#allocation12 + $0x1628] ss:$24 sps:$4 sm:$0xff]   ;;  %v21544_v2 = vld [vmem:[#allocation12 + $0x165c] ss:$24 sps:$4 sm:$0xff]  }
 0x773   :  { %v7954_v27 = vsel %vm7836_vm4, %v7952_v21, %v7953_v38  ;;  %v21539_v38 = vld [vmem:[#allocation12 + $0x1650] ss:$24 sps:$4 sm:$0xff]  }
 0x774   :  { %v7955_v5 = vsel %vm7838_vm5, %v7952_v21, %v7954_v27  ;;  %v7960_v9 = vsel %vm3099_vm0, %v7959_v28, %v7924_v30  ;;  %v21542_v30 = vld [vmem:[#allocation12 + $0x1658] ss:$24 sps:$4 sm:$0xff]   ;;  %v21547_v27 = vld [vmem:[#allocation12 + $0x1684] ss:$24 sps:$4 sm:$0xff]  }
 0x775   :  { %v7956_v6 = vsel %vm7840_vm6, %v7952_v21, %v7955_v5  ;;  %v7961_v46 = vsel %vm7836_vm4, %v7959_v28, %v7960_v9  ;;  %v21535_v21 = vld [vmem:[#allocation12 + $0x1624] ss:$24 sps:$4 sm:$0xff]   ;;  %v21548_v9 = vld [vmem:[#allocation12 + $0x1688] ss:$24 sps:$4 sm:$0xff]  }
 0x776   :  { %v8073_v41 = vrot.slane %v7956_v6, %v23801_v58  ;;  %v8066_v19 = vcombine.high %v7956_v6, %v7956_v6  ;;  %v7962_v1 = vsel %vm7838_vm5, %v7959_v28, %v7961_v46  ;;  %v21550_v5 = vld [vmem:[#allocation12 + $0x168c] ss:$24 sps:$4 sm:$0xff]   ;;  %v21545_v6 = vld [vmem:[#allocation12 + $0x1680] ss:$24 sps:$4 sm:$0xff]  }
 0x777   :  { %v7963_v42 = vsel %vm7840_vm6, %v7959_v28, %v7962_v1  ;;  %v21541_v28 = vld [vmem:[#allocation12 + $0x1654] ss:$24 sps:$4 sm:$0xff]   ;;  %v21554_v1 = vld [vmem:[#allocation12 + $0x16b8] ss:$24 sps:$4 sm:$0xff]  }
 0x778   :  { %v8081_v3 = vcombine.high %v8073_v41, %v8073_v41  ;;  %v24588_v48 = vrot.slane %v8066_v19, %v23801_v58  ;;  %7967 = vst [vmem:[#allocation2 + $0x20] sm:$0xf] %v7963_v42  ;;  %v24594_v12 = vpack.c.bf16 %v8073_v41, %v8073_v41  ;;  %v21553_v46 = vld [vmem:[#allocation12 + $0x16b4] ss:$24 sps:$4 sm:$0xff]   ;;  %v21551_v19 = vld [vmem:[#allocation12 + $0x16b0] ss:$24 sps:$4 sm:$0xff]  }
 0x779   :  { %v21556_v41 = vld [vmem:[#allocation12 + $0x16bc] ss:$24 sps:$4 sm:$0xff]  }
 0x77a   :  { %v24590_v47 = vpack.c.bf16 %v8081_v3, %v8081_v3  ;;  %v8082_v26 = vcombine.high %v24588_v48, %v24588_v48  ;;  %v21559_v42 = vld [vmem:[#allocation12 + $0x16e4] ss:$24 sps:$4 sm:$0xff]  }
 0x77b   :  { %v21562_v3 = vld [vmem:[#allocation12 + $0x16ec] ss:$24 sps:$4 sm:$0xff]  }
 0x77c   :  { %15387 = vmatprep.mubr.bf16.mxu1 %v24590_v47  ;;  %15879 = vmatprep.mubr.bf16.mxu0 %v24590_v47  ;;  %v24598_v32 = vpack.c.bf16 %v8082_v26, %v8082_v26  ;;  %v21565_v26 = vld [vmem:[#allocation12 + $0x1714] ss:$24 sps:$4 sm:$0xff]  }
 0x77d   :  { %15388 = vmatmul.mubr.bf16.vlgmr.msra.gmra.mrb[12].mxu1 %v24594_v12  ;;  %15880 = vmatmul.mubr.bf16.vlgmr.msra.gmra.mrb[28].mxu0 %v24594_v12 }
 0x77e   :  { %15397 = vmatpush1.bf16.msra.mxu1 %v21497_v18  ;;  %15889 = vmatpush1.bf16.msra.mxu0 %v21500_v25  ;;  %v21557_v18 = vld [vmem:[#allocation12 + $0x16e0] ss:$24 sps:$4 sm:$0xff]  }
 0x77f   :  { %15428 = vmatprep.mubr.bf16.mxu1 %v24598_v32  ;;  %15920 = vmatprep.mubr.bf16.mxu0 %v24598_v32  ;;  %v21560_v25 = vld [vmem:[#allocation12 + $0x16e8] ss:$24 sps:$4 sm:$0xff]  }
 0x780   :  { %15398 = vmatprep.subr.bf16.mxu1 %v21505_v53  ;;  %15890 = vmatprep.subr.bf16.mxu0 %v21508_v34  ;;  %v21568_v53 = vld [vmem:[#allocation12 + $0x171c] ss:$24 sps:$4 sm:$0xff]   ;;  %v21563_v34 = vld [vmem:[#allocation12 + $0x1710] ss:$24 sps:$4 sm:$0xff]  }
 0x782   :  { %15399 = vmatpush1.bf16.msra.mxu1 %v21503_v55  ;;  %15891 = vmatpush1.bf16.msra.mxu0 %v21506_v61  ;;  %v21566_v55 = vld [vmem:[#allocation12 + $0x1718] ss:$24 sps:$4 sm:$0xff]   ;;  %v21571_v61 = vld [vmem:[#allocation12 + $0x1744] ss:$24 sps:$4 sm:$0xff]  }
 0x783   :  { %15400 = vmatprep.subr.bf16.mxu1 %v21511_v4  ;;  %15892 = vmatprep.subr.bf16.mxu0 %v21514_v35  ;;  %v21574_v4 = vld [vmem:[#allocation12 + $0x174c] ss:$24 sps:$4 sm:$0xff]   ;;  %v21569_v35 = vld [vmem:[#allocation12 + $0x1740] ss:$24 sps:$4 sm:$0xff]  }
 0x786   :  { %15401 = vmatpush1.bf16.msra.mxu1 %v21509_v31  ;;  %15893 = vmatpush1.bf16.msra.mxu0 %v21512_v10  ;;  %v21572_v31 = vld [vmem:[#allocation12 + $0x1748] ss:$24 sps:$4 sm:$0xff]   ;;  %v21577_v10 = vld [vmem:[#allocation12 + $0x1774] ss:$24 sps:$4 sm:$0xff]  }
 0x787   :  { %15402 = vmatprep.subr.bf16.mxu1 %v21517_v0  ;;  %15894 = vmatprep.subr.bf16.mxu0 %v21520_v8  ;;  %v21580_v0 = vld [vmem:[#allocation12 + $0x177c] ss:$24 sps:$4 sm:$0xff]   ;;  %v21575_v8 = vld [vmem:[#allocation12 + $0x1770] ss:$24 sps:$4 sm:$0xff]  }
 0x78a   :  { %15403 = vmatpush1.bf16.msra.mxu1 %v21515_v11  ;;  %15895 = vmatpush1.bf16.msra.mxu0 %v21518_v13  ;;  %v21578_v11 = vld [vmem:[#allocation12 + $0x1778] ss:$24 sps:$4 sm:$0xff]   ;;  %v21583_v13 = vld [vmem:[#allocation12 + $0x17a4] ss:$24 sps:$4 sm:$0xff]  }
 0x78b   :  { %15404 = vmatprep.subr.bf16.mxu1 %v21523_v52  ;;  %15896 = vmatprep.subr.bf16.mxu0 %v21526_v36  ;;  %v21586_v52 = vld [vmem:[#allocation12 + $0x17ac] ss:$24 sps:$4 sm:$0xff]   ;;  %v24604_v36 = vld [vmem:[#allocation2 + $0x20] sm:$0xff] }
 0x78e   :  { %15405 = vmatpush1.bf16.msra.mxu1 %v21521_v37  ;;  %15897 = vmatpush1.bf16.msra.mxu0 %v21524_v14  ;;  %v21581_v37 = vld [vmem:[#allocation12 + $0x17a0] ss:$24 sps:$4 sm:$0xff]  }
 0x78f   :  { %15406 = vmatprep.subr.bf16.mxu1 %v21529_v15  ;;  %15898 = vmatprep.subr.bf16.mxu0 %v21532_v17  ;;  %v21584_v14 = vld [vmem:[#allocation12 + $0x17a8] ss:$24 sps:$4 sm:$0xff]   ;;  %v21589_v15 = vld [vmem:[#allocation12 + $0x17d4] ss:$24 sps:$4 sm:$0xff]  }
 0x790   :  { %v21592_v17 = vld [vmem:[#allocation12 + $0x17dc] ss:$24 sps:$4 sm:$0xff]  }
 0x792   :  { %15407 = vmatpush1.bf16.msra.mxu1 %v21527_v62  ;;  %15899 = vmatpush1.bf16.msra.mxu0 %v21530_v20  ;;  %v24608_v62 = vrot.slane %v24604_v36, %v23801_v58  ;;  %v21587_v20 = vld [vmem:[#allocation12 + $0x17d0] ss:$24 sps:$4 sm:$0xff]  }
 0x793   :  { %15408 = vmatprep.subr.bf16.mxu1 %v21535_v21  ;;  %15900 = vmatprep.subr.bf16.mxu0 %v21538_v23  ;;  %v21590_v21 = vld [vmem:[#allocation12 + $0x17d8] ss:$24 sps:$4 sm:$0xff]   ;;  %v21595_v23 = vld [vmem:[#allocation12 + $0x1804] ss:$24 sps:$4 sm:$0xff]  }
 0x796   :  { %15409 = vmatpush1.bf16.msra.mxu1 %v21533_v49  ;;  %15901 = vmatpush1.bf16.msra.mxu0 %v21536_v24  ;;  %v21598_v49 = vld [vmem:[#allocation12 + $0x180c] ss:$24 sps:$4 sm:$0xff]   ;;  %v8098_v24 = vcombine.high %v24608_v62, %v24608_v62 }
 0x797   :  { %15410 = vmatprep.subr.bf16.mxu1 %v21541_v28  ;;  %15902 = vmatprep.subr.bf16.mxu0 %v21544_v2  ;;  %v21593_v28 = vld [vmem:[#allocation12 + $0x1800] ss:$24 sps:$4 sm:$0xff]   ;;  %v24614_v2 = vpack.c.bf16 %v24588_v48, %v24588_v48 }
 0x798   :  { %v21602_v48 = vld [vmem:[#allocation12 + $0x1838] ss:$24 sps:$4 sm:$0xff]  }
 0x79a   :  { %15411 = vmatpush1.bf16.msra.mxu1 %v21539_v38  ;;  %15903 = vmatpush1.bf16.msra.mxu0 %v21542_v30  ;;  %v21596_v38 = vld [vmem:[#allocation12 + $0x1808] ss:$24 sps:$4 sm:$0xff]   ;;  %v24616_v30 = vpack.c.bf16 %v8098_v24, %v8098_v24  ;;  %v21650_v24 = vld [vmem:[#allocation12 + $0x19b8] ss:$24 sps:$4 sm:$0xff]  }
 0x79b   :  { %15412 = vmatprep.subr.bf16.mxu1 %v21547_v27  ;;  %15904 = vmatprep.subr.bf16.mxu0 %v21550_v5  ;;  %v21601_v27 = vld [vmem:[#allocation12 + $0x1834] ss:$24 sps:$4 sm:$0xff]  }
 0x79c   :  { %v21604_v5 = vld [vmem:[#allocation12 + $0x183c] ss:$24 sps:$4 sm:$0xff]  }
 0x79e   :  { %15413 = vmatpush1.bf16.msra.mxu1 %v21545_v6  ;;  %15905 = vmatpush1.bf16.msra.mxu0 %v21548_v9  ;;  %v21599_v6 = vld [vmem:[#allocation12 + $0x1830] ss:$24 sps:$4 sm:$0xff]   ;;  %v21607_v9 = vld [vmem:[#allocation12 + $0x1864] ss:$24 sps:$4 sm:$0xff]  }
 0x79f   :  { %15414 = vmatprep.subr.bf16.mxu1 %v21553_v46  ;;  %15906 = vmatprep.subr.bf16.mxu0 %v21556_v41  ;;  %v21610_v46 = vld [vmem:[#allocation12 + $0x186c] ss:$24 sps:$4 sm:$0xff]   ;;  %v21605_v41 = vld [vmem:[#allocation12 + $0x1860] ss:$24 sps:$4 sm:$0xff]  }
 0x7a2   :  { %15415 = vmatpush1.bf16.msra.mxu1 %v21551_v19  ;;  %15907 = vmatpush1.bf16.msra.mxu0 %v21554_v1  ;;  %v21608_v19 = vld [vmem:[#allocation12 + $0x1868] ss:$24 sps:$4 sm:$0xff]   ;;  %v21613_v1 = vld [vmem:[#allocation12 + $0x1894] ss:$24 sps:$4 sm:$0xff]  }
 0x7a3   :  { %15416 = vmatprep.subr.bf16.mxu1 %v21559_v42  ;;  %15908 = vmatprep.subr.bf16.mxu0 %v21562_v3  ;;  %v21616_v42 = vld [vmem:[#allocation12 + $0x189c] ss:$24 sps:$4 sm:$0xff]   ;;  %v21611_v3 = vld [vmem:[#allocation12 + $0x1890] ss:$24 sps:$4 sm:$0xff]  }
 0x7a6   :  { %15417 = vmatpush1.bf16.msra.mxu1 %v21557_v18  ;;  %15909 = vmatpush1.bf16.msra.mxu0 %v21560_v25  ;;  %v21614_v18 = vld [vmem:[#allocation12 + $0x1898] ss:$24 sps:$4 sm:$0xff]   ;;  %v21619_v25 = vld [vmem:[#allocation12 + $0x18c4] ss:$24 sps:$4 sm:$0xff]  }
 0x7a7   :  { %15418 = vmatprep.subr.bf16.mxu1 %v21565_v26  ;;  %15910 = vmatprep.subr.bf16.mxu0 %v21568_v53  ;;  %v21622_v26 = vld [vmem:[#allocation12 + $0x18cc] ss:$24 sps:$4 sm:$0xff]   ;;  %v21617_v53 = vld [vmem:[#allocation12 + $0x18c0] ss:$24 sps:$4 sm:$0xff]  }
 0x7aa   :  { %15419 = vmatpush1.bf16.msra.mxu1 %v21563_v34  ;;  %15911 = vmatpush1.bf16.msra.mxu0 %v21566_v55  ;;  %v21620_v34 = vld [vmem:[#allocation12 + $0x18c8] ss:$24 sps:$4 sm:$0xff]   ;;  %v21625_v55 = vld [vmem:[#allocation12 + $0x18f4] ss:$24 sps:$4 sm:$0xff]  }
 0x7ab   :  { %15420 = vmatprep.subr.bf16.mxu1 %v21571_v61  ;;  %15912 = vmatprep.subr.bf16.mxu0 %v21574_v4  ;;  %v21628_v61 = vld [vmem:[#allocation12 + $0x18fc] ss:$24 sps:$4 sm:$0xff]   ;;  %v21623_v4 = vld [vmem:[#allocation12 + $0x18f0] ss:$24 sps:$4 sm:$0xff]  }
 0x7ae   :  { %15421 = vmatpush1.bf16.msra.mxu1 %v21569_v35  ;;  %15913 = vmatpush1.bf16.msra.mxu0 %v21572_v31  ;;  %v21626_v35 = vld [vmem:[#allocation12 + $0x18f8] ss:$24 sps:$4 sm:$0xff]   ;;  %v21631_v31 = vld [vmem:[#allocation12 + $0x1924] ss:$24 sps:$4 sm:$0xff]  }
 0x7af   :  { %15422 = vmatprep.subr.bf16.mxu1 %v21577_v10  ;;  %15914 = vmatprep.subr.bf16.mxu0 %v21580_v0  ;;  %v21634_v10 = vld [vmem:[#allocation12 + $0x192c] ss:$24 sps:$4 sm:$0xff]   ;;  %v21629_v0 = vld [vmem:[#allocation12 + $0x1920] ss:$24 sps:$4 sm:$0xff]  }
 0x7b2   :  { %15423 = vmatpush1.bf16.msra.mxu1 %v21575_v8  ;;  %15915 = vmatpush1.bf16.msra.mxu0 %v21578_v11  ;;  %v21632_v8 = vld [vmem:[#allocation12 + $0x1928] ss:$24 sps:$4 sm:$0xff]   ;;  %v21637_v11 = vld [vmem:[#allocation12 + $0x1954] ss:$24 sps:$4 sm:$0xff]  }
 0x7b3   :  { %15424 = vmatprep.subr.bf16.mxu1 %v21583_v13  ;;  %15916 = vmatprep.subr.bf16.mxu0 %v21586_v52  ;;  %v21640_v13 = vld [vmem:[#allocation12 + $0x195c] ss:$24 sps:$4 sm:$0xff]   ;;  %v21635_v52 = vld [vmem:[#allocation12 + $0x1950] ss:$24 sps:$4 sm:$0xff]  }
 0x7b6   :  { %15425 = vmatpush1.bf16.msra.mxu1 %v21581_v37  ;;  %15917 = vmatpush1.bf16.msra.mxu0 %v21584_v14  ;;  %v21638_v37 = vld [vmem:[#allocation12 + $0x1958] ss:$24 sps:$4 sm:$0xff]   ;;  %v21643_v14 = vld [vmem:[#allocation12 + $0x1984] ss:$24 sps:$4 sm:$0xff]  }
 0x7b7   :  { %15426 = vmatprep.subr.bf16.mxu1 %v21589_v15  ;;  %15918 = vmatprep.subr.bf16.mxu0 %v21592_v17  ;;  %v21646_v15 = vld [vmem:[#allocation12 + $0x198c] ss:$24 sps:$4 sm:$0xff]   ;;  %v21641_v17 = vld [vmem:[#allocation12 + $0x1980] ss:$24 sps:$4 sm:$0xff]  }
 0x7ba   :  { %15427 = vmatpush1.bf16.msra.mxu1 %v21587_v20  ;;  %15919 = vmatpush1.bf16.msra.mxu0 %v21590_v21  ;;  %v21644_v20 = vld [vmem:[#allocation12 + $0x1988] ss:$24 sps:$4 sm:$0xff]   ;;  %v21649_v21 = vld [vmem:[#allocation12 + $0x19b4] ss:$24 sps:$4 sm:$0xff]  }
 0x7bb   :  { %15437 = vmatprep.subr.bf16.mxu1 %v21595_v23  ;;  %15929 = vmatprep.subr.bf16.mxu0 %v21598_v49  ;;  %v21652_v23 = vld [vmem:[#allocation12 + $0x19bc] ss:$24 sps:$4 sm:$0xff]   ;;  %v21647_v49 = vld [vmem:[#allocation12 + $0x19b0] ss:$24 sps:$4 sm:$0xff]  }
 0x7bd   :  { %15429 = vmatmul.mubr.bf16.vlgmr.msra.gmra.mrb[12].mxu1 %v24614_v2  ;;  %15921 = vmatmul.mubr.bf16.vlgmr.msra.gmra.mrb[28].mxu0 %v24614_v2 }
 0x7be   :  { %15438 = vmatpush1.bf16.msra.mxu1 %v21593_v28  ;;  %15469 = vmatprep.mubr.bf16.mxu1 %v24616_v30  ;;  %v21655_v28 = vld [vmem:[#allocation12 + $0x19e4] ss:$24 sps:$4 sm:$0xff]  }
 0x7bf   :  { %15930 = vmatpush1.bf16.msra.mxu0 %v21596_v38  ;;  %15961 = vmatprep.mubr.bf16.mxu0 %v24616_v30  ;;  %v21658_v38 = vld [vmem:[#allocation12 + $0x19ec] ss:$24 sps:$4 sm:$0xff]  }
 0x7c0   :  { %15439 = vmatprep.subr.bf16.mxu1 %v21601_v27  ;;  %15931 = vmatprep.subr.bf16.mxu0 %v21604_v5  ;;  %v21653_v27 = vld [vmem:[#allocation12 + $0x19e0] ss:$24 sps:$4 sm:$0xff]  }
 0x7c1   :  { %v21656_v5 = vld [vmem:[#allocation12 + $0x19e8] ss:$24 sps:$4 sm:$0xff]  }
 0x7c2   :  { %15440 = vmatpush1.bf16.msra.mxu1 %v21599_v6  ;;  %v21661_v6 = vld [vmem:[#allocation12 + $0x1a14] ss:$24 sps:$4 sm:$0xff]  }
 0x7c3   :  { %15932 = vmatpush1.bf16.msra.mxu0 %v21602_v48  ;;  %15441 = vmatprep.subr.bf16.mxu1 %v21607_v9  ;;  %v21664_v48 = vld [vmem:[#allocation12 + $0x1a1c] ss:$24 sps:$4 sm:$0xff]   ;;  %v21659_v9 = vld [vmem:[#allocation12 + $0x1a10] ss:$24 sps:$4 sm:$0xff]  }
 0x7c4   :  { %15933 = vmatprep.subr.bf16.mxu0 %v21610_v46  ;;  %v21662_v46 = vld [vmem:[#allocation12 + $0x1a18] ss:$24 sps:$4 sm:$0xff]  }
 0x7c6   :  { %15442 = vmatpush1.bf16.msra.mxu1 %v21605_v41  ;;  %v21667_v41 = vld [vmem:[#allocation12 + $0x1a44] ss:$24 sps:$4 sm:$0xff]  }
 0x7c7   :  { %15934 = vmatpush1.bf16.msra.mxu0 %v21608_v19  ;;  %15443 = vmatprep.subr.bf16.mxu1 %v21613_v1  ;;  %v21670_v19 = vld [vmem:[#allocation12 + $0x1a4c] ss:$24 sps:$4 sm:$0xff]   ;;  %v21665_v1 = vld [vmem:[#allocation12 + $0x1a40] ss:$24 sps:$4 sm:$0xff]  }
 0x7c8   :  { %15935 = vmatprep.subr.bf16.mxu0 %v21616_v42  ;;  %v21668_v42 = vld [vmem:[#allocation12 + $0x1a48] ss:$24 sps:$4 sm:$0xff]  }
 0x7ca   :  { %15444 = vmatpush1.bf16.msra.mxu1 %v21611_v3  ;;  %v21673_v3 = vld [vmem:[#allocation12 + $0x1a74] ss:$24 sps:$4 sm:$0xff]  }
 0x7cb   :  { %15936 = vmatpush1.bf16.msra.mxu0 %v21614_v18  ;;  %15445 = vmatprep.subr.bf16.mxu1 %v21619_v25  ;;  %v21676_v18 = vld [vmem:[#allocation12 + $0x1a7c] ss:$24 sps:$4 sm:$0xff]   ;;  %v21671_v25 = vld [vmem:[#allocation12 + $0x1a70] ss:$24 sps:$4 sm:$0xff]  }
 0x7cc   :  { %15937 = vmatprep.subr.bf16.mxu0 %v21622_v26  ;;  %v21674_v26 = vld [vmem:[#allocation12 + $0x1a78] ss:$24 sps:$4 sm:$0xff]  }
 0x7ce   :  { %15446 = vmatpush1.bf16.msra.mxu1 %v21617_v53  ;;  %v21679_v53 = vld [vmem:[#allocation12 + $0x1aa4] ss:$24 sps:$4 sm:$0xff]  }
 0x7cf   :  { %15938 = vmatpush1.bf16.msra.mxu0 %v21620_v34  ;;  %15447 = vmatprep.subr.bf16.mxu1 %v21625_v55  ;;  %v21682_v34 = vld [vmem:[#allocation12 + $0x1aac] ss:$24 sps:$4 sm:$0xff]   ;;  %v8083_v55 = vcombine.high %v24604_v36, %v24604_v36 }
 0x7d0   :  { %15939 = vmatprep.subr.bf16.mxu0 %v21628_v61  ;;  %v21677_v61 = vld [vmem:[#allocation12 + $0x1aa0] ss:$24 sps:$4 sm:$0xff]  }
 0x7d2   :  { %15448 = vmatpush1.bf16.msra.mxu1 %v21623_v4  ;;  %v21680_v4 = vld [vmem:[#allocation12 + $0x1aa8] ss:$24 sps:$4 sm:$0xff]  }
 0x7d3   :  { %15940 = vmatpush1.bf16.msra.mxu0 %v21626_v35  ;;  %15449 = vmatprep.subr.bf16.mxu1 %v21631_v31  ;;  %v21685_v35 = vld [vmem:[#allocation12 + $0x1ad4] ss:$24 sps:$4 sm:$0xff]  }
 0x7d4   :  { %15941 = vmatprep.subr.bf16.mxu0 %v21634_v10  ;;  %v21688_v31 = vld [vmem:[#allocation12 + $0x1adc] ss:$24 sps:$4 sm:$0xff]   ;;  %v24625_v10 = vrot.slane %v8083_v55, %v23801_v58 }
 0x7d5   :  { %v21737_v55 = vld [vmem:[#allocation12 + $0x1c5c] ss:$24 sps:$4 sm:$0xff]  }
 0x7d6   :  { %15450 = vmatpush1.bf16.msra.mxu1 %v21629_v0  ;;  %v21683_v0 = vld [vmem:[#allocation12 + $0x1ad0] ss:$24 sps:$4 sm:$0xff]   ;;  %v8099_v36 = vcombine.high %v24625_v10, %v24625_v10 }
 0x7d7   :  { %15942 = vmatpush1.bf16.msra.mxu0 %v21632_v8  ;;  %15451 = vmatprep.subr.bf16.mxu1 %v21637_v11  ;;  %v21686_v8 = vld [vmem:[#allocation12 + $0x1ad8] ss:$24 sps:$4 sm:$0xff]   ;;  %v21691_v11 = vld [vmem:[#allocation12 + $0x1b04] ss:$24 sps:$4 sm:$0xff]  }
 0x7d8   :  { %15943 = vmatprep.subr.bf16.mxu0 %v21640_v13  ;;  %v21694_v13 = vld [vmem:[#allocation12 + $0x1b0c] ss:$24 sps:$4 sm:$0xff]  }
 0x7da   :  { %15452 = vmatpush1.bf16.msra.mxu1 %v21635_v52  ;;  %v21689_v52 = vld [vmem:[#allocation12 + $0x1b00] ss:$24 sps:$4 sm:$0xff]  }
 0x7db   :  { %15944 = vmatpush1.bf16.msra.mxu0 %v21638_v37  ;;  %15453 = vmatprep.subr.bf16.mxu1 %v21643_v14  ;;  %v24631_v37 = vpack.c.bf16 %v24608_v62, %v24608_v62  ;;  %v21692_v14 = vld [vmem:[#allocation12 + $0x1b08] ss:$24 sps:$4 sm:$0xff]   ;;  %v21707_v62 = vld [vmem:[#allocation12 + $0x1b6c] ss:$24 sps:$4 sm:$0xff]  }
 0x7dc   :  { %15945 = vmatprep.subr.bf16.mxu0 %v21646_v15  ;;  %v21698_v15 = vld [vmem:[#allocation12 + $0x1b34] ss:$24 sps:$4 sm:$0xff]  }
 0x7de   :  { %15454 = vmatpush1.bf16.msra.mxu1 %v21641_v17  ;;  %v24634_v17 = vpack.c.bf16 %v8099_v36, %v8099_v36  ;;  %v21744_v36 = vld [vmem:[#allocation12 + $0x1cb0] ss:$24 sps:$4 sm:$0xff]  }
 0x7df   :  { %15946 = vmatpush1.bf16.msra.mxu0 %v21644_v20  ;;  %15455 = vmatprep.subr.bf16.mxu1 %v21649_v21  ;;  %v21701_v20 = vld [vmem:[#allocation12 + $0x1b3c] ss:$24 sps:$4 sm:$0xff]   ;;  %v21696_v21 = vld [vmem:[#allocation12 + $0x1b30] ss:$24 sps:$4 sm:$0xff]  }
 0x7e0   :  { %15947 = vmatprep.subr.bf16.mxu0 %v21652_v23  ;;  %v21699_v23 = vld [vmem:[#allocation12 + $0x1b38] ss:$24 sps:$4 sm:$0xff]  }
 0x7e2   :  { %15456 = vmatpush1.bf16.msra.mxu1 %v21647_v49  ;;  %v21704_v49 = vld [vmem:[#allocation12 + $0x1b64] ss:$24 sps:$4 sm:$0xff]  }
 0x7e3   :  { %15948 = vmatpush1.bf16.msra.mxu0 %v21650_v24  ;;  %15457 = vmatprep.subr.bf16.mxu1 %v21655_v28  ;;  %v21702_v24 = vld [vmem:[#allocation12 + $0x1b60] ss:$24 sps:$4 sm:$0xff]  }
 0x7e4   :  { %15949 = vmatprep.subr.bf16.mxu0 %v21658_v38  ;;  %v21705_v28 = vld [vmem:[#allocation12 + $0x1b68] ss:$24 sps:$4 sm:$0xff]   ;;  %v21710_v38 = vld [vmem:[#allocation12 + $0x1b94] ss:$24 sps:$4 sm:$0xff]  }
 0x7e6   :  { %15458 = vmatpush1.bf16.msra.mxu1 %v21653_v27  ;;  %v21713_v27 = vld [vmem:[#allocation12 + $0x1b9c] ss:$24 sps:$4 sm:$0xff]  }
 0x7e7   :  { %15950 = vmatpush1.bf16.msra.mxu0 %v21656_v5  ;;  %15459 = vmatprep.subr.bf16.mxu1 %v21661_v6  ;;  %v21708_v5 = vld [vmem:[#allocation12 + $0x1b90] ss:$24 sps:$4 sm:$0xff]  }
 0x7e8   :  { %15951 = vmatprep.subr.bf16.mxu0 %v21664_v48  ;;  %v21711_v6 = vld [vmem:[#allocation12 + $0x1b98] ss:$24 sps:$4 sm:$0xff]   ;;  %v21716_v48 = vld [vmem:[#allocation12 + $0x1bc4] ss:$24 sps:$4 sm:$0xff]  }
 0x7ea   :  { %15460 = vmatpush1.bf16.msra.mxu1 %v21659_v9  ;;  %v21719_v9 = vld [vmem:[#allocation12 + $0x1bcc] ss:$24 sps:$4 sm:$0xff]  }
 0x7eb   :  { %15952 = vmatpush1.bf16.msra.mxu0 %v21662_v46  ;;  %15461 = vmatprep.subr.bf16.mxu1 %v21667_v41  ;;  %v21714_v46 = vld [vmem:[#allocation12 + $0x1bc0] ss:$24 sps:$4 sm:$0xff]  }
 0x7ec   :  { %15953 = vmatprep.subr.bf16.mxu0 %v21670_v19  ;;  %v21717_v41 = vld [vmem:[#allocation12 + $0x1bc8] ss:$24 sps:$4 sm:$0xff]   ;;  %v21722_v19 = vld [vmem:[#allocation12 + $0x1bf4] ss:$24 sps:$4 sm:$0xff]  }
 0x7ee   :  { %15462 = vmatpush1.bf16.msra.mxu1 %v21665_v1  ;;  %v21725_v1 = vld [vmem:[#allocation12 + $0x1bfc] ss:$24 sps:$4 sm:$0xff]  }
 0x7ef   :  { %15954 = vmatpush1.bf16.msra.mxu0 %v21668_v42  ;;  %15463 = vmatprep.subr.bf16.mxu1 %v21673_v3  ;;  %v21720_v42 = vld [vmem:[#allocation12 + $0x1bf0] ss:$24 sps:$4 sm:$0xff]  }
 0x7f0   :  { %15955 = vmatprep.subr.bf16.mxu0 %v21676_v18  ;;  %v21723_v3 = vld [vmem:[#allocation12 + $0x1bf8] ss:$24 sps:$4 sm:$0xff]   ;;  %v21728_v18 = vld [vmem:[#allocation12 + $0x1c24] ss:$24 sps:$4 sm:$0xff]  }
 0x7f2   :  { %15464 = vmatpush1.bf16.msra.mxu1 %v21671_v25  ;;  %v21731_v25 = vld [vmem:[#allocation12 + $0x1c2c] ss:$24 sps:$4 sm:$0xff]  }
 0x7f3   :  { %15956 = vmatpush1.bf16.msra.mxu0 %v21674_v26  ;;  %15465 = vmatprep.subr.bf16.mxu1 %v21679_v53  ;;  %v21726_v26 = vld [vmem:[#allocation12 + $0x1c20] ss:$24 sps:$4 sm:$0xff]  }
 0x7f4   :  { %15957 = vmatprep.subr.bf16.mxu0 %v21682_v34  ;;  %v21729_v53 = vld [vmem:[#allocation12 + $0x1c28] ss:$24 sps:$4 sm:$0xff]   ;;  %v21734_v34 = vld [vmem:[#allocation12 + $0x1c54] ss:$24 sps:$4 sm:$0xff]  }
 0x7f6   :  { %15466 = vmatpush1.bf16.msra.mxu1 %v21677_v61  ;;  %v21732_v61 = vld [vmem:[#allocation12 + $0x1c50] ss:$24 sps:$4 sm:$0xff]  }
 0x7f7   :  { %15958 = vmatpush1.bf16.msra.mxu0 %v21680_v4  ;;  %15467 = vmatprep.subr.bf16.mxu1 %v21685_v35  ;;  %v21735_v4 = vld [vmem:[#allocation12 + $0x1c58] ss:$24 sps:$4 sm:$0xff]   ;;  %v21740_v35 = vld [vmem:[#allocation12 + $0x1c84] ss:$24 sps:$4 sm:$0xff]  }
 0x7f8   :  { %15959 = vmatprep.subr.bf16.mxu0 %v21688_v31  ;;  %v21743_v31 = vld [vmem:[#allocation12 + $0x1c8c] ss:$24 sps:$4 sm:$0xff]  }
 0x7fa   :  { %15468 = vmatpush1.bf16.msra.mxu1 %v21683_v0  ;;  %v21738_v0 = vld [vmem:[#allocation12 + $0x1c80] ss:$24 sps:$4 sm:$0xff]  }
 0x7fb   :  { %15960 = vmatpush1.bf16.msra.mxu0 %v21686_v8  ;;  %15478 = vmatprep.subr.bf16.mxu1 %v21691_v11  ;;  %v21741_v8 = vld [vmem:[#allocation12 + $0x1c88] ss:$24 sps:$4 sm:$0xff]   ;;  %v21746_v11 = vld [vmem:[#allocation12 + $0x1cb4] ss:$24 sps:$4 sm:$0xff]  }
 0x7fc   :  { %15970 = vmatprep.subr.bf16.mxu0 %v21694_v13  ;;  %v21749_v13 = vld [vmem:[#allocation12 + $0x1cbc] ss:$24 sps:$4 sm:$0xff]  }
 0x7fd   :  { %15470 = vmatmul.mubr.bf16.vlgmr.msra.gmra.mrb[12].mxu1 %v24631_v37 }
 0x7fe   :  { %15962 = vmatmul.mubr.bf16.vlgmr.msra.gmra.mrb[28].mxu0 %v24631_v37  ;;  %15479 = vmatpush1.bf16.msra.mxu1 %v21689_v52  ;;  %v21747_v52 = vld [vmem:[#allocation12 + $0x1cb8] ss:$24 sps:$4 sm:$0xff]  }
 0x7ff   :  { %15510 = vmatprep.mubr.bf16.mxu1 %v24634_v17  ;;  %15971 = vmatpush1.bf16.msra.mxu0 %v21692_v14  ;;  %v21752_v14 = vld [vmem:[#allocation12 + $0x1ce4] ss:$24 sps:$4 sm:$0xff]  }
 0x800   :  { %16002 = vmatprep.mubr.bf16.mxu0 %v24634_v17  ;;  %15480 = vmatprep.subr.bf16.mxu1 %v21698_v15  ;;  %v21755_v15 = vld [vmem:[#allocation12 + $0x1cec] ss:$24 sps:$4 sm:$0xff]  }
 0x801   :  { %15972 = vmatprep.subr.bf16.mxu0 %v21701_v20  ;;  %v21750_v20 = vld [vmem:[#allocation12 + $0x1ce0] ss:$24 sps:$4 sm:$0xff]  }
 0x802   :  { %15481 = vmatpush1.bf16.msra.mxu1 %v21696_v21  ;;  %v21753_v21 = vld [vmem:[#allocation12 + $0x1ce8] ss:$24 sps:$4 sm:$0xff]  }
 0x803   :  { %15973 = vmatpush1.bf16.msra.mxu0 %v21699_v23  ;;  %15482 = vmatprep.subr.bf16.mxu1 %v21704_v49  ;;  %v21758_v23 = vld [vmem:[#allocation12 + $0x1d14] ss:$24 sps:$4 sm:$0xff]  }
 0x804   :  { %15974 = vmatprep.subr.bf16.mxu0 %v21707_v62  ;;  %v21761_v49 = vld [vmem:[#allocation12 + $0x1d1c] ss:$24 sps:$4 sm:$0xff]   ;;  %v21756_v62 = vld [vmem:[#allocation12 + $0x1d10] ss:$24 sps:$4 sm:$0xff]  }
 0x806   :  { %15483 = vmatpush1.bf16.msra.mxu1 %v21702_v24  ;;  %v21759_v24 = vld [vmem:[#allocation12 + $0x1d18] ss:$24 sps:$4 sm:$0xff]  }
 0x807   :  { %15975 = vmatpush1.bf16.msra.mxu0 %v21705_v28  ;;  %15484 = vmatprep.subr.bf16.mxu1 %v21710_v38  ;;  %v21764_v28 = vld [vmem:[#allocation12 + $0x1d44] ss:$24 sps:$4 sm:$0xff]  }
 0x808   :  { %15976 = vmatprep.subr.bf16.mxu0 %v21713_v27  ;;  %v21767_v38 = vld [vmem:[#allocation12 + $0x1d4c] ss:$24 sps:$4 sm:$0xff]   ;;  %v21762_v27 = vld [vmem:[#allocation12 + $0x1d40] ss:$24 sps:$4 sm:$0xff]  }
 0x80a   :  { %15485 = vmatpush1.bf16.msra.mxu1 %v21708_v5  ;;  %v21765_v5 = vld [vmem:[#allocation12 + $0x1d48] ss:$24 sps:$4 sm:$0xff]  }
 0x80b   :  { %15977 = vmatpush1.bf16.msra.mxu0 %v21711_v6  ;;  %15486 = vmatprep.subr.bf16.mxu1 %v21716_v48  ;;  %v21770_v6 = vld [vmem:[#allocation12 + $0x1d74] ss:$24 sps:$4 sm:$0xff]  }
 0x80c   :  { %15978 = vmatprep.subr.bf16.mxu0 %v21719_v9  ;;  %v21773_v48 = vld [vmem:[#allocation12 + $0x1d7c] ss:$24 sps:$4 sm:$0xff]   ;;  %v21768_v9 = vld [vmem:[#allocation12 + $0x1d70] ss:$24 sps:$4 sm:$0xff]  }
 0x80e   :  { %15487 = vmatpush1.bf16.msra.mxu1 %v21714_v46  ;;  %v21771_v46 = vld [vmem:[#allocation12 + $0x1d78] ss:$24 sps:$4 sm:$0xff]  }
 0x80f   :  { %15979 = vmatpush1.bf16.msra.mxu0 %v21717_v41  ;;  %15488 = vmatprep.subr.bf16.mxu1 %v21722_v19  ;;  %v21776_v41 = vld [vmem:[#allocation12 + $0x1da4] ss:$24 sps:$4 sm:$0xff]  }
 0x810   :  { %15980 = vmatprep.subr.bf16.mxu0 %v21725_v1  ;;  %v21779_v19 = vld [vmem:[#allocation12 + $0x1dac] ss:$24 sps:$4 sm:$0xff]   ;;  %v21774_v1 = vld [vmem:[#allocation12 + $0x1da0] ss:$24 sps:$4 sm:$0xff]  }
 0x812   :  { %15489 = vmatpush1.bf16.msra.mxu1 %v21720_v42  ;;  %v24639_v42 = vld [vmem:[#allocation2 + $0x28] sm:$0xff] }
 0x813   :  { %15981 = vmatpush1.bf16.msra.mxu0 %v21723_v3  ;;  %15490 = vmatprep.subr.bf16.mxu1 %v21728_v18  ;;  %v21777_v3 = vld [vmem:[#allocation12 + $0x1da8] ss:$24 sps:$4 sm:$0xff]   ;;  %v21782_v18 = vld [vmem:[#allocation12 + $0x1dd4] ss:$24 sps:$4 sm:$0xff]  }
 0x814   :  { %15982 = vmatprep.subr.bf16.mxu0 %v21731_v25  ;;  %v21785_v25 = vld [vmem:[#allocation12 + $0x1ddc] ss:$24 sps:$4 sm:$0xff]  }
 0x816   :  { %15491 = vmatpush1.bf16.msra.mxu1 %v21726_v26  ;;  %v24643_v26 = vrot.slane %v24639_v42, %v23801_v58 }
 0x817   :  { %15983 = vmatpush1.bf16.msra.mxu0 %v21729_v53  ;;  %15492 = vmatprep.subr.bf16.mxu1 %v21734_v34  ;;  %v21780_v53 = vld [vmem:[#allocation12 + $0x1dd0] ss:$24 sps:$4 sm:$0xff]  }
 0x818   :  { %15984 = vmatprep.subr.bf16.mxu0 %v21737_v55  ;;  %v21783_v34 = vld [vmem:[#allocation12 + $0x1dd8] ss:$24 sps:$4 sm:$0xff]   ;;  %v21788_v55 = vld [vmem:[#allocation12 + $0x1e04] ss:$24 sps:$4 sm:$0xff]  }
 0x81a   :  { %15493 = vmatpush1.bf16.msra.mxu1 %v21732_v61  ;;  %v21791_v61 = vld [vmem:[#allocation12 + $0x1e0c] ss:$24 sps:$4 sm:$0xff]  }
 0x81b   :  { %15985 = vmatpush1.bf16.msra.mxu0 %v21735_v4  ;;  %15494 = vmatprep.subr.bf16.mxu1 %v21740_v35  ;;  %v8115_v4 = vcombine.high %v24643_v26, %v24643_v26  ;;  %v21786_v35 = vld [vmem:[#allocation12 + $0x1e00] ss:$24 sps:$4 sm:$0xff]  }
 0x81c   :  { %15986 = vmatprep.subr.bf16.mxu0 %v21743_v31  ;;  %v24649_v31 = vpack.c.bf16 %v24625_v10, %v24625_v10  ;;  %v21803_v10 = vld [vmem:[#allocation12 + $0x1e6c] ss:$24 sps:$4 sm:$0xff]  }
 0x81e   :  { %15495 = vmatpush1.bf16.msra.mxu1 %v21738_v0  ;;  %v21789_v0 = vld [vmem:[#allocation12 + $0x1e08] ss:$24 sps:$4 sm:$0xff]  }
 0x81f   :  { %15987 = vmatpush1.bf16.msra.mxu0 %v21741_v8  ;;  %15496 = vmatprep.subr.bf16.mxu1 %v21746_v11  ;;  %v21794_v8 = vld [vmem:[#allocation12 + $0x1e34] ss:$24 sps:$4 sm:$0xff]   ;;  %v24652_v11 = vpack.c.bf16 %v8115_v4, %v8115_v4  ;;  %v21837_v4 = vld [vmem:[#allocation12 + $0x1f88] ss:$24 sps:$4 sm:$0xff]  }
 0x820   :  { %15988 = vmatprep.subr.bf16.mxu0 %v21749_v13  ;;  %v21797_v13 = vld [vmem:[#allocation12 + $0x1e3c] ss:$24 sps:$4 sm:$0xff]  }
 0x822   :  { %15497 = vmatpush1.bf16.msra.mxu1 %v21744_v36  ;;  %v21792_v36 = vld [vmem:[#allocation12 + $0x1e30] ss:$24 sps:$4 sm:$0xff]  }
 0x823   :  { %15989 = vmatpush1.bf16.msra.mxu0 %v21747_v52  ;;  %15498 = vmatprep.subr.bf16.mxu1 %v21752_v14  ;;  %v21795_v52 = vld [vmem:[#allocation12 + $0x1e38] ss:$24 sps:$4 sm:$0xff]   ;;  %v21800_v14 = vld [vmem:[#allocation12 + $0x1e64] ss:$24 sps:$4 sm:$0xff]  }
 0x824   :  { %15990 = vmatprep.subr.bf16.mxu0 %v21755_v15  ;;  %v21798_v15 = vld [vmem:[#allocation12 + $0x1e60] ss:$24 sps:$4 sm:$0xff]  }
 0x826   :  { %15499 = vmatpush1.bf16.msra.mxu1 %v21750_v20  ;;  %v21801_v20 = vld [vmem:[#allocation12 + $0x1e68] ss:$24 sps:$4 sm:$0xff]  }
 0x827   :  { %15991 = vmatpush1.bf16.msra.mxu0 %v21753_v21  ;;  %15500 = vmatprep.subr.bf16.mxu1 %v21758_v23  ;;  %v21806_v21 = vld [vmem:[#allocation12 + $0x1e94] ss:$24 sps:$4 sm:$0xff]  }
 0x828   :  { %15992 = vmatprep.subr.bf16.mxu0 %v21761_v49  ;;  %v21809_v23 = vld [vmem:[#allocation12 + $0x1e9c] ss:$24 sps:$4 sm:$0xff]   ;;  %v21804_v49 = vld [vmem:[#allocation12 + $0x1e90] ss:$24 sps:$4 sm:$0xff]  }
 0x82a   :  { %15501 = vmatpush1.bf16.msra.mxu1 %v21756_v62  ;;  %v21807_v62 = vld [vmem:[#allocation12 + $0x1e98] ss:$24 sps:$4 sm:$0xff]  }
 0x82b   :  { %15993 = vmatpush1.bf16.msra.mxu0 %v21759_v24  ;;  %15502 = vmatprep.subr.bf16.mxu1 %v21764_v28  ;;  %v21812_v24 = vld [vmem:[#allocation12 + $0x1ec4] ss:$24 sps:$4 sm:$0xff]  }
 0x82c   :  { %15994 = vmatprep.subr.bf16.mxu0 %v21767_v38  ;;  %v21815_v28 = vld [vmem:[#allocation12 + $0x1ecc] ss:$24 sps:$4 sm:$0xff]   ;;  %v21810_v38 = vld [vmem:[#allocation12 + $0x1ec0] ss:$24 sps:$4 sm:$0xff]  }
 0x82e   :  { %15503 = vmatpush1.bf16.msra.mxu1 %v21762_v27  ;;  %v21813_v27 = vld [vmem:[#allocation12 + $0x1ec8] ss:$24 sps:$4 sm:$0xff]  }
 0x82f   :  { %15995 = vmatpush1.bf16.msra.mxu0 %v21765_v5  ;;  %15504 = vmatprep.subr.bf16.mxu1 %v21770_v6  ;;  %v21818_v5 = vld [vmem:[#allocation12 + $0x1ef4] ss:$24 sps:$4 sm:$0xff]  }
 0x830   :  { %15996 = vmatprep.subr.bf16.mxu0 %v21773_v48  ;;  %v21821_v6 = vld [vmem:[#allocation12 + $0x1efc] ss:$24 sps:$4 sm:$0xff]   ;;  %v21816_v48 = vld [vmem:[#allocation12 + $0x1ef0] ss:$24 sps:$4 sm:$0xff]  }
 0x832   :  { %15505 = vmatpush1.bf16.msra.mxu1 %v21768_v9  ;;  %v21819_v9 = vld [vmem:[#allocation12 + $0x1ef8] ss:$24 sps:$4 sm:$0xff]  }
 0x833   :  { %15997 = vmatpush1.bf16.msra.mxu0 %v21771_v46  ;;  %15506 = vmatprep.subr.bf16.mxu1 %v21776_v41  ;;  %v21824_v46 = vld [vmem:[#allocation12 + $0x1f24] ss:$24 sps:$4 sm:$0xff]  }
 0x834   :  { %15998 = vmatprep.subr.bf16.mxu0 %v21779_v19  ;;  %v21827_v41 = vld [vmem:[#allocation12 + $0x1f2c] ss:$24 sps:$4 sm:$0xff]   ;;  %v21822_v19 = vld [vmem:[#allocation12 + $0x1f20] ss:$24 sps:$4 sm:$0xff]  }
 0x836   :  { %15507 = vmatpush1.bf16.msra.mxu1 %v21774_v1  ;;  %v21825_v1 = vld [vmem:[#allocation12 + $0x1f28] ss:$24 sps:$4 sm:$0xff]  }
 0x837   :  { %15999 = vmatpush1.bf16.msra.mxu0 %v21777_v3  ;;  %15508 = vmatprep.subr.bf16.mxu1 %v21782_v18  ;;  %v21830_v3 = vld [vmem:[#allocation12 + $0x1f54] ss:$24 sps:$4 sm:$0xff]  }
 0x838   :  { %16000 = vmatprep.subr.bf16.mxu0 %v21785_v25  ;;  %v21833_v18 = vld [vmem:[#allocation12 + $0x1f5c] ss:$24 sps:$4 sm:$0xff]   ;;  %v21828_v25 = vld [vmem:[#allocation12 + $0x1f50] ss:$24 sps:$4 sm:$0xff]  }
 0x83a   :  { %15509 = vmatpush1.bf16.msra.mxu1 %v21780_v53  ;;  %v21831_v53 = vld [vmem:[#allocation12 + $0x1f58] ss:$24 sps:$4 sm:$0xff]  }
 0x83b   :  { %16001 = vmatpush1.bf16.msra.mxu0 %v21783_v34  ;;  %15519 = vmatprep.subr.bf16.mxu1 %v21788_v55  ;;  %v21836_v34 = vld [vmem:[#allocation12 + $0x1f84] ss:$24 sps:$4 sm:$0xff]  }
 0x83c   :  { %16011 = vmatprep.subr.bf16.mxu0 %v21791_v61  ;;  %v21839_v55 = vld [vmem:[#allocation12 + $0x1f8c] ss:$24 sps:$4 sm:$0xff]   ;;  %v21834_v61 = vld [vmem:[#allocation12 + $0x1f80] ss:$24 sps:$4 sm:$0xff]  }
 0x83d   :  { %15511 = vmatmul.mubr.bf16.vlgmr.msra.gmra.mrb[12].mxu1 %v24649_v31 }
 0x83e   :  { %16003 = vmatmul.mubr.bf16.vlgmr.msra.gmra.mrb[28].mxu0 %v24649_v31  ;;  %15520 = vmatpush1.bf16.msra.mxu1 %v21786_v35  ;;  %v21842_v35 = vld [vmem:[#allocation12 + $0x1fb4] ss:$24 sps:$4 sm:$0xff]  }
 0x83f   :  { %15551 = vmatprep.mubr.bf16.mxu1 %v24652_v11  ;;  %16012 = vmatpush1.bf16.msra.mxu0 %v21789_v0  ;;  %v21845_v0 = vld [vmem:[#allocation12 + $0x1fbc] ss:$24 sps:$4 sm:$0xff]  }
 0x840   :  { %16043 = vmatprep.mubr.bf16.mxu0 %v24652_v11  ;;  %15521 = vmatprep.subr.bf16.mxu1 %v21794_v8  ;;  %v21840_v8 = vld [vmem:[#allocation12 + $0x1fb0] ss:$24 sps:$4 sm:$0xff]  }
 0x841   :  { %16013 = vmatprep.subr.bf16.mxu0 %v21797_v13  ;;  %v21843_v13 = vld [vmem:[#allocation12 + $0x1fb8] ss:$24 sps:$4 sm:$0xff]  }
 0x842   :  { %15522 = vmatpush1.bf16.msra.mxu1 %v21792_v36  ;;  %v21848_v36 = vld [vmem:[#allocation12 + $0x1fe4] ss:$24 sps:$4 sm:$0xff]  }
 0x843   :  { %16014 = vmatpush1.bf16.msra.mxu0 %v21795_v52  ;;  %15523 = vmatprep.subr.bf16.mxu1 %v21800_v14  ;;  %v21851_v52 = vld [vmem:[#allocation12 + $0x1fec] ss:$24 sps:$4 sm:$0xff]   ;;  %v21846_v14 = vld [vmem:[#allocation12 + $0x1fe0] ss:$24 sps:$4 sm:$0xff]  }
 0x844   :  { %16015 = vmatprep.subr.bf16.mxu0 %v21803_v10  ;;  %v21849_v10 = vld [vmem:[#allocation12 + $0x1fe8] ss:$24 sps:$4 sm:$0xff]  }
 0x846   :  { %15524 = vmatpush1.bf16.msra.mxu1 %v21798_v15  ;;  %v21854_v15 = vld [vmem:[#allocation12 + $0x2014] ss:$24 sps:$4 sm:$0xff]  }
 0x847   :  { %16016 = vmatpush1.bf16.msra.mxu0 %v21801_v20  ;;  %15525 = vmatprep.subr.bf16.mxu1 %v21806_v21  ;;  %v21857_v20 = vld [vmem:[#allocation12 + $0x201c] ss:$24 sps:$4 sm:$0xff]   ;;  %v21852_v21 = vld [vmem:[#allocation12 + $0x2010] ss:$24 sps:$4 sm:$0xff]  }
 0x848   :  { %16017 = vmatprep.subr.bf16.mxu0 %v21809_v23  ;;  %v21855_v23 = vld [vmem:[#allocation12 + $0x2018] ss:$24 sps:$4 sm:$0xff]  }
 0x84a   :  { %15526 = vmatpush1.bf16.msra.mxu1 %v21804_v49  ;;  %v21860_v49 = vld [vmem:[#allocation12 + $0x2044] ss:$24 sps:$4 sm:$0xff]  }
 0x84b   :  { %16018 = vmatpush1.bf16.msra.mxu0 %v21807_v62  ;;  %15527 = vmatprep.subr.bf16.mxu1 %v21812_v24  ;;  %v21863_v62 = vld [vmem:[#allocation12 + $0x204c] ss:$24 sps:$4 sm:$0xff]   ;;  %v21858_v24 = vld [vmem:[#allocation12 + $0x2040] ss:$24 sps:$4 sm:$0xff]  }
 0x84c   :  { %16019 = vmatprep.subr.bf16.mxu0 %v21815_v28  ;;  %v21861_v28 = vld [vmem:[#allocation12 + $0x2048] ss:$24 sps:$4 sm:$0xff]  }
 0x84e   :  { %15528 = vmatpush1.bf16.msra.mxu1 %v21810_v38  ;;  %v21866_v38 = vld [vmem:[#allocation12 + $0x2074] ss:$24 sps:$4 sm:$0xff]  }
 0x84f   :  { %16020 = vmatpush1.bf16.msra.mxu0 %v21813_v27  ;;  %15529 = vmatprep.subr.bf16.mxu1 %v21818_v5  ;;  %v21869_v27 = vld [vmem:[#allocation12 + $0x207c] ss:$24 sps:$4 sm:$0xff]   ;;  %v21864_v5 = vld [vmem:[#allocation12 + $0x2070] ss:$24 sps:$4 sm:$0xff]  }
 0x850   :  { %16021 = vmatprep.subr.bf16.mxu0 %v21821_v6  ;;  %v21867_v6 = vld [vmem:[#allocation12 + $0x2078] ss:$24 sps:$4 sm:$0xff]  }
 0x852   :  { %15530 = vmatpush1.bf16.msra.mxu1 %v21816_v48  ;;  %v21872_v48 = vld [vmem:[#allocation12 + $0x20a4] ss:$24 sps:$4 sm:$0xff]  }
 0x853   :  { %16022 = vmatpush1.bf16.msra.mxu0 %v21819_v9  ;;  %15531 = vmatprep.subr.bf16.mxu1 %v21824_v46  ;;  %v21875_v9 = vld [vmem:[#allocation12 + $0x20ac] ss:$24 sps:$4 sm:$0xff]   ;;  %v8100_v46 = vcombine.high %v24639_v42, %v24639_v42 }
 0x854   :  { %16023 = vmatprep.subr.bf16.mxu0 %v21827_v41  ;;  %v21870_v41 = vld [vmem:[#allocation12 + $0x20a0] ss:$24 sps:$4 sm:$0xff]  }
 0x856   :  { %15532 = vmatpush1.bf16.msra.mxu1 %v21822_v19  ;;  %v21873_v19 = vld [vmem:[#allocation12 + $0x20a8] ss:$24 sps:$4 sm:$0xff]  }
 0x857   :  { %16024 = vmatpush1.bf16.msra.mxu0 %v21825_v1  ;;  %15533 = vmatprep.subr.bf16.mxu1 %v21830_v3  ;;  %v21878_v1 = vld [vmem:[#allocation12 + $0x20d4] ss:$24 sps:$4 sm:$0xff]  }
 0x858   :  { %16025 = vmatprep.subr.bf16.mxu0 %v21833_v18  ;;  %v21881_v3 = vld [vmem:[#allocation12 + $0x20dc] ss:$24 sps:$4 sm:$0xff]   ;;  %v24660_v18 = vrot.slane %v8100_v46, %v23801_v58  ;;  %v21885_v58 = vld [vmem:[#allocation12 + $0x2108] ss:$24 sps:$4 sm:$0xff]  }
 0x859   :  { %v21919_v46 = vld [vmem:[#allocation12 + $0x2220] ss:$24 sps:$4 sm:$0xff]  }
 0x85a   :  { %15534 = vmatpush1.bf16.msra.mxu1 %v21828_v25  ;;  %v21876_v25 = vld [vmem:[#allocation12 + $0x20d0] ss:$24 sps:$4 sm:$0xff]   ;;  %v8116_v42 = vcombine.high %v24660_v18, %v24660_v18 }
 0x85b   :  { %16026 = vmatpush1.bf16.msra.mxu0 %v21831_v53  ;;  %15535 = vmatprep.subr.bf16.mxu1 %v21836_v34  ;;  %v21879_v53 = vld [vmem:[#allocation12 + $0x20d8] ss:$24 sps:$4 sm:$0xff]   ;;  %v21884_v34 = vld [vmem:[#allocation12 + $0x2104] ss:$24 sps:$4 sm:$0xff]  }
 0x85c   :  { %16027 = vmatprep.subr.bf16.mxu0 %v21839_v55  ;;  %v21887_v55 = vld [vmem:[#allocation12 + $0x210c] ss:$24 sps:$4 sm:$0xff]  }
 0x85e   :  { %15536 = vmatpush1.bf16.msra.mxu1 %v21834_v61  ;;  %v21882_v61 = vld [vmem:[#allocation12 + $0x2100] ss:$24 sps:$4 sm:$0xff]  }
 0x85f   :  { %16028 = vmatpush1.bf16.msra.mxu0 %v21837_v4  ;;  %15537 = vmatprep.subr.bf16.mxu1 %v21842_v35  ;;  %v24666_v4 = vpack.c.bf16 %v24643_v26, %v24643_v26  ;;  %v21891_v35 = vld [vmem:[#allocation12 + $0x2134] ss:$24 sps:$4 sm:$0xff]  }
 0x860   :  { %16029 = vmatprep.subr.bf16.mxu0 %v21845_v0  ;;  %v24669_v0 = vpack.c.bf16 %v8116_v42, %v8116_v42  ;;  %v21900_v26 = vld [vmem:[#allocation12 + $0x216c] ss:$24 sps:$4 sm:$0xff]   ;;  %v21934_v42 = vld [vmem:[#allocation12 + $0x2288] ss:$24 sps:$4 sm:$0xff]  }
 0x862   :  { %15538 = vmatpush1.bf16.msra.mxu1 %v21840_v8  ;;  %v21894_v8 = vld [vmem:[#allocation12 + $0x213c] ss:$24 sps:$4 sm:$0xff]  }
 0x863   :  { %16030 = vmatpush1.bf16.msra.mxu0 %v21843_v13  ;;  %15539 = vmatprep.subr.bf16.mxu1 %v21848_v36  ;;  %v21889_v13 = vld [vmem:[#allocation12 + $0x2130] ss:$24 sps:$4 sm:$0xff]  }
 0x864   :  { %16031 = vmatprep.subr.bf16.mxu0 %v21851_v52  ;;  %v21892_v36 = vld [vmem:[#allocation12 + $0x2138] ss:$24 sps:$4 sm:$0xff]   ;;  %v21897_v52 = vld [vmem:[#allocation12 + $0x2164] ss:$24 sps:$4 sm:$0xff]  }
 0x866   :  { %15540 = vmatpush1.bf16.msra.mxu1 %v21846_v14  ;;  %v21895_v14 = vld [vmem:[#allocation12 + $0x2160] ss:$24 sps:$4 sm:$0xff]  }
 0x867   :  { %16032 = vmatpush1.bf16.msra.mxu0 %v21849_v10  ;;  %15541 = vmatprep.subr.bf16.mxu1 %v21854_v15  ;;  %v21898_v10 = vld [vmem:[#allocation12 + $0x2168] ss:$24 sps:$4 sm:$0xff]   ;;  %v21903_v15 = vld [vmem:[#allocation12 + $0x2194] ss:$24 sps:$4 sm:$0xff]  }
 0x868   :  { %16033 = vmatprep.subr.bf16.mxu0 %v21857_v20  ;;  %v21906_v20 = vld [vmem:[#allocation12 + $0x219c] ss:$24 sps:$4 sm:$0xff]  }
 0x86a   :  { %15542 = vmatpush1.bf16.msra.mxu1 %v21852_v21  ;;  %v21901_v21 = vld [vmem:[#allocation12 + $0x2190] ss:$24 sps:$4 sm:$0xff]  }
 0x86b   :  { %16034 = vmatpush1.bf16.msra.mxu0 %v21855_v23  ;;  %15543 = vmatprep.subr.bf16.mxu1 %v21860_v49  ;;  %v21904_v23 = vld [vmem:[#allocation12 + $0x2198] ss:$24 sps:$4 sm:$0xff]   ;;  %v21909_v49 = vld [vmem:[#allocation12 + $0x21c4] ss:$24 sps:$4 sm:$0xff]  }
 0x86c   :  { %16035 = vmatprep.subr.bf16.mxu0 %v21863_v62  ;;  %v21912_v62 = vld [vmem:[#allocation12 + $0x21cc] ss:$24 sps:$4 sm:$0xff]  }
 0x86e   :  { %15544 = vmatpush1.bf16.msra.mxu1 %v21858_v24  ;;  %v21907_v24 = vld [vmem:[#allocation12 + $0x21c0] ss:$24 sps:$4 sm:$0xff]  }
 0x86f   :  { %16036 = vmatpush1.bf16.msra.mxu0 %v21861_v28  ;;  %15545 = vmatprep.subr.bf16.mxu1 %v21866_v38  ;;  %v21910_v28 = vld [vmem:[#allocation12 + $0x21c8] ss:$24 sps:$4 sm:$0xff]   ;;  %v21915_v38 = vld [vmem:[#allocation12 + $0x21f4] ss:$24 sps:$4 sm:$0xff]  }
 0x870   :  { %16037 = vmatprep.subr.bf16.mxu0 %v21869_v27  ;;  %v21918_v27 = vld [vmem:[#allocation12 + $0x21fc] ss:$24 sps:$4 sm:$0xff]  }
 0x872   :  { %15546 = vmatpush1.bf16.msra.mxu1 %v21864_v5  ;;  %v21913_v5 = vld [vmem:[#allocation12 + $0x21f0] ss:$24 sps:$4 sm:$0xff]  }
 0x873   :  { %16038 = vmatpush1.bf16.msra.mxu0 %v21867_v6  ;;  %15547 = vmatprep.subr.bf16.mxu1 %v21872_v48  ;;  %v21916_v6 = vld [vmem:[#allocation12 + $0x21f8] ss:$24 sps:$4 sm:$0xff]   ;;  %v21921_v48 = vld [vmem:[#allocation12 + $0x2224] ss:$24 sps:$4 sm:$0xff]  }
 0x874   :  { %16039 = vmatprep.subr.bf16.mxu0 %v21875_v9  ;;  %v21924_v9 = vld [vmem:[#allocation12 + $0x222c] ss:$24 sps:$4 sm:$0xff]  }
 0x876   :  { %15548 = vmatpush1.bf16.msra.mxu1 %v21870_v41  ;;  %v21922_v41 = vld [vmem:[#allocation12 + $0x2228] ss:$24 sps:$4 sm:$0xff]  }
 0x877   :  { %16040 = vmatpush1.bf16.msra.mxu0 %v21873_v19  ;;  %15549 = vmatprep.subr.bf16.mxu1 %v21878_v1  ;;  %v21927_v19 = vld [vmem:[#allocation12 + $0x2254] ss:$24 sps:$4 sm:$0xff]  }
 0x878   :  { %16041 = vmatprep.subr.bf16.mxu0 %v21881_v3  ;;  %v21930_v1 = vld [vmem:[#allocation12 + $0x225c] ss:$24 sps:$4 sm:$0xff]   ;;  %v21925_v3 = vld [vmem:[#allocation12 + $0x2250] ss:$24 sps:$4 sm:$0xff]  }
 0x87a   :  { %15550 = vmatpush1.bf16.msra.mxu1 %v21876_v25  ;;  %v21928_v25 = vld [vmem:[#allocation12 + $0x2258] ss:$24 sps:$4 sm:$0xff]  }
 0x87b   :  { %16042 = vmatpush1.bf16.msra.mxu0 %v21879_v53  ;;  %15560 = vmatprep.subr.bf16.mxu1 %v21884_v34  ;;  %v21933_v53 = vld [vmem:[#allocation12 + $0x2284] ss:$24 sps:$4 sm:$0xff]  }
 0x87c   :  { %16052 = vmatprep.subr.bf16.mxu0 %v21887_v55  ;;  %v21936_v34 = vld [vmem:[#allocation12 + $0x228c] ss:$24 sps:$4 sm:$0xff]   ;;  %v21931_v55 = vld [vmem:[#allocation12 + $0x2280] ss:$24 sps:$4 sm:$0xff]  }
 0x87d   :  { %15552 = vmatmul.mubr.bf16.vlgmr.msra.gmra.mrb[12].mxu1 %v24666_v4 }
 0x87e   :  { %16044 = vmatmul.mubr.bf16.vlgmr.msra.gmra.mrb[28].mxu0 %v24666_v4  ;;  %15561 = vmatpush1.bf16.msra.mxu1 %v21882_v61  ;;  %v21939_v61 = vld [vmem:[#allocation12 + $0x22b4] ss:$24 sps:$4 sm:$0xff]  }
 0x87f   :  { %15592 = vmatprep.mubr.bf16.mxu1 %v24669_v0  ;;  %16053 = vmatpush1.bf16.msra.mxu0 %v21885_v58  ;;  %v21942_v58 = vld [vmem:[#allocation12 + $0x22bc] ss:$24 sps:$4 sm:$0xff]  }
 0x880   :  { %16084 = vmatprep.mubr.bf16.mxu0 %v24669_v0  ;;  %15562 = vmatprep.subr.bf16.mxu1 %v21891_v35  ;;  %v21937_v35 = vld [vmem:[#allocation12 + $0x22b0] ss:$24 sps:$4 sm:$0xff]  }
 0x881   :  { %16054 = vmatprep.subr.bf16.mxu0 %v21894_v8  ;;  %v21940_v8 = vld [vmem:[#allocation12 + $0x22b8] ss:$24 sps:$4 sm:$0xff]  }
 0x882   :  { %15563 = vmatpush1.bf16.msra.mxu1 %v21889_v13  ;;  %v21945_v13 = vld [vmem:[#allocation12 + $0x22e4] ss:$24 sps:$4 sm:$0xff]  }
 0x883   :  { %16055 = vmatpush1.bf16.msra.mxu0 %v21892_v36  ;;  %15564 = vmatprep.subr.bf16.mxu1 %v21897_v52  ;;  %v21948_v36 = vld [vmem:[#allocation12 + $0x22ec] ss:$24 sps:$4 sm:$0xff]   ;;  %v21943_v52 = vld [vmem:[#allocation12 + $0x22e0] ss:$24 sps:$4 sm:$0xff]  }
 0x884   :  { %16056 = vmatprep.subr.bf16.mxu0 %v21900_v26  ;;  %v21946_v26 = vld [vmem:[#allocation12 + $0x22e8] ss:$24 sps:$4 sm:$0xff]  }
 0x886   :  { %15565 = vmatpush1.bf16.msra.mxu1 %v21895_v14  ;;  %v21951_v14 = vld [vmem:[#allocation12 + $0x2314] ss:$24 sps:$4 sm:$0xff]  }
 0x887   :  { %16057 = vmatpush1.bf16.msra.mxu0 %v21898_v10  ;;  %15566 = vmatprep.subr.bf16.mxu1 %v21903_v15  ;;  %v21954_v10 = vld [vmem:[#allocation12 + $0x231c] ss:$24 sps:$4 sm:$0xff]   ;;  %v21949_v15 = vld [vmem:[#allocation12 + $0x2310] ss:$24 sps:$4 sm:$0xff]  }
 0x888   :  { %16058 = vmatprep.subr.bf16.mxu0 %v21906_v20  ;;  %v21952_v20 = vld [vmem:[#allocation12 + $0x2318] ss:$24 sps:$4 sm:$0xff]  }
 0x88a   :  { %15567 = vmatpush1.bf16.msra.mxu1 %v21901_v21  ;;  %v21957_v21 = vld [vmem:[#allocation12 + $0x2344] ss:$24 sps:$4 sm:$0xff]  }
 0x88b   :  { %16059 = vmatpush1.bf16.msra.mxu0 %v21904_v23  ;;  %15568 = vmatprep.subr.bf16.mxu1 %v21909_v49  ;;  %v21960_v23 = vld [vmem:[#allocation12 + $0x234c] ss:$24 sps:$4 sm:$0xff]   ;;  %v21955_v49 = vld [vmem:[#allocation12 + $0x2340] ss:$24 sps:$4 sm:$0xff]  }
 0x88c   :  { %16060 = vmatprep.subr.bf16.mxu0 %v21912_v62  ;;  %v21958_v62 = vld [vmem:[#allocation12 + $0x2348] ss:$24 sps:$4 sm:$0xff]  }
 0x88e   :  { %15569 = vmatpush1.bf16.msra.mxu1 %v21907_v24  ;;  %v21963_v24 = vld [vmem:[#allocation12 + $0x2374] ss:$24 sps:$4 sm:$0xff]  }
 0x88f   :  { %16061 = vmatpush1.bf16.msra.mxu0 %v21910_v28  ;;  %15570 = vmatprep.subr.bf16.mxu1 %v21915_v38  ;;  %v21966_v28 = vld [vmem:[#allocation12 + $0x237c] ss:$24 sps:$4 sm:$0xff]   ;;  %v21961_v38 = vld [vmem:[#allocation12 + $0x2370] ss:$24 sps:$4 sm:$0xff]  }
 0x890   :  { %16062 = vmatprep.subr.bf16.mxu0 %v21918_v27  ;;  %v21964_v27 = vld [vmem:[#allocation12 + $0x2378] ss:$24 sps:$4 sm:$0xff]  }
 0x892   :  { %15571 = vmatpush1.bf16.msra.mxu1 %v21913_v5  ;;  %v21969_v5 = vld [vmem:[#allocation12 + $0x23a4] ss:$24 sps:$4 sm:$0xff]  }
 0x893   :  { %16063 = vmatpush1.bf16.msra.mxu0 %v21916_v6  ;;  %15572 = vmatprep.subr.bf16.mxu1 %v21921_v48  ;;  %v21972_v6 = vld [vmem:[#allocation12 + $0x23ac] ss:$24 sps:$4 sm:$0xff]   ;;  %v21967_v48 = vld [vmem:[#allocation12 + $0x23a0] ss:$24 sps:$4 sm:$0xff]  }
 0x894   :  { %16064 = vmatprep.subr.bf16.mxu0 %v21924_v9  ;;  %v21970_v9 = vld [vmem:[#allocation12 + $0x23a8] ss:$24 sps:$4 sm:$0xff]  }
 0x896   :  { %15573 = vmatpush1.bf16.msra.mxu1 %v21919_v46  ;;  %v21975_v46 = vld [vmem:[#allocation12 + $0x23d4] ss:$24 sps:$4 sm:$0xff]  }
 0x897   :  { %16065 = vmatpush1.bf16.msra.mxu0 %v21922_v41  ;;  %15574 = vmatprep.subr.bf16.mxu1 %v21927_v19  ;;  %v21978_v41 = vld [vmem:[#allocation12 + $0x23dc] ss:$24 sps:$4 sm:$0xff]   ;;  %v21973_v19 = vld [vmem:[#allocation12 + $0x23d0] ss:$24 sps:$4 sm:$0xff]  }
 0x898   :  { %16066 = vmatprep.subr.bf16.mxu0 %v21930_v1  ;;  %v21976_v1 = vld [vmem:[#allocation12 + $0x23d8] ss:$24 sps:$4 sm:$0xff]  }
 0x89a   :  { %15575 = vmatpush1.bf16.msra.mxu1 %v21925_v3  ;;  %v21981_v3 = vld [vmem:[#allocation12 + $0x14] ss:$24 sps:$4 sm:$0xff]  }
 0x89b   :  { %16067 = vmatpush1.bf16.msra.mxu0 %v21928_v25  ;;  %15576 = vmatprep.subr.bf16.mxu1 %v21933_v53  ;;  %v21979_v25 = vld [vmem:[#allocation12 + $0x10] ss:$24 sps:$4 sm:$0xff]   ;;  %v24676_v53 = vpack.c.bf16 %v24660_v18, %v24660_v18  ;;  %v21993_v18 = vld [vmem:[#allocation12 + $0xd4] ss:$24 sps:$4 sm:$0xff]  }
 0x89c   :  { %16068 = vmatprep.subr.bf16.mxu0 %v21936_v34  ;;  %v21984_v34 = vld [vmem:[#allocation12 + $0x44] ss:$24 sps:$4 sm:$0xff]  }
 0x89e   :  { %15577 = vmatpush1.bf16.msra.mxu1 %v21931_v55  ;;  %v21982_v55 = vld [vmem:[#allocation12 + $0x40] ss:$24 sps:$4 sm:$0xff]  }
 0x89f   :  { %16069 = vmatpush1.bf16.msra.mxu0 %v21934_v42  ;;  %15578 = vmatprep.subr.bf16.mxu1 %v21939_v61  ;;  %v21987_v42 = vld [vmem:[#allocation12 + $0x74] ss:$24 sps:$4 sm:$0xff]   ;;  %v21985_v61 = vld [vmem:[#allocation12 + $0x70] ss:$24 sps:$4 sm:$0xff]  }
 0x8a0   :  { %16070 = vmatprep.subr.bf16.mxu0 %v21942_v58  ;;  %v21990_v58 = vld [vmem:[#allocation12 + $0xa4] ss:$24 sps:$4 sm:$0xff]  }
 0x8a2   :  { %15579 = vmatpush1.bf16.msra.mxu1 %v21937_v35  ;;  %v21988_v35 = vld [vmem:[#allocation12 + $0xa0] ss:$24 sps:$4 sm:$0xff]  }
 0x8a3   :  { %16071 = vmatpush1.bf16.msra.mxu0 %v21940_v8  ;;  %15580 = vmatprep.subr.bf16.mxu1 %v21945_v13  ;;  %v21991_v8 = vld [vmem:[#allocation12 + $0xd0] ss:$24 sps:$4 sm:$0xff]   ;;  %v21996_v13 = vld [vmem:[#allocation12 + $0x104] ss:$24 sps:$4 sm:$0xff]  }
 0x8a4   :  { %16072 = vmatprep.subr.bf16.mxu0 %v21948_v36  ;;  %v21994_v36 = vld [vmem:[#allocation12 + $0x100] ss:$24 sps:$4 sm:$0xff]  }
 0x8a6   :  { %15581 = vmatpush1.bf16.msra.mxu1 %v21943_v52  ;;  %v21999_v52 = vld [vmem:[#allocation12 + $0x134] ss:$24 sps:$4 sm:$0xff]  }
 0x8a7   :  { %16073 = vmatpush1.bf16.msra.mxu0 %v21946_v26  ;;  %15582 = vmatprep.subr.bf16.mxu1 %v21951_v14  ;;  %v22002_v26 = vld [vmem:[#allocation12 + $0x164] ss:$24 sps:$4 sm:$0xff]   ;;  %v22000_v14 = vld [vmem:[#allocation12 + $0x160] ss:$24 sps:$4 sm:$0xff]  }
 0x8a8   :  { %16074 = vmatprep.subr.bf16.mxu0 %v21954_v10  ;;  %v22005_v10 = vld [vmem:[#allocation12 + $0x194] ss:$24 sps:$4 sm:$0xff]  }
 0x8aa   :  { %15583 = vmatpush1.bf16.msra.mxu1 %v21949_v15  ;;  %v22003_v15 = vld [vmem:[#allocation12 + $0x190] ss:$24 sps:$4 sm:$0xff]  }
 0x8ab   :  { %16075 = vmatpush1.bf16.msra.mxu0 %v21952_v20  ;;  %15584 = vmatprep.subr.bf16.mxu1 %v21957_v21  ;;  %v22008_v20 = vld [vmem:[#allocation12 + $0x1c4] ss:$24 sps:$4 sm:$0xff]   ;;  %v22006_v21 = vld [vmem:[#allocation12 + $0x1c0] ss:$24 sps:$4 sm:$0xff]  }
 0x8ac   :  { %16076 = vmatprep.subr.bf16.mxu0 %v21960_v23  ;;  %v22011_v23 = vld [vmem:[#allocation12 + $0x1f4] ss:$24 sps:$4 sm:$0xff]  }
 0x8ae   :  { %15585 = vmatpush1.bf16.msra.mxu1 %v21955_v49  ;;  %v22009_v49 = vld [vmem:[#allocation12 + $0x1f0] ss:$24 sps:$4 sm:$0xff]  }
 0x8af   :  { %16077 = vmatpush1.bf16.msra.mxu0 %v21958_v62  ;;  %15586 = vmatprep.subr.bf16.mxu1 %v21963_v24  ;;  %v22014_v62 = vld [vmem:[#allocation12 + $0x224] ss:$24 sps:$4 sm:$0xff]   ;;  %v22012_v24 = vld [vmem:[#allocation12 + $0x220] ss:$24 sps:$4 sm:$0xff]  }
 0x8b0   :  { %16078 = vmatprep.subr.bf16.mxu0 %v21966_v28  ;;  %v22017_v28 = vld [vmem:[#allocation12 + $0x254] ss:$24 sps:$4 sm:$0xff]  }
 0x8b2   :  { %15587 = vmatpush1.bf16.msra.mxu1 %v21961_v38  ;;  %v22015_v38 = vld [vmem:[#allocation12 + $0x250] ss:$24 sps:$4 sm:$0xff]  }
 0x8b3   :  { %16079 = vmatpush1.bf16.msra.mxu0 %v21964_v27  ;;  %15588 = vmatprep.subr.bf16.mxu1 %v21969_v5  ;;  %v22020_v27 = vld [vmem:[#allocation12 + $0x284] ss:$24 sps:$4 sm:$0xff]   ;;  %v22018_v5 = vld [vmem:[#allocation12 + $0x280] ss:$24 sps:$4 sm:$0xff]  }
 0x8b4   :  { %16080 = vmatprep.subr.bf16.mxu0 %v21972_v6  ;;  %v22023_v6 = vld [vmem:[#allocation12 + $0x2b4] ss:$24 sps:$4 sm:$0xff]  }
 0x8b6   :  { %15589 = vmatpush1.bf16.msra.mxu1 %v21967_v48  ;;  %v22021_v48 = vld [vmem:[#allocation12 + $0x2b0] ss:$24 sps:$4 sm:$0xff]  }
 0x8b7   :  { %16081 = vmatpush1.bf16.msra.mxu0 %v21970_v9  ;;  %15590 = vmatprep.subr.bf16.mxu1 %v21975_v46  ;;  %v22026_v9 = vld [vmem:[#allocation12 + $0x2e4] ss:$24 sps:$4 sm:$0xff]   ;;  %v22024_v46 = vld [vmem:[#allocation12 + $0x2e0] ss:$24 sps:$4 sm:$0xff]  }
 0x8b8   :  { %16082 = vmatprep.subr.bf16.mxu0 %v21978_v41  ;;  %v22120_v41 = vld [vmem:[#allocation15 + $0x40] sm:$0xff]  }
 0x8ba   :  { %15591 = vmatpush1.bf16.msra.mxu1 %v21973_v19  ;;  %v22029_v19 = vld [vmem:[#allocation12 + $0x314] ss:$24 sps:$4 sm:$0xff]  }
 0x8bb   :  { %16083 = vmatpush1.bf16.msra.mxu0 %v21976_v1  ;;  %16093 = vmatprep.subr.bf16.mxu1 %v21981_v3  ;;  %v22124_v1 = vld [vmem:[#allocation15] sm:$0xff]  }
 0x8bc   :  { %19211 = vmatprep.subr.bf16.mxu0 %v22120_v41  ;;  %v22027_v3 = vld [vmem:[#allocation12 + $0x310] ss:$24 sps:$4 sm:$0xff]   ;;  %v22059_v41 = vld [vmem:[#allocation12 + $0x4f4] ss:$24 sps:$4 sm:$0xff]  }
 0x8bd   :  { %15593 = vmatmul.mubr.bf16.vlgmr.msra.gmra.mrb[12].mxu1 %v24676_v53 }
 0x8be   :  { %16085 = vmatmul.mubr.bf16.vlgmr.msra.gmra.mrb[28].mxu0 %v24676_v53  ;;  %16094 = vmatpush1.bf16.msra.mxu1 %v21979_v25  ;;  %v22125_v25 = vld [vmem:[#allocation15 + $0x48] sm:$0xff]  }
 0x8bf   :  { %16125 = vmatprep.mubr.bf16.mxu1 %v24403_v56  ;;  %16095 = vmatprep.subr.bf16.mxu1 %v21984_v34  ;;  %v21997_v56 = vld [vmem:[#allocation12 + $0x130] ss:$24 sps:$4 sm:$0xff]   ;;  %v22032_v34 = vld [vmem:[#allocation12 + $0x344] ss:$24 sps:$4 sm:$0xff]  }
 0x8c0   :  { %19212 = vmatpush3.bf16.msra.mxu0 %v22124_v1  ;;  %v22062_v1 = vld [vmem:[#allocation12 + $0x524] ss:$24 sps:$4 sm:$0xff]  }
 0x8c1   :  { %19213 = vmatprep.subr.bf16.mxu0 %v22125_v25  ;;  %v22065_v25 = vld [vmem:[#allocation12 + $0x554] ss:$24 sps:$4 sm:$0xff]  }
 0x8c2   :  { %16096 = vmatpush1.bf16.msra.mxu1 %v21982_v55  ;;  %v22129_v55 = vld [vmem:[#allocation15 + $0x8] sm:$0xff]  }
 0x8c3   :  { %16097 = vmatprep.subr.bf16.mxu1 %v21987_v42  ;;  %v22030_v42 = vld [vmem:[#allocation12 + $0x340] ss:$24 sps:$4 sm:$0xff]  }
 0x8c4   :  { %19214 = vmatpush3.bf16.msra.mxu0 %v22129_v55  ;;  %v22068_v55 = vld [vmem:[#allocation12 + $0x584] ss:$24 sps:$4 sm:$0xff]  }
 0x8c6   :  { %16098 = vmatpush1.bf16.msra.mxu1 %v21985_v61  ;;  %v22130_v61 = vld [vmem:[#allocation15 + $0x50] sm:$0xff]  }
 0x8c7   :  { %16099 = vmatprep.subr.bf16.mxu1 %v21990_v58  ;;  %v22035_v58 = vld [vmem:[#allocation12 + $0x374] ss:$24 sps:$4 sm:$0xff]   ;;  %19215 = vmatprep.subr.bf16.mxu0 %v22130_v61 }
 0x8c8   :  { %v22071_v61 = vld [vmem:[#allocation12 + $0x5b4] ss:$24 sps:$4 sm:$0xff]  }
 0x8ca   :  { %16100 = vmatpush1.bf16.msra.mxu1 %v21988_v35  ;;  %v22134_v35 = vld [vmem:[#allocation15 + $0x10] sm:$0xff]  }
 0x8cb   :  { %16101 = vmatprep.subr.bf16.mxu1 %v21993_v18  ;;  %v22033_v18 = vld [vmem:[#allocation12 + $0x370] ss:$24 sps:$4 sm:$0xff]   ;;  %19216 = vmatpush3.bf16.msra.mxu0 %v22134_v35  ;;  %v22074_v35 = vld [vmem:[#allocation12 + $0x5e4] ss:$24 sps:$4 sm:$0xff]  }
 0x8ce   :  { %16102 = vmatpush1.bf16.msra.mxu1 %v21991_v8  ;;  %v22135_v8 = vld [vmem:[#allocation15 + $0x58] sm:$0xff]  }
 0x8cf   :  { %16103 = vmatprep.subr.bf16.mxu1 %v21996_v13  ;;  %v22038_v13 = vld [vmem:[#allocation12 + $0x3a4] ss:$24 sps:$4 sm:$0xff]   ;;  %19217 = vmatprep.subr.bf16.mxu0 %v22135_v8  ;;  %v22077_v8 = vld [vmem:[#allocation12 + $0x614] ss:$24 sps:$4 sm:$0xff]  }
 0x8d2   :  { %16104 = vmatpush1.bf16.msra.mxu1 %v21994_v36  ;;  %v22139_v36 = vld [vmem:[#allocation15 + $0x18] sm:$0xff]  }
 0x8d3   :  { %16105 = vmatprep.subr.bf16.mxu1 %v21999_v52  ;;  %v22140_v52 = vld [vmem:[#allocation15 + $0x60] sm:$0xff]   ;;  %19218 = vmatpush3.bf16.msra.mxu0 %v22139_v36 }
 0x8d4   :  { %19219 = vmatprep.subr.bf16.mxu0 %v22140_v52  ;;  %v22080_v36 = vld [vmem:[#allocation12 + $0x644] ss:$24 sps:$4 sm:$0xff]   ;;  %v22083_v52 = vld [vmem:[#allocation12 + $0x674] ss:$24 sps:$4 sm:$0xff]  }
 0x8d6   :  { %16106 = vmatpush1.bf16.msra.mxu1 %v21997_v56  ;;  %v22144_v56 = vld [vmem:[#allocation15 + $0x20] sm:$0xff]  }
 0x8d7   :  { %16107 = vmatprep.subr.bf16.mxu1 %v22002_v26  ;;  %v22039_v26 = vld [vmem:[#allocation12 + $0x3d0] ss:$24 sps:$4 sm:$0xff]   ;;  %19220 = vmatpush3.bf16.msra.mxu0 %v22144_v56  ;;  %v22086_v56 = vld [vmem:[#allocation12 + $0x6a4] ss:$24 sps:$4 sm:$0xff]  }
 0x8da   :  { %16108 = vmatpush1.bf16.msra.mxu1 %v22000_v14  ;;  %v22145_v14 = vld [vmem:[#allocation15 + $0x68] sm:$0xff]  }
 0x8db   :  { %16109 = vmatprep.subr.bf16.mxu1 %v22005_v10  ;;  %v22044_v10 = vld [vmem:[#allocation12 + $0x404] ss:$24 sps:$4 sm:$0xff]   ;;  %19221 = vmatprep.subr.bf16.mxu0 %v22145_v14  ;;  %v22089_v14 = vld [vmem:[#allocation12 + $0x6d4] ss:$24 sps:$4 sm:$0xff]  }
 0x8de   :  { %16110 = vmatpush1.bf16.msra.mxu1 %v22003_v15  ;;  %v22149_v15 = vld [vmem:[#allocation15 + $0x28] sm:$0xff]  }
 0x8df   :  { %16111 = vmatprep.subr.bf16.mxu1 %v22008_v20  ;;  %v22042_v20 = vld [vmem:[#allocation12 + $0x400] ss:$24 sps:$4 sm:$0xff]   ;;  %19222 = vmatpush3.bf16.msra.mxu0 %v22149_v15  ;;  %v22092_v15 = vld [vmem:[#allocation12 + $0x704] ss:$24 sps:$4 sm:$0xff]  }
 0x8e2   :  { %16112 = vmatpush1.bf16.msra.mxu1 %v22006_v21  ;;  %v22047_v21 = vld [vmem:[#allocation12 + $0x434] ss:$24 sps:$4 sm:$0xff]  }
 0x8e3   :  { %16113 = vmatprep.subr.bf16.mxu1 %v22011_v23  ;;  %v22045_v23 = vld [vmem:[#allocation12 + $0x430] ss:$24 sps:$4 sm:$0xff]  }
 0x8e6   :  { %16114 = vmatpush1.bf16.msra.mxu1 %v22009_v49  ;;  %v22050_v49 = vld [vmem:[#allocation12 + $0x464] ss:$24 sps:$4 sm:$0xff]  }
 0x8e7   :  { %16115 = vmatprep.subr.bf16.mxu1 %v22014_v62  ;;  %v22150_v62 = vld [vmem:[#allocation15 + $0x70] sm:$0xff]  }
 0x8e8   :  { %19223 = vmatprep.subr.bf16.mxu0 %v22150_v62  ;;  %v22099_v62 = vld [vmem:[#allocation12 + $0x790] ss:$24 sps:$4 sm:$0xff]  }
 0x8ea   :  { %16116 = vmatpush1.bf16.msra.mxu1 %v22012_v24  ;;  %v22154_v24 = vld [vmem:[#allocation15 + $0x30] sm:$0xff]  }
 0x8eb   :  { %16117 = vmatprep.subr.bf16.mxu1 %v22017_v28  ;;  %v22048_v28 = vld [vmem:[#allocation12 + $0x460] ss:$24 sps:$4 sm:$0xff]   ;;  %19224 = vmatpush3.bf16.msra.mxu0 %v22154_v24  ;;  %v22104_v24 = vld [vmem:[#allocation12 + $0x7c4] ss:$24 sps:$4 sm:$0xff]  }
 0x8ee   :  { %16118 = vmatpush1.bf16.msra.mxu1 %v22015_v38  ;;  %v22053_v38 = vld [vmem:[#allocation12 + $0x494] ss:$24 sps:$4 sm:$0xff]  }
 0x8ef   :  { %16119 = vmatprep.subr.bf16.mxu1 %v22020_v27  ;;  %v22155_v27 = vld [vmem:[#allocation15 + $0x78] sm:$0xff]  }
 0x8f0   :  { %19225 = vmatprep.subr.bf16.mxu0 %v22155_v27  ;;  %v22105_v27 = vld [vmem:[#allocation12 + $0x7f0] ss:$24 sps:$4 sm:$0xff]  }
 0x8f2   :  { %16120 = vmatpush1.bf16.msra.mxu1 %v22018_v5  ;;  %v22159_v5 = vld [vmem:[#allocation15 + $0x38] sm:$0xff]  }
 0x8f3   :  { %16121 = vmatprep.subr.bf16.mxu1 %v22023_v6  ;;  %v22160_v6 = vld [vmem:[#allocation15 + $0xc0] sm:$0xff]   ;;  %19226 = vmatpush3.bf16.msra.mxu0 %v22159_v5 }
 0x8f4   :  { %19233 = vmatprep.subr.bf16.mxu0 %v22160_v6  ;;  %v22110_v5 = vld [vmem:[#allocation12 + $0x824] ss:$24 sps:$4 sm:$0xff]   ;;  %v22108_v6 = vld [vmem:[#allocation12 + $0x820] ss:$24 sps:$4 sm:$0xff]  }
 0x8f6   :  { %16122 = vmatpush1.bf16.msra.mxu1 %v22021_v48  ;;  %v22051_v48 = vld [vmem:[#allocation12 + $0x490] ss:$24 sps:$4 sm:$0xff]  }
 0x8f7   :  { %16123 = vmatprep.subr.bf16.mxu1 %v22026_v9  ;;  %v22056_v9 = vld [vmem:[#allocation12 + $0x4c4] ss:$24 sps:$4 sm:$0xff]  }
 0x8fa   :  { %16124 = vmatpush1.bf16.msra.mxu1 %v22024_v46  ;;  %v22054_v46 = vld [vmem:[#allocation12 + $0x4c0] ss:$24 sps:$4 sm:$0xff]  }
 0x8fb   :  { %16134 = vmatprep.subr.bf16.mxu1 %v22029_v19  ;;  %v22057_v19 = vld [vmem:[#allocation12 + $0x4f0] ss:$24 sps:$4 sm:$0xff]  }
 0x8fd   :  { %16126 = vmatmul.mubr.bf16.vlgmr.msra.gmra.mrb[16].mxu1 %v24407_v60  ;;  %v22036_v60 = vld [vmem:[#allocation12 + $0x3a0] ss:$24 sps:$4 sm:$0xff]  }
 0x8fe   :  { %16135 = vmatpush1.bf16.msra.mxu1 %v22027_v3  ;;  %16166 = vmatprep.mubr.bf16.mxu1 %v24411_v51  ;;  %v22041_v51 = vld [vmem:[#allocation12 + $0x3d4] ss:$24 sps:$4 sm:$0xff]   ;;  %v22060_v3 = vld [vmem:[#allocation12 + $0x520] ss:$24 sps:$4 sm:$0xff]  }
 0x8ff   :  { %16136 = vmatprep.subr.bf16.mxu1 %v22032_v34  ;;  %v22063_v34 = vld [vmem:[#allocation12 + $0x550] ss:$24 sps:$4 sm:$0xff]  }
 0x902   :  { %16137 = vmatpush1.bf16.msra.mxu1 %v22030_v42  ;;  %v22066_v42 = vld [vmem:[#allocation12 + $0x580] ss:$24 sps:$4 sm:$0xff]  }
 0x903   :  { %16138 = vmatprep.subr.bf16.mxu1 %v22035_v58  ;;  %v22069_v58 = vld [vmem:[#allocation12 + $0x5b0] ss:$24 sps:$4 sm:$0xff]  }
 0x906   :  { %16139 = vmatpush1.bf16.msra.mxu1 %v22033_v18  ;;  %v22072_v18 = vld [vmem:[#allocation12 + $0x5e0] ss:$24 sps:$4 sm:$0xff]  }
 0x907   :  { %16140 = vmatprep.subr.bf16.mxu1 %v22038_v13  ;;  %v22075_v13 = vld [vmem:[#allocation12 + $0x610] ss:$24 sps:$4 sm:$0xff]  }
 0x90a   :  { %16141 = vmatpush1.bf16.msra.mxu1 %v22036_v60  ;;  %v22078_v60 = vld [vmem:[#allocation12 + $0x640] ss:$24 sps:$4 sm:$0xff]  }
 0x90b   :  { %16142 = vmatprep.subr.bf16.mxu1 %v22041_v51  ;;  %v22081_v51 = vld [vmem:[#allocation12 + $0x670] ss:$24 sps:$4 sm:$0xff]  }
 0x90e   :  { %16143 = vmatpush1.bf16.msra.mxu1 %v22039_v26  ;;  %v22084_v26 = vld [vmem:[#allocation12 + $0x6a0] ss:$24 sps:$4 sm:$0xff]  }
 0x90f   :  { %16144 = vmatprep.subr.bf16.mxu1 %v22044_v10  ;;  %v22087_v10 = vld [vmem:[#allocation12 + $0x6d0] ss:$24 sps:$4 sm:$0xff]  }
 0x912   :  { %16145 = vmatpush1.bf16.msra.mxu1 %v22042_v20  ;;  %v22095_v20 = vld [vmem:[#allocation12 + $0x734] ss:$24 sps:$4 sm:$0xff]  }
 0x913   :  { %16146 = vmatprep.subr.bf16.mxu1 %v22047_v21  ;;  %v22098_v21 = vld [vmem:[#allocation12 + $0x764] ss:$24 sps:$4 sm:$0xff]  }
 0x916   :  { %16147 = vmatpush1.bf16.msra.mxu1 %v22045_v23  ;;  %v22096_v23 = vld [vmem:[#allocation12 + $0x760] ss:$24 sps:$4 sm:$0xff]  }
 0x917   :  { %16148 = vmatprep.subr.bf16.mxu1 %v22050_v49  ;;  %v22101_v49 = vld [vmem:[#allocation12 + $0x794] ss:$24 sps:$4 sm:$0xff]  }
 0x91a   :  { %16149 = vmatpush1.bf16.msra.mxu1 %v22048_v28  ;;  %v22102_v28 = vld [vmem:[#allocation12 + $0x7c0] ss:$24 sps:$4 sm:$0xff]  }
 0x91b   :  { %16150 = vmatprep.subr.bf16.mxu1 %v22053_v38  ;;  %v22107_v38 = vld [vmem:[#allocation12 + $0x7f4] ss:$24 sps:$4 sm:$0xff]  }
 0x91e   :  { %16151 = vmatpush1.bf16.msra.mxu1 %v22051_v48  ;;  %v22113_v48 = vld [vmem:[#allocation12 + $0x854] ss:$24 sps:$4 sm:$0xff]  }
 0x91f   :  { %16152 = vmatprep.subr.bf16.mxu1 %v22056_v9  ;;  %v22111_v9 = vld [vmem:[#allocation12 + $0x850] ss:$24 sps:$4 sm:$0xff]  }
 0x922   :  { %16153 = vmatpush1.bf16.msra.mxu1 %v22054_v46  ;;  %v22116_v46 = vld [vmem:[#allocation12 + $0x884] ss:$24 sps:$4 sm:$0xff]  }
 0x923   :  { %16154 = vmatprep.subr.bf16.mxu1 %v22059_v41  ;;  %v22114_v41 = vld [vmem:[#allocation12 + $0x880] ss:$24 sps:$4 sm:$0xff]  }
 0x926   :  { %16155 = vmatpush1.bf16.msra.mxu1 %v22057_v19  ;;  %v22119_v19 = vld [vmem:[#allocation12 + $0x8b4] ss:$24 sps:$4 sm:$0xff]  }
 0x927   :  { %16156 = vmatprep.subr.bf16.mxu1 %v22062_v1  ;;  %v22117_v1 = vld [vmem:[#allocation12 + $0x8b0] ss:$24 sps:$4 sm:$0xff]  }
 0x92a   :  { %16157 = vmatpush1.bf16.msra.mxu1 %v22060_v3  ;;  %v22123_v3 = vld [vmem:[#allocation12 + $0x8e4] ss:$24 sps:$4 sm:$0xff]  }
 0x92b   :  { %16158 = vmatprep.subr.bf16.mxu1 %v22065_v25  ;;  %v22121_v25 = vld [vmem:[#allocation12 + $0x8e0] ss:$24 sps:$4 sm:$0xff]  }
 0x92e   :  { %16159 = vmatpush1.bf16.msra.mxu1 %v22063_v34  ;;  %v22128_v34 = vld [vmem:[#allocation12 + $0x914] ss:$24 sps:$4 sm:$0xff]  }
 0x92f   :  { %16160 = vmatprep.subr.bf16.mxu1 %v22068_v55  ;;  %v22126_v55 = vld [vmem:[#allocation12 + $0x910] ss:$24 sps:$4 sm:$0xff]  }
 0x932   :  { %16161 = vmatpush1.bf16.msra.mxu1 %v22066_v42  ;;  %v22133_v42 = vld [vmem:[#allocation12 + $0x944] ss:$24 sps:$4 sm:$0xff]  }
 0x933   :  { %16162 = vmatprep.subr.bf16.mxu1 %v22071_v61  ;;  %v22131_v61 = vld [vmem:[#allocation12 + $0x940] ss:$24 sps:$4 sm:$0xff]  }
 0x936   :  { %16163 = vmatpush1.bf16.msra.mxu1 %v22069_v58  ;;  %v22138_v58 = vld [vmem:[#allocation12 + $0x974] ss:$24 sps:$4 sm:$0xff]  }
 0x937   :  { %16164 = vmatprep.subr.bf16.mxu1 %v22074_v35  ;;  %v22136_v35 = vld [vmem:[#allocation12 + $0x970] ss:$24 sps:$4 sm:$0xff]  }
 0x93a   :  { %16165 = vmatpush1.bf16.msra.mxu1 %v22072_v18  ;;  %v22143_v18 = vld [vmem:[#allocation12 + $0x9a4] ss:$24 sps:$4 sm:$0xff]  }
 0x93b   :  { %16175 = vmatprep.subr.bf16.mxu1 %v22077_v8  ;;  %v22141_v8 = vld [vmem:[#allocation12 + $0x9a0] ss:$24 sps:$4 sm:$0xff]  }
 0x93d   :  { %16167 = vmatmul.mubr.bf16.vlgmr.msra.gmra.mrb[16].mxu1 %v24446_v33  ;;  %v22090_v33 = vld [vmem:[#allocation12 + $0x700] ss:$24 sps:$4 sm:$0xff]  }
 0x93e   :  { %16176 = vmatpush1.bf16.msra.mxu1 %v22075_v13  ;;  %16207 = vmatprep.mubr.bf16.mxu1 %v24448_v59  ;;  %v22093_v59 = vld [vmem:[#allocation12 + $0x730] ss:$24 sps:$4 sm:$0xff]   ;;  %v22148_v13 = vld [vmem:[#allocation12 + $0x9d4] ss:$24 sps:$4 sm:$0xff]  }
 0x93f   :  { %16177 = vmatprep.subr.bf16.mxu1 %v22080_v36  ;;  %v22146_v36 = vld [vmem:[#allocation12 + $0x9d0] ss:$24 sps:$4 sm:$0xff]  }
 0x942   :  { %16178 = vmatpush1.bf16.msra.mxu1 %v22078_v60  ;;  %v24687_v60 = vld [vmem:[#allocation14] sm:$0x3f] }
 0x943   :  { %16179 = vmatprep.subr.bf16.mxu1 %v22083_v52  ;;  %v9326_v52 = vrot.slane %v24687_v60, %v23772_v40 }
 0x946   :  { %16180 = vmatpush1.bf16.msra.mxu1 %v22081_v51  ;;  %v22151_v51 = vld [vmem:[#allocation12 + $0xa00] ss:$24 sps:$4 sm:$0xff]  }
 0x947   :  { %16181 = vmatprep.subr.bf16.mxu1 %v22086_v56  ;;  %v9334_v56 = vrot.slane %v24687_v60, %v23778_v44 }
 0x94a   :  { %16182 = vmatpush1.bf16.msra.mxu1 %v22084_v26  ;;  %v22158_v26 = vld [vmem:[#allocation12 + $0xa34] ss:$24 sps:$4 sm:$0xff]  }
 0x94b   :  { %16183 = vmatprep.subr.bf16.mxu1 %v22089_v14 }
 0x94e   :  { %16184 = vmatpush1.bf16.msra.mxu1 %v22087_v10 }
 0x94f   :  { %16185 = vmatprep.subr.bf16.mxu1 %v22092_v15 }
 0x952   :  { %16186 = vmatpush1.bf16.msra.mxu1 %v22090_v33 }
 0x953   :  { %16187 = vmatprep.subr.bf16.mxu1 %v22095_v20 }
 0x956   :  { %16188 = vmatpush1.bf16.msra.mxu1 %v22093_v59 }
 0x957   :  { %16189 = vmatprep.subr.bf16.mxu1 %v22098_v21 }
 0x95a   :  { %16190 = vmatpush1.bf16.msra.mxu1 %v22096_v23 }
 0x95b   :  { %16191 = vmatprep.subr.bf16.mxu1 %v22101_v49 }
 0x95e   :  { %16192 = vmatpush1.bf16.msra.mxu1 %v22099_v62 }
 0x95f   :  { %16193 = vmatprep.subr.bf16.mxu1 %v22104_v24  ;;  %v22163_v24 = vld [vmem:[#allocation12 + $0xa64] ss:$24 sps:$4 sm:$0xff]  }
 0x962   :  { %16194 = vmatpush1.bf16.msra.mxu1 %v22102_v28 }
 0x963   :  { %16195 = vmatprep.subr.bf16.mxu1 %v22107_v38 }
 0x966   :  { %16196 = vmatpush1.bf16.msra.mxu1 %v22105_v27 }
 0x967   :  { %16197 = vmatprep.subr.bf16.mxu1 %v22110_v5  ;;  %v22161_v5 = vld [vmem:[#allocation12 + $0xa60] ss:$24 sps:$4 sm:$0xff]  }
 0x96a   :  { %16198 = vmatpush1.bf16.msra.mxu1 %v22108_v6  ;;  %v22164_v6 = vld [vmem:[#allocation15 + $0x80] sm:$0xff]  }
 0x96b   :  { %16199 = vmatprep.subr.bf16.mxu1 %v22113_v48 }
 0x96e   :  { %16200 = vmatpush1.bf16.msra.mxu1 %v22111_v9  ;;  %v22165_v9 = vld [vmem:[#allocation15 + $0xc8] sm:$0xff]  }
 0x96f   :  { %16201 = vmatprep.subr.bf16.mxu1 %v22116_v46  ;;  %v22168_v46 = vld [vmem:[#allocation12 + $0xa94] ss:$24 sps:$4 sm:$0xff]  }
 0x972   :  { %16202 = vmatpush1.bf16.msra.mxu1 %v22114_v41 }
 0x973   :  { %16203 = vmatprep.subr.bf16.mxu1 %v22119_v19  ;;  %v22166_v19 = vld [vmem:[#allocation12 + $0xa90] ss:$24 sps:$4 sm:$0xff]  }
 0x976   :  { %16204 = vmatpush1.bf16.msra.mxu1 %v22117_v1  ;;  %v22169_v1 = vld [vmem:[#allocation15 + $0x88] sm:$0xff]  }
 0x977   :  { %16205 = vmatprep.subr.bf16.mxu1 %v22123_v3  ;;  %v22170_v3 = vld [vmem:[#allocation15 + $0xd0] sm:$0xff]  }
 0x97a   :  { %16206 = vmatpush1.bf16.msra.mxu1 %v22121_v25  ;;  %v22173_v25 = vld [vmem:[#allocation12 + $0xac4] ss:$24 sps:$4 sm:$0xff]  }
 0x97b   :  { %16216 = vmatprep.subr.bf16.mxu1 %v22128_v34  ;;  %v22171_v34 = vld [vmem:[#allocation12 + $0xac0] ss:$24 sps:$4 sm:$0xff]  }
 0x97d   :  { %16208 = vmatmul.mubr.bf16.vlgmr.msra.gmra.mrb[16].mxu1 %v24463_v45  ;;  %v22153_v45 = vld [vmem:[#allocation12 + $0xa04] ss:$24 sps:$4 sm:$0xff]  }
 0x97e   :  { %16217 = vmatpush1.bf16.msra.mxu1 %v22126_v55  ;;  %16248 = vmatprep.mubr.bf16.mxu1 %v24465_v22  ;;  %v9322_v22 = vrot.slane %v24687_v60, %v23769_v39  ;;  %v22156_v39 = vld [vmem:[#allocation12 + $0xa30] ss:$24 sps:$4 sm:$0xff]   ;;  %v22174_v55 = vld [vmem:[#allocation15 + $0x90] sm:$0xff]  }
 0x97f   :  { %16218 = vmatprep.subr.bf16.mxu1 %v22133_v42  ;;  %v22175_v42 = vld [vmem:[#allocation15 + $0xd8] sm:$0xff]  }
 0x982   :  { %16219 = vmatpush1.bf16.msra.mxu1 %v22131_v61  ;;  %v22178_v61 = vld [vmem:[#allocation12 + $0xaf4] ss:$24 sps:$4 sm:$0xff]  }
 0x983   :  { %16220 = vmatprep.subr.bf16.mxu1 %v22138_v58  ;;  %v22176_v58 = vld [vmem:[#allocation12 + $0xaf0] ss:$24 sps:$4 sm:$0xff]  }
 0x986   :  { %16221 = vmatpush1.bf16.msra.mxu1 %v22136_v35  ;;  %v22179_v35 = vld [vmem:[#allocation15 + $0x98] sm:$0xff]  }
 0x987   :  { %16222 = vmatprep.subr.bf16.mxu1 %v22143_v18  ;;  %v22180_v18 = vld [vmem:[#allocation15 + $0xe0] sm:$0xff]  }
 0x98a   :  { %16223 = vmatpush1.bf16.msra.mxu1 %v22141_v8  ;;  %v22183_v8 = vld [vmem:[#allocation12 + $0xb24] ss:$24 sps:$4 sm:$0xff]  }
 0x98b   :  { %16224 = vmatprep.subr.bf16.mxu1 %v22148_v13  ;;  %v22181_v13 = vld [vmem:[#allocation12 + $0xb20] ss:$24 sps:$4 sm:$0xff]  }
 0x98e   :  { %16225 = vmatpush1.bf16.msra.mxu1 %v22146_v36  ;;  %v22184_v36 = vld [vmem:[#allocation15 + $0xa0] sm:$0xff]  }
 0x98f   :  { %16226 = vmatprep.subr.bf16.mxu1 %v22153_v45  ;;  %v22185_v45 = vld [vmem:[#allocation15 + $0xe8] sm:$0xff]  }
 0x990   :  { %v15594_v14 = vpop.f32.mrb[12].mxu1 }
 0x991   :  { %v19303_v10 = vadd.f32 %v15594_v14, %v9322_v22  ;;  %v24695_v15 = vpop.f32.mrb[28].mxu0  ;;  %v15596_v33 = vpop.f32.mrb[13].mxu1  ;;  %v22188_v22 = vld [vmem:[#allocation12 + $0xb54] ss:$24 sps:$4 sm:$0xff]   ;;  %v22193_v14 = vld [vmem:[#allocation12 + $0xb84] ss:$24 sps:$4 sm:$0xff]  }
 0x992   :  { %v19304_v20 = vadd.f32 %v15596_v33, %v9326_v52  ;;  %v16088_v59 = vpop.f32.mrb[29].mxu0  ;;  %v15598_v21 = vpop.f32.mrb[14].mxu1  ;;  %16227 = vmatpush1.bf16.msra.mxu1 %v22151_v51  ;;  %v22186_v52 = vld [vmem:[#allocation12 + $0xb50] ss:$24 sps:$4 sm:$0xff]   ;;  %v22194_v33 = vld [vmem:[#allocation15 + $0xb0] sm:$0xff]  }
 0x993   :  { %v16585_v23 = vmax.f32 %v19303_v10, 0.0  ;;  %v19306_v49 = vadd.f32 %v16088_v59, %v9334_v56  ;;  %v16090_v62 = vpop.f32.mrb[30].mxu0  ;;  %v15599_v40 = vpop.f32.mrb[15].mxu1  ;;  %16228 = vmatprep.subr.bf16.mxu1 %v22158_v26  ;;  %v22189_v51 = vld [vmem:[#allocation15 + $0xa8] sm:$0xff]   ;;  %v9330_v56 = vrot.slane %v24687_v60, %v23775_v43  ;;  %v22190_v26 = vld [vmem:[#allocation15 + $0xf0] sm:$0xff]   ;;  %v22195_v59 = vld [vmem:[#allocation15 + $0xf8] sm:$0xff]  }
 0x994   :  { %v16586_v28 = vmax.f32 %v19304_v20, 0.0  ;;  %v16091_v44 = vpop.f32.mrb[31].mxu0  ;;  %v22191_v10 = vld [vmem:[#allocation12 + $0xb80] ss:$24 sps:$4 sm:$0xff]   ;;  %v22198_v21 = vld [vmem:[#allocation12 + $0xbb4] ss:$24 sps:$4 sm:$0xff]  }
 0x995   :  { %v16588_v38 = vmax.f32 %v19306_v49, 0.0  ;;  %v16591_v48 = vpack.c.bf16 %v16585_v23, %v16585_v23  ;;  %v19305_v20 = vadd.f32 %v24695_v15, %v9330_v56  ;;  %v22199_v23 = vld [vmem:[#allocation15 + $0xb8] sm:$0xff]   ;;  %v22205_v40 = vld [vmem:[#allocation12 + $0xc14] ss:$24 sps:$4 sm:$0xff]   ;;  %v22203_v15 = vld [vmem:[#allocation12 + $0xc10] ss:$24 sps:$4 sm:$0xff]  }
 0x996   :  { %v16592_v27 = vpack.c.bf16 %v16586_v28, %v16586_v28  ;;  %16229 = vmatpush1.bf16.msra.mxu1 %v22156_v39  ;;  %v22196_v39 = vld [vmem:[#allocation12 + $0xbb0] ss:$24 sps:$4 sm:$0xff]   ;;  %v22202_v43 = vld [vmem:[#allocation12 + $0xbe4] ss:$24 sps:$4 sm:$0xff]   ;;  %v22200_v60 = vld [vmem:[#allocation12 + $0xbe0] ss:$24 sps:$4 sm:$0xff]  }
 0x997   :  { %16230 = vmatprep.subr.bf16.mxu1 %v22163_v24  ;;  %v16594_v41 = vpack.c.bf16 %v16588_v38, %v16588_v38  ;;  %v16587_v49 = vmax.f32 %v19305_v20, 0.0  ;;  %v22208_v24 = vld [vmem:[#allocation12 + $0xc44] ss:$24 sps:$4 sm:$0xff]   ;;  %v22206_v28 = vld [vmem:[#allocation12 + $0xc40] ss:$24 sps:$4 sm:$0xff]  }
 0x998   :  { %17020 = vmatprep.mubr.bf16.mxu0 %v16592_v27  ;;  %v22211_v44 = vld [vmem:[#allocation12 + $0xc74] ss:$24 sps:$4 sm:$0xff]   ;;  %v22209_v38 = vld [vmem:[#allocation12 + $0xc70] ss:$24 sps:$4 sm:$0xff]   ;;  %v22214_v27 = vld [vmem:[#allocation12 + $0xca4] ss:$24 sps:$4 sm:$0xff]  }
 0x999   :  { %17021 = vmatmul.mubr.bf16.vlgmr.msra.gmra.mrb[32].mxu0 %v16591_v48  ;;  %v16593_v62 = vpack.c.bf16 %v16587_v49, %v16587_v49  ;;  %v22215_v48 = vld [vmem:[#allocation12 + $0xcd0] ss:$24 sps:$4 sm:$0xff]   ;;  %v22262_v20 = vld [vmem:[#allocation12 + $0xfa4] ss:$24 sps:$4 sm:$0xff]   ;;  %v22271_v49 = vld [vmem:[#allocation12 + $0x1034] ss:$24 sps:$4 sm:$0xff]  }
 0x99a   :  { %19234 = vmatpush3.bf16.msra.mxu0 %v22164_v6  ;;  %16231 = vmatpush1.bf16.msra.mxu1 %v22161_v5  ;;  %v22212_v5 = vld [vmem:[#allocation12 + $0xca0] ss:$24 sps:$4 sm:$0xff]   ;;  %v22217_v6 = vld [vmem:[#allocation12 + $0xcd4] ss:$24 sps:$4 sm:$0xff]   ;;  %v22251_v56 = vld [vmem:[#allocation12 + $0xf10] ss:$24 sps:$4 sm:$0xff]  }
 0x99b   :  { %17060 = vmatprep.mubr.bf16.mxu0 %v16594_v41  ;;  %19235 = vmatprep.subr.bf16.mxu0 %v22165_v9  ;;  %v22220_v9 = vld [vmem:[#allocation12 + $0xd04] ss:$24 sps:$4 sm:$0xff]  }
 0x99c   :  { %16232 = vmatprep.subr.bf16.mxu1 %v22168_v46  ;;  %v22223_v46 = vld [vmem:[#allocation12 + $0xd34] ss:$24 sps:$4 sm:$0xff]   ;;  %v22226_v41 = vld [vmem:[#allocation12 + $0xd64] ss:$24 sps:$4 sm:$0xff]  }
 0x99e   :  { %19236 = vmatpush3.bf16.msra.mxu0 %v22169_v1  ;;  %16233 = vmatpush1.bf16.msra.mxu1 %v22166_v19  ;;  %v22224_v19 = vld [vmem:[#allocation12 + $0xd60] ss:$24 sps:$4 sm:$0xff]   ;;  %v22229_v1 = vld [vmem:[#allocation12 + $0xd94] ss:$24 sps:$4 sm:$0xff]  }
 0x99f   :  { %19237 = vmatprep.subr.bf16.mxu0 %v22170_v3  ;;  %16234 = vmatprep.subr.bf16.mxu1 %v22173_v25  ;;  %v22227_v3 = vld [vmem:[#allocation12 + $0xd90] ss:$24 sps:$4 sm:$0xff]   ;;  %v22232_v25 = vld [vmem:[#allocation12 + $0xdc4] ss:$24 sps:$4 sm:$0xff]  }
 0x9a2   :  { %19238 = vmatpush3.bf16.msra.mxu0 %v22174_v55  ;;  %16235 = vmatpush1.bf16.msra.mxu1 %v22171_v34  ;;  %v22230_v34 = vld [vmem:[#allocation12 + $0xdc0] ss:$24 sps:$4 sm:$0xff]   ;;  %v22235_v55 = vld [vmem:[#allocation12 + $0xdf4] ss:$24 sps:$4 sm:$0xff]  }
 0x9a3   :  { %19239 = vmatprep.subr.bf16.mxu0 %v22175_v42  ;;  %16236 = vmatprep.subr.bf16.mxu1 %v22178_v61  ;;  %v22233_v42 = vld [vmem:[#allocation12 + $0xdf0] ss:$24 sps:$4 sm:$0xff]   ;;  %v22238_v61 = vld [vmem:[#allocation12 + $0xe24] ss:$24 sps:$4 sm:$0xff]  }
 0x9a6   :  { %19240 = vmatpush3.bf16.msra.mxu0 %v22179_v35  ;;  %16237 = vmatpush1.bf16.msra.mxu1 %v22176_v58  ;;  %v22236_v58 = vld [vmem:[#allocation12 + $0xe20] ss:$24 sps:$4 sm:$0xff]   ;;  %v22241_v35 = vld [vmem:[#allocation12 + $0xe54] ss:$24 sps:$4 sm:$0xff]  }
 0x9a7   :  { %19241 = vmatprep.subr.bf16.mxu0 %v22180_v18  ;;  %16238 = vmatprep.subr.bf16.mxu1 %v22183_v8  ;;  %v22239_v18 = vld [vmem:[#allocation12 + $0xe50] ss:$24 sps:$4 sm:$0xff]   ;;  %v22244_v8 = vld [vmem:[#allocation12 + $0xe84] ss:$24 sps:$4 sm:$0xff]  }
 0x9aa   :  { %19242 = vmatpush3.bf16.msra.mxu0 %v22184_v36  ;;  %16239 = vmatpush1.bf16.msra.mxu1 %v22181_v13  ;;  %v22242_v13 = vld [vmem:[#allocation12 + $0xe80] ss:$24 sps:$4 sm:$0xff]   ;;  %v22247_v36 = vld [vmem:[#allocation12 + $0xeb4] ss:$24 sps:$4 sm:$0xff]  }
 0x9ab   :  { %19243 = vmatprep.subr.bf16.mxu0 %v22185_v45  ;;  %16240 = vmatprep.subr.bf16.mxu1 %v22188_v22  ;;  %v22245_v45 = vld [vmem:[#allocation12 + $0xeb0] ss:$24 sps:$4 sm:$0xff]   ;;  %v22250_v22 = vld [vmem:[#allocation12 + $0xee4] ss:$24 sps:$4 sm:$0xff]  }
 0x9ae   :  { %19244 = vmatpush3.bf16.msra.mxu0 %v22189_v51  ;;  %16241 = vmatpush1.bf16.msra.mxu1 %v22186_v52  ;;  %v22248_v52 = vld [vmem:[#allocation12 + $0xee0] ss:$24 sps:$4 sm:$0xff]   ;;  %v22253_v51 = vld [vmem:[#allocation12 + $0xf14] ss:$24 sps:$4 sm:$0xff]  }
 0x9af   :  { %19245 = vmatprep.subr.bf16.mxu0 %v22190_v26  ;;  %16242 = vmatprep.subr.bf16.mxu1 %v22193_v14  ;;  %v22256_v26 = vld [vmem:[#allocation12 + $0xf44] ss:$24 sps:$4 sm:$0xff]   ;;  %v22254_v14 = vld [vmem:[#allocation12 + $0xf40] ss:$24 sps:$4 sm:$0xff]  }
 0x9b2   :  { %19246 = vmatpush3.bf16.msra.mxu0 %v22194_v33  ;;  %16243 = vmatpush1.bf16.msra.mxu1 %v22191_v10  ;;  %v22259_v10 = vld [vmem:[#allocation12 + $0xf74] ss:$24 sps:$4 sm:$0xff]   ;;  %v22257_v33 = vld [vmem:[#allocation12 + $0xf70] ss:$24 sps:$4 sm:$0xff]  }
 0x9b3   :  { %19247 = vmatprep.subr.bf16.mxu0 %v22195_v59  ;;  %16244 = vmatprep.subr.bf16.mxu1 %v22198_v21  ;;  %v22260_v59 = vld [vmem:[#allocation12 + $0xfa0] ss:$24 sps:$4 sm:$0xff]   ;;  %v22265_v21 = vld [vmem:[#allocation12 + $0xfd4] ss:$24 sps:$4 sm:$0xff]  }
 0x9b6   :  { %19248 = vmatpush3.bf16.msra.mxu0 %v22199_v23  ;;  %16245 = vmatpush1.bf16.msra.mxu1 %v22196_v39  ;;  %v22263_v39 = vld [vmem:[#allocation12 + $0xfd0] ss:$24 sps:$4 sm:$0xff]   ;;  %v22268_v23 = vld [vmem:[#allocation12 + $0x1004] ss:$24 sps:$4 sm:$0xff]  }
 0x9b7   :  { %16246 = vmatprep.subr.bf16.mxu1 %v22202_v43  ;;  %v22274_v43 = vld [vmem:[#allocation12 + $0x1064] ss:$24 sps:$4 sm:$0xff]  }
 0x9b9   :  { %17061 = vmatmul.mubr.bf16.vlgmr.msra.gmra.mrb[36].mxu0 %v16593_v62  ;;  %v22277_v62 = vld [vmem:[#allocation12 + $0x1094] ss:$24 sps:$4 sm:$0xff]  }
 0x9ba   :  { %16247 = vmatpush1.bf16.msra.mxu1 %v22200_v60  ;;  %v22272_v60 = vld [vmem:[#allocation12 + $0x1060] ss:$24 sps:$4 sm:$0xff]  }
 0x9bb   :  { %16257 = vmatprep.subr.bf16.mxu1 %v22205_v40  ;;  %v22275_v40 = vld [vmem:[#allocation12 + $0x1090] ss:$24 sps:$4 sm:$0xff]  }
 0x9bd   :  { %16249 = vmatmul.mubr.bf16.vlgmr.msra.gmra.mrb[16].mxu1 %v24490_v63  ;;  %v22218_v63 = vld [vmem:[#allocation12 + $0xd00] ss:$24 sps:$4 sm:$0xff]  }
 0x9be   :  { %16258 = vmatpush1.bf16.msra.mxu1 %v22203_v15  ;;  %16289 = vmatprep.mubr.bf16.mxu1 %v24492_v16  ;;  %v22221_v16 = vld [vmem:[#allocation12 + $0xd30] ss:$24 sps:$4 sm:$0xff]   ;;  %v22280_v15 = vld [vmem:[#allocation12 + $0x10c4] ss:$24 sps:$4 sm:$0xff]  }
 0x9bf   :  { %16259 = vmatprep.subr.bf16.mxu1 %v22208_v24  ;;  %v22278_v24 = vld [vmem:[#allocation12 + $0x10c0] ss:$24 sps:$4 sm:$0xff]  }
 0x9c2   :  { %16260 = vmatpush1.bf16.msra.mxu1 %v22206_v28  ;;  %v22283_v28 = vld [vmem:[#allocation12 + $0x10f4] ss:$24 sps:$4 sm:$0xff]  }
 0x9c3   :  { %16261 = vmatprep.subr.bf16.mxu1 %v22211_v44  ;;  %v22281_v44 = vld [vmem:[#allocation12 + $0x10f0] ss:$24 sps:$4 sm:$0xff]  }
 0x9c6   :  { %16262 = vmatpush1.bf16.msra.mxu1 %v22209_v38  ;;  %v22286_v38 = vld [vmem:[#allocation12 + $0x1124] ss:$24 sps:$4 sm:$0xff]  }
 0x9c7   :  { %16263 = vmatprep.subr.bf16.mxu1 %v22214_v27  ;;  %v22284_v27 = vld [vmem:[#allocation12 + $0x1120] ss:$24 sps:$4 sm:$0xff]  }
 0x9ca   :  { %16264 = vmatpush1.bf16.msra.mxu1 %v22212_v5  ;;  %v22289_v5 = vld [vmem:[#allocation12 + $0x1154] ss:$24 sps:$4 sm:$0xff]  }
 0x9cb   :  { %16265 = vmatprep.subr.bf16.mxu1 %v22217_v6  ;;  %v22287_v6 = vld [vmem:[#allocation12 + $0x1150] ss:$24 sps:$4 sm:$0xff]  }
 0x9ce   :  { %16266 = vmatpush1.bf16.msra.mxu1 %v22215_v48  ;;  %v22292_v48 = vld [vmem:[#allocation12 + $0x1184] ss:$24 sps:$4 sm:$0xff]  }
 0x9cf   :  { %16267 = vmatprep.subr.bf16.mxu1 %v22220_v9  ;;  %v22290_v9 = vld [vmem:[#allocation12 + $0x1180] ss:$24 sps:$4 sm:$0xff]  }
 0x9d2   :  { %16268 = vmatpush1.bf16.msra.mxu1 %v22218_v63  ;;  %v22295_v63 = vld [vmem:[#allocation12 + $0x11b4] ss:$24 sps:$4 sm:$0xff]  }
 0x9d3   :  { %16269 = vmatprep.subr.bf16.mxu1 %v22223_v46  ;;  %v22293_v46 = vld [vmem:[#allocation12 + $0x11b0] ss:$24 sps:$4 sm:$0xff]  }
 0x9d6   :  { %16270 = vmatpush1.bf16.msra.mxu1 %v22221_v16  ;;  %v22298_v16 = vld [vmem:[#allocation12 + $0x11e4] ss:$24 sps:$4 sm:$0xff]  }
 0x9d7   :  { %16271 = vmatprep.subr.bf16.mxu1 %v22226_v41  ;;  %v22296_v41 = vld [vmem:[#allocation12 + $0x11e0] ss:$24 sps:$4 sm:$0xff]  }
 0x9da   :  { %16272 = vmatpush1.bf16.msra.mxu1 %v22224_v19  ;;  %v22301_v19 = vld [vmem:[#allocation12 + $0x1214] ss:$24 sps:$4 sm:$0xff]  }
 0x9db   :  { %16273 = vmatprep.subr.bf16.mxu1 %v22229_v1  ;;  %v22299_v1 = vld [vmem:[#allocation12 + $0x1210] ss:$24 sps:$4 sm:$0xff]  }
 0x9de   :  { %16274 = vmatpush1.bf16.msra.mxu1 %v22227_v3  ;;  %v22304_v3 = vld [vmem:[#allocation12 + $0x1244] ss:$24 sps:$4 sm:$0xff]  }
 0x9df   :  { %16275 = vmatprep.subr.bf16.mxu1 %v22232_v25  ;;  %v22302_v25 = vld [vmem:[#allocation12 + $0x1240] ss:$24 sps:$4 sm:$0xff]  }
 0x9e2   :  { %16276 = vmatpush1.bf16.msra.mxu1 %v22230_v34  ;;  %v22307_v34 = vld [vmem:[#allocation12 + $0x1274] ss:$24 sps:$4 sm:$0xff]  }
 0x9e3   :  { %16277 = vmatprep.subr.bf16.mxu1 %v22235_v55  ;;  %v22305_v55 = vld [vmem:[#allocation12 + $0x1270] ss:$24 sps:$4 sm:$0xff]  }
 0x9e6   :  { %16278 = vmatpush1.bf16.msra.mxu1 %v22233_v42  ;;  %v22310_v42 = vld [vmem:[#allocation12 + $0x12a4] ss:$24 sps:$4 sm:$0xff]  }
 0x9e7   :  { %16279 = vmatprep.subr.bf16.mxu1 %v22238_v61  ;;  %v22308_v61 = vld [vmem:[#allocation12 + $0x12a0] ss:$24 sps:$4 sm:$0xff]  }
 0x9ea   :  { %16280 = vmatpush1.bf16.msra.mxu1 %v22236_v58  ;;  %v22313_v58 = vld [vmem:[#allocation12 + $0x12d4] ss:$24 sps:$4 sm:$0xff]  }
 0x9eb   :  { %16281 = vmatprep.subr.bf16.mxu1 %v22241_v35  ;;  %v22311_v35 = vld [vmem:[#allocation12 + $0x12d0] ss:$24 sps:$4 sm:$0xff]  }
 0x9ee   :  { %16282 = vmatpush1.bf16.msra.mxu1 %v22239_v18  ;;  %v22316_v18 = vld [vmem:[#allocation12 + $0x1304] ss:$24 sps:$4 sm:$0xff]  }
 0x9ef   :  { %16283 = vmatprep.subr.bf16.mxu1 %v22244_v8  ;;  %v22319_v8 = vld [vmem:[#allocation12 + $0x1334] ss:$24 sps:$4 sm:$0xff]  }
 0x9f2   :  { %16284 = vmatpush1.bf16.msra.mxu1 %v22242_v13  ;;  %v22322_v13 = vld [vmem:[#allocation12 + $0x1364] ss:$24 sps:$4 sm:$0xff]  }
 0x9f3   :  { %16285 = vmatprep.subr.bf16.mxu1 %v22247_v36  ;;  %v22320_v36 = vld [vmem:[#allocation12 + $0x1360] ss:$24 sps:$4 sm:$0xff]  }
 0x9f6   :  { %16286 = vmatpush1.bf16.msra.mxu1 %v22245_v45  ;;  %v22325_v45 = vld [vmem:[#allocation12 + $0x1394] ss:$24 sps:$4 sm:$0xff]  }
 0x9f7   :  { %16287 = vmatprep.subr.bf16.mxu1 %v22250_v22  ;;  %v22323_v22 = vld [vmem:[#allocation12 + $0x1390] ss:$24 sps:$4 sm:$0xff]  }
 0x9fa   :  { %16288 = vmatpush1.bf16.msra.mxu1 %v22248_v52  ;;  %v22328_v52 = vld [vmem:[#allocation12 + $0x13c4] ss:$24 sps:$4 sm:$0xff]  }
 0x9fb   :  { %16298 = vmatprep.subr.bf16.mxu1 %v22253_v51  ;;  %v22326_v51 = vld [vmem:[#allocation12 + $0x13c0] ss:$24 sps:$4 sm:$0xff]  }
 0x9fd   :  { %16290 = vmatmul.mubr.bf16.vlgmr.msra.gmra.mrb[16].mxu1 %v24507_v54  ;;  %v22266_v54 = vld [vmem:[#allocation12 + $0x1000] ss:$24 sps:$4 sm:$0xff]  }
 0x9fe   :  { %16299 = vmatpush1.bf16.msra.mxu1 %v22251_v56  ;;  %16330 = vmatprep.mubr.bf16.mxu1 %v24509_v29  ;;  %v22269_v29 = vld [vmem:[#allocation12 + $0x1030] ss:$24 sps:$4 sm:$0xff]   ;;  %v22331_v56 = vld [vmem:[#allocation12 + $0x13f4] ss:$24 sps:$4 sm:$0xff]  }
 0x9ff   :  { %16300 = vmatprep.subr.bf16.mxu1 %v22256_v26  ;;  %v22329_v26 = vld [vmem:[#allocation12 + $0x13f0] ss:$24 sps:$4 sm:$0xff]  }
 0xa02   :  { %16301 = vmatpush1.bf16.msra.mxu1 %v22254_v14  ;;  %v22334_v14 = vld [vmem:[#allocation12 + $0x1424] ss:$24 sps:$4 sm:$0xff]  }
 0xa03   :  { %16302 = vmatprep.subr.bf16.mxu1 %v22259_v10  ;;  %v22332_v10 = vld [vmem:[#allocation12 + $0x1420] ss:$24 sps:$4 sm:$0xff]  }
 0xa06   :  { %16303 = vmatpush1.bf16.msra.mxu1 %v22257_v33  ;;  %v22337_v33 = vld [vmem:[#allocation12 + $0x1454] ss:$24 sps:$4 sm:$0xff]  }
 0xa07   :  { %16304 = vmatprep.subr.bf16.mxu1 %v22262_v20  ;;  %v22335_v20 = vld [vmem:[#allocation12 + $0x1450] ss:$24 sps:$4 sm:$0xff]  }
 0xa0a   :  { %16305 = vmatpush1.bf16.msra.mxu1 %v22260_v59  ;;  %v22340_v59 = vld [vmem:[#allocation12 + $0x1484] ss:$24 sps:$4 sm:$0xff]  }
 0xa0b   :  { %16306 = vmatprep.subr.bf16.mxu1 %v22265_v21 }
 0xa0e   :  { %16307 = vmatpush1.bf16.msra.mxu1 %v22263_v39 }
 0xa0f   :  { %16308 = vmatprep.subr.bf16.mxu1 %v22268_v23 }
 0xa12   :  { %16309 = vmatpush1.bf16.msra.mxu1 %v22266_v54 }
 0xa13   :  { %16310 = vmatprep.subr.bf16.mxu1 %v22271_v49  ;;  %v22338_v49 = vld [vmem:[#allocation12 + $0x1480] ss:$24 sps:$4 sm:$0xff]  }
 0xa16   :  { %16311 = vmatpush1.bf16.msra.mxu1 %v22269_v29 }
 0xa17   :  { %16312 = vmatprep.subr.bf16.mxu1 %v22274_v43  ;;  %v22343_v43 = vld [vmem:[#allocation12 + $0x14b4] ss:$24 sps:$4 sm:$0xff]  }
 0xa1a   :  { %16313 = vmatpush1.bf16.msra.mxu1 %v22272_v60  ;;  %v22341_v60 = vld [vmem:[#allocation12 + $0x14b0] ss:$24 sps:$4 sm:$0xff]  }
 0xa1b   :  { %16314 = vmatprep.subr.bf16.mxu1 %v22277_v62  ;;  %v22346_v62 = vld [vmem:[#allocation12 + $0x14e4] ss:$24 sps:$4 sm:$0xff]  }
 0xa1e   :  { %16315 = vmatpush1.bf16.msra.mxu1 %v22275_v40  ;;  %v22344_v40 = vld [vmem:[#allocation12 + $0x14e0] ss:$24 sps:$4 sm:$0xff]  }
 0xa1f   :  { %16316 = vmatprep.subr.bf16.mxu1 %v22280_v15  ;;  %v22349_v15 = vld [vmem:[#allocation12 + $0x1514] ss:$24 sps:$4 sm:$0xff]  }
 0xa22   :  { %16317 = vmatpush1.bf16.msra.mxu1 %v22278_v24  ;;  %v22347_v24 = vld [vmem:[#allocation12 + $0x1510] ss:$24 sps:$4 sm:$0xff]  }
 0xa23   :  { %16318 = vmatprep.subr.bf16.mxu1 %v22283_v28  ;;  %v22352_v28 = vld [vmem:[#allocation12 + $0x1544] ss:$24 sps:$4 sm:$0xff]  }
 0xa26   :  { %16319 = vmatpush1.bf16.msra.mxu1 %v22281_v44  ;;  %v22350_v44 = vld [vmem:[#allocation12 + $0x1540] ss:$24 sps:$4 sm:$0xff]  }
 0xa27   :  { %16320 = vmatprep.subr.bf16.mxu1 %v22286_v38  ;;  %v22355_v38 = vld [vmem:[#allocation12 + $0x1574] ss:$24 sps:$4 sm:$0xff]  }
 0xa2a   :  { %16321 = vmatpush1.bf16.msra.mxu1 %v22284_v27  ;;  %v22353_v27 = vld [vmem:[#allocation12 + $0x1570] ss:$24 sps:$4 sm:$0xff]  }
 0xa2b   :  { %16322 = vmatprep.subr.bf16.mxu1 %v22289_v5  ;;  %v22358_v5 = vld [vmem:[#allocation12 + $0x15a4] ss:$24 sps:$4 sm:$0xff]  }
 0xa2e   :  { %16323 = vmatpush1.bf16.msra.mxu1 %v22287_v6  ;;  %v22356_v6 = vld [vmem:[#allocation12 + $0x15a0] ss:$24 sps:$4 sm:$0xff]  }
 0xa2f   :  { %16324 = vmatprep.subr.bf16.mxu1 %v22292_v48  ;;  %v22361_v48 = vld [vmem:[#allocation12 + $0x15d4] ss:$24 sps:$4 sm:$0xff]  }
 0xa32   :  { %16325 = vmatpush1.bf16.msra.mxu1 %v22290_v9  ;;  %v22359_v9 = vld [vmem:[#allocation12 + $0x15d0] ss:$24 sps:$4 sm:$0xff]  }
 0xa33   :  { %16326 = vmatprep.subr.bf16.mxu1 %v22295_v63  ;;  %v19162_v63 = vld [vmem:[#allocation17] ss:$0 sm:$0xff] }
 0xa36   :  { %16327 = vmatpush1.bf16.msra.mxu1 %v22293_v46  ;;  %v22364_v46 = vld [vmem:[#allocation12 + $0x1604] ss:$24 sps:$4 sm:$0xff]  }
 0xa37   :  { %16328 = vmatprep.subr.bf16.mxu1 %v22298_v16 }
 0xa3a   :  { %16329 = vmatpush1.bf16.msra.mxu1 %v22296_v41 }
 0xa3b   :  { %16339 = vmatprep.subr.bf16.mxu1 %v22301_v19 }
 0xa3d   :  { %16331 = vmatmul.mubr.bf16.vlgmr.msra.gmra.mrb[16].mxu1 %v24517_v57  ;;  %v22314_v57 = vld [vmem:[#allocation12 + $0x1300] ss:$24 sps:$4 sm:$0xff]  }
 0xa3e   :  { %16340 = vmatpush1.bf16.msra.mxu1 %v22299_v1  ;;  %16371 = vmatprep.mubr.bf16.mxu1 %v24590_v47  ;;  %v22317_v47 = vld [vmem:[#allocation12 + $0x1330] ss:$24 sps:$4 sm:$0xff]   ;;  %v22362_v1 = vld [vmem:[#allocation12 + $0x1600] ss:$24 sps:$4 sm:$0xff]  }
 0xa3f   :  { %16341 = vmatprep.subr.bf16.mxu1 %v22304_v3 }
 0xa42   :  { %16342 = vmatpush1.bf16.msra.mxu1 %v22302_v25  ;;  %v22367_v25 = vld [vmem:[#allocation12 + $0x1634] ss:$24 sps:$4 sm:$0xff]  }
 0xa43   :  { %16343 = vmatprep.subr.bf16.mxu1 %v22307_v34 }
 0xa46   :  { %16344 = vmatpush1.bf16.msra.mxu1 %v22305_v55  ;;  %v22365_v55 = vld [vmem:[#allocation12 + $0x1630] ss:$24 sps:$4 sm:$0xff]  }
 0xa47   :  { %16345 = vmatprep.subr.bf16.mxu1 %v22310_v42  ;;  %v22370_v42 = vld [vmem:[#allocation12 + $0x1664] ss:$24 sps:$4 sm:$0xff]  }
 0xa4a   :  { %16346 = vmatpush1.bf16.msra.mxu1 %v22308_v61  ;;  %v22368_v61 = vld [vmem:[#allocation12 + $0x1660] ss:$24 sps:$4 sm:$0xff]  }
 0xa4b   :  { %16347 = vmatprep.subr.bf16.mxu1 %v22313_v58  ;;  %v22373_v58 = vld [vmem:[#allocation12 + $0x1694] ss:$24 sps:$4 sm:$0xff]  }
 0xa4e   :  { %16348 = vmatpush1.bf16.msra.mxu1 %v22311_v35  ;;  %v22371_v35 = vld [vmem:[#allocation12 + $0x1690] ss:$24 sps:$4 sm:$0xff]  }
 0xa4f   :  { %16349 = vmatprep.subr.bf16.mxu1 %v22316_v18  ;;  %v22376_v18 = vld [vmem:[#allocation12 + $0x16c4] ss:$24 sps:$4 sm:$0xff]  }
 0xa52   :  { %16350 = vmatpush1.bf16.msra.mxu1 %v22314_v57  ;;  %v22374_v57 = vld [vmem:[#allocation12 + $0x16c0] ss:$24 sps:$4 sm:$0xff]  }
 0xa53   :  { %16351 = vmatprep.subr.bf16.mxu1 %v22319_v8  ;;  %v22379_v8 = vld [vmem:[#allocation12 + $0x16f4] ss:$24 sps:$4 sm:$0xff]  }
 0xa56   :  { %16352 = vmatpush1.bf16.msra.mxu1 %v22317_v47  ;;  %v22377_v47 = vld [vmem:[#allocation12 + $0x16f0] ss:$24 sps:$4 sm:$0xff]  }
 0xa57   :  { %16353 = vmatprep.subr.bf16.mxu1 %v22322_v13  ;;  %v22382_v13 = vld [vmem:[#allocation12 + $0x1724] ss:$24 sps:$4 sm:$0xff]  }
 0xa5a   :  { %16354 = vmatpush1.bf16.msra.mxu1 %v22320_v36  ;;  %v22380_v36 = vld [vmem:[#allocation12 + $0x1720] ss:$24 sps:$4 sm:$0xff]  }
 0xa5b   :  { %16355 = vmatprep.subr.bf16.mxu1 %v22325_v45  ;;  %v22385_v45 = vld [vmem:[#allocation12 + $0x1754] ss:$24 sps:$4 sm:$0xff]  }
 0xa5e   :  { %16356 = vmatpush1.bf16.msra.mxu1 %v22323_v22  ;;  %v22383_v22 = vld [vmem:[#allocation12 + $0x1750] ss:$24 sps:$4 sm:$0xff]  }
 0xa5f   :  { %16357 = vmatprep.subr.bf16.mxu1 %v22328_v52  ;;  %v22388_v52 = vld [vmem:[#allocation12 + $0x1784] ss:$24 sps:$4 sm:$0xff]  }
 0xa62   :  { %16358 = vmatpush1.bf16.msra.mxu1 %v22326_v51  ;;  %v22386_v51 = vld [vmem:[#allocation12 + $0x1780] ss:$24 sps:$4 sm:$0xff]  }
 0xa63   :  { %16359 = vmatprep.subr.bf16.mxu1 %v22331_v56  ;;  %v22391_v56 = vld [vmem:[#allocation12 + $0x17b4] ss:$24 sps:$4 sm:$0xff]  }
 0xa66   :  { %16360 = vmatpush1.bf16.msra.mxu1 %v22329_v26  ;;  %v22389_v26 = vld [vmem:[#allocation12 + $0x17b0] ss:$24 sps:$4 sm:$0xff]  }
 0xa67   :  { %16361 = vmatprep.subr.bf16.mxu1 %v22334_v14  ;;  %v22394_v14 = vld [vmem:[#allocation12 + $0x17e4] ss:$24 sps:$4 sm:$0xff]  }
 0xa6a   :  { %16362 = vmatpush1.bf16.msra.mxu1 %v22332_v10  ;;  %v22392_v10 = vld [vmem:[#allocation12 + $0x17e0] ss:$24 sps:$4 sm:$0xff]  }
 0xa6b   :  { %16363 = vmatprep.subr.bf16.mxu1 %v22337_v33  ;;  %v22397_v33 = vld [vmem:[#allocation12 + $0x1814] ss:$24 sps:$4 sm:$0xff]  }
 0xa6c   :  { %v19227_v21 = vpop.f32.mrb[32].mxu0 }
 0xa6d   :  { %v19228_v39 = vpop.f32.mrb[33].mxu0 }
 0xa6e   :  { %v19229_v23 = vadd.f32 %v19228_v39, %v19227_v21  ;;  %16364 = vmatpush1.bf16.msra.mxu1 %v22335_v20  ;;  %v19230_v54 = vpop.f32.mrb[34].mxu0  ;;  %v22395_v20 = vld [vmem:[#allocation12 + $0x1810] ss:$24 sps:$4 sm:$0xff]   ;;  %v22398_v21 = vld [vmem:[#allocation12 + $0x1840] ss:$24 sps:$4 sm:$0xff]  }
 0xa6f   :  { %v19231_v29 = vpop.f32.mrb[35].mxu0  ;;  %16365 = vmatprep.subr.bf16.mxu1 %v22340_v59  ;;  %v22400_v59 = vld [vmem:[#allocation12 + $0x1844] ss:$24 sps:$4 sm:$0xff]   ;;  %v22403_v39 = vld [vmem:[#allocation12 + $0x1874] ss:$24 sps:$4 sm:$0xff]  }
 0xa70   :  { %v17023_v41 = vadd.f32 %v19229_v23, %v19162_v63  ;;  %v22401_v23 = vld [vmem:[#allocation12 + $0x1870] ss:$24 sps:$4 sm:$0xff]   ;;  %v22406_v54 = vld [vmem:[#allocation12 + $0x18a4] ss:$24 sps:$4 sm:$0xff]   ;;  %v22409_v29 = vld [vmem:[#allocation12 + $0x18d4] ss:$24 sps:$4 sm:$0xff]  }
 0xa71   :  { %v22431_v63 = vld [vmem:[#allocation12 + $0x1a50] ss:$24 sps:$4 sm:$0xff]  }
 0xa72   :  { %16366 = vmatpush1.bf16.msra.mxu1 %v22338_v49  ;;  %v22404_v49 = vld [vmem:[#allocation12 + $0x18a0] ss:$24 sps:$4 sm:$0xff]  }
 0xa73   :  { %16367 = vmatprep.subr.bf16.mxu1 %v22343_v43  ;;  %v22407_v43 = vld [vmem:[#allocation12 + $0x18d0] ss:$24 sps:$4 sm:$0xff]  }
 0xa76   :  { %16368 = vmatpush1.bf16.msra.mxu1 %v22341_v60  ;;  %v22412_v60 = vld [vmem:[#allocation12 + $0x1904] ss:$24 sps:$4 sm:$0xff]  }
 0xa77   :  { %16369 = vmatprep.subr.bf16.mxu1 %v22346_v62  ;;  %v22415_v62 = vld [vmem:[#allocation12 + $0x1934] ss:$24 sps:$4 sm:$0xff]  }
 0xa7a   :  { %16370 = vmatpush1.bf16.msra.mxu1 %v22344_v40  ;;  %v22418_v40 = vld [vmem:[#allocation12 + $0x1964] ss:$24 sps:$4 sm:$0xff]  }
 0xa7b   :  { %16380 = vmatprep.subr.bf16.mxu1 %v22349_v15  ;;  %v22416_v15 = vld [vmem:[#allocation12 + $0x1960] ss:$24 sps:$4 sm:$0xff]  }
 0xa7d   :  { %16372 = vmatmul.mubr.bf16.vlgmr.msra.gmra.mrb[16].mxu1 %v24594_v12 }
 0xa7e   :  { %16381 = vmatpush1.bf16.msra.mxu1 %v22347_v24  ;;  %16412 = vmatprep.mubr.bf16.mxu1 %v24598_v32  ;;  %v22421_v24 = vld [vmem:[#allocation12 + $0x1994] ss:$24 sps:$4 sm:$0xff]  }
 0xa7f   :  { %16382 = vmatprep.subr.bf16.mxu1 %v22352_v28  ;;  %v22419_v28 = vld [vmem:[#allocation12 + $0x1990] ss:$24 sps:$4 sm:$0xff]  }
 0xa82   :  { %16383 = vmatpush1.bf16.msra.mxu1 %v22350_v44  ;;  %v22424_v44 = vld [vmem:[#allocation12 + $0x19c4] ss:$24 sps:$4 sm:$0xff]  }
 0xa83   :  { %16384 = vmatprep.subr.bf16.mxu1 %v22355_v38  ;;  %v22422_v38 = vld [vmem:[#allocation12 + $0x19c0] ss:$24 sps:$4 sm:$0xff]  }
 0xa86   :  { %16385 = vmatpush1.bf16.msra.mxu1 %v22353_v27  ;;  %v22427_v27 = vld [vmem:[#allocation12 + $0x19f4] ss:$24 sps:$4 sm:$0xff]  }
 0xa87   :  { %16386 = vmatprep.subr.bf16.mxu1 %v22358_v5  ;;  %v22425_v5 = vld [vmem:[#allocation12 + $0x19f0] ss:$24 sps:$4 sm:$0xff]  }
 0xa8a   :  { %16387 = vmatpush1.bf16.msra.mxu1 %v22356_v6  ;;  %v22430_v6 = vld [vmem:[#allocation12 + $0x1a24] ss:$24 sps:$4 sm:$0xff]  }
 0xa8b   :  { %16388 = vmatprep.subr.bf16.mxu1 %v22361_v48  ;;  %v22428_v48 = vld [vmem:[#allocation12 + $0x1a20] ss:$24 sps:$4 sm:$0xff]  }
 0xa8c   :  { %v19249_v12 = vpop.f32.mrb[36].mxu0 }
 0xa8d   :  { %v19250_v16 = vpop.f32.mrb[37].mxu0 }
 0xa8e   :  { %v19251_v32 = vadd.f32 %v19250_v16, %v19249_v12  ;;  %v19252_v19 = vpop.f32.mrb[38].mxu0  ;;  %16389 = vmatpush1.bf16.msra.mxu1 %v22359_v9  ;;  %v22433_v9 = vld [vmem:[#allocation12 + $0x1a54] ss:$24 sps:$4 sm:$0xff]   ;;  %v22434_v12 = vld [vmem:[#allocation12 + $0x1a80] ss:$24 sps:$4 sm:$0xff]  }
 0xa8f   :  { %v19253_v3 = vpop.f32.mrb[39].mxu0  ;;  %16390 = vmatprep.subr.bf16.mxu1 %v22364_v46  ;;  %v22436_v46 = vld [vmem:[#allocation12 + $0x1a84] ss:$24 sps:$4 sm:$0xff]   ;;  %v22439_v16 = vld [vmem:[#allocation12 + $0x1ab4] ss:$24 sps:$4 sm:$0xff]  }
 0xa90   :  { %v24708_v34 = vadd.f32 %v19251_v32, %v17023_v41  ;;  %v22437_v41 = vld [vmem:[#allocation12 + $0x1ab0] ss:$24 sps:$4 sm:$0xff]   ;;  %v22442_v32 = vld [vmem:[#allocation12 + $0x1ae4] ss:$24 sps:$4 sm:$0xff]   ;;  %v22440_v19 = vld [vmem:[#allocation12 + $0x1ae0] ss:$24 sps:$4 sm:$0xff]  }
 0xa91   :  { %v22443_v3 = vld [vmem:[#allocation12 + $0x1b10] ss:$24 sps:$4 sm:$0xff]  }
 0xa92   :  { %16391 = vmatpush1.bf16.msra.mxu1 %v22362_v1  ;;  %v22445_v1 = vld [vmem:[#allocation12 + $0x1b14] ss:$24 sps:$4 sm:$0xff]  }
 0xa93   :  { %16392 = vmatprep.subr.bf16.mxu1 %v22367_v25  ;;  %v22448_v25 = vld [vmem:[#allocation12 + $0x1b44] ss:$24 sps:$4 sm:$0xff]  }
 0xa96   :  { %16393 = vmatpush1.bf16.msra.mxu1 %v22365_v55  ;;  %v22446_v55 = vld [vmem:[#allocation12 + $0x1b40] ss:$24 sps:$4 sm:$0xff]  }
 0xa97   :  { %16394 = vmatprep.subr.bf16.mxu1 %v22370_v42  ;;  %v22451_v42 = vld [vmem:[#allocation12 + $0x1b74] ss:$24 sps:$4 sm:$0xff]  }
 0xa9a   :  { %16395 = vmatpush1.bf16.msra.mxu1 %v22368_v61  ;;  %v22449_v61 = vld [vmem:[#allocation12 + $0x1b70] ss:$24 sps:$4 sm:$0xff]  }
 0xa9b   :  { %16396 = vmatprep.subr.bf16.mxu1 %v22373_v58  ;;  %v22454_v58 = vld [vmem:[#allocation12 + $0x1ba4] ss:$24 sps:$4 sm:$0xff]  }
 0xa9e   :  { %16397 = vmatpush1.bf16.msra.mxu1 %v22371_v35  ;;  %v22452_v35 = vld [vmem:[#allocation12 + $0x1ba0] ss:$24 sps:$4 sm:$0xff]  }
 0xa9f   :  { %16398 = vmatprep.subr.bf16.mxu1 %v22376_v18  ;;  %v22457_v18 = vld [vmem:[#allocation12 + $0x1bd4] ss:$24 sps:$4 sm:$0xff]  }
 0xaa2   :  { %16399 = vmatpush1.bf16.msra.mxu1 %v22374_v57  ;;  %v22455_v57 = vld [vmem:[#allocation12 + $0x1bd0] ss:$24 sps:$4 sm:$0xff]  }
 0xaa3   :  { %16400 = vmatprep.subr.bf16.mxu1 %v22379_v8  ;;  %v22460_v8 = vld [vmem:[#allocation12 + $0x1c04] ss:$24 sps:$4 sm:$0xff]  }
 0xaa6   :  { %16401 = vmatpush1.bf16.msra.mxu1 %v22377_v47  ;;  %v22463_v47 = vld [vmem:[#allocation12 + $0x1c34] ss:$24 sps:$4 sm:$0xff]  }
 0xaa7   :  { %16402 = vmatprep.subr.bf16.mxu1 %v22382_v13  ;;  %v22466_v13 = vld [vmem:[#allocation12 + $0x1c64] ss:$24 sps:$4 sm:$0xff]  }
 0xaaa   :  { %16403 = vmatpush1.bf16.msra.mxu1 %v22380_v36  ;;  %v22464_v36 = vld [vmem:[#allocation12 + $0x1c60] ss:$24 sps:$4 sm:$0xff]  }
 0xaab   :  { %16404 = vmatprep.subr.bf16.mxu1 %v22385_v45  ;;  %v22469_v45 = vld [vmem:[#allocation12 + $0x1c94] ss:$24 sps:$4 sm:$0xff]  }
 0xaae   :  { %16405 = vmatpush1.bf16.msra.mxu1 %v22383_v22  ;;  %v22467_v22 = vld [vmem:[#allocation12 + $0x1c90] ss:$24 sps:$4 sm:$0xff]  }
 0xaaf   :  { %16406 = vmatprep.subr.bf16.mxu1 %v22388_v52  ;;  %v22472_v52 = vld [vmem:[#allocation12 + $0x1cc4] ss:$24 sps:$4 sm:$0xff]  }
 0xab2   :  { %16407 = vmatpush1.bf16.msra.mxu1 %v22386_v51  ;;  %v22470_v51 = vld [vmem:[#allocation12 + $0x1cc0] ss:$24 sps:$4 sm:$0xff]  }
 0xab3   :  { %16408 = vmatprep.subr.bf16.mxu1 %v22391_v56  ;;  %v22475_v56 = vld [vmem:[#allocation12 + $0x1cf4] ss:$24 sps:$4 sm:$0xff]  }
 0xab6   :  { %16409 = vmatpush1.bf16.msra.mxu1 %v22389_v26  ;;  %v22473_v26 = vld [vmem:[#allocation12 + $0x1cf0] ss:$24 sps:$4 sm:$0xff]  }
 0xab7   :  { %16410 = vmatprep.subr.bf16.mxu1 %v22394_v14  ;;  %v22478_v14 = vld [vmem:[#allocation12 + $0x1d24] ss:$24 sps:$4 sm:$0xff]  }
 0xaba   :  { %16411 = vmatpush1.bf16.msra.mxu1 %v22392_v10  ;;  %v22476_v10 = vld [vmem:[#allocation12 + $0x1d20] ss:$24 sps:$4 sm:$0xff]  }
 0xabb   :  { %16421 = vmatprep.subr.bf16.mxu1 %v22397_v33  ;;  %v22481_v33 = vld [vmem:[#allocation12 + $0x1d54] ss:$24 sps:$4 sm:$0xff]  }
 0xabd   :  { %16413 = vmatmul.mubr.bf16.vlgmr.msra.gmra.mrb[16].mxu1 %v24614_v2  ;;  %v22410_v2 = vld [vmem:[#allocation12 + $0x1900] ss:$24 sps:$4 sm:$0xff]  }
 0xabe   :  { %16422 = vmatpush1.bf16.msra.mxu1 %v22395_v20  ;;  %16453 = vmatprep.mubr.bf16.mxu1 %v24616_v30  ;;  %v22413_v30 = vld [vmem:[#allocation12 + $0x1930] ss:$24 sps:$4 sm:$0xff]  }
 0xabf   :  { %16423 = vmatprep.subr.bf16.mxu1 %v22400_v59  ;;  %v22479_v20 = vld [vmem:[#allocation12 + $0x1d50] ss:$24 sps:$4 sm:$0xff]   ;;  %v22484_v59 = vld [vmem:[#allocation12 + $0x1d84] ss:$24 sps:$4 sm:$0xff]  }
 0xac2   :  { %16424 = vmatpush1.bf16.msra.mxu1 %v22398_v21  ;;  %v22482_v21 = vld [vmem:[#allocation12 + $0x1d80] ss:$24 sps:$4 sm:$0xff]  }
 0xac3   :  { %16425 = vmatprep.subr.bf16.mxu1 %v22403_v39  ;;  %v22487_v39 = vld [vmem:[#allocation12 + $0x1db4] ss:$24 sps:$4 sm:$0xff]  }
 0xac6   :  { %16426 = vmatpush1.bf16.msra.mxu1 %v22401_v23  ;;  %v22485_v23 = vld [vmem:[#allocation12 + $0x1db0] ss:$24 sps:$4 sm:$0xff]  }
 0xac7   :  { %16427 = vmatprep.subr.bf16.mxu1 %v22406_v54  ;;  %v22490_v54 = vld [vmem:[#allocation12 + $0x1de4] ss:$24 sps:$4 sm:$0xff]  }
 0xaca   :  { %16428 = vmatpush1.bf16.msra.mxu1 %v22404_v49  ;;  %v22488_v49 = vld [vmem:[#allocation12 + $0x1de0] ss:$24 sps:$4 sm:$0xff]  }
 0xacb   :  { %16429 = vmatprep.subr.bf16.mxu1 %v22409_v29  ;;  %v22493_v29 = vld [vmem:[#allocation12 + $0x1e14] ss:$24 sps:$4 sm:$0xff]  }
 0xace   :  { %16430 = vmatpush1.bf16.msra.mxu1 %v22407_v43  ;;  %v22491_v43 = vld [vmem:[#allocation12 + $0x1e10] ss:$24 sps:$4 sm:$0xff]  }
 0xacf   :  { %16431 = vmatprep.subr.bf16.mxu1 %v22412_v60  ;;  %v22496_v60 = vld [vmem:[#allocation12 + $0x1e44] ss:$24 sps:$4 sm:$0xff]  }
 0xad2   :  { %16432 = vmatpush1.bf16.msra.mxu1 %v22410_v2  ;;  %v22587_v2 = vld [vmem:[#allocation15 + $0x140] sm:$0xff]  }
 0xad3   :  { %16433 = vmatprep.subr.bf16.mxu1 %v22415_v62  ;;  %v22588_v62 = vld [vmem:[#allocation15 + $0x100] sm:$0xff]   ;;  %19255 = vmatprep.subr.bf16.mxu0 %v22587_v2  ;;  %v22566_v2 = vld [vmem:[#allocation12 + $0x22c0] ss:$24 sps:$4 sm:$0xff]  }
 0xad4   :  { %19256 = vmatpush3.bf16.msra.mxu0 %v22588_v62  ;;  %v22571_v62 = vld [vmem:[#allocation12 + $0x22f4] ss:$24 sps:$4 sm:$0xff]  }
 0xad6   :  { %16434 = vmatpush1.bf16.msra.mxu1 %v22413_v30  ;;  %v22589_v30 = vld [vmem:[#allocation15 + $0x148] sm:$0xff]  }
 0xad7   :  { %16435 = vmatprep.subr.bf16.mxu1 %v22418_v40  ;;  %v22494_v40 = vld [vmem:[#allocation12 + $0x1e40] ss:$24 sps:$4 sm:$0xff]   ;;  %19257 = vmatprep.subr.bf16.mxu0 %v22589_v30  ;;  %v22569_v30 = vld [vmem:[#allocation12 + $0x22f0] ss:$24 sps:$4 sm:$0xff]  }
 0xada   :  { %16436 = vmatpush1.bf16.msra.mxu1 %v22416_v15  ;;  %v22499_v15 = vld [vmem:[#allocation12 + $0x1e74] ss:$24 sps:$4 sm:$0xff]  }
 0xadb   :  { %16437 = vmatprep.subr.bf16.mxu1 %v22421_v24  ;;  %v22590_v24 = vld [vmem:[#allocation15 + $0x108] sm:$0xff]  }
 0xadc   :  { %19258 = vmatpush3.bf16.msra.mxu0 %v22590_v24  ;;  %v22577_v24 = vld [vmem:[#allocation12 + $0x2354] ss:$24 sps:$4 sm:$0xff]  }
 0xade   :  { %16438 = vmatpush1.bf16.msra.mxu1 %v22419_v28  ;;  %v22591_v28 = vld [vmem:[#allocation15 + $0x150] sm:$0xff]  }
 0xadf   :  { %16439 = vmatprep.subr.bf16.mxu1 %v22424_v44  ;;  %v22497_v44 = vld [vmem:[#allocation12 + $0x1e70] ss:$24 sps:$4 sm:$0xff]   ;;  %19259 = vmatprep.subr.bf16.mxu0 %v22591_v28 }
 0xae0   :  { %v22575_v28 = vld [vmem:[#allocation12 + $0x2350] ss:$24 sps:$4 sm:$0xff]  }
 0xae2   :  { %16440 = vmatpush1.bf16.msra.mxu1 %v22422_v38  ;;  %v22502_v38 = vld [vmem:[#allocation12 + $0x1ea4] ss:$24 sps:$4 sm:$0xff]  }
 0xae3   :  { %16441 = vmatprep.subr.bf16.mxu1 %v22427_v27  ;;  %v22593_v27 = vld [vmem:[#allocation15 + $0x158] sm:$0xff]  }
 0xae6   :  { %16442 = vmatpush1.bf16.msra.mxu1 %v22425_v5  ;;  %v22500_v5 = vld [vmem:[#allocation12 + $0x1ea0] ss:$24 sps:$4 sm:$0xff]  }
 0xae7   :  { %16443 = vmatprep.subr.bf16.mxu1 %v22430_v6  ;;  %v22594_v6 = vld [vmem:[#allocation15 + $0x118] sm:$0xff]  }
 0xaea   :  { %16444 = vmatpush1.bf16.msra.mxu1 %v22428_v48  ;;  %v22595_v48 = vld [vmem:[#allocation15 + $0x160] sm:$0xff]  }
 0xaeb   :  { %16445 = vmatprep.subr.bf16.mxu1 %v22433_v9  ;;  %v22503_v9 = vld [vmem:[#allocation12 + $0x1ed0] ss:$24 sps:$4 sm:$0xff]  }
 0xaee   :  { %16446 = vmatpush1.bf16.msra.mxu1 %v22431_v63  ;;  %v22508_v63 = vld [vmem:[#allocation12 + $0x1f04] ss:$24 sps:$4 sm:$0xff]  }
 0xaef   :  { %16447 = vmatprep.subr.bf16.mxu1 %v22436_v46  ;;  %v22596_v46 = vld [vmem:[#allocation15 + $0x120] sm:$0xff]  }
 0xaf2   :  { %16448 = vmatpush1.bf16.msra.mxu1 %v22434_v12  ;;  %v22597_v12 = vld [vmem:[#allocation15 + $0x168] sm:$0xff]  }
 0xaf3   :  { %16449 = vmatprep.subr.bf16.mxu1 %v22439_v16  ;;  %v22506_v16 = vld [vmem:[#allocation12 + $0x1f00] ss:$24 sps:$4 sm:$0xff]  }
 0xaf6   :  { %16450 = vmatpush1.bf16.msra.mxu1 %v22437_v41  ;;  %v22511_v41 = vld [vmem:[#allocation12 + $0x1f34] ss:$24 sps:$4 sm:$0xff]  }
 0xaf7   :  { %16451 = vmatprep.subr.bf16.mxu1 %v22442_v32  ;;  %v22598_v32 = vld [vmem:[#allocation15 + $0x128] sm:$0xff]  }
 0xafa   :  { %16452 = vmatpush1.bf16.msra.mxu1 %v22440_v19  ;;  %v22509_v19 = vld [vmem:[#allocation12 + $0x1f30] ss:$24 sps:$4 sm:$0xff]  }
 0xafb   :  { %16462 = vmatprep.subr.bf16.mxu1 %v22445_v1  ;;  %v22514_v1 = vld [vmem:[#allocation12 + $0x1f64] ss:$24 sps:$4 sm:$0xff]  }
 0xafd   :  { %16454 = vmatmul.mubr.bf16.vlgmr.msra.gmra.mrb[16].mxu1 %v24631_v37  ;;  %v22458_v37 = vld [vmem:[#allocation12 + $0x1c00] ss:$24 sps:$4 sm:$0xff]  }
 0xafe   :  { %16463 = vmatpush1.bf16.msra.mxu1 %v22443_v3  ;;  %16494 = vmatprep.mubr.bf16.mxu1 %v24634_v17  ;;  %v22461_v17 = vld [vmem:[#allocation12 + $0x1c30] ss:$24 sps:$4 sm:$0xff]   ;;  %v22512_v3 = vld [vmem:[#allocation12 + $0x1f60] ss:$24 sps:$4 sm:$0xff]  }
 0xaff   :  { %16464 = vmatprep.subr.bf16.mxu1 %v22448_v25  ;;  %v22517_v25 = vld [vmem:[#allocation12 + $0x1f94] ss:$24 sps:$4 sm:$0xff]  }
 0xb02   :  { %16465 = vmatpush1.bf16.msra.mxu1 %v22446_v55  ;;  %v22515_v55 = vld [vmem:[#allocation12 + $0x1f90] ss:$24 sps:$4 sm:$0xff]  }
 0xb03   :  { %16466 = vmatprep.subr.bf16.mxu1 %v22451_v42  ;;  %v22520_v42 = vld [vmem:[#allocation12 + $0x1fc4] ss:$24 sps:$4 sm:$0xff]  }
 0xb06   :  { %16467 = vmatpush1.bf16.msra.mxu1 %v22449_v61  ;;  %v22518_v61 = vld [vmem:[#allocation12 + $0x1fc0] ss:$24 sps:$4 sm:$0xff]  }
 0xb07   :  { %16468 = vmatprep.subr.bf16.mxu1 %v22454_v58  ;;  %v22523_v58 = vld [vmem:[#allocation12 + $0x1ff4] ss:$24 sps:$4 sm:$0xff]  }
 0xb0a   :  { %16469 = vmatpush1.bf16.msra.mxu1 %v22452_v35  ;;  %v22521_v35 = vld [vmem:[#allocation12 + $0x1ff0] ss:$24 sps:$4 sm:$0xff]  }
 0xb0b   :  { %16470 = vmatprep.subr.bf16.mxu1 %v22457_v18  ;;  %v22526_v18 = vld [vmem:[#allocation12 + $0x2024] ss:$24 sps:$4 sm:$0xff]  }
 0xb0e   :  { %16471 = vmatpush1.bf16.msra.mxu1 %v22455_v57  ;;  %v22524_v57 = vld [vmem:[#allocation12 + $0x2020] ss:$24 sps:$4 sm:$0xff]  }
 0xb0f   :  { %16472 = vmatprep.subr.bf16.mxu1 %v22460_v8  ;;  %v22529_v8 = vld [vmem:[#allocation12 + $0x2054] ss:$24 sps:$4 sm:$0xff]  }
 0xb12   :  { %16473 = vmatpush1.bf16.msra.mxu1 %v22458_v37  ;;  %v22527_v37 = vld [vmem:[#allocation12 + $0x2050] ss:$24 sps:$4 sm:$0xff]  }
 0xb13   :  { %16474 = vmatprep.subr.bf16.mxu1 %v22463_v47  ;;  %v22532_v47 = vld [vmem:[#allocation12 + $0x2084] ss:$24 sps:$4 sm:$0xff]  }
 0xb16   :  { %16475 = vmatpush1.bf16.msra.mxu1 %v22461_v17  ;;  %v22530_v17 = vld [vmem:[#allocation12 + $0x2080] ss:$24 sps:$4 sm:$0xff]  }
 0xb17   :  { %16476 = vmatprep.subr.bf16.mxu1 %v22466_v13  ;;  %v22535_v13 = vld [vmem:[#allocation12 + $0x20b4] ss:$24 sps:$4 sm:$0xff]  }
 0xb1a   :  { %16477 = vmatpush1.bf16.msra.mxu1 %v22464_v36  ;;  %v22533_v36 = vld [vmem:[#allocation12 + $0x20b0] ss:$24 sps:$4 sm:$0xff]  }
 0xb1b   :  { %16478 = vmatprep.subr.bf16.mxu1 %v22469_v45  ;;  %v22538_v45 = vld [vmem:[#allocation12 + $0x20e4] ss:$24 sps:$4 sm:$0xff]  }
 0xb1e   :  { %16479 = vmatpush1.bf16.msra.mxu1 %v22467_v22  ;;  %v22536_v22 = vld [vmem:[#allocation12 + $0x20e0] ss:$24 sps:$4 sm:$0xff]  }
 0xb1f   :  { %16480 = vmatprep.subr.bf16.mxu1 %v22472_v52  ;;  %v22541_v52 = vld [vmem:[#allocation12 + $0x2114] ss:$24 sps:$4 sm:$0xff]  }
 0xb22   :  { %16481 = vmatpush1.bf16.msra.mxu1 %v22470_v51  ;;  %v22539_v51 = vld [vmem:[#allocation12 + $0x2110] ss:$24 sps:$4 sm:$0xff]  }
 0xb23   :  { %16482 = vmatprep.subr.bf16.mxu1 %v22475_v56  ;;  %v22544_v56 = vld [vmem:[#allocation12 + $0x2144] ss:$24 sps:$4 sm:$0xff]  }
 0xb26   :  { %16483 = vmatpush1.bf16.msra.mxu1 %v22473_v26  ;;  %v22542_v26 = vld [vmem:[#allocation12 + $0x2140] ss:$24 sps:$4 sm:$0xff]  }
 0xb27   :  { %16484 = vmatprep.subr.bf16.mxu1 %v22478_v14  ;;  %v22547_v14 = vld [vmem:[#allocation12 + $0x2174] ss:$24 sps:$4 sm:$0xff]  }
 0xb2a   :  { %16485 = vmatpush1.bf16.msra.mxu1 %v22476_v10  ;;  %v22545_v10 = vld [vmem:[#allocation12 + $0x2170] ss:$24 sps:$4 sm:$0xff]  }
 0xb2b   :  { %16486 = vmatprep.subr.bf16.mxu1 %v22481_v33  ;;  %v22550_v33 = vld [vmem:[#allocation12 + $0x21a4] ss:$24 sps:$4 sm:$0xff]  }
 0xb2e   :  { %16487 = vmatpush1.bf16.msra.mxu1 %v22479_v20  ;;  %v22548_v20 = vld [vmem:[#allocation12 + $0x21a0] ss:$24 sps:$4 sm:$0xff]  }
 0xb2f   :  { %16488 = vmatprep.subr.bf16.mxu1 %v22484_v59  ;;  %v22553_v59 = vld [vmem:[#allocation12 + $0x21d4] ss:$24 sps:$4 sm:$0xff]  }
 0xb32   :  { %16489 = vmatpush1.bf16.msra.mxu1 %v22482_v21  ;;  %v22551_v21 = vld [vmem:[#allocation12 + $0x21d0] ss:$24 sps:$4 sm:$0xff]  }
 0xb33   :  { %16490 = vmatprep.subr.bf16.mxu1 %v22487_v39  ;;  %v22556_v39 = vld [vmem:[#allocation12 + $0x2204] ss:$24 sps:$4 sm:$0xff]  }
 0xb36   :  { %16491 = vmatpush1.bf16.msra.mxu1 %v22485_v23  ;;  %v22559_v23 = vld [vmem:[#allocation12 + $0x2234] ss:$24 sps:$4 sm:$0xff]  }
 0xb37   :  { %16492 = vmatprep.subr.bf16.mxu1 %v22490_v54  ;;  %v22562_v54 = vld [vmem:[#allocation12 + $0x2264] ss:$24 sps:$4 sm:$0xff]  }
 0xb3a   :  { %16493 = vmatpush1.bf16.msra.mxu1 %v22488_v49  ;;  %v22560_v49 = vld [vmem:[#allocation12 + $0x2260] ss:$24 sps:$4 sm:$0xff]  }
 0xb3b   :  { %16503 = vmatprep.subr.bf16.mxu1 %v22493_v29  ;;  %v22565_v29 = vld [vmem:[#allocation12 + $0x2294] ss:$24 sps:$4 sm:$0xff]  }
 0xb3d   :  { %16495 = vmatmul.mubr.bf16.vlgmr.msra.gmra.mrb[16].mxu1 %v24649_v31  ;;  %v22592_v31 = vld [vmem:[#allocation15 + $0x110] sm:$0xff]  }
 0xb3e   :  { %16504 = vmatpush1.bf16.msra.mxu1 %v22491_v43  ;;  %16535 = vmatprep.mubr.bf16.mxu1 %v24652_v11  ;;  %v22505_v11 = vld [vmem:[#allocation12 + $0x1ed4] ss:$24 sps:$4 sm:$0xff]   ;;  %v22563_v43 = vld [vmem:[#allocation12 + $0x2290] ss:$24 sps:$4 sm:$0xff]  }
 0xb3f   :  { %16505 = vmatprep.subr.bf16.mxu1 %v22496_v60  ;;  %19260 = vmatpush3.bf16.msra.mxu0 %v22592_v31  ;;  %v22568_v60 = vld [vmem:[#allocation12 + $0x22c4] ss:$24 sps:$4 sm:$0xff]   ;;  %v22583_v31 = vld [vmem:[#allocation12 + $0x23b4] ss:$24 sps:$4 sm:$0xff]  }
 0xb40   :  { %19261 = vmatprep.subr.bf16.mxu0 %v22593_v27  ;;  %v22581_v27 = vld [vmem:[#allocation12 + $0x23b0] ss:$24 sps:$4 sm:$0xff]  }
 0xb42   :  { %16506 = vmatpush1.bf16.msra.mxu1 %v22494_v40  ;;  %v22574_v40 = vld [vmem:[#allocation12 + $0x2324] ss:$24 sps:$4 sm:$0xff]  }
 0xb43   :  { %16507 = vmatprep.subr.bf16.mxu1 %v22499_v15  ;;  %19262 = vmatpush3.bf16.msra.mxu0 %v22594_v6  ;;  %v22572_v15 = vld [vmem:[#allocation12 + $0x2320] ss:$24 sps:$4 sm:$0xff]  }
 0xb44   :  { %19263 = vmatprep.subr.bf16.mxu0 %v22595_v48  ;;  %v22599_v6 = vld [vmem:[#allocation15 + $0x170] sm:$0xff]  }
 0xb45   :  { %v22600_v48 = vld [vmem:[#allocation15 + $0x130] sm:$0xff]  }
 0xb46   :  { %16508 = vmatpush1.bf16.msra.mxu1 %v22497_v44  ;;  %v22580_v44 = vld [vmem:[#allocation12 + $0x2384] ss:$24 sps:$4 sm:$0xff]  }
 0xb47   :  { %16509 = vmatprep.subr.bf16.mxu1 %v22502_v38  ;;  %19264 = vmatpush3.bf16.msra.mxu0 %v22596_v46  ;;  %v22578_v38 = vld [vmem:[#allocation12 + $0x2380] ss:$24 sps:$4 sm:$0xff]  }
 0xb48   :  { %19265 = vmatprep.subr.bf16.mxu0 %v22597_v12  ;;  %v22662_v46 = vld [vmem:[#allocation14] sm:$0x3f] }
 0xb49   :  { %v9338_v12 = vrot.slane %v22662_v46, %v24216_v50 }
 0xb4a   :  { %16510 = vmatpush1.bf16.msra.mxu1 %v22500_v5  ;;  %v22586_v5 = vld [vmem:[#allocation12 + $0x23e4] ss:$24 sps:$4 sm:$0xff]  }
 0xb4b   :  { %16511 = vmatprep.subr.bf16.mxu1 %v22505_v11  ;;  %19266 = vmatpush3.bf16.msra.mxu0 %v22598_v32  ;;  %v22584_v11 = vld [vmem:[#allocation12 + $0x23e0] ss:$24 sps:$4 sm:$0xff]  }
 0xb4c   :  { %19267 = vmatprep.subr.bf16.mxu0 %v22599_v6 }
 0xb4e   :  { %16512 = vmatpush1.bf16.msra.mxu1 %v22503_v9  ;;  %v22601_v9 = vld [vmem:[#allocation15 + $0x178] sm:$0xff]  }
 0xb4f   :  { %16513 = vmatprep.subr.bf16.mxu1 %v22508_v63  ;;  %19268 = vmatpush3.bf16.msra.mxu0 %v22600_v48  ;;  %v22602_v63 = vld [vmem:[#allocation15 + $0x138] sm:$0xff]  }
 0xb50   :  { %19269 = vmatprep.subr.bf16.mxu0 %v22601_v9 }
 0xb52   :  { %16514 = vmatpush1.bf16.msra.mxu1 %v22506_v16  ;;  %v9342_v16 = vrot.slane %v22662_v46, %v24219_v7 }
 0xb53   :  { %16515 = vmatprep.subr.bf16.mxu1 %v22511_v41  ;;  %19270 = vmatpush3.bf16.msra.mxu0 %v22602_v63 }
 0xb56   :  { %16516 = vmatpush1.bf16.msra.mxu1 %v22509_v19 }
 0xb57   :  { %16517 = vmatprep.subr.bf16.mxu1 %v22514_v1 }
 0xb5a   :  { %16518 = vmatpush1.bf16.msra.mxu1 %v22512_v3 }
 0xb5b   :  { %16519 = vmatprep.subr.bf16.mxu1 %v22517_v25 }
 0xb5e   :  { %16520 = vmatpush1.bf16.msra.mxu1 %v22515_v55 }
 0xb5f   :  { %16521 = vmatprep.subr.bf16.mxu1 %v22520_v42 }
 0xb62   :  { %16522 = vmatpush1.bf16.msra.mxu1 %v22518_v61 }
 0xb63   :  { %16523 = vmatprep.subr.bf16.mxu1 %v22523_v58 }
 0xb66   :  { %16524 = vmatpush1.bf16.msra.mxu1 %v22521_v35 }
 0xb67   :  { %16525 = vmatprep.subr.bf16.mxu1 %v22526_v18 }
 0xb6a   :  { %16526 = vmatpush1.bf16.msra.mxu1 %v22524_v57 }
 0xb6b   :  { %16527 = vmatprep.subr.bf16.mxu1 %v22529_v8 }
 0xb6e   :  { %16528 = vmatpush1.bf16.msra.mxu1 %v22527_v37 }
 0xb6f   :  { %16529 = vmatprep.subr.bf16.mxu1 %v22532_v47 }
 0xb72   :  { %16530 = vmatpush1.bf16.msra.mxu1 %v22530_v17 }
 0xb73   :  { %16531 = vmatprep.subr.bf16.mxu1 %v22535_v13 }
 0xb76   :  { %16532 = vmatpush1.bf16.msra.mxu1 %v22533_v36 }
 0xb77   :  { %16533 = vmatprep.subr.bf16.mxu1 %v22538_v45 }
 0xb7a   :  { %16534 = vmatpush1.bf16.msra.mxu1 %v22536_v22 }
 0xb7b   :  { %16544 = vmatprep.subr.bf16.mxu1 %v22541_v52 }
 0xb7d   :  { %16536 = vmatmul.mubr.bf16.vlgmr.msra.gmra.mrb[16].mxu1 %v24666_v4  ;;  %v22554_v4 = vld [vmem:[#allocation12 + $0x2200] ss:$24 sps:$4 sm:$0xff]  }
 0xb7e   :  { %16545 = vmatpush1.bf16.msra.mxu1 %v22539_v51  ;;  %16576 = vmatprep.mubr.bf16.mxu1 %v24669_v0  ;;  %v22557_v0 = vld [vmem:[#allocation12 + $0x2230] ss:$24 sps:$4 sm:$0xff]  }
 0xb7f   :  { %16546 = vmatprep.subr.bf16.mxu1 %v22544_v56 }
 0xb82   :  { %16547 = vmatpush1.bf16.msra.mxu1 %v22542_v26 }
 0xb83   :  { %16548 = vmatprep.subr.bf16.mxu1 %v22547_v14 }
 0xb86   :  { %16549 = vmatpush1.bf16.msra.mxu1 %v22545_v10 }
 0xb87   :  { %16550 = vmatprep.subr.bf16.mxu1 %v22550_v33 }
 0xb8a   :  { %16551 = vmatpush1.bf16.msra.mxu1 %v22548_v20 }
 0xb8b   :  { %16552 = vmatprep.subr.bf16.mxu1 %v22553_v59 }
 0xb8e   :  { %16553 = vmatpush1.bf16.msra.mxu1 %v22551_v21 }
 0xb8f   :  { %16554 = vmatprep.subr.bf16.mxu1 %v22556_v39 }
 0xb92   :  { %16555 = vmatpush1.bf16.msra.mxu1 %v22554_v4 }
 0xb93   :  { %16556 = vmatprep.subr.bf16.mxu1 %v22559_v23 }
 0xb96   :  { %16557 = vmatpush1.bf16.msra.mxu1 %v22557_v0 }
 0xb97   :  { %16558 = vmatprep.subr.bf16.mxu1 %v22562_v54 }
 0xb9a   :  { %16559 = vmatpush1.bf16.msra.mxu1 %v22560_v49 }
 0xb9b   :  { %16560 = vmatprep.subr.bf16.mxu1 %v22565_v29 }
 0xb9e   :  { %16561 = vmatpush1.bf16.msra.mxu1 %v22563_v43 }
 0xb9f   :  { %16562 = vmatprep.subr.bf16.mxu1 %v22568_v60 }
 0xba2   :  { %16563 = vmatpush1.bf16.msra.mxu1 %v22566_v2 }
 0xba3   :  { %16564 = vmatprep.subr.bf16.mxu1 %v22571_v62 }
 0xba6   :  { %16565 = vmatpush1.bf16.msra.mxu1 %v22569_v30 }
 0xba7   :  { %16566 = vmatprep.subr.bf16.mxu1 %v22574_v40 }
 0xbaa   :  { %16567 = vmatpush1.bf16.msra.mxu1 %v22572_v15 }
 0xbab   :  { %16568 = vmatprep.subr.bf16.mxu1 %v22577_v24 }
 0xbae   :  { %16569 = vmatpush1.bf16.msra.mxu1 %v22575_v28 }
 0xbaf   :  { %16570 = vmatprep.subr.bf16.mxu1 %v22580_v44 }
 0xbb2   :  { %16571 = vmatpush1.bf16.msra.mxu1 %v22578_v38 }
 0xbb3   :  { %16572 = vmatprep.subr.bf16.mxu1 %v22583_v31 }
 0xbb6   :  { %16573 = vmatpush1.bf16.msra.mxu1 %v22581_v27 }
 0xbb7   :  { %16574 = vmatprep.subr.bf16.mxu1 %v22586_v5 }
 0xbba   :  { %16575 = vmatpush1.bf16.msra.mxu1 %v22584_v11 }
 0xbbd   :  { %16577 = vmatmul.mubr.bf16.vlgmr.msra.gmra.mrb[16].mxu1 %v24676_v53 }
 0xc90   :  { %v16578_v41 = vpop.f32.mrb[16].mxu1 }
 0xc91   :  { %v19307_v32 = vadd.f32 %v16578_v41, %v9338_v12  ;;  %v16580_v19 = vpop.f32.mrb[17].mxu1 }
 0xc92   :  { %v19308_v1 = vadd.f32 %v16580_v19, %v9342_v16  ;;  %v16582_v3 = vpop.f32.mrb[18].mxu1 }
 0xc93   :  { %v16589_v25 = vmax.f32 %v19307_v32, 0.0  ;;  %v16583_v53 = vpop.f32.mrb[19].mxu1 }
 0xc94   :  { %v16590_v55 = vmax.f32 %v19308_v1, 0.0 }
 0xc95   :  { %v16595_v61 = vpack.c.bf16 %v16589_v25, %v16589_v25 }
 0xc96   :  { %v16596_v42 = vpack.c.bf16 %v16590_v55, %v16590_v55 }
 0xc98   :  { %17100 = vmatprep.mubr.bf16.mxu0 %v16596_v42 }
 0xc99   :  { %17101 = vmatmul.mubr.bf16.vlgmr.msra.gmra.mrb[40].mxu0 %v16595_v61 }
 0xd6c   :  { %v19271_v58 = vpop.f32.mrb[40].mxu0 }
 0xd6d   :  { %v19272_v35 = vpop.f32.mrb[41].mxu0 }
 0xd6e   :  { %v19273_v18 = vadd.f32 %v19272_v35, %v19271_v58  ;;  %v19274_v50 = vpop.f32.mrb[42].mxu0 }
 0xd6f   :  { %v19275_v57 = vpop.f32.mrb[43].mxu0 }
 0xd70   :  { %v17103_v7 = vadd.f32 %v19273_v18, %v24708_v34 }
 0xd72   :  { %17108 = vst [vmem:[#allocation18] sm:$0x3] %v17103_v7 }
 0xd73   :  { %22872 = shalt.err (!%p22869_p6)
}
 0xd74   :  { %s22873_s14 = scalar_lea.hbm %s24746_s12, 32 }
 0xd75   :  { %p22874_p7 = scmp.ne.s32.totalorder %s24746_s12, %s22873_s14  ;;  %p22877_p8 = scmp.lt.u32.totalorder %s22873_s14, %s24746_s12 }
 0xd77   :  { %p22879_p9 = pnand %p22877_p8, %p22874_p7 }
 0xd79   :  { %22882 = shalt.err (!%p22879_p9)
}
 0xd7a   :  { %17118 = dma.vmem_to_hbm [thread:$0]  %s17116_s25, 32, %s24746_s12, [#allocation5]  }
 0xd7b   :  { %22893 = dma.done.wait [#allocation5], 32  }
 0xd7c   :  { %22894 = vsyncadd [#allocation5], 4294967264 }
 0xd7d   :  { %17122 = vsyncpa [#allocation4], 1 }
 0xd7e   :  { %17123 = vsyncpa [#allocation7], 1 }
 0xd7f   :  { %17124 = vsyncpa [#allocation10], 1 }
 0xd80   :  { %17125 = vsyncpa [#allocation13], 1 }
 0xd81   :  { %17126 = vsyncpa [#allocation16], 1 }
 0xd82   :  { %17127 = vsyncpa [#allocation5], 1 }

</bundles_post_ra>
